<compile_context>
chip_gen: v6e
topology: v6e:2x2x1
jax: 0.10.0
libtpu: 0.0.40
codegen_flags: <defaults>
</compile_context>

<pallas_src>
import functools

import numpy as np
import jax
import jax.numpy as jnp
from jax.experimental import pallas as pl
from jax.experimental.pallas import tpu as pltpu


VMEM_LIMIT_BYTES = 48 * 1024 * 1024   # leaves headroom within v7x's 64 MiB VMEM


def _round_up(x, m):
    return (x + m - 1) // m * m


# ---------------------------------------------------------------------------
# Tiled matmul kernel:  out = act(A @ W + b)   (bf16 operands, f32 accumulate)
# ---------------------------------------------------------------------------
def _mm_kernel(a_ref, w_ref, b_ref, o_ref, acc_ref, *, act):
    @pl.when(pl.program_id(2) == 0)
    def _init():
        acc_ref[...] = jnp.zeros_like(acc_ref)

    acc_ref[...] += jnp.dot(a_ref[...], w_ref[...],
                            preferred_element_type=jnp.float32)

    @pl.when(pl.program_id(2) == pl.num_programs(2) - 1)
    def _epilogue():
        r = acc_ref[...] + b_ref[...]                  # (tm,tn) + (1,tn), f32
        if act == "relu":
            r = jnp.maximum(r, 0.0)
        o_ref[...] = r.astype(o_ref.dtype)


@functools.lru_cache(maxsize=None)
def _mm_call(Mp, Kp, Np, tm, tk, tn, act, out_dtype):
    return pl.pallas_call(
        functools.partial(_mm_kernel, act=act),
        out_shape=jax.ShapeDtypeStruct((Mp, Np), out_dtype),
        grid=(Mp // tm, Np // tn, Kp // tk),
        in_specs=[pl.BlockSpec((tm, tk), lambda i, j, k: (i, k)),
                  pl.BlockSpec((tk, tn), lambda i, j, k: (k, j)),
                  pl.BlockSpec((1, tn), lambda i, j, k: (0, j))],
        out_specs=pl.BlockSpec((tm, tn), lambda i, j, k: (i, j)),
        scratch_shapes=[pltpu.VMEM((tm, tn), jnp.float32)],
        compiler_params=pltpu.CompilerParams(
            dimension_semantics=("parallel", "parallel", "arbitrary"),
            vmem_limit_bytes=VMEM_LIMIT_BYTES),
    )


def _tiles(M, K, N):
    # 128-aligned tiles (friendly to v5e's 4x128 MXU; still fine on v6e/v7x).
    tm = min(128, _round_up(M, 8))
    tn = min(256, _round_up(N, 128))
    tk = min(512, _round_up(K, 128))
    return tm, tk, tn, _round_up(M, tm), _round_up(K, tk), _round_up(N, tn)


def pallas_matmul(a, w, b=None, act="none", out_dtype=jnp.bfloat16):
    """(M,K) @ (K,N) + b with optional fused ReLU; bf16 in, f32 accumulate."""
    M, K = a.shape
    K2, N = w.shape
    assert K == K2
    tm, tk, tn, Mp, Kp, Np = _tiles(M, K, N)
    a_p = jnp.pad(a.astype(jnp.bfloat16), ((0, Mp - M), (0, Kp - K)))
    w_p = jnp.pad(w.astype(jnp.bfloat16), ((0, Kp - K), (0, Np - N)))
    if b is None:
        b_p = jnp.zeros((1, Np), jnp.float32)
    else:
        b_p = jnp.pad(jnp.asarray(b, jnp.float32).reshape(1, N),
                      ((0, 0), (0, Np - N)))
    out_dtype = jax.dtypes.canonicalize_dtype(out_dtype)
    out = _mm_call(Mp, Kp, Np, tm, tk, tn, act, out_dtype)(a_p, w_p, b_p)
    return out[:M, :N]


# ---------------------------------------------------------------------------
# Fused SelfAttention + distillation residual:
#   out = add + (A @ Wf) * sigmoid(A @ Wg)       (A tiles read once)
# ---------------------------------------------------------------------------
def _sa_kernel(a_ref, wf_ref, wg_ref, add_ref, o_ref, accf_ref, accg_ref):
    @pl.when(pl.program_id(2) == 0)
    def _init():
        accf_ref[...] = jnp.zeros_like(accf_ref)
        accg_ref[...] = jnp.zeros_like(accg_ref)

    a = a_ref[...]
    accf_ref[...] += jnp.dot(a, wf_ref[...], preferred_element_type=jnp.float32)
    accg_ref[...] += jnp.dot(a, wg_ref[...], preferred_element_type=jnp.float32)

    @pl.when(pl.program_id(2) == pl.num_programs(2) - 1)
    def _epilogue():
        gated = accf_ref[...] * jax.nn.sigmoid(accg_ref[...])
        o_ref[...] = (add_ref[...].astype(jnp.float32) + gated).astype(o_ref.dtype)


@functools.lru_cache(maxsize=None)
def _sa_call(Mp, Kp, Np, tm, tk, tn, out_dtype):
    return pl.pallas_call(
        _sa_kernel,
        out_shape=jax.ShapeDtypeStruct((Mp, Np), out_dtype),
        grid=(Mp // tm, Np // tn, Kp // tk),
        in_specs=[pl.BlockSpec((tm, tk), lambda i, j, k: (i, k)),
                  pl.BlockSpec((tk, tn), lambda i, j, k: (k, j)),
                  pl.BlockSpec((tk, tn), lambda i, j, k: (k, j)),
                  pl.BlockSpec((tm, tn), lambda i, j, k: (i, j))],
        out_specs=pl.BlockSpec((tm, tn), lambda i, j, k: (i, j)),
        scratch_shapes=[pltpu.VMEM((tm, tn), jnp.float32),
                        pltpu.VMEM((tm, tn), jnp.float32)],
        compiler_params=pltpu.CompilerParams(
            dimension_semantics=("parallel", "parallel", "arbitrary"),
            vmem_limit_bytes=VMEM_LIMIT_BYTES),
    )


def pallas_sa_gated_add(a, wf, wg, add, out_dtype=jnp.bfloat16):
    M, K = a.shape
    N = wf.shape[1]
    tm, tk, tn, Mp, Kp, Np = _tiles(M, K, N)
    a_p = jnp.pad(a.astype(jnp.bfloat16), ((0, Mp - M), (0, Kp - K)))
    wf_p = jnp.pad(wf.astype(jnp.bfloat16), ((0, Kp - K), (0, Np - N)))
    wg_p = jnp.pad(wg.astype(jnp.bfloat16), ((0, Kp - K), (0, Np - N)))
    add_p = jnp.pad(add.astype(jnp.bfloat16), ((0, Mp - M), (0, Np - N)))
    out_dtype = jax.dtypes.canonicalize_dtype(out_dtype)
    out = _sa_call(Mp, Kp, Np, tm, tk, tn, out_dtype)(a_p, wf_p, wg_p, add_p)
    return out[:M, :N]


# ---------------------------------------------------------------------------
# Transpose-free bilinear resize: per-row (R @ x) kernels, C kept lane-dense.
# ---------------------------------------------------------------------------
def _rowmix_kernel(r_ref, x_ref, o_ref):
    y = jnp.dot(r_ref[...], x_ref[0].astype(jnp.float32),
                preferred_element_type=jnp.float32)
    o_ref[0] = y.astype(o_ref.dtype)


@functools.lru_cache(maxsize=None)
def _rowmix_call(G, S, D, So, out_dtype):
    return pl.pallas_call(
        _rowmix_kernel,
        out_shape=jax.ShapeDtypeStruct((G, So, D), out_dtype),
        grid=(G,),
        in_specs=[pl.BlockSpec((So, S), lambda g: (0, 0)),
                  pl.BlockSpec((1, S, D), lambda g: (g, 0, 0))],
        out_specs=pl.BlockSpec((1, So, D), lambda g: (g, 0, 0)),
        compiler_params=pltpu.CompilerParams(
            dimension_semantics=("parallel",),
            vmem_limit_bytes=VMEM_LIMIT_BYTES),
    )


def _rowmix(R, x3):
    G, S, D = x3.shape
    So = R.shape[0]
    out_dtype = jax.dtypes.canonicalize_dtype(x3.dtype)
    return _rowmix_call(G, S, D, So, out_dtype)(R, x3)


@functools.lru_cache(maxsize=None)
def _resize_matrix_np(in_size, out_size):
    R = np.zeros((out_size, in_size), np.float32)
    if in_size == out_size:
        np.fill_diagonal(R, 1.0)
        return R
    scale = in_size / out_size
    for i in range(out_size):
        src = max((i + 0.5) * scale - 0.5, 0.0)
        i0 = min(int(np.floor(src)), in_size - 1)
        i1 = min(i0 + 1, in_size - 1)
        lam = src - i0
        R[i, i0] += 1.0 - lam
        R[i, i1] += lam
    return R


def resize_bilinear(x, out_h, out_w):
    """PyTorch-style bilinear (align_corners=False), NHWC, no HBM transposes."""
    B, H, W, C = x.shape
    if H != out_h:
        Rh = jnp.asarray(_resize_matrix_np(H, out_h))
        x = _rowmix(Rh, x.reshape(B, H, W * C)).reshape(B, out_h, W, C)
    if W != out_w:
        Rw = jnp.asarray(_resize_matrix_np(W, out_w))
        x = _rowmix(Rw, x.reshape(B * out_h, W, C)).reshape(B, out_h, out_w, C)
    return x


# ---------------------------------------------------------------------------
# Conv = im2col (slicing glue, fused by XLA inside the jit) + tiled MXU matmul
# ---------------------------------------------------------------------------
def _im2col(x, kh, kw, stride, padding, dilation):
    B, H, W, C = x.shape
    xp = jnp.pad(x, ((0, 0), (padding, padding), (padding, padding), (0, 0)))
    Ho = (H + 2 * padding - dilation * (kh - 1) - 1) // stride + 1
    Wo = (W + 2 * padding - dilation * (kw - 1) - 1) // stride + 1
    patches = []
    for i in range(kh):
        for j in range(kw):
            di, dj = i * dilation, j * dilation
            p = xp[:, di:di + (Ho - 1) * stride + 1:stride,
                   dj:dj + (Wo - 1) * stride + 1:stride, :]
            patches.append(p)
    cols = jnp.concatenate(patches, axis=-1)     # (B,Ho,Wo,kh*kw*C)
    return cols, Ho, Wo
# TODO(synk): fold the kh*kw taps into the matmul K-grid (per-tap partial
#   products into the VMEM accumulator) to avoid materializing im2col in HBM.


def conv2d(x, w, b=None, stride=1, padding=0, dilation=1, act="none"):
    kh, kw, cin, cout = w.shape
    B = x.shape[0]
    cols, Ho, Wo = _im2col(x, kh, kw, stride, padding, dilation)
    A = cols.reshape(B * Ho * Wo, kh * kw * cin)
    Wm = w.reshape(kh * kw * cin, cout)
    y = pallas_matmul(A, Wm, b, act=act)
    return y.reshape(B, Ho, Wo, cout)


# ---------------------------------------------------------------------------
# Model definition (deterministic synthetic parameters)
# ---------------------------------------------------------------------------
CH_4X = 64        # encoder channels at 1/4 resolution
CH_BN = 256       # encoder bottleneck channels
ASPP_OUT = 256    # as hard-coded in the PyTorch module
SKIP_CH = 48
ASPP_RATES = (3, 6, 9)


class ParamGen:
    def __init__(self, seed=0):
        self.key = jax.random.PRNGKey(seed)

    def take(self, shape, scale=0.05):
        self.key, sub = jax.random.split(self.key)
        return scale * jax.random.normal(sub, shape, dtype=jnp.float32)


def init_params(outputs_desc):
    ch_out = sum(outputs_desc.values())
    n_sem = ch_out - 1
    pg = ParamGen(0)
    P = {}

    def conv_p(name, k, cin, cout, bias=True):
        P[name + "_w"] = pg.take((k, k, cin, cout))
        if bias:
            P[name + "_b"] = pg.take((cout,))

    # synthetic encoder (stand-in for the pretrained ResNet backbone)
    conv_p("enc1", 3, 3, 32)
    conv_p("enc2", 3, 32, CH_4X)
    conv_p("enc3", 3, CH_4X, 128)
    conv_p("enc4", 3, 128, CH_BN)

    for pfx in ("aspp_sem", "aspp_dep"):
        conv_p(f"{pfx}_c0", 1, CH_BN, ASPP_OUT)
        for bi in range(len(ASPP_RATES)):
            conv_p(f"{pfx}_c{bi + 1}", 3, CH_BN, ASPP_OUT)
        conv_p(f"{pfx}_pool", 1, CH_BN, ASPP_OUT)
        conv_p(f"{pfx}_out", 1, (2 + len(ASPP_RATES)) * ASPP_OUT, ASPP_OUT)

    for pfx, nout in (("dec_sem", n_sem), ("dec_dep", 1)):
        conv_p(f"{pfx}_skip", 1, CH_4X, SKIP_CH)
        conv_p(f"{pfx}_fuse", 3, ASPP_OUT + SKIP_CH, ASPP_OUT)
        conv_p(f"{pfx}_pred", 1, ASPP_OUT, nout)

    for pfx in ("sa_d2s", "sa_s2d"):
        conv_p(f"{pfx}_conv", 3, ASPP_OUT, ASPP_OUT, bias=False)
        conv_p(f"{pfx}_attn", 3, ASPP_OUT, ASPP_OUT, bias=False)

    for pfx, nout in (("dist_sem", n_sem), ("dist_dep", 1)):
        conv_p(f"{pfx}_conv", 3, ASPP_OUT, ASPP_OUT)
        conv_p(f"{pfx}_pred", 1, ASPP_OUT, nout)
    return P


def _fused_w(P, names):
    return jnp.concatenate([P[n + "_w"] for n in names], axis=-1)


def _fused_b(P, names):
    return jnp.concatenate([P[n + "_b"] for n in names], axis=-1)


def encoder(P, x):
    f2 = conv2d(x, P["enc1_w"], P["enc1_b"], stride=2, padding=1, act="relu")
    f4 = conv2d(f2, P["enc2_w"], P["enc2_b"], stride=2, padding=1, act="relu")
    f8 = conv2d(f4, P["enc3_w"], P["enc3_b"], stride=2, padding=1, act="relu")
    f16 = conv2d(f8, P["enc4_w"], P["enc4_b"], stride=2, padding=1, act="relu")
    return {2: f2, 4: f4, 8: f8, 16: f16}


def aspp_both(P, x):
    """ASPP for semseg+depth with shared im2col A: branch weights concatenated
    along Cout, each branch output is [sem 256 | dep 256]."""
    B, H, W, _ = x.shape
    names0 = ("aspp_sem_c0", "aspp_dep_c0")
    branches = [conv2d(x, _fused_w(P, names0), _fused_b(P, names0), act="relu")]
    for bi, rate in enumerate(ASPP_RATES):
        names = (f"aspp_sem_c{bi + 1}", f"aspp_dep_c{bi + 1}")
        branches.append(conv2d(x, _fused_w(P, names), _fused_b(P, names),
                               padding=rate, dilation=rate, act="relu"))
    # global-average-pool branch (tiny reduction -> plain XLA glue inside jit)
    pooled = jnp.mean(x.astype(jnp.float32), axis=(1, 2), keepdims=True)
    namesp = ("aspp_sem_pool", "aspp_dep_pool")
    pooled = conv2d(pooled, _fused_w(P, namesp), _fused_b(P, namesp), act="relu")
    branches.append(jnp.broadcast_to(pooled, (B, H, W, 2 * ASPP_OUT)))

    a_sem = jnp.concatenate([br[..., :ASPP_OUT] for br in branches], axis=-1)
    a_dep = jnp.concatenate([br[..., ASPP_OUT:] for br in branches], axis=-1)
    out_sem = conv2d(a_sem, P["aspp_sem_out_w"], P["aspp_sem_out_b"], act="relu")
    out_dep = conv2d(a_dep, P["aspp_dep_out_w"], P["aspp_dep_out_b"], act="relu")
    return out_sem, out_dep


def decoders_deeplab(P, a_sem, a_dep, skip_4x):
    B, Hs, Ws, _ = skip_4x.shape
    # one fused (transpose-free) upsample of both 256-ch bottleneck features
    up = resize_bilinear(jnp.concatenate([a_sem, a_dep], axis=-1), Hs, Ws)
    up_sem, up_dep = up[..., :ASPP_OUT], up[..., ASPP_OUT:]
    # both skip 1x1 convs share A = features[4]
    namesk = ("dec_sem_skip", "dec_dep_skip")
    skip = conv2d(skip_4x, _fused_w(P, namesk), _fused_b(P, namesk), act="relu")
    skip_sem, skip_dep = skip[..., :SKIP_CH], skip[..., SKIP_CH:]

    feat_sem = conv2d(jnp.concatenate([up_sem, skip_sem], axis=-1),
                      P["dec_sem_fuse_w"], P["dec_sem_fuse_b"],
                      padding=1, act="relu")
    feat_dep = conv2d(jnp.concatenate([up_dep, skip_dep], axis=-1),
                      P["dec_dep_fuse_w"], P["dec_dep_fuse_b"],
                      padding=1, act="relu")
    pred_sem = conv2d(feat_sem, P["dec_sem_pred_w"], P["dec_sem_pred_b"])
    pred_dep = conv2d(feat_dep, P["dec_dep_pred_w"], P["dec_dep_pred_b"])
    return pred_sem, feat_sem, pred_dep, feat_dep


def sa_gated_residual(P, pfx, x_feat, add_feat):
    """add_feat + SelfAttention(x_feat) = add + conv(x)*sigmoid(conv_attn(x)),
    fused into one Pallas kernel (shared A, two accumulators, gate+add epilogue)."""
    B, H, W, C = x_feat.shape
    cols, Ho, Wo = _im2col(x_feat, 3, 3, 1, 1, 1)
    A = cols.reshape(B * Ho * Wo, 9 * C)
    wf = P[f"{pfx}_conv_w"].reshape(9 * C, ASPP_OUT)
    wg = P[f"{pfx}_attn_w"].reshape(9 * C, ASPP_OUT)
    add = add_feat.reshape(B * Ho * Wo, ASPP_OUT)
    out = pallas_sa_gated_add(A, wf, wg, add)
    return out.reshape(B, Ho, Wo, ASPP_OUT)


def decoder_distillation(P, pfx, x):
    h = conv2d(x, P[f"{pfx}_conv_w"], P[f"{pfx}_conv_b"], padding=1, act="relu")
    return conv2d(h, P[f"{pfx}_pred_w"], P[f"{pfx}_pred_b"])


def model_forward(P, x_nchw, outputs_desc):
    H, W = x_nchw.shape[2], x_nchw.shape[3]
    x = jnp.transpose(x_nchw, (0, 2, 3, 1)).astype(jnp.bfloat16)   # NCHW -> NHWC

    features = encoder(P, x)
    features_lowest = features[max(features.keys())]

    a_sem, a_dep = aspp_both(P, features_lowest)
    pred_sem, feat_sem, pred_dep, feat_dep = decoders_deeplab(
        P, a_sem, a_dep, features[4])

    # fused (sem|dep) upsample of the intermediate predictions
    intermediate = resize_bilinear(
        jnp.concatenate([pred_sem, pred_dep], axis=-1), H, W)

    # cross-task self-attention + distillation residual (fused per target branch)
    dist_in_sem = sa_gated_residual(P, "sa_d2s", feat_dep, feat_sem)
    dist_in_dep = sa_gated_residual(P, "sa_s2d", feat_sem, feat_dep)
    fin_sem = decoder_distillation(P, "dist_sem", dist_in_sem)
    fin_dep = decoder_distillation(P, "dist_dep", dist_in_dep)
    final = resize_bilinear(jnp.concatenate([fin_sem, fin_dep], axis=-1), H, W)

    inter_nchw = jnp.transpose(intermediate.astype(jnp.float32), (0, 3, 1, 2))
    final_nchw = jnp.transpose(final.astype(jnp.float32), (0, 3, 1, 2))
    out = {}
    offset = 0
    for task, num_ch in outputs_desc.items():
        out[task] = [inter_nchw[:, offset:offset + num_ch],
                     final_nchw[:, offset:offset + num_ch]]   # NCHW like PyTorch
        offset += num_ch
    return out


if __name__ == "__main__":
    outputs_desc = {"semseg": 4, "depth": 1}   # ch_out = 5 -> semseg 4, depth 1
    x = jax.random.normal(jax.random.PRNGKey(0), (2, 3, 32, 32),
                          dtype=jnp.float32)   # NCHW input

    params = init_params(outputs_desc)
    fwd = jax.jit(functools.partial(model_forward, outputs_desc=outputs_desc))
    out = jax.block_until_ready(fwd(params, x))

    assert out["semseg"][0].shape == (2, 4, 32, 32)
    assert out["semseg"][1].shape == (2, 4, 32, 32)
    assert out["depth"][0].shape == (2, 1, 32, 32)
    assert out["depth"][1].shape == (2, 1, 32, 32)
    for task in out:
        for t in out[task]:
            assert bool(jnp.all(jnp.isfinite(t)))
    print("KERNEL_OK")
</pallas_src>

<mosaic_0001>
module attributes {stable_mosaic.version = 11 : i64} {
  func.func @_mm_kernel(%arg0: i32, %arg1: i32, %arg2: i32, %arg3: memref<128x128xbf16, #tpu.memory_space<vmem>>, %arg4: memref<128x128xbf16, #tpu.memory_space<vmem>>, %arg5: memref<1x128xf32, #tpu.memory_space<vmem>>, %arg6: memref<128x128xbf16, #tpu.memory_space<vmem>>, %arg7: memref<128x128xf32, #tpu.memory_space<vmem>>) attributes {dimension_semantics = [#tpu.dimension_semantics<parallel>, #tpu.dimension_semantics<parallel>, #tpu.dimension_semantics<arbitrary>], iteration_bounds = array<i64: 4, 1, 1>, scalar_prefetch = 0 : i64, scratch_operands = 1 : i64, tpu.core_type = #tpu.core_type<tc>, window_params = [{transform_indices = @transform_0, window_bounds = array<i64: 128, 128>}, {transform_indices = @transform_1, window_bounds = array<i64: 128, 128>}, {transform_indices = @transform_2, window_bounds = array<i64: 1, 128>}, {transform_indices = @transform_3, window_bounds = array<i64: 128, 128>}]} {
    %c0_i32 = arith.constant 0 : i32
    %0 = arith.cmpi eq, %arg2, %c0_i32 : i32
    %1 = arith.extui %0 : i1 to i32
    %c0_i32_0 = arith.constant 0 : i32
    %2 = arith.cmpi ne, %1, %c0_i32_0 : i32
    scf.if %2 {
      %cst_10 = arith.constant 0.000000e+00 : f32
      %12 = vector.broadcast %cst_10 : f32 to vector<128x128xf32>
      %c0_11 = arith.constant 0 : index
      %c0_12 = arith.constant 0 : index
      %13 = vector.load %arg7[%c0_11, %c0_12] : memref<128x128xf32, #tpu.memory_space<vmem>>, vector<128x128xf32>
      tpu.vector_store %arg7[%c0_11, %c0_12], %12 {strides = array<i32>} : memref<128x128xf32, #tpu.memory_space<vmem>>, vector<128x128xf32>,
    } else {
    }
    %c0 = arith.constant 0 : index
    %c0_1 = arith.constant 0 : index
    %3 = vector.load %arg7[%c0, %c0_1] : memref<128x128xf32, #tpu.memory_space<vmem>>, vector<128x128xf32>
    %c0_2 = arith.constant 0 : index
    %c0_3 = arith.constant 0 : index
    %4 = vector.load %arg3[%c0_2, %c0_3] : memref<128x128xbf16, #tpu.memory_space<vmem>>, vector<128x128xbf16>
    %c0_4 = arith.constant 0 : index
    %c0_5 = arith.constant 0 : index
    %5 = vector.load %arg4[%c0_4, %c0_5] : memref<128x128xbf16, #tpu.memory_space<vmem>>, vector<128x128xbf16>
    %cst = arith.constant dense<0.000000e+00> : vector<128x128xf32>
    %6 = tpu.matmul %4, %5, %cst {dimension_numbers = #tpu.dot_dimension_numbers<[1], [0], [0], [1], [0, 0, 1, 1], [], []>} : vector<128x128xbf16>, vector<128x128xbf16>, vector<128x128xf32> -> vector<128x128xf32>
    %7 = arith.addf %3, %6 : vector<128x128xf32>
    %c0_6 = arith.constant 0 : index
    %c0_7 = arith.constant 0 : index
    %8 = vector.load %arg7[%c0_6, %c0_7] : memref<128x128xf32, #tpu.memory_space<vmem>>, vector<128x128xf32>
    tpu.vector_store %arg7[%c0_6, %c0_7], %7 {strides = array<i32>} : memref<128x128xf32, #tpu.memory_space<vmem>>, vector<128x128xf32>,
    %c0_i32_8 = arith.constant 0 : i32
    %9 = arith.cmpi eq, %arg2, %c0_i32_8 : i32
    %10 = arith.extui %9 : i1 to i32
    %c0_i32_9 = arith.constant 0 : i32
    %11 = arith.cmpi ne, %10, %c0_i32_9 : i32
    scf.if %11 {
      %c0_10 = arith.constant 0 : index
      %c0_11 = arith.constant 0 : index
      %12 = vector.load %arg7[%c0_10, %c0_11] : memref<128x128xf32, #tpu.memory_space<vmem>>, vector<128x128xf32>
      %c0_12 = arith.constant 0 : index
      %c0_13 = arith.constant 0 : index
      %13 = vector.load %arg5[%c0_12, %c0_13] : memref<1x128xf32, #tpu.memory_space<vmem>>, vector<1x128xf32>
      %14 = vector.broadcast %13 : vector<1x128xf32> to vector<128x128xf32>
      %15 = arith.addf %12, %14 : vector<128x128xf32>
      %cst_14 = arith.constant 0.000000e+00 : f32
      %16 = vector.broadcast %cst_14 : f32 to vector<128x128xf32>
      %17 = arith.maximumf %15, %16 : vector<128x128xf32>
      %18 = arith.truncf %17 : vector<128x128xf32> to vector<128x128xbf16>
      %c0_15 = arith.constant 0 : index
      %c0_16 = arith.constant 0 : index
      %19 = vector.load %arg6[%c0_15, %c0_16] : memref<128x128xbf16, #tpu.memory_space<vmem>>, vector<128x128xbf16>
      tpu.vector_store %arg6[%c0_15, %c0_16], %18 {strides = array<i32>} : memref<128x128xbf16, #tpu.memory_space<vmem>>, vector<128x128xbf16>,
    } else {
    }
    return
  }
  func.func @transform_0(%arg0: i32, %arg1: i32, %arg2: i32) -> (i32, i32) {
    %c0_i32 = arith.constant 0 : i32
    return %arg0, %arg2 : i32, i32
  }
  func.func @transform_1(%arg0: i32, %arg1: i32, %arg2: i32) -> (i32, i32) {
    %c0_i32 = arith.constant 0 : i32
    return %arg2, %arg1 : i32, i32
  }
  func.func @transform_2(%arg0: i32, %arg1: i32, %arg2: i32) -> (i32, i32) {
    %c0_i32 = arith.constant 0 : i32
    %c0_i32_0 = arith.constant 0 : i32
    return %c0_i32, %arg1 : i32, i32
  }
  func.func @transform_3(%arg0: i32, %arg1: i32, %arg2: i32) -> (i32, i32) {
    %c0_i32 = arith.constant 0 : i32
    return %arg0, %arg1 : i32, i32
  }
}

module attributes {stable_mosaic.version = 11 : i64} {
  func.func @_mm_kernel(%arg0: i32, %arg1: i32, %arg2: i32, %arg3: memref<128x384xbf16, #tpu.memory_space<vmem>>, %arg4: memref<384x128xbf16, #tpu.memory_space<vmem>>, %arg5: memref<1x128xf32, #tpu.memory_space<vmem>>, %arg6: memref<128x128xbf16, #tpu.memory_space<vmem>>, %arg7: memref<128x128xf32, #tpu.memory_space<vmem>>) attributes {dimension_semantics = [#tpu.dimension_semantics<parallel>, #tpu.dimension_semantics<parallel>, #tpu.dimension_semantics<arbitrary>], iteration_bounds = array<i64: 1, 1, 1>, scalar_prefetch = 0 : i64, scratch_operands = 1 : i64, tpu.core_type = #tpu.core_type<tc>, window_params = [{transform_indices = @transform_0, window_bounds = array<i64: 128, 384>}, {transform_indices = @transform_1, window_bounds = array<i64: 384, 128>}, {transform_indices = @transform_2, window_bounds = array<i64: 1, 128>}, {transform_indices = @transform_3, window_bounds = array<i64: 128, 128>}]} {
    %c0_i32 = arith.constant 0 : i32
    %0 = arith.cmpi eq, %arg2, %c0_i32 : i32
    %1 = arith.extui %0 : i1 to i32
    %c0_i32_0 = arith.constant 0 : i32
    %2 = arith.cmpi ne, %1, %c0_i32_0 : i32
    scf.if %2 {
      %cst_10 = arith.constant 0.000000e+00 : f32
      %12 = vector.broadcast %cst_10 : f32 to vector<128x128xf32>
      %c0_11 = arith.constant 0 : index
      %c0_12 = arith.constant 0 : index
      %13 = vector.load %arg7[%c0_11, %c0_12] : memref<128x128xf32, #tpu.memory_space<vmem>>, vector<128x128xf32>
      tpu.vector_store %arg7[%c0_11, %c0_12], %12 {strides = array<i32>} : memref<128x128xf32, #tpu.memory_space<vmem>>, vector<128x128xf32>,
    } else {
    }
    %c0 = arith.constant 0 : index
    %c0_1 = arith.constant 0 : index
    %3 = vector.load %arg7[%c0, %c0_1] : memref<128x128xf32, #tpu.memory_space<vmem>>, vector<128x128xf32>
    %c0_2 = arith.constant 0 : index
    %c0_3 = arith.constant 0 : index
    %4 = vector.load %arg3[%c0_2, %c0_3] : memref<128x384xbf16, #tpu.memory_space<vmem>>, vector<128x384xbf16>
    %c0_4 = arith.constant 0 : index
    %c0_5 = arith.constant 0 : index
    %5 = vector.load %arg4[%c0_4, %c0_5] : memref<384x128xbf16, #tpu.memory_space<vmem>>, vector<384x128xbf16>
    %cst = arith.constant dense<0.000000e+00> : vector<128x128xf32>
    %6 = tpu.matmul %4, %5, %cst {dimension_numbers = #tpu.dot_dimension_numbers<[1], [0], [0], [1], [0, 0, 1, 1], [], []>} : vector<128x384xbf16>, vector<384x128xbf16>, vector<128x128xf32> -> vector<128x128xf32>
    %7 = arith.addf %3, %6 : vector<128x128xf32>
    %c0_6 = arith.constant 0 : index
    %c0_7 = arith.constant 0 : index
    %8 = vector.load %arg7[%c0_6, %c0_7] : memref<128x128xf32, #tpu.memory_space<vmem>>, vector<128x128xf32>
    tpu.vector_store %arg7[%c0_6, %c0_7], %7 {strides = array<i32>} : memref<128x128xf32, #tpu.memory_space<vmem>>, vector<128x128xf32>,
    %c0_i32_8 = arith.constant 0 : i32
    %9 = arith.cmpi eq, %arg2, %c0_i32_8 : i32
    %10 = arith.extui %9 : i1 to i32
    %c0_i32_9 = arith.constant 0 : i32
    %11 = arith.cmpi ne, %10, %c0_i32_9 : i32
    scf.if %11 {
      %c0_10 = arith.constant 0 : index
      %c0_11 = arith.constant 0 : index
      %12 = vector.load %arg7[%c0_10, %c0_11] : memref<128x128xf32, #tpu.memory_space<vmem>>, vector<128x128xf32>
      %c0_12 = arith.constant 0 : index
      %c0_13 = arith.constant 0 : index
      %13 = vector.load %arg5[%c0_12, %c0_13] : memref<1x128xf32, #tpu.memory_space<vmem>>, vector<1x128xf32>
      %14 = vector.broadcast %13 : vector<1x128xf32> to vector<128x128xf32>
      %15 = arith.addf %12, %14 : vector<128x128xf32>
      %cst_14 = arith.constant 0.000000e+00 : f32
      %16 = vector.broadcast %cst_14 : f32 to vector<128x128xf32>
      %17 = arith.maximumf %15, %16 : vector<128x128xf32>
      %18 = arith.truncf %17 : vector<128x128xf32> to vector<128x128xbf16>
      %c0_15 = arith.constant 0 : index
      %c0_16 = arith.constant 0 : index
      %19 = vector.load %arg6[%c0_15, %c0_16] : memref<128x128xbf16, #tpu.memory_space<vmem>>, vector<128x128xbf16>
      tpu.vector_store %arg6[%c0_15, %c0_16], %18 {strides = array<i32>} : memref<128x128xbf16, #tpu.memory_space<vmem>>, vector<128x128xbf16>,
    } else {
    }
    return
  }
  func.func @transform_0(%arg0: i32, %arg1: i32, %arg2: i32) -> (i32, i32) {
    %c0_i32 = arith.constant 0 : i32
    return %arg0, %arg2 : i32, i32
  }
  func.func @transform_1(%arg0: i32, %arg1: i32, %arg2: i32) -> (i32, i32) {
    %c0_i32 = arith.constant 0 : i32
    return %arg2, %arg1 : i32, i32
  }
  func.func @transform_2(%arg0: i32, %arg1: i32, %arg2: i32) -> (i32, i32) {
    %c0_i32 = arith.constant 0 : i32
    %c0_i32_0 = arith.constant 0 : i32
    return %c0_i32, %arg1 : i32, i32
  }
  func.func @transform_3(%arg0: i32, %arg1: i32, %arg2: i32) -> (i32, i32) {
    %c0_i32 = arith.constant 0 : i32
    return %arg0, %arg1 : i32, i32
  }
}

module attributes {stable_mosaic.version = 11 : i64} {
  func.func @_mm_kernel(%arg0: i32, %arg1: i32, %arg2: i32, %arg3: memref<32x512xbf16, #tpu.memory_space<vmem>>, %arg4: memref<512x128xbf16, #tpu.memory_space<vmem>>, %arg5: memref<1x128xf32, #tpu.memory_space<vmem>>, %arg6: memref<32x128xbf16, #tpu.memory_space<vmem>>, %arg7: memref<32x128xf32, #tpu.memory_space<vmem>>) attributes {dimension_semantics = [#tpu.dimension_semantics<parallel>, #tpu.dimension_semantics<parallel>, #tpu.dimension_semantics<arbitrary>], iteration_bounds = array<i64: 1, 1, 2>, scalar_prefetch = 0 : i64, scratch_operands = 1 : i64, tpu.core_type = #tpu.core_type<tc>, window_params = [{transform_indices = @transform_0, window_bounds = array<i64: 32, 512>}, {transform_indices = @transform_1, window_bounds = array<i64: 512, 128>}, {transform_indices = @transform_2, window_bounds = array<i64: 1, 128>}, {transform_indices = @transform_3, window_bounds = array<i64: 32, 128>}]} {
    %c0_i32 = arith.constant 0 : i32
    %0 = arith.cmpi eq, %arg2, %c0_i32 : i32
    %1 = arith.extui %0 : i1 to i32
    %c0_i32_0 = arith.constant 0 : i32
    %2 = arith.cmpi ne, %1, %c0_i32_0 : i32
    scf.if %2 {
      %cst_9 = arith.constant 0.000000e+00 : f32
      %12 = vector.broadcast %cst_9 : f32 to vector<32x128xf32>
      %c0_10 = arith.constant 0 : index
      %c0_11 = arith.constant 0 : index
      %13 = vector.load %arg7[%c0_10, %c0_11] : memref<32x128xf32, #tpu.memory_space<vmem>>, vector<32x128xf32>
      tpu.vector_store %arg7[%c0_10, %c0_11], %12 {strides = array<i32>} : memref<32x128xf32, #tpu.memory_space<vmem>>, vector<32x128xf32>,
    } else {
    }
    %c0 = arith.constant 0 : index
    %c0_1 = arith.constant 0 : index
    %3 = vector.load %arg7[%c0, %c0_1] : memref<32x128xf32, #tpu.memory_space<vmem>>, vector<32x128xf32>
    %c0_2 = arith.constant 0 : index
    %c0_3 = arith.constant 0 : index
    %4 = vector.load %arg3[%c0_2, %c0_3] : memref<32x512xbf16, #tpu.memory_space<vmem>>, vector<32x512xbf16>
    %c0_4 = arith.constant 0 : index
    %c0_5 = arith.constant 0 : index
    %5 = vector.load %arg4[%c0_4, %c0_5] : memref<512x128xbf16, #tpu.memory_space<vmem>>, vector<512x128xbf16>
    %cst = arith.constant dense<0.000000e+00> : vector<32x128xf32>
    %6 = tpu.matmul %4, %5, %cst {dimension_numbers = #tpu.dot_dimension_numbers<[1], [0], [0], [1], [0, 0, 1, 1], [], []>} : vector<32x512xbf16>, vector<512x128xbf16>, vector<32x128xf32> -> vector<32x128xf32>
    %7 = arith.addf %3, %6 : vector<32x128xf32>
    %c0_6 = arith.constant 0 : index
    %c0_7 = arith.constant 0 : index
    %8 = vector.load %arg7[%c0_6, %c0_7] : memref<32x128xf32, #tpu.memory_space<vmem>>, vector<32x128xf32>
    tpu.vector_store %arg7[%c0_6, %c0_7], %7 {strides = array<i32>} : memref<32x128xf32, #tpu.memory_space<vmem>>, vector<32x128xf32>,
    %c1_i32 = arith.constant 1 : i32
    %9 = arith.cmpi eq, %arg2, %c1_i32 : i32
    %10 = arith.extui %9 : i1 to i32
    %c0_i32_8 = arith.constant 0 : i32
    %11 = arith.cmpi ne, %10, %c0_i32_8 : i32
    scf.if %11 {
      %c0_9 = arith.constant 0 : index
      %c0_10 = arith.constant 0 : index
      %12 = vector.load %arg7[%c0_9, %c0_10] : memref<32x128xf32, #tpu.memory_space<vmem>>, vector<32x128xf32>
      %c0_11 = arith.constant 0 : index
      %c0_12 = arith.constant 0 : index
      %13 = vector.load %arg5[%c0_11, %c0_12] : memref<1x128xf32, #tpu.memory_space<vmem>>, vector<1x128xf32>
      %14 = vector.broadcast %13 : vector<1x128xf32> to vector<32x128xf32>
      %15 = arith.addf %12, %14 : vector<32x128xf32>
      %cst_13 = arith.constant 0.000000e+00 : f32
      %16 = vector.broadcast %cst_13 : f32 to vector<32x128xf32>
      %17 = arith.maximumf %15, %16 : vector<32x128xf32>
      %18 = arith.truncf %17 : vector<32x128xf32> to vector<32x128xbf16>
      %c0_14 = arith.constant 0 : index
      %c0_15 = arith.constant 0 : index
      %19 = vector.load %arg6[%c0_14, %c0_15] : memref<32x128xbf16, #tpu.memory_space<vmem>>, vector<32x128xbf16>
      tpu.vector_store %arg6[%c0_14, %c0_15], %18 {strides = array<i32>} : memref<32x128xbf16, #tpu.memory_space<vmem>>, vector<32x128xbf16>,
    } else {
    }
    return
  }
  func.func @transform_0(%arg0: i32, %arg1: i32, %arg2: i32) -> (i32, i32) {
    %c0_i32 = arith.constant 0 : i32
    return %arg0, %arg2 : i32, i32
  }
  func.func @transform_1(%arg0: i32, %arg1: i32, %arg2: i32) -> (i32, i32) {
    %c0_i32 = arith.constant 0 : i32
    return %arg2, %arg1 : i32, i32
  }
  func.func @transform_2(%arg0: i32, %arg1: i32, %arg2: i32) -> (i32, i32) {
    %c0_i32 = arith.constant 0 : i32
    %c0_i32_0 = arith.constant 0 : i32
    return %c0_i32, %arg1 : i32, i32
  }
  func.func @transform_3(%arg0: i32, %arg1: i32, %arg2: i32) -> (i32, i32) {
    %c0_i32 = arith.constant 0 : i32
    return %arg0, %arg1 : i32, i32
  }
}

module attributes {stable_mosaic.version = 11 : i64} {
  func.func @_mm_kernel(%arg0: i32, %arg1: i32, %arg2: i32, %arg3: memref<8x512xbf16, #tpu.memory_space<vmem>>, %arg4: memref<512x256xbf16, #tpu.memory_space<vmem>>, %arg5: memref<1x256xf32, #tpu.memory_space<vmem>>, %arg6: memref<8x256xbf16, #tpu.memory_space<vmem>>, %arg7: memref<8x256xf32, #tpu.memory_space<vmem>>) attributes {dimension_semantics = [#tpu.dimension_semantics<parallel>, #tpu.dimension_semantics<parallel>, #tpu.dimension_semantics<arbitrary>], iteration_bounds = array<i64: 1, 1, 3>, scalar_prefetch = 0 : i64, scratch_operands = 1 : i64, tpu.core_type = #tpu.core_type<tc>, window_params = [{transform_indices = @transform_0, window_bounds = array<i64: 8, 512>}, {transform_indices = @transform_1, window_bounds = array<i64: 512, 256>}, {transform_indices = @transform_2, window_bounds = array<i64: 1, 256>}, {transform_indices = @transform_3, window_bounds = array<i64: 8, 256>}]} {
    %c0_i32 = arith.constant 0 : i32
    %0 = arith.cmpi eq, %arg2, %c0_i32 : i32
    %1 = arith.extui %0 : i1 to i32
    %c0_i32_0 = arith.constant 0 : i32
    %2 = arith.cmpi ne, %1, %c0_i32_0 : i32
    scf.if %2 {
      %cst_9 = arith.constant 0.000000e+00 : f32
      %12 = vector.broadcast %cst_9 : f32 to vector<8x256xf32>
      %c0_10 = arith.constant 0 : index
      %c0_11 = arith.constant 0 : index
      %13 = vector.load %arg7[%c0_10, %c0_11] : memref<8x256xf32, #tpu.memory_space<vmem>>, vector<8x256xf32>
      tpu.vector_store %arg7[%c0_10, %c0_11], %12 {strides = array<i32>} : memref<8x256xf32, #tpu.memory_space<vmem>>, vector<8x256xf32>,
    } else {
    }
    %c0 = arith.constant 0 : index
    %c0_1 = arith.constant 0 : index
    %3 = vector.load %arg7[%c0, %c0_1] : memref<8x256xf32, #tpu.memory_space<vmem>>, vector<8x256xf32>
    %c0_2 = arith.constant 0 : index
    %c0_3 = arith.constant 0 : index
    %4 = vector.load %arg3[%c0_2, %c0_3] : memref<8x512xbf16, #tpu.memory_space<vmem>>, vector<8x512xbf16>
    %c0_4 = arith.constant 0 : index
    %c0_5 = arith.constant 0 : index
    %5 = vector.load %arg4[%c0_4, %c0_5] : memref<512x256xbf16, #tpu.memory_space<vmem>>, vector<512x256xbf16>
    %cst = arith.constant dense<0.000000e+00> : vector<8x256xf32>
    %6 = tpu.matmul %4, %5, %cst {dimension_numbers = #tpu.dot_dimension_numbers<[1], [0], [0], [1], [0, 0, 1, 1], [], []>} : vector<8x512xbf16>, vector<512x256xbf16>, vector<8x256xf32> -> vector<8x256xf32>
    %7 = arith.addf %3, %6 : vector<8x256xf32>
    %c0_6 = arith.constant 0 : index
    %c0_7 = arith.constant 0 : index
    %8 = vector.load %arg7[%c0_6, %c0_7] : memref<8x256xf32, #tpu.memory_space<vmem>>, vector<8x256xf32>
    tpu.vector_store %arg7[%c0_6, %c0_7], %7 {strides = array<i32>} : memref<8x256xf32, #tpu.memory_space<vmem>>, vector<8x256xf32>,
    %c2_i32 = arith.constant 2 : i32
    %9 = arith.cmpi eq, %arg2, %c2_i32 : i32
    %10 = arith.extui %9 : i1 to i32
    %c0_i32_8 = arith.constant 0 : i32
    %11 = arith.cmpi ne, %10, %c0_i32_8 : i32
    scf.if %11 {
      %c0_9 = arith.constant 0 : index
      %c0_10 = arith.constant 0 : index
      %12 = vector.load %arg7[%c0_9, %c0_10] : memref<8x256xf32, #tpu.memory_space<vmem>>, vector<8x256xf32>
      %c0_11 = arith.constant 0 : index
      %c0_12 = arith.constant 0 : index
      %13 = vector.load %arg5[%c0_11, %c0_12] : memref<1x256xf32, #tpu.memory_space<vmem>>, vector<1x256xf32>
      %14 = vector.broadcast %13 : vector<1x256xf32> to vector<8x256xf32>
      %15 = arith.addf %12, %14 : vector<8x256xf32>
      %cst_13 = arith.constant 0.000000e+00 : f32
      %16 = vector.broadcast %cst_13 : f32 to vector<8x256xf32>
      %17 = arith.maximumf %15, %16 : vector<8x256xf32>
      %18 = arith.truncf %17 : vector<8x256xf32> to vector<8x256xbf16>
      %c0_14 = arith.constant 0 : index
      %c0_15 = arith.constant 0 : index
      %19 = vector.load %arg6[%c0_14, %c0_15] : memref<8x256xbf16, #tpu.memory_space<vmem>>, vector<8x256xbf16>
      tpu.vector_store %arg6[%c0_14, %c0_15], %18 {strides = array<i32>} : memref<8x256xbf16, #tpu.memory_space<vmem>>, vector<8x256xbf16>,
    } else {
    }
    return
  }
  func.func @transform_0(%arg0: i32, %arg1: i32, %arg2: i32) -> (i32, i32) {
    %c0_i32 = arith.constant 0 : i32
    return %arg0, %arg2 : i32, i32
  }
  func.func @transform_1(%arg0: i32, %arg1: i32, %arg2: i32) -> (i32, i32) {
    %c0_i32 = arith.constant 0 : i32
    return %arg2, %arg1 : i32, i32
  }
  func.func @transform_2(%arg0: i32, %arg1: i32, %arg2: i32) -> (i32, i32) {
    %c0_i32 = arith.constant 0 : i32
    %c0_i32_0 = arith.constant 0 : i32
    return %c0_i32, %arg1 : i32, i32
  }
  func.func @transform_3(%arg0: i32, %arg1: i32, %arg2: i32) -> (i32, i32) {
    %c0_i32 = arith.constant 0 : i32
    return %arg0, %arg1 : i32, i32
  }
}

module attributes {stable_mosaic.version = 11 : i64} {
  func.func @_mm_kernel(%arg0: i32, %arg1: i32, %arg2: i32, %arg3: memref<8x512xbf16, #tpu.memory_space<vmem>>, %arg4: memref<512x256xbf16, #tpu.memory_space<vmem>>, %arg5: memref<1x256xf32, #tpu.memory_space<vmem>>, %arg6: memref<8x256xbf16, #tpu.memory_space<vmem>>, %arg7: memref<8x256xf32, #tpu.memory_space<vmem>>) attributes {dimension_semantics = [#tpu.dimension_semantics<parallel>, #tpu.dimension_semantics<parallel>, #tpu.dimension_semantics<arbitrary>], iteration_bounds = array<i64: 1, 2, 5>, scalar_prefetch = 0 : i64, scratch_operands = 1 : i64, tpu.core_type = #tpu.core_type<tc>, window_params = [{transform_indices = @transform_0, window_bounds = array<i64: 8, 512>}, {transform_indices = @transform_1, window_bounds = array<i64: 512, 256>}, {transform_indices = @transform_2, window_bounds = array<i64: 1, 256>}, {transform_indices = @transform_3, window_bounds = array<i64: 8, 256>}]} {
    %c0_i32 = arith.constant 0 : i32
    %0 = arith.cmpi eq, %arg2, %c0_i32 : i32
    %1 = arith.extui %0 : i1 to i32
    %c0_i32_0 = arith.constant 0 : i32
    %2 = arith.cmpi ne, %1, %c0_i32_0 : i32
    scf.if %2 {
      %cst_9 = arith.constant 0.000000e+00 : f32
      %12 = vector.broadcast %cst_9 : f32 to vector<8x256xf32>
      %c0_10 = arith.constant 0 : index
      %c0_11 = arith.constant 0 : index
      %13 = vector.load %arg7[%c0_10, %c0_11] : memref<8x256xf32, #tpu.memory_space<vmem>>, vector<8x256xf32>
      tpu.vector_store %arg7[%c0_10, %c0_11], %12 {strides = array<i32>} : memref<8x256xf32, #tpu.memory_space<vmem>>, vector<8x256xf32>,
    } else {
    }
    %c0 = arith.constant 0 : index
    %c0_1 = arith.constant 0 : index
    %3 = vector.load %arg7[%c0, %c0_1] : memref<8x256xf32, #tpu.memory_space<vmem>>, vector<8x256xf32>
    %c0_2 = arith.constant 0 : index
    %c0_3 = arith.constant 0 : index
    %4 = vector.load %arg3[%c0_2, %c0_3] : memref<8x512xbf16, #tpu.memory_space<vmem>>, vector<8x512xbf16>
    %c0_4 = arith.constant 0 : index
    %c0_5 = arith.constant 0 : index
    %5 = vector.load %arg4[%c0_4, %c0_5] : memref<512x256xbf16, #tpu.memory_space<vmem>>, vector<512x256xbf16>
    %cst = arith.constant dense<0.000000e+00> : vector<8x256xf32>
    %6 = tpu.matmul %4, %5, %cst {dimension_numbers = #tpu.dot_dimension_numbers<[1], [0], [0], [1], [0, 0, 1, 1], [], []>} : vector<8x512xbf16>, vector<512x256xbf16>, vector<8x256xf32> -> vector<8x256xf32>
    %7 = arith.addf %3, %6 : vector<8x256xf32>
    %c0_6 = arith.constant 0 : index
    %c0_7 = arith.constant 0 : index
    %8 = vector.load %arg7[%c0_6, %c0_7] : memref<8x256xf32, #tpu.memory_space<vmem>>, vector<8x256xf32>
    tpu.vector_store %arg7[%c0_6, %c0_7], %7 {strides = array<i32>} : memref<8x256xf32, #tpu.memory_space<vmem>>, vector<8x256xf32>,
    %c4_i32 = arith.constant 4 : i32
    %9 = arith.cmpi eq, %arg2, %c4_i32 : i32
    %10 = arith.extui %9 : i1 to i32
    %c0_i32_8 = arith.constant 0 : i32
    %11 = arith.cmpi ne, %10, %c0_i32_8 : i32
    scf.if %11 {
      %c0_9 = arith.constant 0 : index
      %c0_10 = arith.constant 0 : index
      %12 = vector.load %arg7[%c0_9, %c0_10] : memref<8x256xf32, #tpu.memory_space<vmem>>, vector<8x256xf32>
      %c0_11 = arith.constant 0 : index
      %c0_12 = arith.constant 0 : index
      %13 = vector.load %arg5[%c0_11, %c0_12] : memref<1x256xf32, #tpu.memory_space<vmem>>, vector<1x256xf32>
      %14 = vector.broadcast %13 : vector<1x256xf32> to vector<8x256xf32>
      %15 = arith.addf %12, %14 : vector<8x256xf32>
      %cst_13 = arith.constant 0.000000e+00 : f32
      %16 = vector.broadcast %cst_13 : f32 to vector<8x256xf32>
      %17 = arith.maximumf %15, %16 : vector<8x256xf32>
      %18 = arith.truncf %17 : vector<8x256xf32> to vector<8x256xbf16>
      %c0_14 = arith.constant 0 : index
      %c0_15 = arith.constant 0 : index
      %19 = vector.load %arg6[%c0_14, %c0_15] : memref<8x256xbf16, #tpu.memory_space<vmem>>, vector<8x256xbf16>
      tpu.vector_store %arg6[%c0_14, %c0_15], %18 {strides = array<i32>} : memref<8x256xbf16, #tpu.memory_space<vmem>>, vector<8x256xbf16>,
    } else {
    }
    return
  }
  func.func @transform_0(%arg0: i32, %arg1: i32, %arg2: i32) -> (i32, i32) {
    %c0_i32 = arith.constant 0 : i32
    return %arg0, %arg2 : i32, i32
  }
  func.func @transform_1(%arg0: i32, %arg1: i32, %arg2: i32) -> (i32, i32) {
    %c0_i32 = arith.constant 0 : i32
    return %arg2, %arg1 : i32, i32
  }
  func.func @transform_2(%arg0: i32, %arg1: i32, %arg2: i32) -> (i32, i32) {
    %c0_i32 = arith.constant 0 : i32
    %c0_i32_0 = arith.constant 0 : i32
    return %c0_i32, %arg1 : i32, i32
  }
  func.func @transform_3(%arg0: i32, %arg1: i32, %arg2: i32) -> (i32, i32) {
    %c0_i32 = arith.constant 0 : i32
    return %arg0, %arg1 : i32, i32
  }
}

module attributes {stable_mosaic.version = 11 : i64} {
  func.func @_mm_kernel(%arg0: i32, %arg1: i32, %arg2: i32, %arg3: memref<8x256xbf16, #tpu.memory_space<vmem>>, %arg4: memref<256x256xbf16, #tpu.memory_space<vmem>>, %arg5: memref<1x256xf32, #tpu.memory_space<vmem>>, %arg6: memref<8x256xbf16, #tpu.memory_space<vmem>>, %arg7: memref<8x256xf32, #tpu.memory_space<vmem>>) attributes {dimension_semantics = [#tpu.dimension_semantics<parallel>, #tpu.dimension_semantics<parallel>, #tpu.dimension_semantics<arbitrary>], iteration_bounds = array<i64: 1, 2, 1>, scalar_prefetch = 0 : i64, scratch_operands = 1 : i64, tpu.core_type = #tpu.core_type<tc>, window_params = [{transform_indices = @transform_0, window_bounds = array<i64: 8, 256>}, {transform_indices = @transform_1, window_bounds = array<i64: 256, 256>}, {transform_indices = @transform_2, window_bounds = array<i64: 1, 256>}, {transform_indices = @transform_3, window_bounds = array<i64: 8, 256>}]} {
    %c0_i32 = arith.constant 0 : i32
    %0 = arith.cmpi eq, %arg2, %c0_i32 : i32
    %1 = arith.extui %0 : i1 to i32
    %c0_i32_0 = arith.constant 0 : i32
    %2 = arith.cmpi ne, %1, %c0_i32_0 : i32
    scf.if %2 {
      %cst_10 = arith.constant 0.000000e+00 : f32
      %12 = vector.broadcast %cst_10 : f32 to vector<8x256xf32>
      %c0_11 = arith.constant 0 : index
      %c0_12 = arith.constant 0 : index
      %13 = vector.load %arg7[%c0_11, %c0_12] : memref<8x256xf32, #tpu.memory_space<vmem>>, vector<8x256xf32>
      tpu.vector_store %arg7[%c0_11, %c0_12], %12 {strides = array<i32>} : memref<8x256xf32, #tpu.memory_space<vmem>>, vector<8x256xf32>,
    } else {
    }
    %c0 = arith.constant 0 : index
    %c0_1 = arith.constant 0 : index
    %3 = vector.load %arg7[%c0, %c0_1] : memref<8x256xf32, #tpu.memory_space<vmem>>, vector<8x256xf32>
    %c0_2 = arith.constant 0 : index
    %c0_3 = arith.constant 0 : index
    %4 = vector.load %arg3[%c0_2, %c0_3] : memref<8x256xbf16, #tpu.memory_space<vmem>>, vector<8x256xbf16>
    %c0_4 = arith.constant 0 : index
    %c0_5 = arith.constant 0 : index
    %5 = vector.load %arg4[%c0_4, %c0_5] : memref<256x256xbf16, #tpu.memory_space<vmem>>, vector<256x256xbf16>
    %cst = arith.constant dense<0.000000e+00> : vector<8x256xf32>
    %6 = tpu.matmul %4, %5, %cst {dimension_numbers = #tpu.dot_dimension_numbers<[1], [0], [0], [1], [0, 0, 1, 1], [], []>} : vector<8x256xbf16>, vector<256x256xbf16>, vector<8x256xf32> -> vector<8x256xf32>
    %7 = arith.addf %3, %6 : vector<8x256xf32>
    %c0_6 = arith.constant 0 : index
    %c0_7 = arith.constant 0 : index
    %8 = vector.load %arg7[%c0_6, %c0_7] : memref<8x256xf32, #tpu.memory_space<vmem>>, vector<8x256xf32>
    tpu.vector_store %arg7[%c0_6, %c0_7], %7 {strides = array<i32>} : memref<8x256xf32, #tpu.memory_space<vmem>>, vector<8x256xf32>,
    %c0_i32_8 = arith.constant 0 : i32
    %9 = arith.cmpi eq, %arg2, %c0_i32_8 : i32
    %10 = arith.extui %9 : i1 to i32
    %c0_i32_9 = arith.constant 0 : i32
    %11 = arith.cmpi ne, %10, %c0_i32_9 : i32
    scf.if %11 {
      %c0_10 = arith.constant 0 : index
      %c0_11 = arith.constant 0 : index
      %12 = vector.load %arg7[%c0_10, %c0_11] : memref<8x256xf32, #tpu.memory_space<vmem>>, vector<8x256xf32>
      %c0_12 = arith.constant 0 : index
      %c0_13 = arith.constant 0 : index
      %13 = vector.load %arg5[%c0_12, %c0_13] : memref<1x256xf32, #tpu.memory_space<vmem>>, vector<1x256xf32>
      %14 = vector.broadcast %13 : vector<1x256xf32> to vector<8x256xf32>
      %15 = arith.addf %12, %14 : vector<8x256xf32>
      %cst_14 = arith.constant 0.000000e+00 : f32
      %16 = vector.broadcast %cst_14 : f32 to vector<8x256xf32>
      %17 = arith.maximumf %15, %16 : vector<8x256xf32>
      %18 = arith.truncf %17 : vector<8x256xf32> to vector<8x256xbf16>
      %c0_15 = arith.constant 0 : index
      %c0_16 = arith.constant 0 : index
      %19 = vector.load %arg6[%c0_15, %c0_16] : memref<8x256xbf16, #tpu.memory_space<vmem>>, vector<8x256xbf16>
      tpu.vector_store %arg6[%c0_15, %c0_16], %18 {strides = array<i32>} : memref<8x256xbf16, #tpu.memory_space<vmem>>, vector<8x256xbf16>,
    } else {
    }
    return
  }
  func.func @transform_0(%arg0: i32, %arg1: i32, %arg2: i32) -> (i32, i32) {
    %c0_i32 = arith.constant 0 : i32
    return %arg0, %arg2 : i32, i32
  }
  func.func @transform_1(%arg0: i32, %arg1: i32, %arg2: i32) -> (i32, i32) {
    %c0_i32 = arith.constant 0 : i32
    return %arg2, %arg1 : i32, i32
  }
  func.func @transform_2(%arg0: i32, %arg1: i32, %arg2: i32) -> (i32, i32) {
    %c0_i32 = arith.constant 0 : i32
    %c0_i32_0 = arith.constant 0 : i32
    return %c0_i32, %arg1 : i32, i32
  }
  func.func @transform_3(%arg0: i32, %arg1: i32, %arg2: i32) -> (i32, i32) {
    %c0_i32 = arith.constant 0 : i32
    return %arg0, %arg1 : i32, i32
  }
}

module attributes {stable_mosaic.version = 11 : i64} {
  func.func @_rowmix_kernel(%arg0: i32, %arg1: memref<8x2xf32, #tpu.memory_space<vmem>>, %arg2: memref<1x2x1024xbf16, #tpu.memory_space<vmem>>, %arg3: memref<1x8x1024xbf16, #tpu.memory_space<vmem>>) attributes {dimension_semantics = [#tpu.dimension_semantics<parallel>], iteration_bounds = array<i64: 2>, scalar_prefetch = 0 : i64, scratch_operands = 0 : i64, tpu.core_type = #tpu.core_type<tc>, window_params = [{pipeline_mode = #tpu.pipeline_mode<synchronous>, transform_indices = @transform_0, window_bounds = array<i64: 8, 2>}, {transform_indices = @transform_1, window_bounds = array<i64: 1, 2, 1024>}, {transform_indices = @transform_2, window_bounds = array<i64: 1, 8, 1024>}]} {
    %c0 = arith.constant 0 : index
    %c0_0 = arith.constant 0 : index
    %0 = vector.load %arg1[%c0, %c0_0] : memref<8x2xf32, #tpu.memory_space<vmem>>, vector<8x2xf32>
    %c0_1 = arith.constant 0 : index
    %c0_2 = arith.constant 0 : index
    %c0_3 = arith.constant 0 : index
    %1 = vector.load %arg2[%c0_1, %c0_2, %c0_3] : memref<1x2x1024xbf16, #tpu.memory_space<vmem>>, vector<1x2x1024xbf16>
    %2 = vector.shape_cast %1 : vector<1x2x1024xbf16> to vector<2x1024xbf16>
    %3 = arith.extf %2 : vector<2x1024xbf16> to vector<2x1024xf32>
    %cst = arith.constant dense<0.000000e+00> : vector<8x1024xf32>
    %4 = tpu.matmul %0, %3, %cst {dimension_numbers = #tpu.dot_dimension_numbers<[1], [0], [0], [1], [0, 0, 1, 1], [], []>} : vector<8x2xf32>, vector<2x1024xf32>, vector<8x1024xf32> -> vector<8x1024xf32>
    %5 = arith.truncf %4 : vector<8x1024xf32> to vector<8x1024xbf16>
    %c0_4 = arith.constant 0 : index
    %c0_5 = arith.constant 0 : index
    %c0_6 = arith.constant 0 : index
    %6 = vector.load %arg3[%c0_4, %c0_5, %c0_6] : memref<1x8x1024xbf16, #tpu.memory_space<vmem>>, vector<1x8x1024xbf16>
    %7 = vector.shape_cast %6 : vector<1x8x1024xbf16> to vector<8x1024xbf16>
    %8 = vector.shape_cast %5 : vector<8x1024xbf16> to vector<1x8x1024xbf16>
    tpu.vector_store %arg3[%c0_4, %c0_5, %c0_6], %8 {strides = array<i32>} : memref<1x8x1024xbf16, #tpu.memory_space<vmem>>, vector<1x8x1024xbf16>,
    return
  }
  func.func @transform_0(%arg0: i32) -> (i32, i32) {
    %c0_i32 = arith.constant 0 : i32
    %c0_i32_0 = arith.constant 0 : i32
    %c0_i32_1 = arith.constant 0 : i32
    return %c0_i32, %c0_i32_0 : i32, i32
  }
  func.func @transform_1(%arg0: i32) -> (i32, i32, i32) {
    %c0_i32 = arith.constant 0 : i32
    %c0_i32_0 = arith.constant 0 : i32
    %c0_i32_1 = arith.constant 0 : i32
    return %arg0, %c0_i32, %c0_i32_0 : i32, i32, i32
  }
  func.func @transform_2(%arg0: i32) -> (i32, i32, i32) {
    %c0_i32 = arith.constant 0 : i32
    %c0_i32_0 = arith.constant 0 : i32
    %c0_i32_1 = arith.constant 0 : i32
    return %arg0, %c0_i32, %c0_i32_0 : i32, i32, i32
  }
}

module attributes {stable_mosaic.version = 11 : i64} {
  func.func @_rowmix_kernel(%arg0: i32, %arg1: memref<8x2xf32, #tpu.memory_space<vmem>>, %arg2: memref<1x2x512xbf16, #tpu.memory_space<vmem>>, %arg3: memref<1x8x512xbf16, #tpu.memory_space<vmem>>) attributes {dimension_semantics = [#tpu.dimension_semantics<parallel>], iteration_bounds = array<i64: 16>, scalar_prefetch = 0 : i64, scratch_operands = 0 : i64, tpu.core_type = #tpu.core_type<tc>, window_params = [{pipeline_mode = #tpu.pipeline_mode<synchronous>, transform_indices = @transform_0, window_bounds = array<i64: 8, 2>}, {transform_indices = @transform_1, window_bounds = array<i64: 1, 2, 512>}, {transform_indices = @transform_2, window_bounds = array<i64: 1, 8, 512>}]} {
    %c0 = arith.constant 0 : index
    %c0_0 = arith.constant 0 : index
    %0 = vector.load %arg1[%c0, %c0_0] : memref<8x2xf32, #tpu.memory_space<vmem>>, vector<8x2xf32>
    %c0_1 = arith.constant 0 : index
    %c0_2 = arith.constant 0 : index
    %c0_3 = arith.constant 0 : index
    %1 = vector.load %arg2[%c0_1, %c0_2, %c0_3] : memref<1x2x512xbf16, #tpu.memory_space<vmem>>, vector<1x2x512xbf16>
    %2 = vector.shape_cast %1 : vector<1x2x512xbf16> to vector<2x512xbf16>
    %3 = arith.extf %2 : vector<2x512xbf16> to vector<2x512xf32>
    %cst = arith.constant dense<0.000000e+00> : vector<8x512xf32>
    %4 = tpu.matmul %0, %3, %cst {dimension_numbers = #tpu.dot_dimension_numbers<[1], [0], [0], [1], [0, 0, 1, 1], [], []>} : vector<8x2xf32>, vector<2x512xf32>, vector<8x512xf32> -> vector<8x512xf32>
    %5 = arith.truncf %4 : vector<8x512xf32> to vector<8x512xbf16>
    %c0_4 = arith.constant 0 : index
    %c0_5 = arith.constant 0 : index
    %c0_6 = arith.constant 0 : index
    %6 = vector.load %arg3[%c0_4, %c0_5, %c0_6] : memref<1x8x512xbf16, #tpu.memory_space<vmem>>, vector<1x8x512xbf16>
    %7 = vector.shape_cast %6 : vector<1x8x512xbf16> to vector<8x512xbf16>
    %8 = vector.shape_cast %5 : vector<8x512xbf16> to vector<1x8x512xbf16>
    tpu.vector_store %arg3[%c0_4, %c0_5, %c0_6], %8 {strides = array<i32>} : memref<1x8x512xbf16, #tpu.memory_space<vmem>>, vector<1x8x512xbf16>,
    return
  }
  func.func @transform_0(%arg0: i32) -> (i32, i32) {
    %c0_i32 = arith.constant 0 : i32
    %c0_i32_0 = arith.constant 0 : i32
    %c0_i32_1 = arith.constant 0 : i32
    return %c0_i32, %c0_i32_0 : i32, i32
  }
  func.func @transform_1(%arg0: i32) -> (i32, i32, i32) {
    %c0_i32 = arith.constant 0 : i32
    %c0_i32_0 = arith.constant 0 : i32
    %c0_i32_1 = arith.constant 0 : i32
    return %arg0, %c0_i32, %c0_i32_0 : i32, i32, i32
  }
  func.func @transform_2(%arg0: i32) -> (i32, i32, i32) {
    %c0_i32 = arith.constant 0 : i32
    %c0_i32_0 = arith.constant 0 : i32
    %c0_i32_1 = arith.constant 0 : i32
    return %arg0, %c0_i32, %c0_i32_0 : i32, i32, i32
  }
}

module attributes {stable_mosaic.version = 11 : i64} {
  func.func @_mm_kernel(%arg0: i32, %arg1: i32, %arg2: i32, %arg3: memref<128x128xbf16, #tpu.memory_space<vmem>>, %arg4: memref<128x128xbf16, #tpu.memory_space<vmem>>, %arg5: memref<1x128xf32, #tpu.memory_space<vmem>>, %arg6: memref<128x128xbf16, #tpu.memory_space<vmem>>, %arg7: memref<128x128xf32, #tpu.memory_space<vmem>>) attributes {dimension_semantics = [#tpu.dimension_semantics<parallel>, #tpu.dimension_semantics<parallel>, #tpu.dimension_semantics<arbitrary>], iteration_bounds = array<i64: 1, 1, 1>, scalar_prefetch = 0 : i64, scratch_operands = 1 : i64, tpu.core_type = #tpu.core_type<tc>, window_params = [{transform_indices = @transform_0, window_bounds = array<i64: 128, 128>}, {transform_indices = @transform_1, window_bounds = array<i64: 128, 128>}, {transform_indices = @transform_2, window_bounds = array<i64: 1, 128>}, {transform_indices = @transform_3, window_bounds = array<i64: 128, 128>}]} {
    %c0_i32 = arith.constant 0 : i32
    %0 = arith.cmpi eq, %arg2, %c0_i32 : i32
    %1 = arith.extui %0 : i1 to i32
    %c0_i32_0 = arith.constant 0 : i32
    %2 = arith.cmpi ne, %1, %c0_i32_0 : i32
    scf.if %2 {
      %cst_10 = arith.constant 0.000000e+00 : f32
      %12 = vector.broadcast %cst_10 : f32 to vector<128x128xf32>
      %c0_11 = arith.constant 0 : index
      %c0_12 = arith.constant 0 : index
      %13 = vector.load %arg7[%c0_11, %c0_12] : memref<128x128xf32, #tpu.memory_space<vmem>>, vector<128x128xf32>
      tpu.vector_store %arg7[%c0_11, %c0_12], %12 {strides = array<i32>} : memref<128x128xf32, #tpu.memory_space<vmem>>, vector<128x128xf32>,
    } else {
    }
    %c0 = arith.constant 0 : index
    %c0_1 = arith.constant 0 : index
    %3 = vector.load %arg7[%c0, %c0_1] : memref<128x128xf32, #tpu.memory_space<vmem>>, vector<128x128xf32>
    %c0_2 = arith.constant 0 : index
    %c0_3 = arith.constant 0 : index
    %4 = vector.load %arg3[%c0_2, %c0_3] : memref<128x128xbf16, #tpu.memory_space<vmem>>, vector<128x128xbf16>
    %c0_4 = arith.constant 0 : index
    %c0_5 = arith.constant 0 : index
    %5 = vector.load %arg4[%c0_4, %c0_5] : memref<128x128xbf16, #tpu.memory_space<vmem>>, vector<128x128xbf16>
    %cst = arith.constant dense<0.000000e+00> : vector<128x128xf32>
    %6 = tpu.matmul %4, %5, %cst {dimension_numbers = #tpu.dot_dimension_numbers<[1], [0], [0], [1], [0, 0, 1, 1], [], []>} : vector<128x128xbf16>, vector<128x128xbf16>, vector<128x128xf32> -> vector<128x128xf32>
    %7 = arith.addf %3, %6 : vector<128x128xf32>
    %c0_6 = arith.constant 0 : index
    %c0_7 = arith.constant 0 : index
    %8 = vector.load %arg7[%c0_6, %c0_7] : memref<128x128xf32, #tpu.memory_space<vmem>>, vector<128x128xf32>
    tpu.vector_store %arg7[%c0_6, %c0_7], %7 {strides = array<i32>} : memref<128x128xf32, #tpu.memory_space<vmem>>, vector<128x128xf32>,
    %c0_i32_8 = arith.constant 0 : i32
    %9 = arith.cmpi eq, %arg2, %c0_i32_8 : i32
    %10 = arith.extui %9 : i1 to i32
    %c0_i32_9 = arith.constant 0 : i32
    %11 = arith.cmpi ne, %10, %c0_i32_9 : i32
    scf.if %11 {
      %c0_10 = arith.constant 0 : index
      %c0_11 = arith.constant 0 : index
      %12 = vector.load %arg7[%c0_10, %c0_11] : memref<128x128xf32, #tpu.memory_space<vmem>>, vector<128x128xf32>
      %c0_12 = arith.constant 0 : index
      %c0_13 = arith.constant 0 : index
      %13 = vector.load %arg5[%c0_12, %c0_13] : memref<1x128xf32, #tpu.memory_space<vmem>>, vector<1x128xf32>
      %14 = vector.broadcast %13 : vector<1x128xf32> to vector<128x128xf32>
      %15 = arith.addf %12, %14 : vector<128x128xf32>
      %cst_14 = arith.constant 0.000000e+00 : f32
      %16 = vector.broadcast %cst_14 : f32 to vector<128x128xf32>
      %17 = arith.maximumf %15, %16 : vector<128x128xf32>
      %18 = arith.truncf %17 : vector<128x128xf32> to vector<128x128xbf16>
      %c0_15 = arith.constant 0 : index
      %c0_16 = arith.constant 0 : index
      %19 = vector.load %arg6[%c0_15, %c0_16] : memref<128x128xbf16, #tpu.memory_space<vmem>>, vector<128x128xbf16>
      tpu.vector_store %arg6[%c0_15, %c0_16], %18 {strides = array<i32>} : memref<128x128xbf16, #tpu.memory_space<vmem>>, vector<128x128xbf16>,
    } else {
    }
    return
  }
  func.func @transform_0(%arg0: i32, %arg1: i32, %arg2: i32) -> (i32, i32) {
    %c0_i32 = arith.constant 0 : i32
    return %arg0, %arg2 : i32, i32
  }
  func.func @transform_1(%arg0: i32, %arg1: i32, %arg2: i32) -> (i32, i32) {
    %c0_i32 = arith.constant 0 : i32
    return %arg2, %arg1 : i32, i32
  }
  func.func @transform_2(%arg0: i32, %arg1: i32, %arg2: i32) -> (i32, i32) {
    %c0_i32 = arith.constant 0 : i32
    %c0_i32_0 = arith.constant 0 : i32
    return %c0_i32, %arg1 : i32, i32
  }
  func.func @transform_3(%arg0: i32, %arg1: i32, %arg2: i32) -> (i32, i32) {
    %c0_i32 = arith.constant 0 : i32
    return %arg0, %arg1 : i32, i32
  }
}

module attributes {stable_mosaic.version = 11 : i64} {
  func.func @_mm_kernel(%arg0: i32, %arg1: i32, %arg2: i32, %arg3: memref<128x512xbf16, #tpu.memory_space<vmem>>, %arg4: memref<512x256xbf16, #tpu.memory_space<vmem>>, %arg5: memref<1x256xf32, #tpu.memory_space<vmem>>, %arg6: memref<128x256xbf16, #tpu.memory_space<vmem>>, %arg7: memref<128x256xf32, #tpu.memory_space<vmem>>) attributes {dimension_semantics = [#tpu.dimension_semantics<parallel>, #tpu.dimension_semantics<parallel>, #tpu.dimension_semantics<arbitrary>], iteration_bounds = array<i64: 1, 1, 6>, scalar_prefetch = 0 : i64, scratch_operands = 1 : i64, tpu.core_type = #tpu.core_type<tc>, window_params = [{transform_indices = @transform_0, window_bounds = array<i64: 128, 512>}, {transform_indices = @transform_1, window_bounds = array<i64: 512, 256>}, {transform_indices = @transform_2, window_bounds = array<i64: 1, 256>}, {transform_indices = @transform_3, window_bounds = array<i64: 128, 256>}]} {
    %c0_i32 = arith.constant 0 : i32
    %0 = arith.cmpi eq, %arg2, %c0_i32 : i32
    %1 = arith.extui %0 : i1 to i32
    %c0_i32_0 = arith.constant 0 : i32
    %2 = arith.cmpi ne, %1, %c0_i32_0 : i32
    scf.if %2 {
      %cst_9 = arith.constant 0.000000e+00 : f32
      %12 = vector.broadcast %cst_9 : f32 to vector<128x256xf32>
      %c0_10 = arith.constant 0 : index
      %c0_11 = arith.constant 0 : index
      %13 = vector.load %arg7[%c0_10, %c0_11] : memref<128x256xf32, #tpu.memory_space<vmem>>, vector<128x256xf32>
      tpu.vector_store %arg7[%c0_10, %c0_11], %12 {strides = array<i32>} : memref<128x256xf32, #tpu.memory_space<vmem>>, vector<128x256xf32>,
    } else {
    }
    %c0 = arith.constant 0 : index
    %c0_1 = arith.constant 0 : index
    %3 = vector.load %arg7[%c0, %c0_1] : memref<128x256xf32, #tpu.memory_space<vmem>>, vector<128x256xf32>
    %c0_2 = arith.constant 0 : index
    %c0_3 = arith.constant 0 : index
    %4 = vector.load %arg3[%c0_2, %c0_3] : memref<128x512xbf16, #tpu.memory_space<vmem>>, vector<128x512xbf16>
    %c0_4 = arith.constant 0 : index
    %c0_5 = arith.constant 0 : index
    %5 = vector.load %arg4[%c0_4, %c0_5] : memref<512x256xbf16, #tpu.memory_space<vmem>>, vector<512x256xbf16>
    %cst = arith.constant dense<0.000000e+00> : vector<128x256xf32>
    %6 = tpu.matmul %4, %5, %cst {dimension_numbers = #tpu.dot_dimension_numbers<[1], [0], [0], [1], [0, 0, 1, 1], [], []>} : vector<128x512xbf16>, vector<512x256xbf16>, vector<128x256xf32> -> vector<128x256xf32>
    %7 = arith.addf %3, %6 : vector<128x256xf32>
    %c0_6 = arith.constant 0 : index
    %c0_7 = arith.constant 0 : index
    %8 = vector.load %arg7[%c0_6, %c0_7] : memref<128x256xf32, #tpu.memory_space<vmem>>, vector<128x256xf32>
    tpu.vector_store %arg7[%c0_6, %c0_7], %7 {strides = array<i32>} : memref<128x256xf32, #tpu.memory_space<vmem>>, vector<128x256xf32>,
    %c5_i32 = arith.constant 5 : i32
    %9 = arith.cmpi eq, %arg2, %c5_i32 : i32
    %10 = arith.extui %9 : i1 to i32
    %c0_i32_8 = arith.constant 0 : i32
    %11 = arith.cmpi ne, %10, %c0_i32_8 : i32
    scf.if %11 {
      %c0_9 = arith.constant 0 : index
      %c0_10 = arith.constant 0 : index
      %12 = vector.load %arg7[%c0_9, %c0_10] : memref<128x256xf32, #tpu.memory_space<vmem>>, vector<128x256xf32>
      %c0_11 = arith.constant 0 : index
      %c0_12 = arith.constant 0 : index
      %13 = vector.load %arg5[%c0_11, %c0_12] : memref<1x256xf32, #tpu.memory_space<vmem>>, vector<1x256xf32>
      %14 = vector.broadcast %13 : vector<1x256xf32> to vector<128x256xf32>
      %15 = arith.addf %12, %14 : vector<128x256xf32>
      %cst_13 = arith.constant 0.000000e+00 : f32
      %16 = vector.broadcast %cst_13 : f32 to vector<128x256xf32>
      %17 = arith.maximumf %15, %16 : vector<128x256xf32>
      %18 = arith.truncf %17 : vector<128x256xf32> to vector<128x256xbf16>
      %c0_14 = arith.constant 0 : index
      %c0_15 = arith.constant 0 : index
      %19 = vector.load %arg6[%c0_14, %c0_15] : memref<128x256xbf16, #tpu.memory_space<vmem>>, vector<128x256xbf16>
      tpu.vector_store %arg6[%c0_14, %c0_15], %18 {strides = array<i32>} : memref<128x256xbf16, #tpu.memory_space<vmem>>, vector<128x256xbf16>,
    } else {
    }
    return
  }
  func.func @transform_0(%arg0: i32, %arg1: i32, %arg2: i32) -> (i32, i32) {
    %c0_i32 = arith.constant 0 : i32
    return %arg0, %arg2 : i32, i32
  }
  func.func @transform_1(%arg0: i32, %arg1: i32, %arg2: i32) -> (i32, i32) {
    %c0_i32 = arith.constant 0 : i32
    return %arg2, %arg1 : i32, i32
  }
  func.func @transform_2(%arg0: i32, %arg1: i32, %arg2: i32) -> (i32, i32) {
    %c0_i32 = arith.constant 0 : i32
    %c0_i32_0 = arith.constant 0 : i32
    return %c0_i32, %arg1 : i32, i32
  }
  func.func @transform_3(%arg0: i32, %arg1: i32, %arg2: i32) -> (i32, i32) {
    %c0_i32 = arith.constant 0 : i32
    return %arg0, %arg1 : i32, i32
  }
}

module attributes {stable_mosaic.version = 11 : i64} {
  func.func @_sa_kernel(%arg0: i32, %arg1: i32, %arg2: i32, %arg3: memref<128x512xbf16, #tpu.memory_space<vmem>>, %arg4: memref<512x256xbf16, #tpu.memory_space<vmem>>, %arg5: memref<512x256xbf16, #tpu.memory_space<vmem>>, %arg6: memref<128x256xbf16, #tpu.memory_space<vmem>>, %arg7: memref<128x256xbf16, #tpu.memory_space<vmem>>, %arg8: memref<128x256xf32, #tpu.memory_space<vmem>>, %arg9: memref<128x256xf32, #tpu.memory_space<vmem>>) attributes {dimension_semantics = [#tpu.dimension_semantics<parallel>, #tpu.dimension_semantics<parallel>, #tpu.dimension_semantics<arbitrary>], iteration_bounds = array<i64: 1, 1, 5>, scalar_prefetch = 0 : i64, scratch_operands = 2 : i64, tpu.core_type = #tpu.core_type<tc>, window_params = [{transform_indices = @transform_0, window_bounds = array<i64: 128, 512>}, {transform_indices = @transform_1, window_bounds = array<i64: 512, 256>}, {transform_indices = @transform_2, window_bounds = array<i64: 512, 256>}, {transform_indices = @transform_3, window_bounds = array<i64: 128, 256>}, {transform_indices = @transform_4, window_bounds = array<i64: 128, 256>}]} {
    %c0_i32 = arith.constant 0 : i32
    %0 = arith.cmpi eq, %arg2, %c0_i32 : i32
    %1 = arith.extui %0 : i1 to i32
    %c0_i32_0 = arith.constant 0 : i32
    %2 = arith.cmpi ne, %1, %c0_i32_0 : i32
    scf.if %2 {
      %cst_16 = arith.constant 0.000000e+00 : f32
      %17 = vector.broadcast %cst_16 : f32 to vector<128x256xf32>
      %c0_17 = arith.constant 0 : index
      %c0_18 = arith.constant 0 : index
      %18 = vector.load %arg8[%c0_17, %c0_18] : memref<128x256xf32, #tpu.memory_space<vmem>>, vector<128x256xf32>
      tpu.vector_store %arg8[%c0_17, %c0_18], %17 {strides = array<i32>} : memref<128x256xf32, #tpu.memory_space<vmem>>, vector<128x256xf32>,
      %cst_19 = arith.constant 0.000000e+00 : f32
      %19 = vector.broadcast %cst_19 : f32 to vector<128x256xf32>
      %c0_20 = arith.constant 0 : index
      %c0_21 = arith.constant 0 : index
      %20 = vector.load %arg9[%c0_20, %c0_21] : memref<128x256xf32, #tpu.memory_space<vmem>>, vector<128x256xf32>
      tpu.vector_store %arg9[%c0_20, %c0_21], %19 {strides = array<i32>} : memref<128x256xf32, #tpu.memory_space<vmem>>, vector<128x256xf32>,
    } else {
    }
    %c0 = arith.constant 0 : index
    %c0_1 = arith.constant 0 : index
    %3 = vector.load %arg3[%c0, %c0_1] : memref<128x512xbf16, #tpu.memory_space<vmem>>, vector<128x512xbf16>
    %c0_2 = arith.constant 0 : index
    %c0_3 = arith.constant 0 : index
    %4 = vector.load %arg8[%c0_2, %c0_3] : memref<128x256xf32, #tpu.memory_space<vmem>>, vector<128x256xf32>
    %c0_4 = arith.constant 0 : index
    %c0_5 = arith.constant 0 : index
    %5 = vector.load %arg4[%c0_4, %c0_5] : memref<512x256xbf16, #tpu.memory_space<vmem>>, vector<512x256xbf16>
    %cst = arith.constant dense<0.000000e+00> : vector<128x256xf32>
    %6 = tpu.matmul %3, %5, %cst {dimension_numbers = #tpu.dot_dimension_numbers<[1], [0], [0], [1], [0, 0, 1, 1], [], []>} : vector<128x512xbf16>, vector<512x256xbf16>, vector<128x256xf32> -> vector<128x256xf32>
    %7 = arith.addf %4, %6 : vector<128x256xf32>
    %c0_6 = arith.constant 0 : index
    %c0_7 = arith.constant 0 : index
    %8 = vector.load %arg8[%c0_6, %c0_7] : memref<128x256xf32, #tpu.memory_space<vmem>>, vector<128x256xf32>
    tpu.vector_store %arg8[%c0_6, %c0_7], %7 {strides = array<i32>} : memref<128x256xf32, #tpu.memory_space<vmem>>, vector<128x256xf32>,
    %c0_8 = arith.constant 0 : index
    %c0_9 = arith.constant 0 : index
    %9 = vector.load %arg9[%c0_8, %c0_9] : memref<128x256xf32, #tpu.memory_space<vmem>>, vector<128x256xf32>
    %c0_10 = arith.constant 0 : index
    %c0_11 = arith.constant 0 : index
    %10 = vector.load %arg5[%c0_10, %c0_11] : memref<512x256xbf16, #tpu.memory_space<vmem>>, vector<512x256xbf16>
    %cst_12 = arith.constant dense<0.000000e+00> : vector<128x256xf32>
    %11 = tpu.matmul %3, %10, %cst_12 {dimension_numbers = #tpu.dot_dimension_numbers<[1], [0], [0], [1], [0, 0, 1, 1], [], []>} : vector<128x512xbf16>, vector<512x256xbf16>, vector<128x256xf32> -> vector<128x256xf32>
    %12 = arith.addf %9, %11 : vector<128x256xf32>
    %c0_13 = arith.constant 0 : index
    %c0_14 = arith.constant 0 : index
    %13 = vector.load %arg9[%c0_13, %c0_14] : memref<128x256xf32, #tpu.memory_space<vmem>>, vector<128x256xf32>
    tpu.vector_store %arg9[%c0_13, %c0_14], %12 {strides = array<i32>} : memref<128x256xf32, #tpu.memory_space<vmem>>, vector<128x256xf32>,
    %c4_i32 = arith.constant 4 : i32
    %14 = arith.cmpi eq, %arg2, %c4_i32 : i32
    %15 = arith.extui %14 : i1 to i32
    %c0_i32_15 = arith.constant 0 : i32
    %16 = arith.cmpi ne, %15, %c0_i32_15 : i32
    scf.if %16 {
      %c0_16 = arith.constant 0 : index
      %c0_17 = arith.constant 0 : index
      %17 = vector.load %arg8[%c0_16, %c0_17] : memref<128x256xf32, #tpu.memory_space<vmem>>, vector<128x256xf32>
      %c0_18 = arith.constant 0 : index
      %c0_19 = arith.constant 0 : index
      %18 = vector.load %arg9[%c0_18, %c0_19] : memref<128x256xf32, #tpu.memory_space<vmem>>, vector<128x256xf32>
      %19 = arith.negf %18 : vector<128x256xf32>
      %20 = math.exp %19 : vector<128x256xf32>
      %cst_20 = arith.constant 1.000000e+00 : f32
      %21 = vector.broadcast %cst_20 : f32 to vector<128x256xf32>
      %22 = arith.addf %21, %20 : vector<128x256xf32>
      %23 = arith.divf %21, %22 : vector<128x256xf32>
      %24 = arith.mulf %17, %23 : vector<128x256xf32>
      %c0_21 = arith.constant 0 : index
      %c0_22 = arith.constant 0 : index
      %25 = vector.load %arg6[%c0_21, %c0_22] : memref<128x256xbf16, #tpu.memory_space<vmem>>, vector<128x256xbf16>
      %26 = arith.extf %25 : vector<128x256xbf16> to vector<128x256xf32>
      %27 = arith.addf %26, %24 : vector<128x256xf32>
      %28 = arith.truncf %27 : vector<128x256xf32> to vector<128x256xbf16>
      %c0_23 = arith.constant 0 : index
      %c0_24 = arith.constant 0 : index
      %29 = vector.load %arg7[%c0_23, %c0_24] : memref<128x256xbf16, #tpu.memory_space<vmem>>, vector<128x256xbf16>
      tpu.vector_store %arg7[%c0_23, %c0_24], %28 {strides = array<i32>} : memref<128x256xbf16, #tpu.memory_space<vmem>>, vector<128x256xbf16>,
    } else {
    }
    return
  }
  func.func @transform_0(%arg0: i32, %arg1: i32, %arg2: i32) -> (i32, i32) {
    %c0_i32 = arith.constant 0 : i32
    return %arg0, %arg2 : i32, i32
  }
  func.func @transform_1(%arg0: i32, %arg1: i32, %arg2: i32) -> (i32, i32) {
    %c0_i32 = arith.constant 0 : i32
    return %arg2, %arg1 : i32, i32
  }
  func.func @transform_2(%arg0: i32, %arg1: i32, %arg2: i32) -> (i32, i32) {
    %c0_i32 = arith.constant 0 : i32
    return %arg2, %arg1 : i32, i32
  }
  func.func @transform_3(%arg0: i32, %arg1: i32, %arg2: i32) -> (i32, i32) {
    %c0_i32 = arith.constant 0 : i32
    return %arg0, %arg1 : i32, i32
  }
  func.func @transform_4(%arg0: i32, %arg1: i32, %arg2: i32) -> (i32, i32) {
    %c0_i32 = arith.constant 0 : i32
    return %arg0, %arg1 : i32, i32
  }
}

module attributes {stable_mosaic.version = 11 : i64} {
  func.func @_mm_kernel(%arg0: i32, %arg1: i32, %arg2: i32, %arg3: memref<128x512xbf16, #tpu.memory_space<vmem>>, %arg4: memref<512x256xbf16, #tpu.memory_space<vmem>>, %arg5: memref<1x256xf32, #tpu.memory_space<vmem>>, %arg6: memref<128x256xbf16, #tpu.memory_space<vmem>>, %arg7: memref<128x256xf32, #tpu.memory_space<vmem>>) attributes {dimension_semantics = [#tpu.dimension_semantics<parallel>, #tpu.dimension_semantics<parallel>, #tpu.dimension_semantics<arbitrary>], iteration_bounds = array<i64: 1, 1, 5>, scalar_prefetch = 0 : i64, scratch_operands = 1 : i64, tpu.core_type = #tpu.core_type<tc>, window_params = [{transform_indices = @transform_0, window_bounds = array<i64: 128, 512>}, {transform_indices = @transform_1, window_bounds = array<i64: 512, 256>}, {transform_indices = @transform_2, window_bounds = array<i64: 1, 256>}, {transform_indices = @transform_3, window_bounds = array<i64: 128, 256>}]} {
    %c0_i32 = arith.constant 0 : i32
    %0 = arith.cmpi eq, %arg2, %c0_i32 : i32
    %1 = arith.extui %0 : i1 to i32
    %c0_i32_0 = arith.constant 0 : i32
    %2 = arith.cmpi ne, %1, %c0_i32_0 : i32
    scf.if %2 {
      %cst_9 = arith.constant 0.000000e+00 : f32
      %12 = vector.broadcast %cst_9 : f32 to vector<128x256xf32>
      %c0_10 = arith.constant 0 : index
      %c0_11 = arith.constant 0 : index
      %13 = vector.load %arg7[%c0_10, %c0_11] : memref<128x256xf32, #tpu.memory_space<vmem>>, vector<128x256xf32>
      tpu.vector_store %arg7[%c0_10, %c0_11], %12 {strides = array<i32>} : memref<128x256xf32, #tpu.memory_space<vmem>>, vector<128x256xf32>,
    } else {
    }
    %c0 = arith.constant 0 : index
    %c0_1 = arith.constant 0 : index
    %3 = vector.load %arg7[%c0, %c0_1] : memref<128x256xf32, #tpu.memory_space<vmem>>, vector<128x256xf32>
    %c0_2 = arith.constant 0 : index
    %c0_3 = arith.constant 0 : index
    %4 = vector.load %arg3[%c0_2, %c0_3] : memref<128x512xbf16, #tpu.memory_space<vmem>>, vector<128x512xbf16>
    %c0_4 = arith.constant 0 : index
    %c0_5 = arith.constant 0 : index
    %5 = vector.load %arg4[%c0_4, %c0_5] : memref<512x256xbf16, #tpu.memory_space<vmem>>, vector<512x256xbf16>
    %cst = arith.constant dense<0.000000e+00> : vector<128x256xf32>
    %6 = tpu.matmul %4, %5, %cst {dimension_numbers = #tpu.dot_dimension_numbers<[1], [0], [0], [1], [0, 0, 1, 1], [], []>} : vector<128x512xbf16>, vector<512x256xbf16>, vector<128x256xf32> -> vector<128x256xf32>
    %7 = arith.addf %3, %6 : vector<128x256xf32>
    %c0_6 = arith.constant 0 : index
    %c0_7 = arith.constant 0 : index
    %8 = vector.load %arg7[%c0_6, %c0_7] : memref<128x256xf32, #tpu.memory_space<vmem>>, vector<128x256xf32>
    tpu.vector_store %arg7[%c0_6, %c0_7], %7 {strides = array<i32>} : memref<128x256xf32, #tpu.memory_space<vmem>>, vector<128x256xf32>,
    %c4_i32 = arith.constant 4 : i32
    %9 = arith.cmpi eq, %arg2, %c4_i32 : i32
    %10 = arith.extui %9 : i1 to i32
    %c0_i32_8 = arith.constant 0 : i32
    %11 = arith.cmpi ne, %10, %c0_i32_8 : i32
    scf.if %11 {
      %c0_9 = arith.constant 0 : index
      %c0_10 = arith.constant 0 : index
      %12 = vector.load %arg7[%c0_9, %c0_10] : memref<128x256xf32, #tpu.memory_space<vmem>>, vector<128x256xf32>
      %c0_11 = arith.constant 0 : index
      %c0_12 = arith.constant 0 : index
      %13 = vector.load %arg5[%c0_11, %c0_12] : memref<1x256xf32, #tpu.memory_space<vmem>>, vector<1x256xf32>
      %14 = vector.broadcast %13 : vector<1x256xf32> to vector<128x256xf32>
      %15 = arith.addf %12, %14 : vector<128x256xf32>
      %cst_13 = arith.constant 0.000000e+00 : f32
      %16 = vector.broadcast %cst_13 : f32 to vector<128x256xf32>
      %17 = arith.maximumf %15, %16 : vector<128x256xf32>
      %18 = arith.truncf %17 : vector<128x256xf32> to vector<128x256xbf16>
      %c0_14 = arith.constant 0 : index
      %c0_15 = arith.constant 0 : index
      %19 = vector.load %arg6[%c0_14, %c0_15] : memref<128x256xbf16, #tpu.memory_space<vmem>>, vector<128x256xbf16>
      tpu.vector_store %arg6[%c0_14, %c0_15], %18 {strides = array<i32>} : memref<128x256xbf16, #tpu.memory_space<vmem>>, vector<128x256xbf16>,
    } else {
    }
    return
  }
  func.func @transform_0(%arg0: i32, %arg1: i32, %arg2: i32) -> (i32, i32) {
    %c0_i32 = arith.constant 0 : i32
    return %arg0, %arg2 : i32, i32
  }
  func.func @transform_1(%arg0: i32, %arg1: i32, %arg2: i32) -> (i32, i32) {
    %c0_i32 = arith.constant 0 : i32
    return %arg2, %arg1 : i32, i32
  }
  func.func @transform_2(%arg0: i32, %arg1: i32, %arg2: i32) -> (i32, i32) {
    %c0_i32 = arith.constant 0 : i32
    %c0_i32_0 = arith.constant 0 : i32
    return %c0_i32, %arg1 : i32, i32
  }
  func.func @transform_3(%arg0: i32, %arg1: i32, %arg2: i32) -> (i32, i32) {
    %c0_i32 = arith.constant 0 : i32
    return %arg0, %arg1 : i32, i32
  }
}

module attributes {stable_mosaic.version = 11 : i64} {
  func.func @_mm_kernel(%arg0: i32, %arg1: i32, %arg2: i32, %arg3: memref<128x256xbf16, #tpu.memory_space<vmem>>, %arg4: memref<256x128xbf16, #tpu.memory_space<vmem>>, %arg5: memref<1x128xf32, #tpu.memory_space<vmem>>, %arg6: memref<128x128xbf16, #tpu.memory_space<vmem>>, %arg7: memref<128x128xf32, #tpu.memory_space<vmem>>) attributes {dimension_semantics = [#tpu.dimension_semantics<parallel>, #tpu.dimension_semantics<parallel>, #tpu.dimension_semantics<arbitrary>], iteration_bounds = array<i64: 1, 1, 1>, scalar_prefetch = 0 : i64, scratch_operands = 1 : i64, tpu.core_type = #tpu.core_type<tc>, window_params = [{transform_indices = @transform_0, window_bounds = array<i64: 128, 256>}, {transform_indices = @transform_1, window_bounds = array<i64: 256, 128>}, {transform_indices = @transform_2, window_bounds = array<i64: 1, 128>}, {transform_indices = @transform_3, window_bounds = array<i64: 128, 128>}]} {
    %c0_i32 = arith.constant 0 : i32
    %0 = arith.cmpi eq, %arg2, %c0_i32 : i32
    %1 = arith.extui %0 : i1 to i32
    %c0_i32_0 = arith.constant 0 : i32
    %2 = arith.cmpi ne, %1, %c0_i32_0 : i32
    scf.if %2 {
      %cst_10 = arith.constant 0.000000e+00 : f32
      %12 = vector.broadcast %cst_10 : f32 to vector<128x128xf32>
      %c0_11 = arith.constant 0 : index
      %c0_12 = arith.constant 0 : index
      %13 = vector.load %arg7[%c0_11, %c0_12] : memref<128x128xf32, #tpu.memory_space<vmem>>, vector<128x128xf32>
      tpu.vector_store %arg7[%c0_11, %c0_12], %12 {strides = array<i32>} : memref<128x128xf32, #tpu.memory_space<vmem>>, vector<128x128xf32>,
    } else {
    }
    %c0 = arith.constant 0 : index
    %c0_1 = arith.constant 0 : index
    %3 = vector.load %arg7[%c0, %c0_1] : memref<128x128xf32, #tpu.memory_space<vmem>>, vector<128x128xf32>
    %c0_2 = arith.constant 0 : index
    %c0_3 = arith.constant 0 : index
    %4 = vector.load %arg3[%c0_2, %c0_3] : memref<128x256xbf16, #tpu.memory_space<vmem>>, vector<128x256xbf16>
    %c0_4 = arith.constant 0 : index
    %c0_5 = arith.constant 0 : index
    %5 = vector.load %arg4[%c0_4, %c0_5] : memref<256x128xbf16, #tpu.memory_space<vmem>>, vector<256x128xbf16>
    %cst = arith.constant dense<0.000000e+00> : vector<128x128xf32>
    %6 = tpu.matmul %4, %5, %cst {dimension_numbers = #tpu.dot_dimension_numbers<[1], [0], [0], [1], [0, 0, 1, 1], [], []>} : vector<128x256xbf16>, vector<256x128xbf16>, vector<128x128xf32> -> vector<128x128xf32>
    %7 = arith.addf %3, %6 : vector<128x128xf32>
    %c0_6 = arith.constant 0 : index
    %c0_7 = arith.constant 0 : index
    %8 = vector.load %arg7[%c0_6, %c0_7] : memref<128x128xf32, #tpu.memory_space<vmem>>, vector<128x128xf32>
    tpu.vector_store %arg7[%c0_6, %c0_7], %7 {strides = array<i32>} : memref<128x128xf32, #tpu.memory_space<vmem>>, vector<128x128xf32>,
    %c0_i32_8 = arith.constant 0 : i32
    %9 = arith.cmpi eq, %arg2, %c0_i32_8 : i32
    %10 = arith.extui %9 : i1 to i32
    %c0_i32_9 = arith.constant 0 : i32
    %11 = arith.cmpi ne, %10, %c0_i32_9 : i32
    scf.if %11 {
      %c0_10 = arith.constant 0 : index
      %c0_11 = arith.constant 0 : index
      %12 = vector.load %arg7[%c0_10, %c0_11] : memref<128x128xf32, #tpu.memory_space<vmem>>, vector<128x128xf32>
      %c0_12 = arith.constant 0 : index
      %c0_13 = arith.constant 0 : index
      %13 = vector.load %arg5[%c0_12, %c0_13] : memref<1x128xf32, #tpu.memory_space<vmem>>, vector<1x128xf32>
      %14 = vector.broadcast %13 : vector<1x128xf32> to vector<128x128xf32>
      %15 = arith.addf %12, %14 : vector<128x128xf32>
      %16 = arith.truncf %15 : vector<128x128xf32> to vector<128x128xbf16>
      %c0_14 = arith.constant 0 : index
      %c0_15 = arith.constant 0 : index
      %17 = vector.load %arg6[%c0_14, %c0_15] : memref<128x128xbf16, #tpu.memory_space<vmem>>, vector<128x128xbf16>
      tpu.vector_store %arg6[%c0_14, %c0_15], %16 {strides = array<i32>} : memref<128x128xbf16, #tpu.memory_space<vmem>>, vector<128x128xbf16>,
    } else {
    }
    return
  }
  func.func @transform_0(%arg0: i32, %arg1: i32, %arg2: i32) -> (i32, i32) {
    %c0_i32 = arith.constant 0 : i32
    return %arg0, %arg2 : i32, i32
  }
  func.func @transform_1(%arg0: i32, %arg1: i32, %arg2: i32) -> (i32, i32) {
    %c0_i32 = arith.constant 0 : i32
    return %arg2, %arg1 : i32, i32
  }
  func.func @transform_2(%arg0: i32, %arg1: i32, %arg2: i32) -> (i32, i32) {
    %c0_i32 = arith.constant 0 : i32
    %c0_i32_0 = arith.constant 0 : i32
    return %c0_i32, %arg1 : i32, i32
  }
  func.func @transform_3(%arg0: i32, %arg1: i32, %arg2: i32) -> (i32, i32) {
    %c0_i32 = arith.constant 0 : i32
    return %arg0, %arg1 : i32, i32
  }
}

module attributes {stable_mosaic.version = 11 : i64} {
  func.func @_rowmix_kernel(%arg0: i32, %arg1: memref<32x8xf32, #tpu.memory_space<vmem>>, %arg2: memref<1x8x5xbf16, #tpu.memory_space<vmem>>, %arg3: memref<1x32x5xbf16, #tpu.memory_space<vmem>>) attributes {dimension_semantics = [#tpu.dimension_semantics<parallel>], iteration_bounds = array<i64: 64>, scalar_prefetch = 0 : i64, scratch_operands = 0 : i64, tpu.core_type = #tpu.core_type<tc>, window_params = [{pipeline_mode = #tpu.pipeline_mode<synchronous>, transform_indices = @transform_0, window_bounds = array<i64: 32, 8>}, {transform_indices = @transform_1, window_bounds = array<i64: 1, 8, 5>}, {transform_indices = @transform_2, window_bounds = array<i64: 1, 32, 5>}]} {
    %c0 = arith.constant 0 : index
    %c0_0 = arith.constant 0 : index
    %0 = vector.load %arg1[%c0, %c0_0] : memref<32x8xf32, #tpu.memory_space<vmem>>, vector<32x8xf32>
    %c0_1 = arith.constant 0 : index
    %c0_2 = arith.constant 0 : index
    %c0_3 = arith.constant 0 : index
    %1 = vector.load %arg2[%c0_1, %c0_2, %c0_3] : memref<1x8x5xbf16, #tpu.memory_space<vmem>>, vector<1x8x5xbf16>
    %2 = vector.shape_cast %1 : vector<1x8x5xbf16> to vector<8x5xbf16>
    %3 = arith.extf %2 : vector<8x5xbf16> to vector<8x5xf32>
    %cst = arith.constant dense<0.000000e+00> : vector<32x5xf32>
    %4 = tpu.matmul %0, %3, %cst {dimension_numbers = #tpu.dot_dimension_numbers<[1], [0], [0], [1], [0, 0, 1, 1], [], []>} : vector<32x8xf32>, vector<8x5xf32>, vector<32x5xf32> -> vector<32x5xf32>
    %5 = arith.truncf %4 : vector<32x5xf32> to vector<32x5xbf16>
    %c0_4 = arith.constant 0 : index
    %c0_5 = arith.constant 0 : index
    %c0_6 = arith.constant 0 : index
    %6 = vector.load %arg3[%c0_4, %c0_5, %c0_6] : memref<1x32x5xbf16, #tpu.memory_space<vmem>>, vector<1x32x5xbf16>
    %7 = vector.shape_cast %6 : vector<1x32x5xbf16> to vector<32x5xbf16>
    %8 = vector.shape_cast %5 : vector<32x5xbf16> to vector<1x32x5xbf16>
    tpu.vector_store %arg3[%c0_4, %c0_5, %c0_6], %8 {strides = array<i32>} : memref<1x32x5xbf16, #tpu.memory_space<vmem>>, vector<1x32x5xbf16>,
    return
  }
  func.func @transform_0(%arg0: i32) -> (i32, i32) {
    %c0_i32 = arith.constant 0 : i32
    %c0_i32_0 = arith.constant 0 : i32
    %c0_i32_1 = arith.constant 0 : i32
    return %c0_i32, %c0_i32_0 : i32, i32
  }
  func.func @transform_1(%arg0: i32) -> (i32, i32, i32) {
    %c0_i32 = arith.constant 0 : i32
    %c0_i32_0 = arith.constant 0 : i32
    %c0_i32_1 = arith.constant 0 : i32
    return %arg0, %c0_i32, %c0_i32_0 : i32, i32, i32
  }
  func.func @transform_2(%arg0: i32) -> (i32, i32, i32) {
    %c0_i32 = arith.constant 0 : i32
    %c0_i32_0 = arith.constant 0 : i32
    %c0_i32_1 = arith.constant 0 : i32
    return %arg0, %c0_i32, %c0_i32_0 : i32, i32, i32
  }
}

module attributes {stable_mosaic.version = 11 : i64} {
  func.func @_rowmix_kernel(%arg0: i32, %arg1: memref<32x8xf32, #tpu.memory_space<vmem>>, %arg2: memref<1x8x40xbf16, #tpu.memory_space<vmem>>, %arg3: memref<1x32x40xbf16, #tpu.memory_space<vmem>>) attributes {dimension_semantics = [#tpu.dimension_semantics<parallel>], iteration_bounds = array<i64: 2>, scalar_prefetch = 0 : i64, scratch_operands = 0 : i64, tpu.core_type = #tpu.core_type<tc>, window_params = [{pipeline_mode = #tpu.pipeline_mode<synchronous>, transform_indices = @transform_0, window_bounds = array<i64: 32, 8>}, {transform_indices = @transform_1, window_bounds = array<i64: 1, 8, 40>}, {transform_indices = @transform_2, window_bounds = array<i64: 1, 32, 40>}]} {
    %c0 = arith.constant 0 : index
    %c0_0 = arith.constant 0 : index
    %0 = vector.load %arg1[%c0, %c0_0] : memref<32x8xf32, #tpu.memory_space<vmem>>, vector<32x8xf32>
    %c0_1 = arith.constant 0 : index
    %c0_2 = arith.constant 0 : index
    %c0_3 = arith.constant 0 : index
    %1 = vector.load %arg2[%c0_1, %c0_2, %c0_3] : memref<1x8x40xbf16, #tpu.memory_space<vmem>>, vector<1x8x40xbf16>
    %2 = vector.shape_cast %1 : vector<1x8x40xbf16> to vector<8x40xbf16>
    %3 = arith.extf %2 : vector<8x40xbf16> to vector<8x40xf32>
    %cst = arith.constant dense<0.000000e+00> : vector<32x40xf32>
    %4 = tpu.matmul %0, %3, %cst {dimension_numbers = #tpu.dot_dimension_numbers<[1], [0], [0], [1], [0, 0, 1, 1], [], []>} : vector<32x8xf32>, vector<8x40xf32>, vector<32x40xf32> -> vector<32x40xf32>
    %5 = arith.truncf %4 : vector<32x40xf32> to vector<32x40xbf16>
    %c0_4 = arith.constant 0 : index
    %c0_5 = arith.constant 0 : index
    %c0_6 = arith.constant 0 : index
    %6 = vector.load %arg3[%c0_4, %c0_5, %c0_6] : memref<1x32x40xbf16, #tpu.memory_space<vmem>>, vector<1x32x40xbf16>
    %7 = vector.shape_cast %6 : vector<1x32x40xbf16> to vector<32x40xbf16>
    %8 = vector.shape_cast %5 : vector<32x40xbf16> to vector<1x32x40xbf16>
    tpu.vector_store %arg3[%c0_4, %c0_5, %c0_6], %8 {strides = array<i32>} : memref<1x32x40xbf16, #tpu.memory_space<vmem>>, vector<1x32x40xbf16>,
    return
  }
  func.func @transform_0(%arg0: i32) -> (i32, i32) {
    %c0_i32 = arith.constant 0 : i32
    %c0_i32_0 = arith.constant 0 : i32
    %c0_i32_1 = arith.constant 0 : i32
    return %c0_i32, %c0_i32_0 : i32, i32
  }
  func.func @transform_1(%arg0: i32) -> (i32, i32, i32) {
    %c0_i32 = arith.constant 0 : i32
    %c0_i32_0 = arith.constant 0 : i32
    %c0_i32_1 = arith.constant 0 : i32
    return %arg0, %c0_i32, %c0_i32_0 : i32, i32, i32
  }
  func.func @transform_2(%arg0: i32) -> (i32, i32, i32) {
    %c0_i32 = arith.constant 0 : i32
    %c0_i32_0 = arith.constant 0 : i32
    %c0_i32_1 = arith.constant 0 : i32
    return %arg0, %c0_i32, %c0_i32_0 : i32, i32, i32
  }
}

</mosaic_0001>

<bundles_post_ra>
// kernel: model_forward.28
= control target key start
LH: loop header
LB: loop body
LE: loop exit
PB: predicated region body
PF: predicated region fallthrough
CT: control target
= control target key end

     0   :  { %s1059_s12 = smov 0   ;;  %s1061_s13 = smov 0   ;;  %s1146_s0 = inlined_call_operand.vmem [shape: bf16[512,128], index: 0, kind: input, shape index: {}]   ;;  %s1147_s1 = inlined_call_operand.vmem [shape: bf16[128,128], index: 1, kind: input, shape index: {}]   ;;  %s1148_s2 = inlined_call_operand.vmem [shape: f32[1,128], index: 2, kind: input, shape index: {}]   ;;  %s1149_s3 = inlined_call_operand.vmem [shape: bf16[512,128], index: 3, kind: output, shape index: {}]  }
   0x1   :  { %s1063_s14 = smov 0  }
   0x2 LB: > { %s32_s15 = sadd.s32 1, %s1033_s13  ;;  %p808_p0 = scmp.ge.s32.totalorder %s1037_s14, 1  ;;  %s1037_s14 = sphi %s1063_s14, %s13_s14   ;;  %s1033_s13 = sphi %s1061_s13, %s1151_s13   ;;  %s1029_s12 = sphi %s1059_s12, %s1150_s12  }
   0x3   : > { %p34_p1 = scmp.ge.s32.totalorder %s32_s15, 4  ;;  %p188_p2 = scmp.lt.s32.totalorder %s1037_s14, 5 }
   0x5   : > { %s1153_s15 = smov (%p34_p1, %s32_s15), 0  ;;  %p189_p3 = pnand %p808_p0, %p188_p2 }
   0x6   : > { %s809_s18 = sshll.u32 (!%p189_p3), %s1029_s12, 4 }
   0x7   : > { %192 = sbr.rel (%p189_p3) target bundleno = 259 (0x103), region = 32  ;;  %p230_p4 = scmp.lt.s32.totalorder (!%p189_p3), %s809_s18, 63 }
   0xc   : > { %v999_v0 = vld [vmem:[%s1147_s1 + $0x38] sm:$0xff]   ;;  %v1000_v1 = vld [vmem:[%s1147_s1 + $0x30] sm:$0xff]   ;;  %s1155_s18 = smov (!%p230_p4, %s809_s18), 63  ;;  %v1001_v2 = vld [vmem:[%s1147_s1 + $0x28] sm:$0xff]  }
   0xd   : > { %927 = vmatprep.subr.bf16.mxu0 %v999_v0  ;;  %959 = vmatprep.subr.bf16.mxu1 %v999_v0  ;;  %s810_s23 = sshll.u32 %s1155_s18, 2  ;;  %v1002_v3 = vld [vmem:[%s1147_s1 + $0x20] sm:$0xff]   ;;  %v1003_v6 = vld [vmem:[%s1147_s1 + $0x18] sm:$0xff]   ;;  %v1004_v7 = vld [vmem:[%s1147_s1 + $0x10] sm:$0xff]  }
   0xe   : > { %928 = vmatpush3.bf16.msra.mxu0 %v999_v0  ;;  %967 = vmatpush3.bf16.msra.mxu1 %v999_v0  ;;  %s1094_s26 = scalar_lea.vmem %s1146_s0, %s810_s23  ;;  %v1005_v8 = vld [vmem:[%s1147_s1 + $0x8] sm:$0xff]   ;;  %v1006_v9 = vld [vmem:[%s1147_s1] sm:$0xff]   ;;  %s1127_s17 = scalar_lea.vmem %s1149_s3, %s810_s23 }
   0xf   : > { %929 = vmatprep.subr.bf16.mxu0 %v1000_v1  ;;  %960 = vmatprep.subr.bf16.mxu1 %v1000_v1  ;;  %v1007_v4 = vld [vmem:[%s1094_s26] sm:$0xff]   ;;  %v1009_v10 = vld [vmem:[%s1094_s26 + $0x8] sm:$0xff]   ;;  %v1011_v12 = vld [vmem:[%s1094_s26 + $0x10] sm:$0xff]  }
  0x10   : > { %v1008_v5 = vld [vmem:[%s1094_s26 + $0x20] sm:$0xff]   ;;  %943 = vmatprep.mubr.bf16.mxu0 %v1007_v4  ;;  %v1010_v11 = vld [vmem:[%s1094_s26 + $0x28] sm:$0xff]   ;;  %v1012_v13 = vld [vmem:[%s1094_s26 + $0x30] sm:$0xff]  }
  0x11   : > { %951 = vmatprep.mubr.bf16.mxu1 %v1008_v5  ;;  %v1013_v14 = vld [vmem:[%s1094_s26 + $0x18] sm:$0xff]   ;;  %v829_v16 = vld [vmem:[%s1148_s2] ss:$0 sm:$0xff] }
  0x12   : > { %930 = vmatpush3.bf16.msra.mxu0 %v1000_v1  ;;  %968 = vmatpush3.bf16.msra.mxu1 %v1000_v1  ;;  %v1014_v15 = vld [vmem:[%s1094_s26 + $0x38] sm:$0xff]  }
  0x13   : > { %931 = vmatprep.subr.bf16.mxu0 %v1001_v2  ;;  %961 = vmatprep.subr.bf16.mxu1 %v1001_v2 }
  0x16   : > { %932 = vmatpush3.bf16.msra.mxu0 %v1001_v2  ;;  %969 = vmatpush3.bf16.msra.mxu1 %v1001_v2 }
  0x17   : > { %933 = vmatprep.subr.bf16.mxu0 %v1002_v3  ;;  %962 = vmatprep.subr.bf16.mxu1 %v1002_v3 }
  0x1a   : > { %934 = vmatpush3.bf16.msra.mxu0 %v1002_v3  ;;  %970 = vmatpush3.bf16.msra.mxu1 %v1002_v3 }
  0x1b   : > { %935 = vmatprep.subr.bf16.mxu0 %v1003_v6  ;;  %963 = vmatprep.subr.bf16.mxu1 %v1003_v6 }
  0x1e   : > { %936 = vmatpush3.bf16.msra.mxu0 %v1003_v6  ;;  %971 = vmatpush3.bf16.msra.mxu1 %v1003_v6 }
  0x1f   : > { %937 = vmatprep.subr.bf16.mxu0 %v1004_v7  ;;  %964 = vmatprep.subr.bf16.mxu1 %v1004_v7 }
  0x22   : > { %938 = vmatpush3.bf16.msra.mxu0 %v1004_v7  ;;  %972 = vmatpush3.bf16.msra.mxu1 %v1004_v7 }
  0x23   : > { %939 = vmatprep.subr.bf16.mxu0 %v1005_v8  ;;  %965 = vmatprep.subr.bf16.mxu1 %v1005_v8 }
  0x26   : > { %940 = vmatpush3.bf16.msra.mxu0 %v1005_v8  ;;  %973 = vmatpush3.bf16.msra.mxu1 %v1005_v8 }
  0x27   : > { %941 = vmatprep.subr.bf16.mxu0 %v1006_v9  ;;  %966 = vmatprep.subr.bf16.mxu1 %v1006_v9 }
  0x2a   : > { %942 = vmatpush3.bf16.msra.mxu0 %v1006_v9  ;;  %974 = vmatpush3.bf16.msra.mxu1 %v1006_v9 }
  0x2d   : > { %944 = vmatmul.mubr.bf16.vlgmr.msra.gmra.mxu0 %v1009_v10  ;;  %952 = vmatmul.mubr.bf16.vlgmr.msra.gmra.mxu1 %v1010_v11 }
  0x2e   : > { %947 = vmatprep.mubr.bf16.mxu0 %v1011_v12  ;;  %955 = vmatprep.mubr.bf16.mxu1 %v1012_v13 }
  0x35   : > { %948 = vmatmul.mubr.bf16.gmra.mxu0 %v1013_v14  ;;  %956 = vmatmul.mubr.bf16.gmra.mxu1 %v1014_v15 }
  0xed   : > { %v945_v17 = vpop.f32.mrf.mxu0  ;;  %v953_v18 = vpop.f32.mrf.mxu1 }
  0xee   : > { %v581_v19 = vadd.f32 %v945_v17, %v829_v16  ;;  %v589_v20 = vadd.f32 %v953_v18, %v829_v16 }
  0xef   : > { %v458_v21 = vpop.f32.mrf.mxu0  ;;  %v490_v22 = vpop.f32.mrf.mxu1 }
  0xf0   : > { %v579_v23 = vadd.f32 %v829_v16, %v458_v21  ;;  %v587_v24 = vadd.f32 %v829_v16, %v490_v22  ;;  %v597_v29 = vmax.f32 %v581_v19, 0.0  ;;  %v605_v30 = vmax.f32 %v589_v20, 0.0 }
  0xf1   : > { %v946_v25 = vpop.f32.mrf.mxu0  ;;  %v954_v26 = vpop.f32.mrf.mxu1 }
  0xf2   : > { %v582_v27 = vadd.f32 %v946_v25, %v829_v16  ;;  %v590_v28 = vadd.f32 %v954_v26, %v829_v16  ;;  %v595_v37 = vmax.f32 %v579_v23, 0.0  ;;  %v603_v38 = vmax.f32 %v587_v24, 0.0 }
  0xf3   : > { %v461_v31 = vpop.f32.mrf.mxu0  ;;  %v493_v32 = vpop.f32.mrf.mxu1 }
  0xf4   : > { %v598_v33 = vmax.f32 %v582_v27, 0.0  ;;  %v606_v34 = vmax.f32 %v590_v28, 0.0  ;;  %v580_v35 = vadd.f32 %v829_v16, %v461_v31  ;;  %v588_v36 = vadd.f32 %v829_v16, %v493_v32 }
  0xf5   : > { %v949_v39 = vpop.f32.mrf.mxu0  ;;  %v957_v40 = vpop.f32.mrf.mxu1 }
  0xf6   : > { %v872_v41 = vpack.c.bf16 %v598_v33, %v597_v29  ;;  %v892_v42 = vpack.c.bf16 %v606_v34, %v605_v30  ;;  %v596_v43 = vmax.f32 %v580_v35, 0.0  ;;  %v604_v44 = vmax.f32 %v588_v36, 0.0 }
  0xf7   : > { %v585_v45 = vadd.f32 %v949_v39, %v829_v16  ;;  %v593_v46 = vadd.f32 %v957_v40, %v829_v16  ;;  %v474_v47 = vpop.f32.mrf.mxu0  ;;  %v506_v48 = vpop.f32.mrf.mxu1 }
  0xf8   : > { %904 = vst [vmem:[%s1127_s17 + $0x8] sm:$0xff] %v872_v41   ;;  %908 = vst [vmem:[%s1127_s17 + $0x28] sm:$0xff] %v892_v42   ;;  %v867_v49 = vpack.c.bf16 %v596_v43, %v595_v37  ;;  %v887_v50 = vpack.c.bf16 %v604_v44, %v603_v38  ;;  %v583_v51 = vadd.f32 %v829_v16, %v474_v47 }
  0xf9   : > { %v591_v52 = vadd.f32 %v829_v16, %v506_v48  ;;  %v950_v53 = vpop.f32.mrf.mxu0  ;;  %v958_v54 = vpop.f32.mrf.mxu1  ;;  %v601_v57 = vmax.f32 %v585_v45, 0.0  ;;  %v609_v58 = vmax.f32 %v593_v46, 0.0 }
  0xfa   : > { %868 = vst [vmem:[%s1127_s17] sm:$0xff] %v867_v49   ;;  %907 = vst [vmem:[%s1127_s17 + $0x20] sm:$0xff] %v887_v50   ;;  %v586_v55 = vadd.f32 %v950_v53, %v829_v16  ;;  %v594_v56 = vadd.f32 %v958_v54, %v829_v16  ;;  %v599_v1 = vmax.f32 %v583_v51, 0.0 }
  0xfb   : > { %v477_v59 = vpop.f32.mrf.mxu0  ;;  %v509_v60 = vpop.f32.mrf.mxu1  ;;  %v607_v2 = vmax.f32 %v591_v52, 0.0 }
  0xfc   : > { %v602_v61 = vmax.f32 %v586_v55, 0.0  ;;  %v610_v62 = vmax.f32 %v594_v56, 0.0  ;;  %v584_v63 = vadd.f32 %v829_v16, %v477_v59  ;;  %v592_v0 = vadd.f32 %v829_v16, %v509_v60 }
  0xfe   : > { %v882_v3 = vpack.c.bf16 %v602_v61, %v601_v57  ;;  %v902_v4 = vpack.c.bf16 %v610_v62, %v609_v58  ;;  %v600_v5 = vmax.f32 %v584_v63, 0.0  ;;  %v608_v6 = vmax.f32 %v592_v0, 0.0 }
 0x100   : > { %906 = vst [vmem:[%s1127_s17 + $0x18] sm:$0xff] %v882_v3   ;;  %910 = vst [vmem:[%s1127_s17 + $0x38] sm:$0xff] %v902_v4   ;;  %v877_v7 = vpack.c.bf16 %v600_v5, %v599_v1  ;;  %v897_v8 = vpack.c.bf16 %v608_v6, %v607_v2 }
 0x102   : > { %905 = vst [vmem:[%s1127_s17 + $0x10] sm:$0xff] %v877_v7   ;;  %909 = vst [vmem:[%s1127_s17 + $0x30] sm:$0xff] %v897_v8  }
 0x103 PF: > { %s13_s14 = sadd.s32 1, %s1037_s14   ;;  %s1150_s12 = smov %s1033_s13 }
 0x104   : > { %p10_p5 = scmp.ge.s32.totalorder %s13_s14, 6   ;;  %s1151_s13 = smov %s1153_s15 }
 0x106   :  { %12 = sbr.rel (!%p10_p5) target bundleno = 2 (0x2), region = 76 }

// kernel: model_forward.29
= control target key start
LH: loop header
LB: loop body
LE: loop exit
PB: predicated region body
PF: predicated region fallthrough
CT: control target
= control target key end

     0   :  { %s1276_s1 = inlined_call_operand.vmem [shape: bf16[384,128], index: 1, kind: input, shape index: {}]   ;;  %s1277_s0 = inlined_call_operand.vmem [shape: bf16[128,384], index: 0, kind: input, shape index: {}]   ;;  %s1278_s2 = inlined_call_operand.vmem [shape: f32[1,128], index: 2, kind: input, shape index: {}]   ;;  %s1279_s3 = inlined_call_operand.vmem [shape: bf16[128,128], index: 3, kind: output, shape index: {}]  }
   0x1   :  { %v1011_v0 = vld [vmem:[%s1276_s1 + $0x78] sm:$0xff]   ;;  %v1014_v3 = vld [vmem:[%s1276_s1 + $0x70] sm:$0xff]   ;;  %v1017_v6 = vld [vmem:[%s1276_s1 + $0x68] sm:$0xff]  }
   0x2   :  { %v1012_v1 = vld [vmem:[%s1276_s1 + $0x38] sm:$0xff]   ;;  %899 = vmatprep.subr.bf16.mxu0 %v1011_v0  ;;  %v1015_v4 = vld [vmem:[%s1276_s1 + $0x30] sm:$0xff]   ;;  %v1018_v7 = vld [vmem:[%s1276_s1 + $0x28] sm:$0xff]  }
   0x3   :  { %v1013_v2 = vld [vmem:[%s1276_s1 + $0xb8] sm:$0xff]   ;;  %900 = vmatpush3.bf16.msra.mxu0 %v1012_v1  ;;  %v1016_v5 = vld [vmem:[%s1276_s1 + $0xb0] sm:$0xff]   ;;  %v1019_v8 = vld [vmem:[%s1276_s1 + $0xa8] sm:$0xff]  }
   0x4   :  { %979 = vmatprep.subr.bf16.mxu1 %v1013_v2  ;;  %901 = vmatprep.subr.bf16.mxu0 %v1014_v3  ;;  %v1020_v9 = vld [vmem:[%s1276_s1 + $0x60] sm:$0xff]   ;;  %v1023_v12 = vld [vmem:[%s1276_s1 + $0x58] sm:$0xff]   ;;  %v1026_v15 = vld [vmem:[%s1276_s1 + $0x50] sm:$0xff]  }
   0x5   :  { %980 = vmatpush3.bf16.msra.mxu1 %v1013_v2  ;;  %v1021_v10 = vld [vmem:[%s1276_s1 + $0x20] sm:$0xff]   ;;  %v1025_v13 = vld [vmem:[%s1276_s1 + $0x98] sm:$0xff]   ;;  %v1028_v16 = vld [vmem:[%s1276_s1 + $0x90] sm:$0xff]  }
   0x6   :  { %981 = vmatprep.subr.bf16.mxu1 %v1016_v5  ;;  %v1022_v11 = vld [vmem:[%s1276_s1 + $0xa0] sm:$0xff]   ;;  %v1024_v14 = vld [vmem:[%s1276_s1 + $0x18] sm:$0xff]   ;;  %v1027_v17 = vld [vmem:[%s1276_s1 + $0x10] sm:$0xff]  }
   0x7   :  { %902 = vmatpush3.bf16.msra.mxu0 %v1015_v4  ;;  %v1029_v18 = vld [vmem:[%s1276_s1 + $0x48] sm:$0xff]   ;;  %v1032_v21 = vld [vmem:[%s1276_s1 + $0x40] sm:$0xff]   ;;  %v1047_v32 = vld [vmem:[%s1277_s0 + $0x50] ss:$12 sps:$4 sm:$0xff]  }
   0x8   :  { %903 = vmatprep.subr.bf16.mxu0 %v1017_v6  ;;  %v1030_v19 = vld [vmem:[%s1276_s1 + $0x8] sm:$0xff]   ;;  %v1034_v22 = vld [vmem:[%s1276_s1 + $0x80] sm:$0xff]   ;;  %v1045_v34 = vld [vmem:[%s1277_s0 + $0x30] ss:$12 sps:$4 sm:$0xff]  }
   0x9   :  { %982 = vmatpush3.bf16.msra.mxu1 %v1016_v5  ;;  %v1031_v20 = vld [vmem:[%s1276_s1 + $0x88] sm:$0xff]   ;;  %v1037_v23 = vld [vmem:[%s1277_s0 + $0x4] ss:$12 sps:$4 sm:$0xff]   ;;  %v1043_v31 = vld [vmem:[%s1277_s0 + $0x34] ss:$12 sps:$4 sm:$0xff]  }
   0xa   :  { %983 = vmatprep.subr.bf16.mxu1 %v1019_v8  ;;  %v1038_v24 = vld [vmem:[%s1277_s0 + $0x8] ss:$12 sps:$4 sm:$0xff]   ;;  %v1033_v25 = vld [vmem:[%s1276_s1] sm:$0xff]   ;;  %435 = vmatprep.mubr.bf16.mxu0 %v1037_v23  ;;  %v1048_v35 = vld [vmem:[%s1277_s0 + $0x4c] ss:$12 sps:$4 sm:$0xff]  }
   0xb   :  { %904 = vmatpush3.bf16.msra.mxu0 %v1018_v7  ;;  %995 = vmatprep.mubr.bf16.mxu1 %v1038_v24  ;;  %v1035_v26 = vld [vmem:[%s1277_s0] ss:$12 sps:$4 sm:$0xff]   ;;  %v1040_v27 = vld [vmem:[%s1277_s0 + $0x1c] ss:$12 sps:$4 sm:$0xff]   ;;  %v1046_v29 = vld [vmem:[%s1277_s0 + $0x38] ss:$12 sps:$4 sm:$0xff]  }
   0xc   :  { %905 = vmatprep.subr.bf16.mxu0 %v1020_v9  ;;  %v1039_v28 = vld [vmem:[%s1277_s0 + $0x20] ss:$12 sps:$4 sm:$0xff]   ;;  %v1042_v30 = vld [vmem:[%s1277_s0 + $0x18] ss:$12 sps:$4 sm:$0xff]   ;;  %v1054_v33 = vld [vmem:[%s1277_s0 + $0x68] ss:$12 sps:$4 sm:$0xff]  }
   0xd   :  { %984 = vmatpush3.bf16.msra.mxu1 %v1019_v8  ;;  %v1055_v36 = vld [vmem:[%s1277_s0 + $0x80] ss:$12 sps:$4 sm:$0xff]   ;;  %v1062_v37 = vld [vmem:[%s1277_s0 + $0x98] ss:$12 sps:$4 sm:$0xff]   ;;  %v1050_v38 = vld [vmem:[%s1277_s0 + $0x48] ss:$12 sps:$4 sm:$0xff]  }
   0xe   :  { %985 = vmatprep.subr.bf16.mxu1 %v1022_v11  ;;  %v1051_v39 = vld [vmem:[%s1277_s0 + $0x64] ss:$12 sps:$4 sm:$0xff]   ;;  %v1053_v41 = vld [vmem:[%s1277_s0 + $0x60] ss:$12 sps:$4 sm:$0xff]   ;;  %v1056_v42 = vld [vmem:[%s1277_s0 + $0x7c] ss:$12 sps:$4 sm:$0xff]  }
   0xf   :  { %906 = vmatpush3.bf16.msra.mxu0 %v1021_v10  ;;  %v1063_v40 = vld [vmem:[%s1277_s0 + $0xb0] ss:$12 sps:$4 sm:$0xff]   ;;  %v1058_v43 = vld [vmem:[%s1277_s0 + $0x78] ss:$12 sps:$4 sm:$0xff]   ;;  %v1059_v44 = vld [vmem:[%s1277_s0 + $0x94] ss:$12 sps:$4 sm:$0xff]  }
  0x10   :  { %907 = vmatprep.subr.bf16.mxu0 %v1023_v12  ;;  %v1061_v45 = vld [vmem:[%s1277_s0 + $0x90] ss:$12 sps:$4 sm:$0xff]   ;;  %v1064_v46 = vld [vmem:[%s1277_s0 + $0xac] ss:$12 sps:$4 sm:$0xff]   ;;  %v1066_v47 = vld [vmem:[%s1277_s0 + $0xa8] ss:$12 sps:$4 sm:$0xff]  }
  0x11   :  { %986 = vmatpush3.bf16.msra.mxu1 %v1022_v11  ;;  %v1234_v55 = vld [vmem:[%s1278_s2] ss:$0 sm:$0xff] }
  0x12   :  { %987 = vmatprep.subr.bf16.mxu1 %v1025_v13 }
  0x13   :  { %908 = vmatpush3.bf16.msra.mxu0 %v1024_v14 }
  0x14   :  { %909 = vmatprep.subr.bf16.mxu0 %v1026_v15 }
  0x15   :  { %988 = vmatpush3.bf16.msra.mxu1 %v1025_v13 }
  0x16   :  { %989 = vmatprep.subr.bf16.mxu1 %v1028_v16 }
  0x17   :  { %910 = vmatpush3.bf16.msra.mxu0 %v1027_v17 }
  0x18   :  { %911 = vmatprep.subr.bf16.mxu0 %v1029_v18 }
  0x19   :  { %990 = vmatpush3.bf16.msra.mxu1 %v1028_v16 }
  0x1a   :  { %991 = vmatprep.subr.bf16.mxu1 %v1031_v20 }
  0x1b   :  { %912 = vmatpush3.bf16.msra.mxu0 %v1030_v19 }
  0x1c   :  { %913 = vmatprep.subr.bf16.mxu0 %v1032_v21 }
  0x1d   :  { %992 = vmatpush3.bf16.msra.mxu1 %v1031_v20 }
  0x1e   :  { %993 = vmatprep.subr.bf16.mxu1 %v1034_v22 }
  0x1f   :  { %914 = vmatpush3.bf16.msra.mxu0 %v1033_v25 }
  0x21   :  { %994 = vmatpush3.bf16.msra.mxu1 %v1034_v22 }
  0x22   :  { %436 = vmatmul.mubr.bf16.vlgmr.msra.gmra.mxu0 %v1035_v26 }
  0x23   :  { %443 = vmatprep.mubr.bf16.mxu0 %v1040_v27 }
  0x24   :  { %996 = vmatmul.mubr.bf16.vlgmr.msra.gmra.mxu1 %v1039_v28 }
  0x25   :  { %999 = vmatprep.mubr.bf16.mxu1 %v1046_v29 }
  0x2a   :  { %444 = vmatmul.mubr.bf16.gmra.mxu0 %v1042_v30 }
  0x2b   :  { %451 = vmatprep.mubr.bf16.mxu0 %v1043_v31 }
  0x2c   :  { %1000 = vmatmul.mubr.bf16.gmra.mxu1 %v1047_v32 }
  0x2d   :  { %1003 = vmatprep.mubr.bf16.mxu1 %v1054_v33 }
  0x32   :  { %452 = vmatmul.mubr.bf16.gmra.mxu0 %v1045_v34 }
  0x33   :  { %459 = vmatprep.mubr.bf16.mxu0 %v1048_v35 }
  0x34   :  { %1004 = vmatmul.mubr.bf16.gmra.mxu1 %v1055_v36 }
  0x35   :  { %1007 = vmatprep.mubr.bf16.mxu1 %v1062_v37 }
  0x3a   :  { %460 = vmatmul.mubr.bf16.gmra.mxu0 %v1050_v38 }
  0x3b   :  { %467 = vmatprep.mubr.bf16.mxu0 %v1051_v39 }
  0x3c   :  { %1008 = vmatmul.mubr.bf16.gmra.mxu1 %v1063_v40 }
  0x42   :  { %468 = vmatmul.mubr.bf16.gmra.mxu0 %v1053_v41 }
  0x43   :  { %475 = vmatprep.mubr.bf16.mxu0 %v1056_v42 }
  0x4a   :  { %476 = vmatmul.mubr.bf16.gmra.mxu0 %v1058_v43 }
  0x4b   :  { %483 = vmatprep.mubr.bf16.mxu0 %v1059_v44 }
  0x52   :  { %484 = vmatmul.mubr.bf16.gmra.mxu0 %v1061_v45 }
  0x53   :  { %491 = vmatprep.mubr.bf16.mxu0 %v1064_v46 }
  0x5a   :  { %492 = vmatmul.mubr.bf16.gmra.mxu0 %v1066_v47 }
  0xe2   :  { %v915_v48 = vpop.f32.mrf.mxu0 }
  0xe4   :  { %v916_v49 = vpop.f32.mrf.mxu0  ;;  %v997_v50 = vpop.f32.mrf.mxu1 }
  0xe5   :  { %v917_v51 = vadd.f32 %v916_v49, %v915_v48 }
  0xe6   :  { %v918_v52 = vpop.f32.mrf.mxu0  ;;  %v534_v53 = vpop.f32.mrf.mxu1 }
  0xe7   :  { %v535_v54 = vadd.f32 %v917_v51, %v534_v53 }
  0xe8   :  { %v919_v56 = vpop.f32.mrf.mxu0  ;;  %v998_v57 = vpop.f32.mrf.mxu1 }
  0xe9   :  { %v920_v58 = vadd.f32 %v919_v56, %v918_v52  ;;  %v655_v61 = vadd.f32 %v1234_v55, %v535_v54 }
  0xea   :  { %v921_v59 = vpop.f32.mrf.mxu0  ;;  %v537_v60 = vpop.f32.mrf.mxu1 }
  0xeb   :  { %v538_v62 = vadd.f32 %v920_v58, %v537_v60  ;;  %v671_v4 = vmax.f32 %v655_v61, 0.0 }
  0xec   :  { %v922_v63 = vpop.f32.mrf.mxu0  ;;  %v1001_v0 = vpop.f32.mrf.mxu1 }
  0xed   :  { %v656_v1 = vadd.f32 %v1234_v55, %v538_v62  ;;  %v923_v2 = vadd.f32 %v922_v63, %v921_v59 }
  0xee   :  { %v924_v3 = vpop.f32.mrf.mxu0  ;;  %v550_v8 = vpop.f32.mrf.mxu1 }
  0xef   :  { %v672_v5 = vmax.f32 %v656_v1, 0.0  ;;  %v543_v6 = vadd.f32 %v997_v50, %v923_v2 }
  0xf0   :  { %v925_v7 = vpop.f32.mrf.mxu0  ;;  %v1002_v15 = vpop.f32.mrf.mxu1 }
  0xf1   :  { %v855_v9 = vpack.c.bf16 %v672_v5, %v671_v4  ;;  %v926_v10 = vadd.f32 %v925_v7, %v924_v3  ;;  %v657_v12 = vadd.f32 %v1234_v55, %v543_v6 }
  0xf2   :  { %v927_v11 = vpop.f32.mrf.mxu0  ;;  %v553_v23 = vpop.f32.mrf.mxu1 }
  0xf3   :  { %856 = vst [vmem:[%s1279_s3] sm:$0xff] %v855_v9   ;;  %v546_v13 = vadd.f32 %v998_v57, %v926_v10  ;;  %v673_v19 = vmax.f32 %v657_v12, 0.0 }
  0xf4   :  { %v928_v14 = vpop.f32.mrf.mxu0  ;;  %v1005_v30 = vpop.f32.mrf.mxu1 }
  0xf5   :  { %v658_v16 = vadd.f32 %v1234_v55, %v546_v13  ;;  %v929_v17 = vadd.f32 %v928_v14, %v927_v11 }
  0xf6   :  { %v930_v18 = vpop.f32.mrf.mxu0  ;;  %v566_v38 = vpop.f32.mrf.mxu1 }
  0xf7   :  { %v674_v20 = vmax.f32 %v658_v16, 0.0  ;;  %v551_v21 = vadd.f32 %v929_v17, %v550_v8 }
  0xf8   :  { %v931_v22 = vpop.f32.mrf.mxu0  ;;  %v1006_v45 = vpop.f32.mrf.mxu1 }
  0xf9   :  { %v860_v24 = vpack.c.bf16 %v674_v20, %v673_v19  ;;  %v932_v25 = vadd.f32 %v931_v22, %v930_v18  ;;  %v659_v27 = vadd.f32 %v1234_v55, %v551_v21 }
  0xfa   :  { %v933_v26 = vpop.f32.mrf.mxu0  ;;  %v569_v53 = vpop.f32.mrf.mxu1 }
  0xfb   :  { %892 = vst [vmem:[%s1279_s3 + $0x8] sm:$0xff] %v860_v24   ;;  %v554_v28 = vadd.f32 %v932_v25, %v553_v23  ;;  %v675_v34 = vmax.f32 %v659_v27, 0.0 }
  0xfc   :  { %v934_v29 = vpop.f32.mrf.mxu0  ;;  %v1009_v61 = vpop.f32.mrf.mxu1 }
  0xfd   :  { %v660_v31 = vadd.f32 %v1234_v55, %v554_v28  ;;  %v935_v32 = vadd.f32 %v934_v29, %v933_v26 }
  0xfe   :  { %v936_v33 = vpop.f32.mrf.mxu0  ;;  %v582_v5 = vpop.f32.mrf.mxu1 }
  0xff   :  { %v676_v35 = vmax.f32 %v660_v31, 0.0  ;;  %v559_v36 = vadd.f32 %v1001_v0, %v935_v32 }
 0x100   :  { %v937_v37 = vpop.f32.mrf.mxu0  ;;  %v1010_v12 = vpop.f32.mrf.mxu1 }
 0x101   :  { %v865_v39 = vpack.c.bf16 %v676_v35, %v675_v34  ;;  %v938_v40 = vadd.f32 %v937_v37, %v936_v33  ;;  %v661_v42 = vadd.f32 %v1234_v55, %v559_v36 }
 0x102   :  { %v939_v41 = vpop.f32.mrf.mxu0  ;;  %v585_v20 = vpop.f32.mrf.mxu1 }
 0x103   :  { %893 = vst [vmem:[%s1279_s3 + $0x10] sm:$0xff] %v865_v39   ;;  %v562_v43 = vadd.f32 %v1002_v15, %v938_v40  ;;  %v677_v49 = vmax.f32 %v661_v42, 0.0 }
 0x104   :  { %v940_v44 = vpop.f32.mrf.mxu0 }
 0x105   :  { %v662_v46 = vadd.f32 %v1234_v55, %v562_v43  ;;  %v941_v47 = vadd.f32 %v940_v44, %v939_v41 }
 0x106   :  { %v942_v48 = vpop.f32.mrf.mxu0 }
 0x107   :  { %v678_v50 = vmax.f32 %v662_v46, 0.0  ;;  %v567_v51 = vadd.f32 %v941_v47, %v566_v38 }
 0x108   :  { %v943_v52 = vpop.f32.mrf.mxu0 }
 0x109   :  { %v870_v54 = vpack.c.bf16 %v678_v50, %v677_v49  ;;  %v944_v56 = vadd.f32 %v943_v52, %v942_v48  ;;  %v663_v58 = vadd.f32 %v1234_v55, %v567_v51 }
 0x10a   :  { %v945_v57 = vpop.f32.mrf.mxu0 }
 0x10b   :  { %894 = vst [vmem:[%s1279_s3 + $0x18] sm:$0xff] %v870_v54   ;;  %v570_v59 = vadd.f32 %v944_v56, %v569_v53  ;;  %v679_v1 = vmax.f32 %v663_v58, 0.0 }
 0x10c   :  { %v946_v60 = vpop.f32.mrf.mxu0 }
 0x10d   :  { %v664_v62 = vadd.f32 %v1234_v55, %v570_v59  ;;  %v947_v63 = vadd.f32 %v946_v60, %v945_v57 }
 0x10e   :  { %v948_v0 = vpop.f32.mrf.mxu0 }
 0x10f   :  { %v680_v2 = vmax.f32 %v664_v62, 0.0  ;;  %v575_v3 = vadd.f32 %v1005_v30, %v947_v63 }
 0x110   :  { %v949_v4 = vpop.f32.mrf.mxu0 }
 0x111   :  { %v875_v6 = vpack.c.bf16 %v680_v2, %v679_v1  ;;  %v950_v7 = vadd.f32 %v949_v4, %v948_v0  ;;  %v665_v9 = vadd.f32 %v1234_v55, %v575_v3 }
 0x112   :  { %v951_v8 = vpop.f32.mrf.mxu0 }
 0x113   :  { %895 = vst [vmem:[%s1279_s3 + $0x20] sm:$0xff] %v875_v6   ;;  %v578_v10 = vadd.f32 %v1006_v45, %v950_v7  ;;  %v681_v16 = vmax.f32 %v665_v9, 0.0 }
 0x114   :  { %v952_v11 = vpop.f32.mrf.mxu0 }
 0x115   :  { %v666_v13 = vadd.f32 %v1234_v55, %v578_v10  ;;  %v953_v14 = vadd.f32 %v952_v11, %v951_v8 }
 0x116   :  { %v954_v15 = vpop.f32.mrf.mxu0 }
 0x117   :  { %v682_v17 = vmax.f32 %v666_v13, 0.0  ;;  %v583_v18 = vadd.f32 %v953_v14, %v582_v5 }
 0x118   :  { %v955_v19 = vpop.f32.mrf.mxu0 }
 0x119   :  { %v880_v21 = vpack.c.bf16 %v682_v17, %v681_v16  ;;  %v956_v22 = vadd.f32 %v955_v19, %v954_v15  ;;  %v667_v24 = vadd.f32 %v1234_v55, %v583_v18 }
 0x11a   :  { %v957_v23 = vpop.f32.mrf.mxu0 }
 0x11b   :  { %896 = vst [vmem:[%s1279_s3 + $0x28] sm:$0xff] %v880_v21   ;;  %v586_v25 = vadd.f32 %v956_v22, %v585_v20  ;;  %v683_v30 = vmax.f32 %v667_v24, 0.0 }
 0x11c   :  { %v958_v26 = vpop.f32.mrf.mxu0 }
 0x11d   :  { %v668_v27 = vadd.f32 %v1234_v55, %v586_v25  ;;  %v959_v28 = vadd.f32 %v958_v26, %v957_v23 }
 0x11e   :  { %v960_v29 = vpop.f32.mrf.mxu0 }
 0x11f   :  { %v684_v31 = vmax.f32 %v668_v27, 0.0  ;;  %v591_v32 = vadd.f32 %v1009_v61, %v959_v28 }
 0x120   :  { %v961_v33 = vpop.f32.mrf.mxu0 }
 0x121   :  { %v885_v34 = vpack.c.bf16 %v684_v31, %v683_v30  ;;  %v962_v35 = vadd.f32 %v961_v33, %v960_v29  ;;  %v669_v36 = vadd.f32 %v1234_v55, %v591_v32 }
 0x123   :  { %897 = vst [vmem:[%s1279_s3 + $0x30] sm:$0xff] %v885_v34   ;;  %v594_v37 = vadd.f32 %v1010_v12, %v962_v35  ;;  %v685_v39 = vmax.f32 %v669_v36, 0.0 }
 0x125   :  { %v670_v38 = vadd.f32 %v1234_v55, %v594_v37 }
 0x127   :  { %v686_v40 = vmax.f32 %v670_v38, 0.0 }
 0x129   :  { %v890_v41 = vpack.c.bf16 %v686_v40, %v685_v39 }
 0x12b   :  { %898 = vst [vmem:[%s1279_s3 + $0x38] sm:$0xff] %v890_v41  }

// kernel: model_forward.30
= control target key start
LH: loop header
LB: loop body
LE: loop exit
PB: predicated region body
PF: predicated region fallthrough
CT: control target
= control target key end

     0   :  { %s1144_s12 = smov 0   ;;  %s1146_s13 = smov 0   ;;  %s1264_s0 = inlined_call_operand.vmem [shape: bf16[32,1024], index: 0, kind: input, shape index: {}]   ;;  %s1265_s1 = inlined_call_operand.vmem [shape: bf16[1024,128], index: 1, kind: input, shape index: {}]   ;;  %s1266_s2 = inlined_call_operand.vmem [shape: f32[1,128], index: 2, kind: input, shape index: {}]   ;;  %s1267_s3 = inlined_call_operand.vmem [shape: bf16[32,128], index: 3, kind: output, shape index: {}]  }
   0x1   :  { %s1148_s14 = smov 0   ;;  %s1150_s15 = smov 0  }
   0x2   :  { %s1152_s16 = smov 0  }
   0x3 LB: > { %s25_s17 = sadd.s32 1, %s1117_s15  ;;  %p48_p1 = scmp.ne.s32.totalorder %s1109_s13, %s1105_s12  ;;  %s1121_s16 = sphi %s1152_s16, %s13_s16   ;;  %s1117_s15 = sphi %s1150_s15, %s1271_s15   ;;  %s1113_s14 = sphi %s1148_s14, %s1270_s14   ;;  %s1109_s13 = sphi %s1146_s13, %s1269_s13   ;;  %s1105_s12 = sphi %s1144_s12, %s1268_s12  }
   0x4   : > { %p26_p0 = scmp.ge.s32.totalorder %s25_s17, 2  ;;  %p49_p2 = scmp.eq.s32.totalorder %s1121_s16, 0 }
   0x5   : > { %s41_s19 = sadd.s32 1, %s1109_s13  ;;  %p867_p5 = scmp.ge.s32.totalorder %s1121_s16, 2 }
   0x6   : > { %s1273_s17 = smov (%p26_p0, %s25_s17), 0  ;;  %p50_p3 = por %p49_p2, %p48_p1 }
   0x7   : > { %s37_s18 = ssub.s32 %s1117_s15, %s1273_s17  ;;  %162 = sbr.rel (%p867_p5) target bundleno = 20 (0x14), region = 20 }
   0x8   : > { %p39_p4 = scmp.eq.s32.totalorder %s37_s18, 0 }
   0xa   : > { %s1179_s20 = scalar_select %p39_p4, %s1109_s13, %s41_s19  }
   0xc   : > { %165 = sbr.rel (!%p50_p3) target bundleno = 20 (0x14), region = 24  ;;  %s167_s21 = sand.u32 (%p50_p3), 1, %s1109_s13  }
   0xd   : > { %s926_s22 = sshll.u32 (%p50_p3), %s1117_s15, 4  ;;  %s868_s23 = sshll.u32 (%p50_p3), %s167_s21, 6 }
   0xe   : > { %s175_s26 = scalar_lea.vmem (%p50_p3), %s1264_s0, %s926_s22  ;;  %s169_s27 = scalar_lea.vmem (%p50_p3), [#allocation3], %s868_s23 }
   0xf   : > { %v188_v0 = vld [vmem:[%s175_s26] sm:$0xff] (%p50_p3)  ;;  %v190_v1 = vld [vmem:[%s175_s26 + $0x8] sm:$0xff] (%p50_p3) }
  0x10   : > { %v192_v2 = vld [vmem:[%s175_s26 + $0x20] sm:$0xff] (%p50_p3)  ;;  %189 = vst [vmem:[%s169_s27] sm:$0xff] (%p50_p3), %v188_v0  ;;  %191 = vst [vmem:[%s169_s27 + $0x8] sm:$0xff] (%p50_p3), %v190_v1  ;;  %v194_v3 = vld [vmem:[%s175_s26 + $0x28] sm:$0xff] (%p50_p3) }
  0x11   : > { %193 = vst [vmem:[%s169_s27 + $0x10] sm:$0xff] %v192_v2  ;;  %v196_v4 = vld [vmem:[%s175_s26 + $0x40] sm:$0xff]  ;;  %v198_v5 = vld [vmem:[%s175_s26 + $0x48] sm:$0xff]  ;;  %195 = vst [vmem:[%s169_s27 + $0x18] sm:$0xff] %v194_v3 }
  0x12   : > { %197 = vst [vmem:[%s169_s27 + $0x20] sm:$0xff] %v196_v4  ;;  %199 = vst [vmem:[%s169_s27 + $0x28] sm:$0xff] %v198_v5  ;;  %v200_v6 = vld [vmem:[%s175_s26 + $0x60] sm:$0xff]  ;;  %v202_v7 = vld [vmem:[%s175_s26 + $0x68] sm:$0xff] }
  0x13   : > { %201 = vst [vmem:[%s169_s27 + $0x30] sm:$0xff] %v200_v6  ;;  %203 = vst [vmem:[%s169_s27 + $0x38] sm:$0xff] %v202_v7 }
  0x14 PF: > { %p871_p6 = scmp.ge.s32.totalorder %s1121_s16, 1  ;;  %p220_p7 = scmp.lt.s32.totalorder %s1121_s16, 3 }
  0x16   : > { %p221_p8 = pnand %p871_p6, %p220_p7 }
  0x17   : > { %s227_s28 = sand.u32 (!%p221_p8), 1, %s1105_s12   ;;  %s873_s29 = sshll.u32 (!%p221_p8), %s1113_s14, 6 }
  0x18   : > { %224 = sbr.rel (%p221_p8) target bundleno = 300 (0x12c), region = 51  ;;  %s872_s30 = sshll.u32 (!%p221_p8), %s227_s28, 6 }
  0x19   : > { %p267_p9 = scmp.lt.s32.totalorder (!%p221_p8), %s873_s29, 127  ;;  %s1196_s8 = scalar_lea.vmem (!%p221_p8), [#allocation3], %s872_s30 }
  0x1a   : > { %p875_p10 = scmp.ne.s32.totalorder (!%p221_p8), %s1113_s14, 0 }
  0x1d   : > { %s1275_s29 = smov (!%p267_p9, %s873_s29), 127  ;;  %291 = sbr.rel (%p875_p10) target bundleno = 37 (0x25), region = 59 }
  0x1e   : > { %s874_s4 = sshll.u32 %s1275_s29, 2 }
  0x1f   : > { %s1194_s7 = scalar_lea.vmem %s1265_s1, %s874_s4 }
  0x22   : > { %v1123_v8 = vmov 0.0  }
  0x23   : > { %292 = vst [vmem:[#allocation2 + $0x10] sm:$0xff] %v1123_v8  ;;  %293 = vst [vmem:[#allocation2] sm:$0xff] %v1123_v8 }
  0x24   : > { %294 = vst [vmem:[#allocation2 + $0x18] sm:$0xff] %v1123_v8  ;;  %295 = vst [vmem:[#allocation2 + $0x8] sm:$0xff] %v1123_v8 }
  0x25 PF: > { %v1039_v9 = vld [vmem:[%s1194_s7 + $0x78] sm:$0xff]   ;;  %v1043_v13 = vld [vmem:[%s1194_s7 + $0x70] sm:$0xff]   ;;  %v1047_v17 = vld [vmem:[%s1194_s7 + $0x68] sm:$0xff]   ;;  %p916_p11 = scmp.ne.s32.totalorder %s1113_s14, 1 }
  0x26   : > { %v1040_v10 = vld [vmem:[%s1194_s7 + $0xf8] sm:$0xff]   ;;  %942 = vmatprep.subr.bf16.mxu0 %v1039_v9  ;;  %v1044_v14 = vld [vmem:[%s1194_s7 + $0xf0] sm:$0xff]   ;;  %v1048_v18 = vld [vmem:[%s1194_s7 + $0xe8] sm:$0xff]  }
  0x27   : > { %v1041_v11 = vld [vmem:[%s1194_s7 + $0x38] sm:$0xff]   ;;  %970 = vmatprep.subr.bf16.mxu1 %v1040_v10  ;;  %v1045_v15 = vld [vmem:[%s1194_s7 + $0x30] sm:$0xff]   ;;  %v1049_v19 = vld [vmem:[%s1194_s7 + $0x28] sm:$0xff]  }
  0x28   : > { %v1042_v12 = vld [vmem:[%s1194_s7 + $0xb8] sm:$0xff]   ;;  %943 = vmatpush3.bf16.msra.mxu0 %v1041_v11  ;;  %v1046_v16 = vld [vmem:[%s1194_s7 + $0xb0] sm:$0xff]   ;;  %v1050_v20 = vld [vmem:[%s1194_s7 + $0xa8] sm:$0xff]  }
  0x29   : > { %971 = vmatpush3.bf16.msra.mxu1 %v1042_v12  ;;  %944 = vmatprep.subr.bf16.mxu0 %v1043_v13  ;;  %v1051_v21 = vld [vmem:[%s1194_s7 + $0x60] sm:$0xff]   ;;  %v1055_v25 = vld [vmem:[%s1194_s7 + $0x58] sm:$0xff]   ;;  %v1059_v29 = vld [vmem:[%s1194_s7 + $0x50] sm:$0xff]  }
  0x2a   : > { %972 = vmatprep.subr.bf16.mxu1 %v1044_v14  ;;  %v1052_v22 = vld [vmem:[%s1194_s7 + $0xe0] sm:$0xff]   ;;  %v1056_v26 = vld [vmem:[%s1194_s7 + $0xd8] sm:$0xff]   ;;  %v1060_v30 = vld [vmem:[%s1194_s7 + $0xd0] sm:$0xff]  }
  0x2b   : > { %v1053_v23 = vld [vmem:[%s1194_s7 + $0x20] sm:$0xff]   ;;  %v1057_v27 = vld [vmem:[%s1194_s7 + $0x18] sm:$0xff]   ;;  %v1061_v31 = vld [vmem:[%s1194_s7 + $0x10] sm:$0xff]  }
  0x2c   : > { %945 = vmatpush3.bf16.msra.mxu0 %v1045_v15  ;;  %v1054_v24 = vld [vmem:[%s1194_s7 + $0xa0] sm:$0xff]   ;;  %v1058_v28 = vld [vmem:[%s1194_s7 + $0x98] sm:$0xff]   ;;  %v1062_v32 = vld [vmem:[%s1194_s7 + $0x90] sm:$0xff]  }
  0x2d   : > { %973 = vmatpush3.bf16.msra.mxu1 %v1046_v16  ;;  %946 = vmatprep.subr.bf16.mxu0 %v1047_v17  ;;  %v1063_v33 = vld [vmem:[%s1194_s7 + $0x48] sm:$0xff]   ;;  %v1067_v37 = vld [vmem:[%s1194_s7 + $0x40] sm:$0xff]   ;;  %v296_v56 = vld [vmem:[#allocation2 + $0x10] sm:$0xff] }
  0x2e   : > { %974 = vmatprep.subr.bf16.mxu1 %v1048_v18  ;;  %v1064_v34 = vld [vmem:[%s1194_s7 + $0xc8] sm:$0xff]   ;;  %v1068_v38 = vld [vmem:[%s1194_s7 + $0xc0] sm:$0xff]   ;;  %v298_v10 = vld [vmem:[#allocation2 + $0x18] sm:$0xff] }
  0x2f   : > { %v1065_v35 = vld [vmem:[%s1194_s7 + $0x8] sm:$0xff]   ;;  %v1069_v39 = vld [vmem:[%s1194_s7] sm:$0xff]  }
  0x30   : > { %947 = vmatpush3.bf16.msra.mxu0 %v1049_v19  ;;  %v1066_v36 = vld [vmem:[%s1194_s7 + $0x88] sm:$0xff]   ;;  %v1070_v40 = vld [vmem:[%s1194_s7 + $0x80] sm:$0xff]  }
  0x31   : > { %975 = vmatpush3.bf16.msra.mxu1 %v1050_v20  ;;  %948 = vmatprep.subr.bf16.mxu0 %v1051_v21  ;;  %v1071_v41 = vld [vmem:[%s1196_s8] ss:$16 sps:$4 sm:$0xff]   ;;  %v1073_v42 = vld [vmem:[%s1196_s8 + $0x4] ss:$16 sps:$4 sm:$0xff]   ;;  %v1074_v43 = vld [vmem:[%s1196_s8 + $0x8] ss:$16 sps:$4 sm:$0xff]  }
  0x32   : > { %976 = vmatprep.subr.bf16.mxu1 %v1052_v22  ;;  %v1076_v44 = vld [vmem:[%s1196_s8 + $0xc] ss:$16 sps:$4 sm:$0xff]   ;;  %636 = vmatprep.mubr.bf16.mxu0 %v1073_v42  ;;  %v1077_v45 = vld [vmem:[%s1196_s8 + $0x24] ss:$16 sps:$4 sm:$0xff]   ;;  %v1081_v47 = vld [vmem:[%s1196_s8 + $0x20] ss:$16 sps:$4 sm:$0xff]  }
  0x33   : > { %685 = vmatprep.mubr.bf16.mxu1 %v1076_v44  ;;  %v1079_v46 = vld [vmem:[%s1196_s8 + $0x2c] ss:$16 sps:$4 sm:$0xff]   ;;  %v1082_v48 = vld [vmem:[%s1196_s8 + $0x28] ss:$16 sps:$4 sm:$0xff]   ;;  %v297_v1 = vld [vmem:[#allocation2] sm:$0xff] }
  0x34   : > { %949 = vmatpush3.bf16.msra.mxu0 %v1053_v23  ;;  %v299_v18 = vld [vmem:[#allocation2 + $0x8] sm:$0xff] }
  0x35   : > { %977 = vmatpush3.bf16.msra.mxu1 %v1054_v24  ;;  %950 = vmatprep.subr.bf16.mxu0 %v1055_v25 }
  0x36   : > { %978 = vmatprep.subr.bf16.mxu1 %v1056_v26 }
  0x38   : > { %951 = vmatpush3.bf16.msra.mxu0 %v1057_v27 }
  0x39   : > { %979 = vmatpush3.bf16.msra.mxu1 %v1058_v28  ;;  %952 = vmatprep.subr.bf16.mxu0 %v1059_v29 }
  0x3a   : > { %980 = vmatprep.subr.bf16.mxu1 %v1060_v30 }
  0x3c   : > { %953 = vmatpush3.bf16.msra.mxu0 %v1061_v31 }
  0x3d   : > { %981 = vmatpush3.bf16.msra.mxu1 %v1062_v32  ;;  %954 = vmatprep.subr.bf16.mxu0 %v1063_v33 }
  0x3e   : > { %982 = vmatprep.subr.bf16.mxu1 %v1064_v34 }
  0x40   : > { %955 = vmatpush3.bf16.msra.mxu0 %v1065_v35 }
  0x41   : > { %983 = vmatpush3.bf16.msra.mxu1 %v1066_v36  ;;  %956 = vmatprep.subr.bf16.mxu0 %v1067_v37 }
  0x42   : > { %984 = vmatprep.subr.bf16.mxu1 %v1068_v38 }
  0x44   : > { %957 = vmatpush3.bf16.msra.mxu0 %v1069_v39 }
  0x45   : > { %985 = vmatpush3.bf16.msra.mxu1 %v1070_v40 }
  0x47   : > { %637 = vmatmul.mubr.bf16.vlgmr.msra.gmra.mxu0 %v1071_v41 }
  0x48   : > { %686 = vmatmul.mubr.bf16.vlgmr.msra.gmra.mxu1 %v1074_v43  ;;  %644 = vmatprep.mubr.bf16.mxu0 %v1077_v45 }
  0x49   : > { %693 = vmatprep.mubr.bf16.mxu1 %v1079_v46 }
  0x4f   : > { %645 = vmatmul.mubr.bf16.gmra.mxu0 %v1081_v47 }
  0x50   : > { %694 = vmatmul.mubr.bf16.gmra.mxu1 %v1082_v48 }
 0x107   : > { %v958_v49 = vpop.f32.mrf.mxu0 }
 0x108   : > { %v986_v50 = vpop.f32.mrf.mxu1 }
 0x109   : > { %v959_v51 = vpop.f32.mrf.mxu0 }
 0x10a   : > { %v960_v52 = vadd.f32 %v959_v51, %v958_v49  ;;  %v987_v53 = vpop.f32.mrf.mxu1 }
 0x10b   : > { %v988_v54 = vadd.f32 %v987_v53, %v986_v50  ;;  %v961_v55 = vpop.f32.mrf.mxu0 }
 0x10c   : > { %v989_v57 = vpop.f32.mrf.mxu1 }
 0x10d   : > { %v688_v58 = vadd.f32 %v988_v54, %v960_v52  ;;  %v962_v59 = vpop.f32.mrf.mxu0 }
 0x10e   : > { %v963_v60 = vadd.f32 %v962_v59, %v961_v55  ;;  %v990_v61 = vpop.f32.mrf.mxu1 }
 0x10f   : > { %v702_v62 = vadd.f32 %v688_v58, %v296_v56  ;;  %v991_v63 = vadd.f32 %v990_v61, %v989_v57  ;;  %v964_v0 = vpop.f32.mrf.mxu0 }
 0x110   : > { %v992_v2 = vpop.f32.mrf.mxu1 }
 0x111   : > { %706 = vst [vmem:[#allocation2 + $0x10] sm:$0xff] %v702_v62  ;;  %v691_v3 = vadd.f32 %v991_v63, %v963_v60  ;;  %v965_v4 = vpop.f32.mrf.mxu0 }
 0x112   : > { %v966_v5 = vadd.f32 %v965_v4, %v964_v0  ;;  %v993_v6 = vpop.f32.mrf.mxu1 }
 0x113   : > { %v703_v7 = vadd.f32 %v691_v3, %v297_v1  ;;  %v994_v8 = vadd.f32 %v993_v6, %v992_v2  ;;  %v967_v9 = vpop.f32.mrf.mxu0 }
 0x114   : > { %v995_v11 = vpop.f32.mrf.mxu1 }
 0x115   : > { %707 = vst [vmem:[#allocation2] sm:$0xff] %v703_v7  ;;  %v696_v12 = vadd.f32 %v994_v8, %v966_v5  ;;  %v968_v13 = vpop.f32.mrf.mxu0 }
 0x116   : > { %v969_v14 = vadd.f32 %v968_v13, %v967_v9  ;;  %v996_v15 = vpop.f32.mrf.mxu1 }
 0x117   : > { %v704_v16 = vadd.f32 %v696_v12, %v298_v10  ;;  %v997_v17 = vadd.f32 %v996_v15, %v995_v11 }
 0x119   : > { %708 = vst [vmem:[#allocation2 + $0x18] sm:$0xff] %v704_v16  ;;  %v699_v19 = vadd.f32 %v997_v17, %v969_v14  ;;  %713 = sbr.rel (%p916_p11) target bundleno = 300 (0x12c), region = 63 }
 0x11b   : > { %v705_v20 = vadd.f32 %v699_v19, %v299_v18 }
 0x11d   : > { %709 = vst [vmem:[#allocation2 + $0x8] sm:$0xff] %v705_v20 }
 0x11e   : > { %v714_v21 = vld [vmem:[#allocation2 + $0x10] sm:$0xff]  ;;  %v715_v22 = vld [vmem:[#allocation2] sm:$0xff] }
 0x11f   : > { %v917_v23 = vld [vmem:[%s1266_s2] ss:$0 sm:$0xff] }
 0x120   : > { %v725_v24 = vadd.f32 %v917_v23, %v714_v21  ;;  %v726_v25 = vadd.f32 %v917_v23, %v715_v22  ;;  %v716_v26 = vld [vmem:[#allocation2 + $0x18] sm:$0xff] }
 0x121   : > { %v727_v28 = vadd.f32 %v917_v23, %v716_v26 }
 0x122   : > { %v729_v30 = vmax.f32 %v725_v24, 0.0  ;;  %v730_v31 = vmax.f32 %v726_v25, 0.0 }
 0x123   : > { %v731_v32 = vmax.f32 %v727_v28, 0.0 }
 0x124   : > { %v717_v27 = vld [vmem:[#allocation2 + $0x8] sm:$0xff]  ;;  %v934_v34 = vpack.c.bf16 %v730_v31, %v729_v30 }
 0x125   : > { %v728_v29 = vadd.f32 %v917_v23, %v717_v27 }
 0x126   : > { %935 = vst [vmem:[%s1267_s3] sm:$0xff] %v934_v34  }
 0x127   : > { %v732_v33 = vmax.f32 %v728_v29, 0.0 }
 0x129   : > { %v939_v35 = vpack.c.bf16 %v732_v33, %v731_v32 }
 0x12b   : > { %941 = vst [vmem:[%s1267_s3 + $0x8] sm:$0xff] %v939_v35  }
 0x12c PF: > { %s13_s16 = sadd.s32 1, %s1121_s16   ;;  %s1268_s12 = smov %s1109_s13 }
 0x12d   : > { %p10_p12 = scmp.ge.s32.totalorder %s13_s16, 4   ;;  %s1269_s13 = smov %s1179_s20 }
 0x12e   : > { %s1270_s14 = smov %s1117_s15  ;;  %s1271_s15 = smov %s1273_s17 }
 0x12f   :  { %12 = sbr.rel (!%p10_p12) target bundleno = 3 (0x3), region = 104 }

// kernel: model_forward.31
= control target key start
LH: loop header
LB: loop body
LE: loop exit
PB: predicated region body
PF: predicated region fallthrough
CT: control target
= control target key end

     0   :  { %s1176_s12 = smov 0   ;;  %s1178_s13 = smov 0   ;;  %s1291_s0 = inlined_call_operand.vmem [shape: bf16[8,1536], index: 0, kind: input, shape index: {}]   ;;  %s1292_s1 = inlined_call_operand.vmem [shape: bf16[1536,256], index: 1, kind: input, shape index: {}]   ;;  %s1293_s2 = inlined_call_operand.vmem [shape: f32[1,256], index: 2, kind: input, shape index: {}]   ;;  %s1294_s3 = inlined_call_operand.vmem [shape: bf16[8,256], index: 3, kind: output, shape index: {}]  }
   0x1   :  { %s1180_s14 = smov 0  }
   0x2 LB: > { %s25_s15 = sadd.s32 1, %s1149_s13  ;;  %p923_p0 = scmp.ge.s32.totalorder %s1153_s14, 1  ;;  %s1153_s14 = sphi %s1180_s14, %s13_s14   ;;  %s1149_s13 = sphi %s1178_s13, %s1296_s13   ;;  %s1145_s12 = sphi %s1176_s12, %s1295_s12  }
   0x3   : > { %p26_p1 = scmp.ge.s32.totalorder %s25_s15, 3  ;;  %p194_p2 = scmp.lt.s32.totalorder %s1153_s14, 4 }
   0x5   : > { %s1298_s15 = smov (%p26_p1, %s25_s15), 0  ;;  %p195_p3 = pnand %p923_p0, %p194_p2 }
   0x6   : > { %s924_s16 = sshll.u32 (!%p195_p3), %s1145_s12, 2  ;;  %s926_s17 = sshll.u32 (!%p195_p3), %s1145_s12, 6 }
   0x7   : > { %198 = sbr.rel (%p195_p3) target bundleno = 303 (0x12f), region = 32  ;;  %p243_p4 = scmp.lt.s32.totalorder (!%p195_p3), %s924_s16, 11 }
   0x8   : > { %p252_p5 = scmp.lt.s32.totalorder (!%p195_p3), %s926_s17, 191  ;;  %p929_p6 = scmp.ne.s32.totalorder (!%p195_p3), %s1145_s12, 0 }
   0xc   : > { %s1300_s16 = smov (!%p243_p4, %s924_s16), 11  ;;  %s1302_s17 = smov (!%p252_p5, %s926_s17), 191 }
   0xd   : > { %s925_s18 = sshll.u32 %s1300_s16, 2  ;;  %s1004_s22 = sshll.u32 %s1302_s17, 3 }
   0xe   : > { %s1201_s21 = scalar_lea.vmem %s1291_s0, %s925_s18  ;;  %s1206_s25 = scalar_lea.vmem %s1292_s1, %s1004_s22 }
   0xf   : > { %280 = sbr.rel (%p929_p6) target bundleno = 22 (0x16), region = 36 }
  0x14   : > { %v1155_v0 = vmov 0.0  }
  0x15   : > { %281 = vst [vmem:[#allocation2] sm:$0xff] %v1155_v0  ;;  %282 = vst [vmem:[#allocation2 + $0x8] sm:$0xff] %v1155_v0 }
  0x16 PF: > { %v1031_v1 = vld [vmem:[%s1206_s25 + $0x74] ss:$8 sps:$4 sm:$0xff]   ;;  %v1035_v3 = vld [vmem:[%s1206_s25 + $0x70] ss:$8 sps:$4 sm:$0xff]   ;;  %v1037_v5 = vld [vmem:[%s1206_s25 + $0x64] ss:$8 sps:$4 sm:$0xff]  }
  0x17   : > { %v1033_v2 = vld [vmem:[%s1206_s25 + $0x174] ss:$8 sps:$4 sm:$0xff]   ;;  %685 = vmatprep.subr.bf16.mxu0 %v1031_v1  ;;  %v1036_v4 = vld [vmem:[%s1206_s25 + $0x170] ss:$8 sps:$4 sm:$0xff]   ;;  %v1039_v6 = vld [vmem:[%s1206_s25 + $0x164] ss:$8 sps:$4 sm:$0xff]  }
  0x18   : > { %726 = vmatprep.subr.bf16.mxu1 %v1033_v2  ;;  %686 = vmatpush1.bf16.msra.mxu0 %v1035_v3  ;;  %v1041_v7 = vld [vmem:[%s1206_s25 + $0x60] ss:$8 sps:$4 sm:$0xff]   ;;  %v1043_v9 = vld [vmem:[%s1206_s25 + $0x54] ss:$8 sps:$4 sm:$0xff]   ;;  %v1047_v11 = vld [vmem:[%s1206_s25 + $0x50] ss:$8 sps:$4 sm:$0xff]  }
  0x19   : > { %727 = vmatpush1.bf16.msra.mxu1 %v1036_v4  ;;  %687 = vmatprep.subr.bf16.mxu0 %v1037_v5  ;;  %v1042_v8 = vld [vmem:[%s1206_s25 + $0x160] ss:$8 sps:$4 sm:$0xff]   ;;  %v1045_v10 = vld [vmem:[%s1206_s25 + $0x154] ss:$8 sps:$4 sm:$0xff]   ;;  %v1048_v12 = vld [vmem:[%s1206_s25 + $0x150] ss:$8 sps:$4 sm:$0xff]  }
  0x1a   : > { %728 = vmatprep.subr.bf16.mxu1 %v1039_v6  ;;  %v1049_v13 = vld [vmem:[%s1206_s25 + $0x44] ss:$8 sps:$4 sm:$0xff]   ;;  %v1053_v15 = vld [vmem:[%s1206_s25 + $0x40] ss:$8 sps:$4 sm:$0xff]   ;;  %v1055_v17 = vld [vmem:[%s1206_s25 + $0x34] ss:$8 sps:$4 sm:$0xff]  }
  0x1b   : > { %v1051_v14 = vld [vmem:[%s1206_s25 + $0x144] ss:$8 sps:$4 sm:$0xff]   ;;  %v1054_v16 = vld [vmem:[%s1206_s25 + $0x140] ss:$8 sps:$4 sm:$0xff]   ;;  %v1057_v18 = vld [vmem:[%s1206_s25 + $0x134] ss:$8 sps:$4 sm:$0xff]  }
  0x1c   : > { %688 = vmatpush1.bf16.msra.mxu0 %v1041_v7  ;;  %v1059_v19 = vld [vmem:[%s1206_s25 + $0x30] ss:$8 sps:$4 sm:$0xff]   ;;  %v1061_v21 = vld [vmem:[%s1206_s25 + $0x24] ss:$8 sps:$4 sm:$0xff]   ;;  %v1065_v23 = vld [vmem:[%s1206_s25 + $0x20] ss:$8 sps:$4 sm:$0xff]  }
  0x1d   : > { %729 = vmatpush1.bf16.msra.mxu1 %v1042_v8  ;;  %689 = vmatprep.subr.bf16.mxu0 %v1043_v9  ;;  %v1060_v20 = vld [vmem:[%s1206_s25 + $0x130] ss:$8 sps:$4 sm:$0xff]   ;;  %v1063_v22 = vld [vmem:[%s1206_s25 + $0x124] ss:$8 sps:$4 sm:$0xff]   ;;  %v1066_v24 = vld [vmem:[%s1206_s25 + $0x120] ss:$8 sps:$4 sm:$0xff]  }
  0x1e   : > { %730 = vmatprep.subr.bf16.mxu1 %v1045_v10  ;;  %v1067_v25 = vld [vmem:[%s1206_s25 + $0x14] ss:$8 sps:$4 sm:$0xff]   ;;  %v1071_v27 = vld [vmem:[%s1206_s25 + $0x10] ss:$8 sps:$4 sm:$0xff]   ;;  %v1073_v29 = vld [vmem:[%s1206_s25 + $0x4] ss:$8 sps:$4 sm:$0xff]  }
  0x1f   : > { %v1069_v26 = vld [vmem:[%s1206_s25 + $0x114] ss:$8 sps:$4 sm:$0xff]   ;;  %v1072_v28 = vld [vmem:[%s1206_s25 + $0x110] ss:$8 sps:$4 sm:$0xff]   ;;  %v1075_v30 = vld [vmem:[%s1206_s25 + $0x104] ss:$8 sps:$4 sm:$0xff]  }
  0x20   : > { %690 = vmatpush1.bf16.msra.mxu0 %v1047_v11  ;;  %v1077_v31 = vld [vmem:[%s1206_s25] ss:$8 sps:$4 sm:$0xff]   ;;  %v1079_v33 = vld [vmem:[%s1206_s25 + $0xf4] ss:$8 sps:$4 sm:$0xff]   ;;  %v1083_v35 = vld [vmem:[%s1206_s25 + $0xf0] ss:$8 sps:$4 sm:$0xff]  }
  0x21   : > { %731 = vmatpush1.bf16.msra.mxu1 %v1048_v12  ;;  %691 = vmatprep.subr.bf16.mxu0 %v1049_v13  ;;  %v1078_v32 = vld [vmem:[%s1206_s25 + $0x100] ss:$8 sps:$4 sm:$0xff]   ;;  %v1081_v34 = vld [vmem:[%s1206_s25 + $0x1f4] ss:$8 sps:$4 sm:$0xff]   ;;  %v1084_v36 = vld [vmem:[%s1206_s25 + $0x1f0] ss:$8 sps:$4 sm:$0xff]  }
  0x22   : > { %732 = vmatprep.subr.bf16.mxu1 %v1051_v14  ;;  %v1085_v37 = vld [vmem:[%s1206_s25 + $0xe4] ss:$8 sps:$4 sm:$0xff]   ;;  %v1089_v39 = vld [vmem:[%s1206_s25 + $0xe0] ss:$8 sps:$4 sm:$0xff]   ;;  %v1091_v41 = vld [vmem:[%s1206_s25 + $0xd4] ss:$8 sps:$4 sm:$0xff]  }
  0x23   : > { %v1087_v38 = vld [vmem:[%s1206_s25 + $0x1e4] ss:$8 sps:$4 sm:$0xff]   ;;  %v1090_v40 = vld [vmem:[%s1206_s25 + $0x1e0] ss:$8 sps:$4 sm:$0xff]   ;;  %v1093_v42 = vld [vmem:[%s1206_s25 + $0x1d4] ss:$8 sps:$4 sm:$0xff]  }
  0x24   : > { %692 = vmatpush1.bf16.msra.mxu0 %v1053_v15  ;;  %v1095_v43 = vld [vmem:[%s1206_s25 + $0xd0] ss:$8 sps:$4 sm:$0xff]   ;;  %v1097_v45 = vld [vmem:[%s1206_s25 + $0xc4] ss:$8 sps:$4 sm:$0xff]   ;;  %v1101_v50 = vld [vmem:[%s1206_s25 + $0xc0] ss:$8 sps:$4 sm:$0xff]  }
  0x25   : > { %733 = vmatpush1.bf16.msra.mxu1 %v1054_v16  ;;  %693 = vmatprep.subr.bf16.mxu0 %v1055_v17  ;;  %v1096_v44 = vld [vmem:[%s1206_s25 + $0x1d0] ss:$8 sps:$4 sm:$0xff]   ;;  %v1099_v46 = vld [vmem:[%s1206_s25 + $0x1c4] ss:$8 sps:$4 sm:$0xff]   ;;  %v1102_v51 = vld [vmem:[%s1206_s25 + $0x1c0] ss:$8 sps:$4 sm:$0xff]  }
  0x26   : > { %734 = vmatprep.subr.bf16.mxu1 %v1057_v18  ;;  %v285_v47 = vld [vmem:[%s1201_s21] sm:$0xff]  ;;  %v286_v49 = vld [vmem:[%s1201_s21 + $0x8] sm:$0xff]  ;;  %v1103_v53 = vld [vmem:[%s1206_s25 + $0xb4] ss:$8 sps:$4 sm:$0xff]   ;;  %p998_p7 = scmp.ne.s32.totalorder %s1145_s12, 2 }
  0x27   : > { %v931_v48 = vcombine.high %v285_v47, %v285_v47  ;;  %v933_v52 = vcombine.high %v286_v49, %v286_v49  ;;  %v1105_v54 = vld [vmem:[%s1206_s25 + $0x1b4] ss:$8 sps:$4 sm:$0xff]   ;;  %v1107_v55 = vld [vmem:[%s1206_s25 + $0xb0] ss:$8 sps:$4 sm:$0xff]   ;;  %v1109_v57 = vld [vmem:[%s1206_s25 + $0xa4] ss:$8 sps:$4 sm:$0xff]   ;;  %v930_v5 = vcombine.low %v285_v47, %v285_v47  ;;  %v932_v6 = vcombine.low %v286_v49, %v286_v49 }
  0x28   : > { %694 = vmatpush1.bf16.msra.mxu0 %v1059_v19  ;;  %v1108_v56 = vld [vmem:[%s1206_s25 + $0x1b0] ss:$8 sps:$4 sm:$0xff]   ;;  %v1111_v58 = vld [vmem:[%s1206_s25 + $0x1a4] ss:$8 sps:$4 sm:$0xff]   ;;  %v1113_v59 = vld [vmem:[%s1206_s25 + $0xa0] ss:$8 sps:$4 sm:$0xff]  }
  0x29   : > { %735 = vmatpush1.bf16.msra.mxu1 %v1060_v20  ;;  %695 = vmatprep.subr.bf16.mxu0 %v1061_v21  ;;  %v1114_v60 = vld [vmem:[%s1206_s25 + $0x1a0] ss:$8 sps:$4 sm:$0xff]   ;;  %v1115_v61 = vld [vmem:[%s1206_s25 + $0x94] ss:$8 sps:$4 sm:$0xff]   ;;  %v1119_v63 = vld [vmem:[%s1206_s25 + $0x90] ss:$8 sps:$4 sm:$0xff]  }
  0x2a   : > { %736 = vmatprep.subr.bf16.mxu1 %v1063_v22  ;;  %717 = vmatprep.mubr.bf16.mxu0 %v931_v48  ;;  %v1117_v62 = vld [vmem:[%s1206_s25 + $0x194] ss:$8 sps:$4 sm:$0xff]   ;;  %v1120_v0 = vld [vmem:[%s1206_s25 + $0x190] ss:$8 sps:$4 sm:$0xff]   ;;  %v1121_v1 = vld [vmem:[%s1206_s25 + $0x84] ss:$8 sps:$4 sm:$0xff]  }
  0x2b   : > { %758 = vmatprep.mubr.bf16.mxu1 %v933_v52  ;;  %v1123_v2 = vld [vmem:[%s1206_s25 + $0x184] ss:$8 sps:$4 sm:$0xff]   ;;  %v1125_v3 = vld [vmem:[%s1206_s25 + $0x80] ss:$8 sps:$4 sm:$0xff]  }
  0x2c   : > { %696 = vmatpush1.bf16.msra.mxu0 %v1065_v23  ;;  %v1126_v4 = vld [vmem:[%s1206_s25 + $0x180] ss:$8 sps:$4 sm:$0xff]  }
  0x2d   : > { %737 = vmatpush1.bf16.msra.mxu1 %v1066_v24  ;;  %697 = vmatprep.subr.bf16.mxu0 %v1067_v25  ;;  %v283_v8 = vld [vmem:[#allocation2] sm:$0xff]  ;;  %v284_v12 = vld [vmem:[#allocation2 + $0x8] sm:$0xff] }
  0x2e   : > { %738 = vmatprep.subr.bf16.mxu1 %v1069_v26 }
  0x30   : > { %698 = vmatpush1.bf16.msra.mxu0 %v1071_v27 }
  0x31   : > { %739 = vmatpush1.bf16.msra.mxu1 %v1072_v28  ;;  %699 = vmatprep.subr.bf16.mxu0 %v1073_v29 }
  0x32   : > { %740 = vmatprep.subr.bf16.mxu1 %v1075_v30 }
  0x34   : > { %700 = vmatpush1.bf16.msra.mxu0 %v1077_v31 }
  0x35   : > { %741 = vmatpush1.bf16.msra.mxu1 %v1078_v32  ;;  %701 = vmatprep.subr.bf16.mxu0 %v1079_v33 }
  0x36   : > { %742 = vmatprep.subr.bf16.mxu1 %v1081_v34 }
  0x38   : > { %702 = vmatpush2.bf16.msra.mxu0 %v1083_v35 }
  0x39   : > { %743 = vmatpush2.bf16.msra.mxu1 %v1084_v36  ;;  %703 = vmatprep.subr.bf16.mxu0 %v1085_v37 }
  0x3a   : > { %744 = vmatprep.subr.bf16.mxu1 %v1087_v38 }
  0x3c   : > { %704 = vmatpush2.bf16.msra.mxu0 %v1089_v39 }
  0x3d   : > { %745 = vmatpush2.bf16.msra.mxu1 %v1090_v40  ;;  %705 = vmatprep.subr.bf16.mxu0 %v1091_v41 }
  0x3e   : > { %746 = vmatprep.subr.bf16.mxu1 %v1093_v42 }
  0x40   : > { %706 = vmatpush2.bf16.msra.mxu0 %v1095_v43 }
  0x41   : > { %747 = vmatpush2.bf16.msra.mxu1 %v1096_v44  ;;  %707 = vmatprep.subr.bf16.mxu0 %v1097_v45 }
  0x42   : > { %748 = vmatprep.subr.bf16.mxu1 %v1099_v46 }
  0x44   : > { %708 = vmatpush2.bf16.msra.mxu0 %v1101_v50 }
  0x45   : > { %749 = vmatpush2.bf16.msra.mxu1 %v1102_v51  ;;  %709 = vmatprep.subr.bf16.mxu0 %v1103_v53 }
  0x46   : > { %750 = vmatprep.subr.bf16.mxu1 %v1105_v54 }
  0x48   : > { %710 = vmatpush2.bf16.msra.mxu0 %v1107_v55 }
  0x49   : > { %751 = vmatpush2.bf16.msra.mxu1 %v1108_v56  ;;  %711 = vmatprep.subr.bf16.mxu0 %v1109_v57 }
  0x4a   : > { %752 = vmatprep.subr.bf16.mxu1 %v1111_v58 }
  0x4c   : > { %712 = vmatpush2.bf16.msra.mxu0 %v1113_v59 }
  0x4d   : > { %753 = vmatpush2.bf16.msra.mxu1 %v1114_v60  ;;  %713 = vmatprep.subr.bf16.mxu0 %v1115_v61 }
  0x4e   : > { %754 = vmatprep.subr.bf16.mxu1 %v1117_v62 }
  0x50   : > { %714 = vmatpush2.bf16.msra.mxu0 %v1119_v63 }
  0x51   : > { %755 = vmatpush2.bf16.msra.mxu1 %v1120_v0  ;;  %715 = vmatprep.subr.bf16.mxu0 %v1121_v1 }
  0x52   : > { %756 = vmatprep.subr.bf16.mxu1 %v1123_v2 }
  0x54   : > { %716 = vmatpush2.bf16.msra.mxu0 %v1125_v3 }
  0x55   : > { %757 = vmatpush2.bf16.msra.mxu1 %v1126_v4 }
  0x57   : > { %718 = vmatmul.mubr.bf16.vlgmr.msra.gmra.mxu0 %v930_v5 }
  0x58   : > { %759 = vmatmul.mubr.bf16.vlgmr.msra.gmra.mxu1 %v932_v6 }
 0x117   : > { %v719_v7 = vpop.f32.mrf.mxu0 }
 0x118   : > { %v760_v9 = vpop.f32.mrf.mxu1 }
 0x119   : > { %v761_v10 = vadd.f32 %v760_v9, %v719_v7  ;;  %v721_v11 = vpop.f32.mrf.mxu0 }
 0x11a   : > { %v762_v13 = vpop.f32.mrf.mxu1 }
 0x11b   : > { %v767_v14 = vadd.f32 %v761_v10, %v283_v8  ;;  %v763_v15 = vadd.f32 %v762_v13, %v721_v11  ;;  %v723_v16 = vpop.f32.mrf.mxu0  ;;  %774 = sbr.rel (%p998_p7) target bundleno = 303 (0x12f), region = 40 }
 0x11c   : > { %v764_v17 = vpop.f32.mrf.mxu1 }
 0x11d   : > { %769 = vst [vmem:[#allocation2] sm:$0xff] %v767_v14  ;;  %v768_v18 = vadd.f32 %v763_v15, %v284_v12  ;;  %v724_v19 = vpop.f32.mrf.mxu0 }
 0x11e   : > { %v765_v20 = vpop.f32.mrf.mxu1 }
 0x11f   : > { %770 = vst [vmem:[#allocation2 + $0x8] sm:$0xff] %v768_v18 }
 0x120   : > { %v779_v21 = vlaneseq  ;;  %v777_v23 = vld [vmem:[%s1293_s2] sm:$0x3] }
 0x122   : > { %v780_v22 = vshrl.u32 %v779_v21, 7 }
 0x124   : > { %v781_v24 = vsub.s32 0, %v780_v22  ;;  %v785_v25 = vsub.s32 1, %v780_v22  ;;  %v775_v26 = vld [vmem:[#allocation2] sm:$0xff] }
 0x126   : > { %v776_v27 = vld [vmem:[#allocation2 + $0x8] sm:$0xff]  ;;  %v782_v28 = vrot.slane %v777_v23, %v781_v24  ;;  %v786_v29 = vrot.slane %v777_v23, %v785_v25 }
 0x128   : > { %v789_v30 = vadd.f32 %v782_v28, %v775_v26  ;;  %v790_v31 = vadd.f32 %v786_v29, %v776_v27 }
 0x12a   : > { %v791_v32 = vmax.f32 %v789_v30, 0.0  ;;  %v792_v33 = vmax.f32 %v790_v31, 0.0 }
 0x12c   : > { %v1005_v34 = vpack.c.bf16 %v792_v33, %v791_v32 }
 0x12e   : > { %801 = vst [vmem:[%s1294_s3] sm:$0xff] %v1005_v34 }
 0x12f PF: > { %s13_s14 = sadd.s32 1, %s1153_s14   ;;  %s1295_s12 = smov %s1149_s13 }
 0x130   : > { %p10_p8 = scmp.ge.s32.totalorder %s13_s14, 5   ;;  %s1296_s13 = smov %s1298_s15 }
 0x132   :  { %12 = sbr.rel (!%p10_p8) target bundleno = 2 (0x2), region = 76 }

// kernel: model_forward.33
= control target key start
LH: loop header
LB: loop body
LE: loop exit
PB: predicated region body
PF: predicated region fallthrough
CT: control target
= control target key end

     0   :  { %s1524_s12 = smov 0   ;;  %s1526_s13 = smov 0   ;;  %s1835_s0 = inlined_call_operand.vmem [shape: bf16[8,2560], index: 0, kind: input, shape index: {}]   ;;  %s1836_s1 = inlined_call_operand.vmem [shape: bf16[2560,512], index: 1, kind: input, shape index: {}]   ;;  %s1837_s2 = inlined_call_operand.vmem [shape: f32[1,512], index: 2, kind: input, shape index: {}]   ;;  %s1838_s3 = inlined_call_operand.vmem [shape: bf16[8,512], index: 3, kind: output, shape index: {}]  }
   0x1   :  { %s1528_s14 = smov 0   ;;  %s1530_s15 = smov 0  }
   0x2   :  { %s1532_s16 = smov 0   ;;  %s1534_s17 = smov 0  }
   0x3   :  { %s1536_s18 = smov 0  }
   0x4 LB: > { %s25_s19 = sadd.s32 1, %s1493_s16  ;;  %s28_s20 = sadd.s32 1, %s1497_s17  ;;  %s1501_s18 = sphi %s1536_s18, %s13_s18   ;;  %s1497_s17 = sphi %s1534_s17, %s1844_s17   ;;  %s1493_s16 = sphi %s1532_s16, %s1843_s16   ;;  %s1489_s15 = sphi %s1530_s15, %s1842_s15   ;;  %s1485_s14 = sphi %s1528_s14, %s1841_s14   ;;  %s1481_s13 = sphi %s1526_s13, %s1840_s13   ;;  %s1477_s12 = sphi %s1524_s12, %s1839_s12  }
   0x5   : > { %p26_p0 = scmp.ge.s32.totalorder %s25_s19, 5  ;;  %p76_p1 = scmp.ne.s32.totalorder %s1481_s13, %s1477_s12 }
   0x6   : > { %p77_p2 = scmp.eq.s32.totalorder %s1501_s18, 0  ;;  %s69_s24 = sadd.s32 1, %s1481_s13 }
   0x7   : > { %s1846_s19 = smov (%p26_p0, %s25_s19), 0  ;;  %s1848_s20 = smov (!%p26_p0, %s28_s20), %s1497_s17 }
   0x8   : > { %p78_p3 = por %p77_p2, %p76_p1  ;;  %p30_p4 = scmp.ge.s32.totalorder %s1848_s20, 2 }
   0x9   : > { %s64_s21 = ssub.s32 %s1493_s16, %s1846_s19  ;;  %p1202_p6 = scmp.ge.s32.totalorder %s1501_s18, 10 }
   0xa   : > { %s1850_s20 = smov (%p30_p4, %s1848_s20), 0 }
   0xb   : > { %s65_s22 = ssub.s32 %s1497_s17, %s1850_s20  ;;  %156 = sbr.rel (%p1202_p6) target bundleno = 55 (0x37), region = 16 }
   0xc   : > { %s66_s23 = sor.u32 %s65_s22, %s64_s21 }
   0xd   : > { %p67_p5 = scmp.eq.s32.totalorder %s66_s23, 0 }
   0xf   : > { %s1575_s25 = scalar_select %p67_p5, %s1481_s13, %s69_s24  }
  0x10   : > { %172 = sbr.rel (!%p78_p3) target bundleno = 55 (0x37), region = 24  ;;  %s174_s26 = sand.u32 (%p78_p3), 1, %s1481_s13  }
  0x11   : > { %s1205_s27 = sshll.u32 (%p78_p3), %s1497_s17, 1  ;;  %s1203_s28 = sshll.u32 (%p78_p3), %s174_s26, 9 }
  0x12   : > { %s1288_s29 = sshll.u32 (%p78_p3), %s1493_s16, 8  ;;  %s1589_s8 = scalar_lea.vmem (%p78_p3), [#allocation3], %s1203_s28 }
  0x13   : > { %s180_s30 = sadd.s32 (%p78_p3), %s1288_s29, %s1205_s27 }
  0x14   : > { %s1207_s4 = sshll.u32 (%p78_p3), %s180_s30, 2 }
  0x15   : > { %s1584_s7 = scalar_lea.vmem %s1836_s1, %s1207_s4 }
  0x16   : > { %v337_v0 = vld [vmem:[%s1584_s7] sm:$0xff]  ;;  %v339_v1 = vld [vmem:[%s1584_s7 + $0x10] sm:$0xff] }
  0x17   : > { %v341_v2 = vld [vmem:[%s1584_s7 + $0x20] sm:$0xff]  ;;  %338 = vst [vmem:[%s1589_s8] sm:$0xff] %v337_v0  ;;  %340 = vst [vmem:[%s1589_s8 + $0x8] sm:$0xff] %v339_v1  ;;  %v343_v3 = vld [vmem:[%s1584_s7 + $0x30] sm:$0xff] }
  0x18   : > { %342 = vst [vmem:[%s1589_s8 + $0x10] sm:$0xff] %v341_v2  ;;  %v345_v4 = vld [vmem:[%s1584_s7 + $0x40] sm:$0xff]  ;;  %v347_v5 = vld [vmem:[%s1584_s7 + $0x50] sm:$0xff]  ;;  %344 = vst [vmem:[%s1589_s8 + $0x18] sm:$0xff] %v343_v3 }
  0x19   : > { %346 = vst [vmem:[%s1589_s8 + $0x20] sm:$0xff] %v345_v4  ;;  %348 = vst [vmem:[%s1589_s8 + $0x28] sm:$0xff] %v347_v5  ;;  %v349_v6 = vld [vmem:[%s1584_s7 + $0x60] sm:$0xff]  ;;  %v351_v7 = vld [vmem:[%s1584_s7 + $0x70] sm:$0xff] }
  0x1a   : > { %v353_v8 = vld [vmem:[%s1584_s7 + $0x80] sm:$0xff]  ;;  %350 = vst [vmem:[%s1589_s8 + $0x30] sm:$0xff] %v349_v6  ;;  %352 = vst [vmem:[%s1589_s8 + $0x38] sm:$0xff] %v351_v7  ;;  %v355_v9 = vld [vmem:[%s1584_s7 + $0x90] sm:$0xff] }
  0x1b   : > { %354 = vst [vmem:[%s1589_s8 + $0x40] sm:$0xff] %v353_v8  ;;  %v357_v10 = vld [vmem:[%s1584_s7 + $0xa0] sm:$0xff]  ;;  %v359_v11 = vld [vmem:[%s1584_s7 + $0xb0] sm:$0xff]  ;;  %356 = vst [vmem:[%s1589_s8 + $0x48] sm:$0xff] %v355_v9 }
  0x1c   : > { %358 = vst [vmem:[%s1589_s8 + $0x50] sm:$0xff] %v357_v10  ;;  %360 = vst [vmem:[%s1589_s8 + $0x58] sm:$0xff] %v359_v11  ;;  %v361_v12 = vld [vmem:[%s1584_s7 + $0xc0] sm:$0xff]  ;;  %v363_v13 = vld [vmem:[%s1584_s7 + $0xd0] sm:$0xff] }
  0x1d   : > { %v365_v14 = vld [vmem:[%s1584_s7 + $0xe0] sm:$0xff]  ;;  %362 = vst [vmem:[%s1589_s8 + $0x60] sm:$0xff] %v361_v12  ;;  %364 = vst [vmem:[%s1589_s8 + $0x68] sm:$0xff] %v363_v13  ;;  %v367_v15 = vld [vmem:[%s1584_s7 + $0xf0] sm:$0xff] }
  0x1e   : > { %366 = vst [vmem:[%s1589_s8 + $0x70] sm:$0xff] %v365_v14  ;;  %v369_v16 = vld [vmem:[%s1584_s7 + $0x100] sm:$0xff]  ;;  %v371_v17 = vld [vmem:[%s1584_s7 + $0x110] sm:$0xff]  ;;  %368 = vst [vmem:[%s1589_s8 + $0x78] sm:$0xff] %v367_v15 }
  0x1f   : > { %370 = vst [vmem:[%s1589_s8 + $0x80] sm:$0xff] %v369_v16  ;;  %372 = vst [vmem:[%s1589_s8 + $0x88] sm:$0xff] %v371_v17  ;;  %v373_v18 = vld [vmem:[%s1584_s7 + $0x120] sm:$0xff]  ;;  %v375_v19 = vld [vmem:[%s1584_s7 + $0x130] sm:$0xff] }
  0x20   : > { %v377_v20 = vld [vmem:[%s1584_s7 + $0x140] sm:$0xff]  ;;  %374 = vst [vmem:[%s1589_s8 + $0x90] sm:$0xff] %v373_v18  ;;  %376 = vst [vmem:[%s1589_s8 + $0x98] sm:$0xff] %v375_v19  ;;  %v379_v21 = vld [vmem:[%s1584_s7 + $0x150] sm:$0xff] }
  0x21   : > { %378 = vst [vmem:[%s1589_s8 + $0xa0] sm:$0xff] %v377_v20  ;;  %v381_v22 = vld [vmem:[%s1584_s7 + $0x160] sm:$0xff]  ;;  %v383_v23 = vld [vmem:[%s1584_s7 + $0x170] sm:$0xff]  ;;  %380 = vst [vmem:[%s1589_s8 + $0xa8] sm:$0xff] %v379_v21 }
  0x22   : > { %382 = vst [vmem:[%s1589_s8 + $0xb0] sm:$0xff] %v381_v22  ;;  %384 = vst [vmem:[%s1589_s8 + $0xb8] sm:$0xff] %v383_v23  ;;  %v385_v24 = vld [vmem:[%s1584_s7 + $0x180] sm:$0xff]  ;;  %v387_v25 = vld [vmem:[%s1584_s7 + $0x190] sm:$0xff] }
  0x23   : > { %v389_v26 = vld [vmem:[%s1584_s7 + $0x1a0] sm:$0xff]  ;;  %386 = vst [vmem:[%s1589_s8 + $0xc0] sm:$0xff] %v385_v24  ;;  %388 = vst [vmem:[%s1589_s8 + $0xc8] sm:$0xff] %v387_v25  ;;  %v391_v27 = vld [vmem:[%s1584_s7 + $0x1b0] sm:$0xff] }
  0x24   : > { %390 = vst [vmem:[%s1589_s8 + $0xd0] sm:$0xff] %v389_v26  ;;  %v393_v28 = vld [vmem:[%s1584_s7 + $0x1c0] sm:$0xff]  ;;  %v395_v29 = vld [vmem:[%s1584_s7 + $0x1d0] sm:$0xff]  ;;  %392 = vst [vmem:[%s1589_s8 + $0xd8] sm:$0xff] %v391_v27 }
  0x25   : > { %394 = vst [vmem:[%s1589_s8 + $0xe0] sm:$0xff] %v393_v28  ;;  %396 = vst [vmem:[%s1589_s8 + $0xe8] sm:$0xff] %v395_v29  ;;  %v397_v30 = vld [vmem:[%s1584_s7 + $0x1e0] sm:$0xff]  ;;  %v399_v31 = vld [vmem:[%s1584_s7 + $0x1f0] sm:$0xff] }
  0x26   : > { %v401_v32 = vld [vmem:[%s1584_s7 + $0x200] sm:$0xff]  ;;  %398 = vst [vmem:[%s1589_s8 + $0xf0] sm:$0xff] %v397_v30  ;;  %400 = vst [vmem:[%s1589_s8 + $0xf8] sm:$0xff] %v399_v31  ;;  %v403_v33 = vld [vmem:[%s1584_s7 + $0x210] sm:$0xff] }
  0x27   : > { %402 = vst [vmem:[%s1589_s8 + $0x100] sm:$0xff] %v401_v32  ;;  %v405_v34 = vld [vmem:[%s1584_s7 + $0x220] sm:$0xff]  ;;  %v407_v35 = vld [vmem:[%s1584_s7 + $0x230] sm:$0xff]  ;;  %404 = vst [vmem:[%s1589_s8 + $0x108] sm:$0xff] %v403_v33 }
  0x28   : > { %406 = vst [vmem:[%s1589_s8 + $0x110] sm:$0xff] %v405_v34  ;;  %408 = vst [vmem:[%s1589_s8 + $0x118] sm:$0xff] %v407_v35  ;;  %v409_v36 = vld [vmem:[%s1584_s7 + $0x240] sm:$0xff]  ;;  %v411_v37 = vld [vmem:[%s1584_s7 + $0x250] sm:$0xff] }
  0x29   : > { %v413_v38 = vld [vmem:[%s1584_s7 + $0x260] sm:$0xff]  ;;  %410 = vst [vmem:[%s1589_s8 + $0x120] sm:$0xff] %v409_v36  ;;  %412 = vst [vmem:[%s1589_s8 + $0x128] sm:$0xff] %v411_v37  ;;  %v415_v39 = vld [vmem:[%s1584_s7 + $0x270] sm:$0xff] }
  0x2a   : > { %414 = vst [vmem:[%s1589_s8 + $0x130] sm:$0xff] %v413_v38  ;;  %v417_v40 = vld [vmem:[%s1584_s7 + $0x280] sm:$0xff]  ;;  %v419_v41 = vld [vmem:[%s1584_s7 + $0x290] sm:$0xff]  ;;  %416 = vst [vmem:[%s1589_s8 + $0x138] sm:$0xff] %v415_v39 }
  0x2b   : > { %418 = vst [vmem:[%s1589_s8 + $0x140] sm:$0xff] %v417_v40  ;;  %420 = vst [vmem:[%s1589_s8 + $0x148] sm:$0xff] %v419_v41  ;;  %v421_v42 = vld [vmem:[%s1584_s7 + $0x2a0] sm:$0xff]  ;;  %v423_v43 = vld [vmem:[%s1584_s7 + $0x2b0] sm:$0xff] }
  0x2c   : > { %v425_v44 = vld [vmem:[%s1584_s7 + $0x2c0] sm:$0xff]  ;;  %422 = vst [vmem:[%s1589_s8 + $0x150] sm:$0xff] %v421_v42  ;;  %424 = vst [vmem:[%s1589_s8 + $0x158] sm:$0xff] %v423_v43  ;;  %v427_v45 = vld [vmem:[%s1584_s7 + $0x2d0] sm:$0xff] }
  0x2d   : > { %426 = vst [vmem:[%s1589_s8 + $0x160] sm:$0xff] %v425_v44  ;;  %v429_v46 = vld [vmem:[%s1584_s7 + $0x2e0] sm:$0xff]  ;;  %v431_v47 = vld [vmem:[%s1584_s7 + $0x2f0] sm:$0xff]  ;;  %428 = vst [vmem:[%s1589_s8 + $0x168] sm:$0xff] %v427_v45 }
  0x2e   : > { %430 = vst [vmem:[%s1589_s8 + $0x170] sm:$0xff] %v429_v46  ;;  %432 = vst [vmem:[%s1589_s8 + $0x178] sm:$0xff] %v431_v47  ;;  %v433_v48 = vld [vmem:[%s1584_s7 + $0x300] sm:$0xff]  ;;  %v435_v49 = vld [vmem:[%s1584_s7 + $0x310] sm:$0xff] }
  0x2f   : > { %v437_v50 = vld [vmem:[%s1584_s7 + $0x320] sm:$0xff]  ;;  %434 = vst [vmem:[%s1589_s8 + $0x180] sm:$0xff] %v433_v48  ;;  %436 = vst [vmem:[%s1589_s8 + $0x188] sm:$0xff] %v435_v49  ;;  %v439_v51 = vld [vmem:[%s1584_s7 + $0x330] sm:$0xff] }
  0x30   : > { %438 = vst [vmem:[%s1589_s8 + $0x190] sm:$0xff] %v437_v50  ;;  %v441_v52 = vld [vmem:[%s1584_s7 + $0x340] sm:$0xff]  ;;  %v443_v53 = vld [vmem:[%s1584_s7 + $0x350] sm:$0xff]  ;;  %440 = vst [vmem:[%s1589_s8 + $0x198] sm:$0xff] %v439_v51 }
  0x31   : > { %442 = vst [vmem:[%s1589_s8 + $0x1a0] sm:$0xff] %v441_v52  ;;  %444 = vst [vmem:[%s1589_s8 + $0x1a8] sm:$0xff] %v443_v53  ;;  %v445_v54 = vld [vmem:[%s1584_s7 + $0x360] sm:$0xff]  ;;  %v447_v55 = vld [vmem:[%s1584_s7 + $0x370] sm:$0xff] }
  0x32   : > { %v449_v56 = vld [vmem:[%s1584_s7 + $0x380] sm:$0xff]  ;;  %446 = vst [vmem:[%s1589_s8 + $0x1b0] sm:$0xff] %v445_v54  ;;  %448 = vst [vmem:[%s1589_s8 + $0x1b8] sm:$0xff] %v447_v55  ;;  %v451_v57 = vld [vmem:[%s1584_s7 + $0x390] sm:$0xff] }
  0x33   : > { %450 = vst [vmem:[%s1589_s8 + $0x1c0] sm:$0xff] %v449_v56  ;;  %v453_v58 = vld [vmem:[%s1584_s7 + $0x3a0] sm:$0xff]  ;;  %v455_v59 = vld [vmem:[%s1584_s7 + $0x3b0] sm:$0xff]  ;;  %452 = vst [vmem:[%s1589_s8 + $0x1c8] sm:$0xff] %v451_v57 }
  0x34   : > { %454 = vst [vmem:[%s1589_s8 + $0x1d0] sm:$0xff] %v453_v58  ;;  %456 = vst [vmem:[%s1589_s8 + $0x1d8] sm:$0xff] %v455_v59  ;;  %v457_v60 = vld [vmem:[%s1584_s7 + $0x3c0] sm:$0xff]  ;;  %v459_v61 = vld [vmem:[%s1584_s7 + $0x3d0] sm:$0xff] }
  0x35   : > { %v461_v62 = vld [vmem:[%s1584_s7 + $0x3e0] sm:$0xff]  ;;  %458 = vst [vmem:[%s1589_s8 + $0x1e0] sm:$0xff] %v457_v60  ;;  %460 = vst [vmem:[%s1589_s8 + $0x1e8] sm:$0xff] %v459_v61  ;;  %v463_v63 = vld [vmem:[%s1584_s7 + $0x3f0] sm:$0xff] }
  0x36   : > { %462 = vst [vmem:[%s1589_s8 + $0x1f0] sm:$0xff] %v461_v62  ;;  %464 = vst [vmem:[%s1589_s8 + $0x1f8] sm:$0xff] %v463_v63 }
  0x37 PF: > { %p1208_p7 = scmp.ge.s32.totalorder %s1501_s18, 1  ;;  %p477_p8 = scmp.lt.s32.totalorder %s1501_s18, 11 }
  0x39   : > { %p478_p9 = pnand %p1208_p7, %p477_p8 }
  0x3a   : > { %s484_s9 = sand.u32 (!%p478_p9), 1, %s1477_s12   ;;  %s1210_s10 = sshll.u32 (!%p478_p9), %s1485_s14, 2 }
  0x3b   : > { %481 = sbr.rel (%p478_p9) target bundleno = 355 (0x163), region = 66  ;;  %s1209_s11 = sshll.u32 (!%p478_p9), %s484_s9, 9 }
  0x3c   : > { %p527_p10 = scmp.lt.s32.totalorder (!%p478_p9), %s1210_s10, 19  ;;  %s1212_s21 = sshll.u32 (!%p478_p9), %s1489_s15, 1 }
  0x3d   : > { %p537_p11 = scmp.lt.s32.totalorder (!%p478_p9), %s1212_s21, 3  ;;  %s1738_s5 = scalar_lea.vmem (!%p478_p9), [#allocation3], %s1209_s11 }
  0x3e   : > { %p1215_p12 = scmp.ne.s32.totalorder (!%p478_p9), %s1485_s14, 0 }
  0x40   : > { %s1852_s10 = smov (!%p527_p10, %s1210_s10), 19  ;;  %s1854_s21 = smov (!%p537_p11, %s1212_s21), 3 }
  0x41   : > { %s1211_s22 = sshll.u32 %s1852_s10, 2  ;;  %s539_s12 = scalar_lea.vmem %s1837_s2, %s1854_s21 }
  0x42   : > { %s1724_s26 = scalar_lea.vmem %s1835_s0, %s1211_s22  ;;  %s1214_s29 = sshll.u32 %s1854_s21, 2 }
  0x43   : > { %s1736_s15 = scalar_lea.vmem %s1838_s3, %s1214_s29  ;;  %554 = sbr.rel (%p1215_p12) target bundleno = 74 (0x4a), region = 74 }
  0x48   : > { %v1503_v0 = vmov 0.0  }
  0x49   : > { %555 = vst [vmem:[#allocation2] sm:$0xff] %v1503_v0  ;;  %556 = vst [vmem:[#allocation2 + $0x8] sm:$0xff] %v1503_v0 }
  0x4a PF: > { %v1347_v1 = vld [vmem:[%s1738_s5 + $0x74] ss:$8 sps:$4 sm:$0xff]   ;;  %v1351_v3 = vld [vmem:[%s1738_s5 + $0x70] ss:$8 sps:$4 sm:$0xff]   ;;  %v1353_v5 = vld [vmem:[%s1738_s5 + $0x64] ss:$8 sps:$4 sm:$0xff]  }
  0x4b   : > { %v1349_v2 = vld [vmem:[%s1738_s5 + $0x174] ss:$8 sps:$4 sm:$0xff]   ;;  %959 = vmatprep.subr.bf16.mxu0 %v1347_v1  ;;  %v1352_v4 = vld [vmem:[%s1738_s5 + $0x170] ss:$8 sps:$4 sm:$0xff]   ;;  %v1355_v6 = vld [vmem:[%s1738_s5 + $0x164] ss:$8 sps:$4 sm:$0xff]  }
  0x4c   : > { %1000 = vmatprep.subr.bf16.mxu1 %v1349_v2  ;;  %960 = vmatpush1.bf16.msra.mxu0 %v1351_v3  ;;  %v1357_v7 = vld [vmem:[%s1738_s5 + $0x60] ss:$8 sps:$4 sm:$0xff]   ;;  %v1359_v9 = vld [vmem:[%s1738_s5 + $0x54] ss:$8 sps:$4 sm:$0xff]   ;;  %v1363_v11 = vld [vmem:[%s1738_s5 + $0x50] ss:$8 sps:$4 sm:$0xff]  }
  0x4d   : > { %1001 = vmatpush1.bf16.msra.mxu1 %v1352_v4  ;;  %961 = vmatprep.subr.bf16.mxu0 %v1353_v5  ;;  %v1358_v8 = vld [vmem:[%s1738_s5 + $0x160] ss:$8 sps:$4 sm:$0xff]   ;;  %v1361_v10 = vld [vmem:[%s1738_s5 + $0x154] ss:$8 sps:$4 sm:$0xff]   ;;  %v1364_v12 = vld [vmem:[%s1738_s5 + $0x150] ss:$8 sps:$4 sm:$0xff]  }
  0x4e   : > { %1002 = vmatprep.subr.bf16.mxu1 %v1355_v6  ;;  %v1365_v13 = vld [vmem:[%s1738_s5 + $0x44] ss:$8 sps:$4 sm:$0xff]   ;;  %v1369_v15 = vld [vmem:[%s1738_s5 + $0x40] ss:$8 sps:$4 sm:$0xff]   ;;  %v1371_v17 = vld [vmem:[%s1738_s5 + $0x34] ss:$8 sps:$4 sm:$0xff]  }
  0x4f   : > { %v1367_v14 = vld [vmem:[%s1738_s5 + $0x144] ss:$8 sps:$4 sm:$0xff]   ;;  %v1370_v16 = vld [vmem:[%s1738_s5 + $0x140] ss:$8 sps:$4 sm:$0xff]   ;;  %v1373_v18 = vld [vmem:[%s1738_s5 + $0x134] ss:$8 sps:$4 sm:$0xff]  }
  0x50   : > { %962 = vmatpush1.bf16.msra.mxu0 %v1357_v7  ;;  %v1375_v19 = vld [vmem:[%s1738_s5 + $0x30] ss:$8 sps:$4 sm:$0xff]   ;;  %v1377_v21 = vld [vmem:[%s1738_s5 + $0x24] ss:$8 sps:$4 sm:$0xff]   ;;  %v1381_v23 = vld [vmem:[%s1738_s5 + $0x20] ss:$8 sps:$4 sm:$0xff]  }
  0x51   : > { %1003 = vmatpush1.bf16.msra.mxu1 %v1358_v8  ;;  %963 = vmatprep.subr.bf16.mxu0 %v1359_v9  ;;  %v1376_v20 = vld [vmem:[%s1738_s5 + $0x130] ss:$8 sps:$4 sm:$0xff]   ;;  %v1379_v22 = vld [vmem:[%s1738_s5 + $0x124] ss:$8 sps:$4 sm:$0xff]   ;;  %v1382_v24 = vld [vmem:[%s1738_s5 + $0x120] ss:$8 sps:$4 sm:$0xff]  }
  0x52   : > { %1004 = vmatprep.subr.bf16.mxu1 %v1361_v10  ;;  %v1383_v25 = vld [vmem:[%s1738_s5 + $0x14] ss:$8 sps:$4 sm:$0xff]   ;;  %v1387_v27 = vld [vmem:[%s1738_s5 + $0x10] ss:$8 sps:$4 sm:$0xff]   ;;  %v1389_v29 = vld [vmem:[%s1738_s5 + $0x4] ss:$8 sps:$4 sm:$0xff]  }
  0x53   : > { %v1385_v26 = vld [vmem:[%s1738_s5 + $0x114] ss:$8 sps:$4 sm:$0xff]   ;;  %v1388_v28 = vld [vmem:[%s1738_s5 + $0x110] ss:$8 sps:$4 sm:$0xff]   ;;  %v1391_v30 = vld [vmem:[%s1738_s5 + $0x104] ss:$8 sps:$4 sm:$0xff]  }
  0x54   : > { %964 = vmatpush1.bf16.msra.mxu0 %v1363_v11  ;;  %v1393_v31 = vld [vmem:[%s1738_s5] ss:$8 sps:$4 sm:$0xff]   ;;  %v1395_v33 = vld [vmem:[%s1738_s5 + $0xf4] ss:$8 sps:$4 sm:$0xff]   ;;  %v1399_v35 = vld [vmem:[%s1738_s5 + $0xf0] ss:$8 sps:$4 sm:$0xff]  }
  0x55   : > { %1005 = vmatpush1.bf16.msra.mxu1 %v1364_v12  ;;  %965 = vmatprep.subr.bf16.mxu0 %v1365_v13  ;;  %v1394_v32 = vld [vmem:[%s1738_s5 + $0x100] ss:$8 sps:$4 sm:$0xff]   ;;  %v1397_v34 = vld [vmem:[%s1738_s5 + $0x1f4] ss:$8 sps:$4 sm:$0xff]   ;;  %v1400_v36 = vld [vmem:[%s1738_s5 + $0x1f0] ss:$8 sps:$4 sm:$0xff]  }
  0x56   : > { %1006 = vmatprep.subr.bf16.mxu1 %v1367_v14  ;;  %v1401_v37 = vld [vmem:[%s1738_s5 + $0xe4] ss:$8 sps:$4 sm:$0xff]   ;;  %v1405_v39 = vld [vmem:[%s1738_s5 + $0xe0] ss:$8 sps:$4 sm:$0xff]   ;;  %v1407_v41 = vld [vmem:[%s1738_s5 + $0xd4] ss:$8 sps:$4 sm:$0xff]  }
  0x57   : > { %v1403_v38 = vld [vmem:[%s1738_s5 + $0x1e4] ss:$8 sps:$4 sm:$0xff]   ;;  %v1406_v40 = vld [vmem:[%s1738_s5 + $0x1e0] ss:$8 sps:$4 sm:$0xff]   ;;  %v1409_v42 = vld [vmem:[%s1738_s5 + $0x1d4] ss:$8 sps:$4 sm:$0xff]  }
  0x58   : > { %966 = vmatpush1.bf16.msra.mxu0 %v1369_v15  ;;  %v1411_v43 = vld [vmem:[%s1738_s5 + $0xd0] ss:$8 sps:$4 sm:$0xff]   ;;  %v1413_v45 = vld [vmem:[%s1738_s5 + $0xc4] ss:$8 sps:$4 sm:$0xff]   ;;  %v1417_v50 = vld [vmem:[%s1738_s5 + $0xc0] ss:$8 sps:$4 sm:$0xff]  }
  0x59   : > { %1007 = vmatpush1.bf16.msra.mxu1 %v1370_v16  ;;  %967 = vmatprep.subr.bf16.mxu0 %v1371_v17  ;;  %v1412_v44 = vld [vmem:[%s1738_s5 + $0x1d0] ss:$8 sps:$4 sm:$0xff]   ;;  %v1415_v46 = vld [vmem:[%s1738_s5 + $0x1c4] ss:$8 sps:$4 sm:$0xff]   ;;  %v1418_v51 = vld [vmem:[%s1738_s5 + $0x1c0] ss:$8 sps:$4 sm:$0xff]  }
  0x5a   : > { %1008 = vmatprep.subr.bf16.mxu1 %v1373_v18  ;;  %v559_v47 = vld [vmem:[%s1724_s26] sm:$0xff]  ;;  %v560_v49 = vld [vmem:[%s1724_s26 + $0x8] sm:$0xff]  ;;  %v1425_v57 = vld [vmem:[%s1738_s5 + $0xa4] ss:$8 sps:$4 sm:$0xff]   ;;  %p1284_p13 = scmp.ne.s32.totalorder %s1485_s14, 4 }
  0x5b   : > { %v1217_v48 = vcombine.high %v559_v47, %v559_v47  ;;  %v1219_v52 = vcombine.high %v560_v49, %v560_v49  ;;  %v1419_v53 = vld [vmem:[%s1738_s5 + $0xb4] ss:$8 sps:$4 sm:$0xff]   ;;  %v1423_v55 = vld [vmem:[%s1738_s5 + $0xb0] ss:$8 sps:$4 sm:$0xff]   ;;  %v1427_v58 = vld [vmem:[%s1738_s5 + $0x1a4] ss:$8 sps:$4 sm:$0xff]   ;;  %v1216_v5 = vcombine.low %v559_v47, %v559_v47  ;;  %v1218_v6 = vcombine.low %v560_v49, %v560_v49 }
  0x5c   : > { %968 = vmatpush1.bf16.msra.mxu0 %v1375_v19  ;;  %v1421_v54 = vld [vmem:[%s1738_s5 + $0x1b4] ss:$8 sps:$4 sm:$0xff]   ;;  %v1424_v56 = vld [vmem:[%s1738_s5 + $0x1b0] ss:$8 sps:$4 sm:$0xff]   ;;  %v1429_v59 = vld [vmem:[%s1738_s5 + $0xa0] ss:$8 sps:$4 sm:$0xff]  }
  0x5d   : > { %1009 = vmatpush1.bf16.msra.mxu1 %v1376_v20  ;;  %969 = vmatprep.subr.bf16.mxu0 %v1377_v21  ;;  %v1430_v60 = vld [vmem:[%s1738_s5 + $0x1a0] ss:$8 sps:$4 sm:$0xff]   ;;  %v1431_v61 = vld [vmem:[%s1738_s5 + $0x94] ss:$8 sps:$4 sm:$0xff]   ;;  %v1435_v63 = vld [vmem:[%s1738_s5 + $0x90] ss:$8 sps:$4 sm:$0xff]  }
  0x5e   : > { %1010 = vmatprep.subr.bf16.mxu1 %v1379_v22  ;;  %991 = vmatprep.mubr.bf16.mxu0 %v1217_v48  ;;  %v1433_v62 = vld [vmem:[%s1738_s5 + $0x194] ss:$8 sps:$4 sm:$0xff]   ;;  %v1436_v0 = vld [vmem:[%s1738_s5 + $0x190] ss:$8 sps:$4 sm:$0xff]   ;;  %v1437_v1 = vld [vmem:[%s1738_s5 + $0x84] ss:$8 sps:$4 sm:$0xff]  }
  0x5f   : > { %1032 = vmatprep.mubr.bf16.mxu1 %v1219_v52  ;;  %v1439_v2 = vld [vmem:[%s1738_s5 + $0x184] ss:$8 sps:$4 sm:$0xff]   ;;  %v1441_v3 = vld [vmem:[%s1738_s5 + $0x80] ss:$8 sps:$4 sm:$0xff]   ;;  %v557_v8 = vld [vmem:[#allocation2] sm:$0xff] }
  0x60   : > { %970 = vmatpush1.bf16.msra.mxu0 %v1381_v23  ;;  %v1442_v4 = vld [vmem:[%s1738_s5 + $0x180] ss:$8 sps:$4 sm:$0xff]   ;;  %v558_v12 = vld [vmem:[#allocation2 + $0x8] sm:$0xff] }
  0x61   : > { %1011 = vmatpush1.bf16.msra.mxu1 %v1382_v24  ;;  %971 = vmatprep.subr.bf16.mxu0 %v1383_v25 }
  0x62   : > { %1012 = vmatprep.subr.bf16.mxu1 %v1385_v26 }
  0x64   : > { %972 = vmatpush1.bf16.msra.mxu0 %v1387_v27 }
  0x65   : > { %1013 = vmatpush1.bf16.msra.mxu1 %v1388_v28  ;;  %973 = vmatprep.subr.bf16.mxu0 %v1389_v29 }
  0x66   : > { %1014 = vmatprep.subr.bf16.mxu1 %v1391_v30 }
  0x68   : > { %974 = vmatpush1.bf16.msra.mxu0 %v1393_v31 }
  0x69   : > { %1015 = vmatpush1.bf16.msra.mxu1 %v1394_v32  ;;  %975 = vmatprep.subr.bf16.mxu0 %v1395_v33 }
  0x6a   : > { %1016 = vmatprep.subr.bf16.mxu1 %v1397_v34 }
  0x6c   : > { %976 = vmatpush2.bf16.msra.mxu0 %v1399_v35 }
  0x6d   : > { %1017 = vmatpush2.bf16.msra.mxu1 %v1400_v36  ;;  %977 = vmatprep.subr.bf16.mxu0 %v1401_v37 }
  0x6e   : > { %1018 = vmatprep.subr.bf16.mxu1 %v1403_v38 }
  0x70   : > { %978 = vmatpush2.bf16.msra.mxu0 %v1405_v39 }
  0x71   : > { %1019 = vmatpush2.bf16.msra.mxu1 %v1406_v40  ;;  %979 = vmatprep.subr.bf16.mxu0 %v1407_v41 }
  0x72   : > { %1020 = vmatprep.subr.bf16.mxu1 %v1409_v42 }
  0x74   : > { %980 = vmatpush2.bf16.msra.mxu0 %v1411_v43 }
  0x75   : > { %1021 = vmatpush2.bf16.msra.mxu1 %v1412_v44  ;;  %981 = vmatprep.subr.bf16.mxu0 %v1413_v45 }
  0x76   : > { %1022 = vmatprep.subr.bf16.mxu1 %v1415_v46 }
  0x78   : > { %982 = vmatpush2.bf16.msra.mxu0 %v1417_v50 }
  0x79   : > { %1023 = vmatpush2.bf16.msra.mxu1 %v1418_v51  ;;  %983 = vmatprep.subr.bf16.mxu0 %v1419_v53 }
  0x7a   : > { %1024 = vmatprep.subr.bf16.mxu1 %v1421_v54 }
  0x7c   : > { %984 = vmatpush2.bf16.msra.mxu0 %v1423_v55 }
  0x7d   : > { %1025 = vmatpush2.bf16.msra.mxu1 %v1424_v56  ;;  %985 = vmatprep.subr.bf16.mxu0 %v1425_v57 }
  0x7e   : > { %1026 = vmatprep.subr.bf16.mxu1 %v1427_v58 }
  0x80   : > { %986 = vmatpush2.bf16.msra.mxu0 %v1429_v59 }
  0x81   : > { %1027 = vmatpush2.bf16.msra.mxu1 %v1430_v60  ;;  %987 = vmatprep.subr.bf16.mxu0 %v1431_v61 }
  0x82   : > { %1028 = vmatprep.subr.bf16.mxu1 %v1433_v62 }
  0x84   : > { %988 = vmatpush2.bf16.msra.mxu0 %v1435_v63 }
  0x85   : > { %1029 = vmatpush2.bf16.msra.mxu1 %v1436_v0  ;;  %989 = vmatprep.subr.bf16.mxu0 %v1437_v1 }
  0x86   : > { %1030 = vmatprep.subr.bf16.mxu1 %v1439_v2 }
  0x88   : > { %990 = vmatpush2.bf16.msra.mxu0 %v1441_v3 }
  0x89   : > { %1031 = vmatpush2.bf16.msra.mxu1 %v1442_v4 }
  0x8b   : > { %992 = vmatmul.mubr.bf16.vlgmr.msra.gmra.mxu0 %v1216_v5 }
  0x8c   : > { %1033 = vmatmul.mubr.bf16.vlgmr.msra.gmra.mxu1 %v1218_v6 }
 0x14b   : > { %v993_v7 = vpop.f32.mrf.mxu0 }
 0x14c   : > { %v1034_v9 = vpop.f32.mrf.mxu1 }
 0x14d   : > { %v1035_v10 = vadd.f32 %v1034_v9, %v993_v7  ;;  %v995_v11 = vpop.f32.mrf.mxu0 }
 0x14e   : > { %v1036_v13 = vpop.f32.mrf.mxu1 }
 0x14f   : > { %v1041_v14 = vadd.f32 %v1035_v10, %v557_v8  ;;  %v1037_v15 = vadd.f32 %v1036_v13, %v995_v11  ;;  %v997_v16 = vpop.f32.mrf.mxu0  ;;  %1048 = sbr.rel (%p1284_p13) target bundleno = 355 (0x163), region = 78 }
 0x150   : > { %v1038_v17 = vpop.f32.mrf.mxu1 }
 0x151   : > { %1043 = vst [vmem:[#allocation2] sm:$0xff] %v1041_v14  ;;  %v1042_v18 = vadd.f32 %v1037_v15, %v558_v12  ;;  %v998_v19 = vpop.f32.mrf.mxu0 }
 0x152   : > { %v1039_v20 = vpop.f32.mrf.mxu1 }
 0x153   : > { %1044 = vst [vmem:[#allocation2 + $0x8] sm:$0xff] %v1042_v18 }
 0x154   : > { %v1053_v21 = vlaneseq  ;;  %v1051_v23 = vld [vmem:[%s539_s12] sm:$0x3] }
 0x156   : > { %v1054_v22 = vshrl.u32 %v1053_v21, 7 }
 0x158   : > { %v1055_v24 = vsub.s32 0, %v1054_v22  ;;  %v1059_v25 = vsub.s32 1, %v1054_v22  ;;  %v1049_v26 = vld [vmem:[#allocation2] sm:$0xff] }
 0x15a   : > { %v1050_v27 = vld [vmem:[#allocation2 + $0x8] sm:$0xff]  ;;  %v1056_v28 = vrot.slane %v1051_v23, %v1055_v24  ;;  %v1060_v29 = vrot.slane %v1051_v23, %v1059_v25 }
 0x15c   : > { %v1063_v30 = vadd.f32 %v1056_v28, %v1049_v26  ;;  %v1064_v31 = vadd.f32 %v1060_v29, %v1050_v27 }
 0x15e   : > { %v1065_v32 = vmax.f32 %v1063_v30, 0.0  ;;  %v1066_v33 = vmax.f32 %v1064_v31, 0.0 }
 0x160   : > { %v1289_v34 = vpack.c.bf16 %v1066_v33, %v1065_v32 }
 0x162   : > { %1075 = vst [vmem:[%s1736_s15] sm:$0xff] %v1289_v34 }
 0x163 PF: > { %s13_s18 = sadd.s32 1, %s1501_s18   ;;  %s1839_s12 = smov %s1481_s13 }
 0x164   : > { %p10_p0 = scmp.ge.s32.totalorder %s13_s18, 12   ;;  %s1840_s13 = smov %s1575_s25 }
 0x165   : > { %s1841_s14 = smov %s1493_s16  ;;  %s1842_s15 = smov %s1497_s17 }
 0x166   : > { %s1843_s16 = smov %s1846_s19  ;;  %s1844_s17 = smov %s1850_s20 }
 0x167   :  { %12 = sbr.rel (!%p10_p0) target bundleno = 4 (0x4), region = 119 }

// kernel: model_forward.32
= control target key start
LH: loop header
LB: loop body
LE: loop exit
PB: predicated region body
PF: predicated region fallthrough
CT: control target
= control target key end

     0   :  { %s1031_s12 = smov 0   ;;  %s1033_s13 = smov 0   ;;  %s1210_s0 = inlined_call_operand.vmem [shape: bf16[8,256], index: 0, kind: input, shape index: {}]   ;;  %s1211_s1 = inlined_call_operand.vmem [shape: bf16[256,512], index: 1, kind: input, shape index: {}]   ;;  %s1212_s2 = inlined_call_operand.vmem [shape: f32[1,512], index: 2, kind: input, shape index: {}]   ;;  %s1213_s3 = inlined_call_operand.vmem [shape: bf16[8,512], index: 3, kind: output, shape index: {}]  }
   0x1   :  { %s1035_s14 = smov 0   ;;  %s1037_s15 = smov 0  }
   0x2   :  { %s1039_s16 = smov 0  }
   0x3 LB: > { %s28_s17 = sadd.s32 1, %s1005_s15  ;;  %p76_p1 = scmp.ne.s32.totalorder %s997_s13, %s993_s12  ;;  %s1009_s16 = sphi %s1039_s16, %s13_s16   ;;  %s1005_s15 = sphi %s1037_s15, %s1217_s15   ;;  %s1001_s14 = sphi %s1035_s14, %s1216_s14   ;;  %s997_s13 = sphi %s1033_s13, %s1215_s13   ;;  %s993_s12 = sphi %s1031_s12, %s1214_s12  }
   0x4   : > { %p30_p0 = scmp.ge.s32.totalorder %s28_s17, 2  ;;  %p77_p2 = scmp.eq.s32.totalorder %s1009_s16, 0 }
   0x5   : > { %s69_s19 = sadd.s32 1, %s997_s13  ;;  %p833_p5 = scmp.ge.s32.totalorder %s1009_s16, 2 }
   0x6   : > { %s1219_s17 = smov (%p30_p0, %s28_s17), 0  ;;  %p78_p3 = por %p77_p2, %p76_p1 }
   0x7   : > { %s65_s18 = ssub.s32 %s1005_s15, %s1219_s17  ;;  %169 = sbr.rel (%p833_p5) target bundleno = 32 (0x20), region = 20 }
   0x8   : > { %p67_p4 = scmp.eq.s32.totalorder %s65_s18, 0 }
   0xa   : > { %s1066_s20 = scalar_select %p67_p4, %s997_s13, %s69_s19  }
   0xc   : > { %172 = sbr.rel (!%p78_p3) target bundleno = 32 (0x20), region = 24  ;;  %s174_s21 = sand.u32 (%p78_p3), 1, %s997_s13  }
   0xd   : > { %s879_s22 = sshll.u32 (%p78_p3), %s1005_s15, 3  ;;  %s834_s23 = sshll.u32 (%p78_p3), %s174_s21, 8 }
   0xe   : > { %s1074_s26 = scalar_lea.vmem (%p78_p3), %s1211_s1, %s879_s22  ;;  %s1079_s27 = scalar_lea.vmem (%p78_p3), [#allocation3], %s834_s23 }
   0xf   : > { %v273_v0 = vld [vmem:[%s1074_s26] sm:$0xff] (%p78_p3)  ;;  %v275_v1 = vld [vmem:[%s1074_s26 + $0x10] sm:$0xff] (%p78_p3) }
  0x10   : > { %v277_v2 = vld [vmem:[%s1074_s26 + $0x20] sm:$0xff] (%p78_p3)  ;;  %274 = vst [vmem:[%s1079_s27] sm:$0xff] (%p78_p3), %v273_v0  ;;  %276 = vst [vmem:[%s1079_s27 + $0x8] sm:$0xff] (%p78_p3), %v275_v1  ;;  %v279_v3 = vld [vmem:[%s1074_s26 + $0x30] sm:$0xff] (%p78_p3) }
  0x11   : > { %278 = vst [vmem:[%s1079_s27 + $0x10] sm:$0xff] %v277_v2  ;;  %v281_v4 = vld [vmem:[%s1074_s26 + $0x40] sm:$0xff]  ;;  %v283_v5 = vld [vmem:[%s1074_s26 + $0x50] sm:$0xff]  ;;  %280 = vst [vmem:[%s1079_s27 + $0x18] sm:$0xff] %v279_v3 }
  0x12   : > { %282 = vst [vmem:[%s1079_s27 + $0x20] sm:$0xff] %v281_v4  ;;  %284 = vst [vmem:[%s1079_s27 + $0x28] sm:$0xff] %v283_v5  ;;  %v285_v6 = vld [vmem:[%s1074_s26 + $0x60] sm:$0xff]  ;;  %v287_v7 = vld [vmem:[%s1074_s26 + $0x70] sm:$0xff] }
  0x13   : > { %v289_v8 = vld [vmem:[%s1074_s26 + $0x80] sm:$0xff]  ;;  %286 = vst [vmem:[%s1079_s27 + $0x30] sm:$0xff] %v285_v6  ;;  %288 = vst [vmem:[%s1079_s27 + $0x38] sm:$0xff] %v287_v7  ;;  %v291_v9 = vld [vmem:[%s1074_s26 + $0x90] sm:$0xff] }
  0x14   : > { %290 = vst [vmem:[%s1079_s27 + $0x40] sm:$0xff] %v289_v8  ;;  %v293_v10 = vld [vmem:[%s1074_s26 + $0xa0] sm:$0xff]  ;;  %v295_v11 = vld [vmem:[%s1074_s26 + $0xb0] sm:$0xff]  ;;  %292 = vst [vmem:[%s1079_s27 + $0x48] sm:$0xff] %v291_v9 }
  0x15   : > { %294 = vst [vmem:[%s1079_s27 + $0x50] sm:$0xff] %v293_v10  ;;  %296 = vst [vmem:[%s1079_s27 + $0x58] sm:$0xff] %v295_v11  ;;  %v297_v12 = vld [vmem:[%s1074_s26 + $0xc0] sm:$0xff]  ;;  %v299_v13 = vld [vmem:[%s1074_s26 + $0xd0] sm:$0xff] }
  0x16   : > { %v301_v14 = vld [vmem:[%s1074_s26 + $0xe0] sm:$0xff]  ;;  %298 = vst [vmem:[%s1079_s27 + $0x60] sm:$0xff] %v297_v12  ;;  %300 = vst [vmem:[%s1079_s27 + $0x68] sm:$0xff] %v299_v13  ;;  %v303_v15 = vld [vmem:[%s1074_s26 + $0xf0] sm:$0xff] }
  0x17   : > { %302 = vst [vmem:[%s1079_s27 + $0x70] sm:$0xff] %v301_v14  ;;  %v305_v16 = vld [vmem:[%s1074_s26 + $0x100] sm:$0xff]  ;;  %v307_v17 = vld [vmem:[%s1074_s26 + $0x110] sm:$0xff]  ;;  %304 = vst [vmem:[%s1079_s27 + $0x78] sm:$0xff] %v303_v15 }
  0x18   : > { %306 = vst [vmem:[%s1079_s27 + $0x80] sm:$0xff] %v305_v16  ;;  %308 = vst [vmem:[%s1079_s27 + $0x88] sm:$0xff] %v307_v17  ;;  %v309_v18 = vld [vmem:[%s1074_s26 + $0x120] sm:$0xff]  ;;  %v311_v19 = vld [vmem:[%s1074_s26 + $0x130] sm:$0xff] }
  0x19   : > { %v313_v20 = vld [vmem:[%s1074_s26 + $0x140] sm:$0xff]  ;;  %310 = vst [vmem:[%s1079_s27 + $0x90] sm:$0xff] %v309_v18  ;;  %312 = vst [vmem:[%s1079_s27 + $0x98] sm:$0xff] %v311_v19  ;;  %v315_v21 = vld [vmem:[%s1074_s26 + $0x150] sm:$0xff] }
  0x1a   : > { %314 = vst [vmem:[%s1079_s27 + $0xa0] sm:$0xff] %v313_v20  ;;  %v317_v22 = vld [vmem:[%s1074_s26 + $0x160] sm:$0xff]  ;;  %v319_v23 = vld [vmem:[%s1074_s26 + $0x170] sm:$0xff]  ;;  %316 = vst [vmem:[%s1079_s27 + $0xa8] sm:$0xff] %v315_v21 }
  0x1b   : > { %318 = vst [vmem:[%s1079_s27 + $0xb0] sm:$0xff] %v317_v22  ;;  %320 = vst [vmem:[%s1079_s27 + $0xb8] sm:$0xff] %v319_v23  ;;  %v321_v24 = vld [vmem:[%s1074_s26 + $0x180] sm:$0xff]  ;;  %v323_v25 = vld [vmem:[%s1074_s26 + $0x190] sm:$0xff] }
  0x1c   : > { %v325_v26 = vld [vmem:[%s1074_s26 + $0x1a0] sm:$0xff]  ;;  %322 = vst [vmem:[%s1079_s27 + $0xc0] sm:$0xff] %v321_v24  ;;  %324 = vst [vmem:[%s1079_s27 + $0xc8] sm:$0xff] %v323_v25  ;;  %v327_v27 = vld [vmem:[%s1074_s26 + $0x1b0] sm:$0xff] }
  0x1d   : > { %326 = vst [vmem:[%s1079_s27 + $0xd0] sm:$0xff] %v325_v26  ;;  %v329_v28 = vld [vmem:[%s1074_s26 + $0x1c0] sm:$0xff]  ;;  %v331_v29 = vld [vmem:[%s1074_s26 + $0x1d0] sm:$0xff]  ;;  %328 = vst [vmem:[%s1079_s27 + $0xd8] sm:$0xff] %v327_v27 }
  0x1e   : > { %330 = vst [vmem:[%s1079_s27 + $0xe0] sm:$0xff] %v329_v28  ;;  %332 = vst [vmem:[%s1079_s27 + $0xe8] sm:$0xff] %v331_v29  ;;  %v333_v30 = vld [vmem:[%s1074_s26 + $0x1e0] sm:$0xff]  ;;  %v335_v31 = vld [vmem:[%s1074_s26 + $0x1f0] sm:$0xff] }
  0x1f   : > { %334 = vst [vmem:[%s1079_s27 + $0xf0] sm:$0xff] %v333_v30  ;;  %336 = vst [vmem:[%s1079_s27 + $0xf8] sm:$0xff] %v335_v31 }
  0x20 PF: > { %p837_p6 = scmp.ge.s32.totalorder %s1009_s16, 1  ;;  %p349_p7 = scmp.lt.s32.totalorder %s1009_s16, 3 }
  0x22   : > { %p350_p8 = pnand %p837_p6, %p349_p7 }
  0x23   : > { %s356_s28 = sand.u32 (!%p350_p8), 1, %s993_s12   ;;  %s839_s6 = sshll.u32 (!%p350_p8), %s1001_s14, 1 }
  0x24   : > { %353 = sbr.rel (%p350_p8) target bundleno = 308 (0x134), region = 66  ;;  %s838_s4 = sshll.u32 (!%p350_p8), %s356_s28, 8 }
  0x25   : > { %s1152_s5 = scalar_lea.vmem (!%p350_p8), [#allocation3], %s838_s4  ;;  %p409_p9 = scmp.lt.s32.totalorder (!%p350_p8), %s839_s6, 3 }
  0x29   : > { %v1148_v32 = vld [vmem:[%s1210_s0] sm:$0xff]  ;;  %v921_v34 = vld [vmem:[%s1152_s5 + $0x74] ss:$8 sps:$4 sm:$0xff]   ;;  %v923_v35 = vld [vmem:[%s1152_s5 + $0x70] ss:$8 sps:$4 sm:$0xff]   ;;  %v683_v3 = vlaneseq  ;;  %s1221_s6 = smov (!%p409_p9, %s839_s6), 3 }
  0x2a   : > { %v843_v33 = vcombine.high %v1148_v32, %v1148_v32  ;;  %631 = vmatprep.subr.bf16.mxu0 %v921_v34  ;;  %v924_v36 = vld [vmem:[%s1152_s5 + $0x64] ss:$8 sps:$4 sm:$0xff]   ;;  %v926_v37 = vld [vmem:[%s1152_s5 + $0x60] ss:$8 sps:$4 sm:$0xff]   ;;  %v927_v38 = vld [vmem:[%s1152_s5 + $0x54] ss:$8 sps:$4 sm:$0xff]   ;;  %v842_v2 = vcombine.low %v1148_v32, %v1148_v32  ;;  %s411_s9 = scalar_lea.vmem %s1212_s2, %s1221_s6 }
  0x2b   : > { %632 = vmatpush1.bf16.msra.mxu0 %v923_v35  ;;  %v929_v39 = vld [vmem:[%s1152_s5 + $0x50] ss:$8 sps:$4 sm:$0xff]   ;;  %v930_v40 = vld [vmem:[%s1152_s5 + $0x44] ss:$8 sps:$4 sm:$0xff]   ;;  %v932_v41 = vld [vmem:[%s1152_s5 + $0x40] ss:$8 sps:$4 sm:$0xff]  }
  0x2c   : > { %663 = vmatprep.mubr.bf16.mxu0 %v843_v33  ;;  %633 = vmatprep.subr.bf16.mxu0 %v924_v36  ;;  %v933_v42 = vld [vmem:[%s1152_s5 + $0x34] ss:$8 sps:$4 sm:$0xff]   ;;  %v935_v43 = vld [vmem:[%s1152_s5 + $0x30] ss:$8 sps:$4 sm:$0xff]   ;;  %v936_v44 = vld [vmem:[%s1152_s5 + $0x24] ss:$8 sps:$4 sm:$0xff]  }
  0x2d   : > { %v938_v45 = vld [vmem:[%s1152_s5 + $0x20] ss:$8 sps:$4 sm:$0xff]   ;;  %v939_v46 = vld [vmem:[%s1152_s5 + $0x14] ss:$8 sps:$4 sm:$0xff]   ;;  %v941_v47 = vld [vmem:[%s1152_s5 + $0x10] ss:$8 sps:$4 sm:$0xff]  }
  0x2e   : > { %v942_v48 = vld [vmem:[%s1152_s5 + $0x4] ss:$8 sps:$4 sm:$0xff]   ;;  %v944_v49 = vld [vmem:[%s1152_s5] ss:$8 sps:$4 sm:$0xff]   ;;  %v945_v50 = vld [vmem:[%s1152_s5 + $0xf4] ss:$8 sps:$4 sm:$0xff]  }
  0x2f   : > { %634 = vmatpush1.bf16.msra.mxu0 %v926_v37  ;;  %v947_v51 = vld [vmem:[%s1152_s5 + $0xf0] ss:$8 sps:$4 sm:$0xff]   ;;  %v948_v52 = vld [vmem:[%s1152_s5 + $0xe4] ss:$8 sps:$4 sm:$0xff]   ;;  %v950_v53 = vld [vmem:[%s1152_s5 + $0xe0] ss:$8 sps:$4 sm:$0xff]  }
  0x30   : > { %635 = vmatprep.subr.bf16.mxu0 %v927_v38  ;;  %v951_v54 = vld [vmem:[%s1152_s5 + $0xd4] ss:$8 sps:$4 sm:$0xff]   ;;  %v953_v55 = vld [vmem:[%s1152_s5 + $0xd0] ss:$8 sps:$4 sm:$0xff]   ;;  %v954_v56 = vld [vmem:[%s1152_s5 + $0xc4] ss:$8 sps:$4 sm:$0xff]  }
  0x31   : > { %v956_v57 = vld [vmem:[%s1152_s5 + $0xc0] ss:$8 sps:$4 sm:$0xff]   ;;  %v957_v58 = vld [vmem:[%s1152_s5 + $0xb4] ss:$8 sps:$4 sm:$0xff]   ;;  %v959_v59 = vld [vmem:[%s1152_s5 + $0xb0] ss:$8 sps:$4 sm:$0xff]  }
  0x32   : > { %v960_v60 = vld [vmem:[%s1152_s5 + $0xa4] ss:$8 sps:$4 sm:$0xff]   ;;  %v962_v61 = vld [vmem:[%s1152_s5 + $0xa0] ss:$8 sps:$4 sm:$0xff]   ;;  %v963_v62 = vld [vmem:[%s1152_s5 + $0x94] ss:$8 sps:$4 sm:$0xff]  }
  0x33   : > { %636 = vmatpush1.bf16.msra.mxu0 %v929_v39  ;;  %v965_v63 = vld [vmem:[%s1152_s5 + $0x90] ss:$8 sps:$4 sm:$0xff]   ;;  %v966_v0 = vld [vmem:[%s1152_s5 + $0x84] ss:$8 sps:$4 sm:$0xff]   ;;  %v968_v1 = vld [vmem:[%s1152_s5 + $0x80] ss:$8 sps:$4 sm:$0xff]  }
  0x34   : > { %637 = vmatprep.subr.bf16.mxu0 %v930_v40  ;;  %v684_v4 = vshrl.u32 %v683_v3, 7  ;;  %v681_v6 = vld [vmem:[%s411_s9] sm:$0x3]  ;;  %s841_s10 = sshll.u32 %s1221_s6, 2 }
  0x35   : > { %s421_s14 = scalar_lea.vmem %s1213_s3, %s841_s10 }
  0x36   : > { %v685_v5 = vsub.s32 0, %v684_v4  ;;  %v689_v7 = vsub.s32 1, %v684_v4 }
  0x37   : > { %638 = vmatpush1.bf16.msra.mxu0 %v932_v41 }
  0x38   : > { %639 = vmatprep.subr.bf16.mxu0 %v933_v42  ;;  %v686_v8 = vrot.slane %v681_v6, %v685_v5  ;;  %v690_v9 = vrot.slane %v681_v6, %v689_v7 }
  0x3b   : > { %640 = vmatpush1.bf16.msra.mxu0 %v935_v43 }
  0x3c   : > { %641 = vmatprep.subr.bf16.mxu0 %v936_v44 }
  0x3f   : > { %642 = vmatpush1.bf16.msra.mxu0 %v938_v45 }
  0x40   : > { %643 = vmatprep.subr.bf16.mxu0 %v939_v46 }
  0x43   : > { %644 = vmatpush1.bf16.msra.mxu0 %v941_v47 }
  0x44   : > { %645 = vmatprep.subr.bf16.mxu0 %v942_v48 }
  0x47   : > { %646 = vmatpush1.bf16.msra.mxu0 %v944_v49 }
  0x48   : > { %647 = vmatprep.subr.bf16.mxu0 %v945_v50 }
  0x4b   : > { %648 = vmatpush2.bf16.msra.mxu0 %v947_v51 }
  0x4c   : > { %649 = vmatprep.subr.bf16.mxu0 %v948_v52 }
  0x4f   : > { %650 = vmatpush2.bf16.msra.mxu0 %v950_v53 }
  0x50   : > { %651 = vmatprep.subr.bf16.mxu0 %v951_v54 }
  0x53   : > { %652 = vmatpush2.bf16.msra.mxu0 %v953_v55 }
  0x54   : > { %653 = vmatprep.subr.bf16.mxu0 %v954_v56 }
  0x57   : > { %654 = vmatpush2.bf16.msra.mxu0 %v956_v57 }
  0x58   : > { %655 = vmatprep.subr.bf16.mxu0 %v957_v58 }
  0x5b   : > { %656 = vmatpush2.bf16.msra.mxu0 %v959_v59 }
  0x5c   : > { %657 = vmatprep.subr.bf16.mxu0 %v960_v60 }
  0x5f   : > { %658 = vmatpush2.bf16.msra.mxu0 %v962_v61 }
  0x60   : > { %659 = vmatprep.subr.bf16.mxu0 %v963_v62 }
  0x63   : > { %660 = vmatpush2.bf16.msra.mxu0 %v965_v63 }
  0x64   : > { %661 = vmatprep.subr.bf16.mxu0 %v966_v0 }
  0x67   : > { %662 = vmatpush2.bf16.msra.mxu0 %v968_v1 }
  0x6a   : > { %664 = vmatmul.mubr.bf16.vlgmr.msra.gmra.mxu0 %v842_v2 }
 0x12a   : > { %v665_v10 = vpop.f32.mrf.mxu0 }
 0x12b   : > { %v693_v11 = vadd.f32 %v686_v8, %v665_v10 }
 0x12c   : > { %v667_v12 = vpop.f32.mrf.mxu0 }
 0x12d   : > { %v694_v13 = vadd.f32 %v690_v9, %v667_v12  ;;  %v695_v15 = vmax.f32 %v693_v11, 0.0 }
 0x12e   : > { %v669_v14 = vpop.f32.mrf.mxu0 }
 0x12f   : > { %v696_v16 = vmax.f32 %v694_v13, 0.0 }
 0x130   : > { %v670_v17 = vpop.f32.mrf.mxu0 }
 0x131   : > { %v880_v18 = vpack.c.bf16 %v696_v16, %v695_v15 }
 0x133   : > { %705 = vst [vmem:[%s421_s14] sm:$0xff] %v880_v18 }
 0x134 PF: > { %s13_s16 = sadd.s32 1, %s1009_s16   ;;  %s1214_s12 = smov %s997_s13 }
 0x135   : > { %p10_p10 = scmp.ge.s32.totalorder %s13_s16, 4   ;;  %s1215_s13 = smov %s1066_s20 }
 0x136   : > { %s1216_s14 = smov %s1005_s15  ;;  %s1217_s15 = smov %s1219_s17 }
 0x137   :  { %12 = sbr.rel (!%p10_p10) target bundleno = 3 (0x3), region = 119 }

// kernel: model_forward.39
= control target key start
LH: loop header
LB: loop body
LE: loop exit
PB: predicated region body
PF: predicated region fallthrough
CT: control target
= control target key end

     0   :  { %s643_s9 = smov 0   ;;  %s679_s0 = inlined_call_operand.vmem [shape: f32[8,2], index: 0, kind: input, shape index: {}]   ;;  %s680_s1 = inlined_call_operand.vmem [shape: bf16[2,2,1024], index: 1, kind: input, shape index: {}]   ;;  %s681_s2 = inlined_call_operand.vmem [shape: bf16[2,8,1024], index: 2, kind: output, shape index: {}]  }
   0x1 LB: > { %s577_s10 = sadd.s32 4294967295, %s624_s9   ;;  %p581_p0 = scmp.ge.s32.totalorder %s624_s9, 1  ;;  %s624_s9 = sphi %s643_s9, %s12_s9  }
   0x2   : > { %p111_p1 = scmp.lt.s32.totalorder %s624_s9, 3 }
   0x4   : > { %p112_p2 = pnand %p581_p0, %p111_p1 }
   0x5   : > { %p132_p3 = scmp.lt.s32.totalorder (!%p112_p2), %s577_s10, 1 }
   0x6   : > { %115 = sbr.rel (%p112_p2) target bundleno = 227 (0xe3), region = 28 }
   0xb   : > { %v151_v0 = vlaneseq  ;;  %v626_v1 = vmov 1983009808   ;;  %v627_v3 = vmov 0.0   ;;  %s683_s10 = smov (!%p132_p3, %s577_s10), 1  ;;  %vm185_vm0 = vcmask 1041408   ;;  %v141_v17 = vld [vmem:[%s679_s0] sm:$0xff] }
   0xc   : > { %v149_v2 = vunpack.c.l.s4 %v626_v1  ;;  %266 = vmatprep.mubr.f32.mxu0 %v627_v3  ;;  %337 = vmatprep.mubr.f32.mxu1 %v627_v3  ;;  %s582_s11 = sshll.u32 %s683_s10, 3  ;;  %vm181_vm1 = vcmask 15360   ;;  %s603_s17 = sshll.u32 %s683_s10, 5 }
   0xd   : > { %v152_v4 = vshrl.u32 %v151_v0, 7  ;;  %s135_s14 = scalar_lea.vmem %s680_s1, %s582_s11  ;;  %s140_s20 = scalar_lea.vmem %s681_s2, %s603_s17 }
   0xe   : > { %v150_v5 = vunpack.c.0.s8 %v149_v2  ;;  %v142_v7 = vld [vmem:[%s135_s14] sm:$0xff] }
   0xf   : > { %v143_v8 = vunpack.c.l.bf16 %v142_v7  ;;  %v144_v9 = vunpack.c.h.bf16 %v142_v7 }
  0x10   : > { %v153_v6 = vsub.s32 %v150_v5, %v152_v4 }
  0x11   : > { %v164_v11 = vcombine.high %v144_v9, %v144_v9  ;;  %v147_v12 = vcombine.high %v143_v8, %v143_v8 }
  0x12   : > { %v154_v10 = vrot.slane %v143_v8, %v153_v6  ;;  %v171_v13 = vrot.slane %v144_v9, %v153_v6 }
  0x13   : > { %v161_v15 = vrot.slane %v147_v12, %v153_v6  ;;  %v178_v16 = vrot.slane %v164_v11, %v153_v6 }
  0x14   : > { %v162_v14 = vcombine.high %v154_v10, %v154_v10  ;;  %v179_v18 = vcombine.high %v171_v13, %v171_v13 }
  0x15   : > { %v163_v19 = vcombine.high %v161_v15, %v161_v15  ;;  %v180_v20 = vcombine.high %v178_v16, %v178_v16 }
  0x16   : > { %585 = vmatprep.subr.msk.mxu0 %vm185_vm0, %v162_v14 }
  0x17   : > { %586 = vmatpush1.msk.msra.mxu0 %vm185_vm0, %v154_v10  ;;  %588 = vmatprep.subr.msk.mxu1 %vm185_vm0, %v163_v19 }
  0x18   : > { %587 = vmatmul.mubr.msk.f32.vlgmr.msra.gmra.mxu0 %vm181_vm1, %v141_v17  ;;  %589 = vmatpush1.msk.msra.mxu1 %vm185_vm0, %v161_v15 }
  0x19   : > { %591 = vmatprep.subr.msk.mxu0 %vm185_vm0, %v179_v18  ;;  %590 = vmatmul.mubr.msk.f32.vlgmr.msra.gmra.mxu1 %vm181_vm1, %v141_v17 }
  0x1a   : > { %594 = vmatprep.subr.msk.mxu1 %vm185_vm0, %v180_v20  ;;  %592 = vmatpush1.msk.msra.mxu0 %vm185_vm0, %v171_v13 }
  0x1b   : > { %595 = vmatpush1.msk.msra.mxu1 %vm185_vm0, %v178_v16  ;;  %408 = vmatprep.mubr.f32.mxu0 %v627_v3 }
  0x1c   : > { %479 = vmatprep.mubr.f32.mxu1 %v627_v3  ;;  %593 = vmatmul.mubr.msk.f32.vlgmr.msra.gmra.mxu0 %vm181_vm1, %v141_v17 }
  0x1d   : > { %596 = vmatmul.mubr.msk.f32.vlgmr.msra.gmra.mxu1 %vm181_vm1, %v141_v17 }
  0xd8   : > { %v268_v21 = vpop.f32.mrf.mxu0 }
  0xd9   : > { %v339_v22 = vpop.f32.mrf.mxu1 }
  0xda   : > { %v270_v23 = vpop.f32.mrf.mxu0 }
  0xdb   : > { %v604_v24 = vpack.c.bf16 %v270_v23, %v268_v21  ;;  %v341_v25 = vpop.f32.mrf.mxu1 }
  0xdc   : > { %v605_v26 = vpack.c.bf16 %v341_v25, %v339_v22  ;;  %v410_v27 = vpop.f32.mrf.mxu0 }
  0xdd   : > { %518 = vst [vmem:[%s140_s20] sm:$0xff] %v604_v24  ;;  %v481_v28 = vpop.f32.mrf.mxu1 }
  0xde   : > { %519 = vst [vmem:[%s140_s20 + $0x8] sm:$0xff] %v605_v26  ;;  %v412_v29 = vpop.f32.mrf.mxu0 }
  0xdf   : > { %v606_v30 = vpack.c.bf16 %v412_v29, %v410_v27  ;;  %v483_v31 = vpop.f32.mrf.mxu1 }
  0xe0   : > { %v607_v32 = vpack.c.bf16 %v483_v31, %v481_v28 }
  0xe1   : > { %520 = vst [vmem:[%s140_s20 + $0x10] sm:$0xff] %v606_v30 }
  0xe2   : > { %521 = vst [vmem:[%s140_s20 + $0x18] sm:$0xff] %v607_v32 }
  0xe3 PF: > { %s12_s9 = sadd.s32 1, %s624_s9  }
  0xe4   : > { %p9_p4 = scmp.ge.s32.totalorder %s12_s9, 4  }
  0xe6   :  { %11 = sbr.rel (!%p9_p4) target bundleno = 1 (0x1), region = 58 }

// kernel: model_forward.40
= control target key start
LH: loop header
LB: loop body
LE: loop exit
PB: predicated region body
PF: predicated region fallthrough
CT: control target
= control target key end

     0   :  { %s446_s9 = smov 0   ;;  %s466_s0 = inlined_call_operand.vmem [shape: f32[8,2], index: 0, kind: input, shape index: {}]   ;;  %s467_s1 = inlined_call_operand.vmem [shape: bf16[16,2,512], index: 1, kind: input, shape index: {}]   ;;  %s468_s2 = inlined_call_operand.vmem [shape: bf16[16,8,512], index: 2, kind: output, shape index: {}]  }
   0x1 LB: > { %s390_s10 = sadd.s32 4294967295, %s427_s9   ;;  %p394_p0 = scmp.ge.s32.totalorder %s427_s9, 1  ;;  %s427_s9 = sphi %s446_s9, %s12_s9  }
   0x2   : > { %p111_p1 = scmp.lt.s32.totalorder %s427_s9, 17 }
   0x4   : > { %p112_p2 = pnand %p394_p0, %p111_p1 }
   0x5   : > { %p132_p3 = scmp.lt.s32.totalorder (!%p112_p2), %s390_s10, 15 }
   0x6   : > { %115 = sbr.rel (%p112_p2) target bundleno = 223 (0xdf), region = 28 }
   0xb   : > { %v149_v0 = vlaneseq  ;;  %v429_v1 = vmov 1983009808   ;;  %v430_v3 = vmov 0.0   ;;  %s470_s10 = smov (!%p132_p3, %s390_s10), 15  ;;  %vm166_vm0 = vcmask 1041408   ;;  %v141_v13 = vld [vmem:[%s466_s0] sm:$0xff] }
   0xc   : > { %v147_v2 = vunpack.c.l.s4 %v429_v1  ;;  %239 = vmatprep.mubr.f32.mxu0 %v430_v3  ;;  %310 = vmatprep.mubr.f32.mxu1 %v430_v3  ;;  %s395_s11 = sshll.u32 %s470_s10, 2  ;;  %vm162_vm1 = vcmask 15360   ;;  %s408_s17 = sshll.u32 %s470_s10, 4 }
   0xd   : > { %v150_v4 = vshrl.u32 %v149_v0, 7  ;;  %s135_s14 = scalar_lea.vmem %s467_s1, %s395_s11  ;;  %s140_s20 = scalar_lea.vmem %s468_s2, %s408_s17 }
   0xe   : > { %v148_v5 = vunpack.c.0.s8 %v147_v2  ;;  %v142_v7 = vld [vmem:[%s135_s14] sm:$0xf] }
   0xf   : > { %v143_v8 = vunpack.c.l.bf16 %v142_v7 }
  0x10   : > { %v151_v6 = vsub.s32 %v148_v5, %v150_v4 }
  0x11   : > { %v145_v10 = vcombine.high %v143_v8, %v143_v8 }
  0x12   : > { %v152_v9 = vrot.slane %v143_v8, %v151_v6 }
  0x13   : > { %v159_v12 = vrot.slane %v145_v10, %v151_v6 }
  0x14   : > { %v160_v11 = vcombine.high %v152_v9, %v152_v9 }
  0x15   : > { %v161_v14 = vcombine.high %v159_v12, %v159_v12 }
  0x16   : > { %398 = vmatprep.subr.msk.mxu0 %vm166_vm0, %v160_v11 }
  0x17   : > { %399 = vmatpush1.msk.msra.mxu0 %vm166_vm0, %v152_v9  ;;  %401 = vmatprep.subr.msk.mxu1 %vm166_vm0, %v161_v14 }
  0x18   : > { %400 = vmatmul.mubr.msk.f32.vlgmr.msra.gmra.mxu0 %vm162_vm1, %v141_v13  ;;  %402 = vmatpush1.msk.msra.mxu1 %vm166_vm0, %v159_v12 }
  0x19   : > { %403 = vmatmul.mubr.msk.f32.vlgmr.msra.gmra.mxu1 %vm162_vm1, %v141_v13 }
  0xd8   : > { %v241_v15 = vpop.f32.mrf.mxu0 }
  0xd9   : > { %v312_v17 = vpop.f32.mrf.mxu1 }
  0xda   : > { %v243_v16 = vpop.f32.mrf.mxu0 }
  0xdb   : > { %v409_v18 = vpack.c.bf16 %v243_v16, %v241_v15  ;;  %v314_v19 = vpop.f32.mrf.mxu1 }
  0xdc   : > { %v410_v20 = vpack.c.bf16 %v314_v19, %v312_v17 }
  0xdd   : > { %333 = vst [vmem:[%s140_s20] sm:$0xff] %v409_v18 }
  0xde   : > { %334 = vst [vmem:[%s140_s20 + $0x8] sm:$0xff] %v410_v20 }
  0xdf PF: > { %s12_s9 = sadd.s32 1, %s427_s9  }
  0xe0   : > { %p9_p4 = scmp.ge.s32.totalorder %s12_s9, 18  }
  0xe2   :  { %11 = sbr.rel (!%p9_p4) target bundleno = 1 (0x1), region = 58 }

// kernel: model_forward.41
= control target key start
LH: loop header
LB: loop body
LE: loop exit
PB: predicated region body
PF: predicated region fallthrough
CT: control target
= control target key end

     0   :  { %s721_s1 = inlined_call_operand.vmem [shape: bf16[128,128], index: 1, kind: input, shape index: {}]   ;;  %s722_s0 = inlined_call_operand.vmem [shape: bf16[128,128], index: 0, kind: input, shape index: {}]   ;;  %s723_s2 = inlined_call_operand.vmem [shape: f32[1,128], index: 2, kind: input, shape index: {}]   ;;  %s724_s3 = inlined_call_operand.vmem [shape: bf16[128,128], index: 3, kind: output, shape index: {}]  }
   0x1   :  { %v610_v0 = vld [vmem:[%s721_s1 + $0x38] sm:$0xff]   ;;  %v611_v1 = vld [vmem:[%s721_s1 + $0x30] sm:$0xff]   ;;  %v612_v2 = vld [vmem:[%s721_s1 + $0x28] sm:$0xff]  }
   0x2   :  { %562 = vmatprep.subr.bf16.mxu0 %v610_v0  ;;  %594 = vmatprep.subr.bf16.mxu1 %v610_v0  ;;  %v613_v3 = vld [vmem:[%s721_s1 + $0x20] sm:$0xff]   ;;  %v614_v6 = vld [vmem:[%s721_s1 + $0x18] sm:$0xff]   ;;  %v615_v7 = vld [vmem:[%s721_s1 + $0x10] sm:$0xff]  }
   0x3   :  { %563 = vmatpush3.bf16.msra.mxu0 %v610_v0  ;;  %602 = vmatpush3.bf16.msra.mxu1 %v610_v0  ;;  %v618_v4 = vld [vmem:[%s722_s0] sm:$0xff]   ;;  %v616_v8 = vld [vmem:[%s721_s1 + $0x8] sm:$0xff]   ;;  %v622_v12 = vld [vmem:[%s722_s0 + $0x10] sm:$0xff]  }
   0x4   :  { %564 = vmatprep.subr.bf16.mxu0 %v611_v1  ;;  %595 = vmatprep.subr.bf16.mxu1 %v611_v1  ;;  %v619_v5 = vld [vmem:[%s722_s0 + $0x20] sm:$0xff]   ;;  %v620_v10 = vld [vmem:[%s722_s0 + $0x8] sm:$0xff]   ;;  %v623_v13 = vld [vmem:[%s722_s0 + $0x30] sm:$0xff]  }
   0x5   :  { %578 = vmatprep.mubr.bf16.mxu0 %v618_v4  ;;  %586 = vmatprep.mubr.bf16.mxu1 %v619_v5  ;;  %v617_v9 = vld [vmem:[%s721_s1] sm:$0xff]   ;;  %v621_v11 = vld [vmem:[%s722_s0 + $0x28] sm:$0xff]   ;;  %v624_v14 = vld [vmem:[%s722_s0 + $0x18] sm:$0xff]  }
   0x6   :  { %v625_v15 = vld [vmem:[%s722_s0 + $0x38] sm:$0xff]   ;;  %v466_v16 = vld [vmem:[%s723_s2] ss:$0 sm:$0xff] }
   0x7   :  { %565 = vmatpush3.bf16.msra.mxu0 %v611_v1  ;;  %603 = vmatpush3.bf16.msra.mxu1 %v611_v1 }
   0x8   :  { %566 = vmatprep.subr.bf16.mxu0 %v612_v2  ;;  %596 = vmatprep.subr.bf16.mxu1 %v612_v2 }
   0xb   :  { %567 = vmatpush3.bf16.msra.mxu0 %v612_v2  ;;  %604 = vmatpush3.bf16.msra.mxu1 %v612_v2 }
   0xc   :  { %568 = vmatprep.subr.bf16.mxu0 %v613_v3  ;;  %597 = vmatprep.subr.bf16.mxu1 %v613_v3 }
   0xf   :  { %569 = vmatpush3.bf16.msra.mxu0 %v613_v3  ;;  %605 = vmatpush3.bf16.msra.mxu1 %v613_v3 }
  0x10   :  { %570 = vmatprep.subr.bf16.mxu0 %v614_v6  ;;  %598 = vmatprep.subr.bf16.mxu1 %v614_v6 }
  0x13   :  { %571 = vmatpush3.bf16.msra.mxu0 %v614_v6  ;;  %606 = vmatpush3.bf16.msra.mxu1 %v614_v6 }
  0x14   :  { %572 = vmatprep.subr.bf16.mxu0 %v615_v7  ;;  %599 = vmatprep.subr.bf16.mxu1 %v615_v7 }
  0x17   :  { %573 = vmatpush3.bf16.msra.mxu0 %v615_v7  ;;  %607 = vmatpush3.bf16.msra.mxu1 %v615_v7 }
  0x18   :  { %574 = vmatprep.subr.bf16.mxu0 %v616_v8  ;;  %600 = vmatprep.subr.bf16.mxu1 %v616_v8 }
  0x1b   :  { %575 = vmatpush3.bf16.msra.mxu0 %v616_v8  ;;  %608 = vmatpush3.bf16.msra.mxu1 %v616_v8 }
  0x1c   :  { %576 = vmatprep.subr.bf16.mxu0 %v617_v9  ;;  %601 = vmatprep.subr.bf16.mxu1 %v617_v9 }
  0x1f   :  { %577 = vmatpush3.bf16.msra.mxu0 %v617_v9  ;;  %609 = vmatpush3.bf16.msra.mxu1 %v617_v9 }
  0x22   :  { %579 = vmatmul.mubr.bf16.vlgmr.msra.gmra.mxu0 %v620_v10  ;;  %587 = vmatmul.mubr.bf16.vlgmr.msra.gmra.mxu1 %v621_v11 }
  0x23   :  { %582 = vmatprep.mubr.bf16.mxu0 %v622_v12  ;;  %590 = vmatprep.mubr.bf16.mxu1 %v623_v13 }
  0x2a   :  { %583 = vmatmul.mubr.bf16.gmra.mxu0 %v624_v14  ;;  %591 = vmatmul.mubr.bf16.gmra.mxu1 %v625_v15 }
  0xe2   :  { %v580_v17 = vpop.f32.mrf.mxu0  ;;  %v588_v18 = vpop.f32.mrf.mxu1 }
  0xe3   :  { %v336_v19 = vadd.f32 %v580_v17, %v466_v16  ;;  %v344_v20 = vadd.f32 %v588_v18, %v466_v16 }
  0xe4   :  { %v213_v21 = vpop.f32.mrf.mxu0  ;;  %v245_v22 = vpop.f32.mrf.mxu1 }
  0xe5   :  { %v334_v23 = vadd.f32 %v466_v16, %v213_v21  ;;  %v342_v24 = vadd.f32 %v466_v16, %v245_v22  ;;  %v352_v29 = vmax.f32 %v336_v19, 0.0  ;;  %v360_v30 = vmax.f32 %v344_v20, 0.0 }
  0xe6   :  { %v581_v25 = vpop.f32.mrf.mxu0  ;;  %v589_v26 = vpop.f32.mrf.mxu1 }
  0xe7   :  { %v337_v27 = vadd.f32 %v581_v25, %v466_v16  ;;  %v345_v28 = vadd.f32 %v589_v26, %v466_v16  ;;  %v350_v37 = vmax.f32 %v334_v23, 0.0  ;;  %v358_v38 = vmax.f32 %v342_v24, 0.0 }
  0xe8   :  { %v216_v31 = vpop.f32.mrf.mxu0  ;;  %v248_v32 = vpop.f32.mrf.mxu1 }
  0xe9   :  { %v353_v33 = vmax.f32 %v337_v27, 0.0  ;;  %v361_v34 = vmax.f32 %v345_v28, 0.0  ;;  %v335_v35 = vadd.f32 %v466_v16, %v216_v31  ;;  %v343_v36 = vadd.f32 %v466_v16, %v248_v32 }
  0xea   :  { %v584_v39 = vpop.f32.mrf.mxu0  ;;  %v592_v40 = vpop.f32.mrf.mxu1 }
  0xeb   :  { %v507_v41 = vpack.c.bf16 %v353_v33, %v352_v29  ;;  %v527_v42 = vpack.c.bf16 %v361_v34, %v360_v30  ;;  %v351_v43 = vmax.f32 %v335_v35, 0.0  ;;  %v359_v44 = vmax.f32 %v343_v36, 0.0 }
  0xec   :  { %v340_v45 = vadd.f32 %v584_v39, %v466_v16  ;;  %v348_v46 = vadd.f32 %v592_v40, %v466_v16  ;;  %v229_v47 = vpop.f32.mrf.mxu0  ;;  %v261_v48 = vpop.f32.mrf.mxu1 }
  0xed   :  { %539 = vst [vmem:[%s724_s3 + $0x8] sm:$0xff] %v507_v41   ;;  %543 = vst [vmem:[%s724_s3 + $0x28] sm:$0xff] %v527_v42   ;;  %v502_v49 = vpack.c.bf16 %v351_v43, %v350_v37  ;;  %v522_v50 = vpack.c.bf16 %v359_v44, %v358_v38  ;;  %v338_v51 = vadd.f32 %v466_v16, %v229_v47 }
  0xee   :  { %v346_v52 = vadd.f32 %v466_v16, %v261_v48  ;;  %v585_v53 = vpop.f32.mrf.mxu0  ;;  %v593_v54 = vpop.f32.mrf.mxu1  ;;  %v356_v57 = vmax.f32 %v340_v45, 0.0  ;;  %v364_v58 = vmax.f32 %v348_v46, 0.0 }
  0xef   :  { %503 = vst [vmem:[%s724_s3] sm:$0xff] %v502_v49   ;;  %542 = vst [vmem:[%s724_s3 + $0x20] sm:$0xff] %v522_v50   ;;  %v341_v55 = vadd.f32 %v585_v53, %v466_v16  ;;  %v349_v56 = vadd.f32 %v593_v54, %v466_v16  ;;  %v354_v1 = vmax.f32 %v338_v51, 0.0 }
  0xf0   :  { %v232_v59 = vpop.f32.mrf.mxu0  ;;  %v264_v60 = vpop.f32.mrf.mxu1  ;;  %v362_v2 = vmax.f32 %v346_v52, 0.0 }
  0xf1   :  { %v357_v61 = vmax.f32 %v341_v55, 0.0  ;;  %v365_v62 = vmax.f32 %v349_v56, 0.0  ;;  %v339_v63 = vadd.f32 %v466_v16, %v232_v59  ;;  %v347_v0 = vadd.f32 %v466_v16, %v264_v60 }
  0xf3   :  { %v517_v3 = vpack.c.bf16 %v357_v61, %v356_v57  ;;  %v537_v4 = vpack.c.bf16 %v365_v62, %v364_v58  ;;  %v355_v5 = vmax.f32 %v339_v63, 0.0  ;;  %v363_v6 = vmax.f32 %v347_v0, 0.0 }
  0xf5   :  { %541 = vst [vmem:[%s724_s3 + $0x18] sm:$0xff] %v517_v3   ;;  %545 = vst [vmem:[%s724_s3 + $0x38] sm:$0xff] %v537_v4   ;;  %v512_v7 = vpack.c.bf16 %v355_v5, %v354_v1  ;;  %v532_v8 = vpack.c.bf16 %v363_v6, %v362_v2 }
  0xf7   :  { %540 = vst [vmem:[%s724_s3 + $0x10] sm:$0xff] %v512_v7   ;;  %544 = vst [vmem:[%s724_s3 + $0x30] sm:$0xff] %v532_v8  }

// kernel: model_forward.43
= control target key start
LH: loop header
LB: loop body
LE: loop exit
PB: predicated region body
PF: predicated region fallthrough
CT: control target
= control target key end

     0   :  { %s2028_s12 = smov 0   ;;  %s2030_s13 = smov 0   ;;  %s2350_s0 = inlined_call_operand.vmem [shape: bf16[128,3072], index: 0, kind: input, shape index: {}]   ;;  %s2351_s1 = inlined_call_operand.vmem [shape: bf16[3072,256], index: 1, kind: input, shape index: {}]   ;;  %s2352_s2 = inlined_call_operand.vmem [shape: f32[1,256], index: 2, kind: input, shape index: {}]   ;;  %s2353_s3 = inlined_call_operand.vmem [shape: bf16[128,256], index: 3, kind: output, shape index: {}]  }
   0x1   :  { %s2032_s14 = smov 0   ;;  %s2034_s15 = smov 0  }
   0x2   :  { %s2036_s16 = smov 0  }
   0x3 LB: > { %s25_s17 = sadd.s32 1, %s2001_s15  ;;  %p48_p1 = scmp.ne.s32.totalorder %s1993_s13, %s1989_s12  ;;  %s2005_s16 = sphi %s2036_s16, %s13_s16   ;;  %s2001_s15 = sphi %s2034_s15, %s2357_s15   ;;  %s1997_s14 = sphi %s2032_s14, %s2356_s14   ;;  %s1993_s13 = sphi %s2030_s13, %s2355_s13   ;;  %s1989_s12 = sphi %s2028_s12, %s2354_s12  }
   0x4   : > { %p26_p0 = scmp.ge.s32.totalorder %s25_s17, 6  ;;  %p49_p2 = scmp.eq.s32.totalorder %s2005_s16, 0 }
   0x5   : > { %s41_s19 = sadd.s32 1, %s1993_s13  ;;  %p1637_p5 = scmp.ge.s32.totalorder %s2005_s16, 6 }
   0x6   : > { %s2359_s17 = smov (%p26_p0, %s25_s17), 0  ;;  %p50_p3 = por %p49_p2, %p48_p1 }
   0x7   : > { %s37_s18 = ssub.s32 %s2001_s15, %s2359_s17  ;;  %164 = sbr.rel (%p1637_p5) target bundleno = 32 (0x20), region = 20 }
   0x8   : > { %p39_p4 = scmp.eq.s32.totalorder %s37_s18, 0 }
   0xa   : > { %s2063_s20 = scalar_select %p39_p4, %s1993_s13, %s41_s19  }
   0xc   : > { %167 = sbr.rel (!%p50_p3) target bundleno = 32 (0x20), region = 24  ;;  %s169_s21 = sand.u32 (%p50_p3), 1, %s1993_s13  }
   0xd   : > { %s1764_s22 = sshll.u32 (%p50_p3), %s2001_s15, 4  ;;  %s1638_s23 = sshll.u32 (%p50_p3), %s169_s21, 8 }
   0xe   : > { %s2071_s26 = scalar_lea.vmem (%p50_p3), %s2350_s0, %s1764_s22  ;;  %s2076_s27 = scalar_lea.vmem (%p50_p3), [#allocation3], %s1638_s23 }
   0xf   : > { %v190_v0 = vld [vmem:[%s2071_s26] sm:$0xff] (%p50_p3)  ;;  %v192_v1 = vld [vmem:[%s2071_s26 + $0x8] sm:$0xff] (%p50_p3) }
  0x10   : > { %v194_v2 = vld [vmem:[%s2071_s26 + $0x60] sm:$0xff] (%p50_p3)  ;;  %191 = vst [vmem:[%s2076_s27] sm:$0xff] (%p50_p3), %v190_v0  ;;  %193 = vst [vmem:[%s2076_s27 + $0x8] sm:$0xff] (%p50_p3), %v192_v1  ;;  %v196_v3 = vld [vmem:[%s2071_s26 + $0x68] sm:$0xff] (%p50_p3) }
  0x11   : > { %195 = vst [vmem:[%s2076_s27 + $0x10] sm:$0xff] %v194_v2  ;;  %v198_v4 = vld [vmem:[%s2071_s26 + $0xc0] sm:$0xff]  ;;  %v200_v5 = vld [vmem:[%s2071_s26 + $0xc8] sm:$0xff]  ;;  %197 = vst [vmem:[%s2076_s27 + $0x18] sm:$0xff] %v196_v3 }
  0x12   : > { %199 = vst [vmem:[%s2076_s27 + $0x20] sm:$0xff] %v198_v4  ;;  %201 = vst [vmem:[%s2076_s27 + $0x28] sm:$0xff] %v200_v5  ;;  %v202_v6 = vld [vmem:[%s2071_s26 + $0x120] sm:$0xff]  ;;  %v204_v7 = vld [vmem:[%s2071_s26 + $0x128] sm:$0xff] }
  0x13   : > { %v206_v8 = vld [vmem:[%s2071_s26 + $0x180] sm:$0xff]  ;;  %203 = vst [vmem:[%s2076_s27 + $0x30] sm:$0xff] %v202_v6  ;;  %205 = vst [vmem:[%s2076_s27 + $0x38] sm:$0xff] %v204_v7  ;;  %v208_v9 = vld [vmem:[%s2071_s26 + $0x188] sm:$0xff] }
  0x14   : > { %207 = vst [vmem:[%s2076_s27 + $0x40] sm:$0xff] %v206_v8  ;;  %v210_v10 = vld [vmem:[%s2071_s26 + $0x1e0] sm:$0xff]  ;;  %v212_v11 = vld [vmem:[%s2071_s26 + $0x1e8] sm:$0xff]  ;;  %209 = vst [vmem:[%s2076_s27 + $0x48] sm:$0xff] %v208_v9 }
  0x15   : > { %211 = vst [vmem:[%s2076_s27 + $0x50] sm:$0xff] %v210_v10  ;;  %213 = vst [vmem:[%s2076_s27 + $0x58] sm:$0xff] %v212_v11  ;;  %v214_v12 = vld [vmem:[%s2071_s26 + $0x240] sm:$0xff]  ;;  %v216_v13 = vld [vmem:[%s2071_s26 + $0x248] sm:$0xff] }
  0x16   : > { %v218_v14 = vld [vmem:[%s2071_s26 + $0x2a0] sm:$0xff]  ;;  %215 = vst [vmem:[%s2076_s27 + $0x60] sm:$0xff] %v214_v12  ;;  %217 = vst [vmem:[%s2076_s27 + $0x68] sm:$0xff] %v216_v13  ;;  %v220_v15 = vld [vmem:[%s2071_s26 + $0x2a8] sm:$0xff] }
  0x17   : > { %219 = vst [vmem:[%s2076_s27 + $0x70] sm:$0xff] %v218_v14  ;;  %v222_v16 = vld [vmem:[%s2071_s26 + $0x300] sm:$0xff]  ;;  %v224_v17 = vld [vmem:[%s2071_s26 + $0x308] sm:$0xff]  ;;  %221 = vst [vmem:[%s2076_s27 + $0x78] sm:$0xff] %v220_v15 }
  0x18   : > { %223 = vst [vmem:[%s2076_s27 + $0x80] sm:$0xff] %v222_v16  ;;  %225 = vst [vmem:[%s2076_s27 + $0x88] sm:$0xff] %v224_v17  ;;  %v226_v18 = vld [vmem:[%s2071_s26 + $0x360] sm:$0xff]  ;;  %v228_v19 = vld [vmem:[%s2071_s26 + $0x368] sm:$0xff] }
  0x19   : > { %v230_v20 = vld [vmem:[%s2071_s26 + $0x3c0] sm:$0xff]  ;;  %227 = vst [vmem:[%s2076_s27 + $0x90] sm:$0xff] %v226_v18  ;;  %229 = vst [vmem:[%s2076_s27 + $0x98] sm:$0xff] %v228_v19  ;;  %v232_v21 = vld [vmem:[%s2071_s26 + $0x3c8] sm:$0xff] }
  0x1a   : > { %231 = vst [vmem:[%s2076_s27 + $0xa0] sm:$0xff] %v230_v20  ;;  %v234_v22 = vld [vmem:[%s2071_s26 + $0x420] sm:$0xff]  ;;  %v236_v23 = vld [vmem:[%s2071_s26 + $0x428] sm:$0xff]  ;;  %233 = vst [vmem:[%s2076_s27 + $0xa8] sm:$0xff] %v232_v21 }
  0x1b   : > { %235 = vst [vmem:[%s2076_s27 + $0xb0] sm:$0xff] %v234_v22  ;;  %237 = vst [vmem:[%s2076_s27 + $0xb8] sm:$0xff] %v236_v23  ;;  %v238_v24 = vld [vmem:[%s2071_s26 + $0x480] sm:$0xff]  ;;  %v240_v25 = vld [vmem:[%s2071_s26 + $0x488] sm:$0xff] }
  0x1c   : > { %v242_v26 = vld [vmem:[%s2071_s26 + $0x4e0] sm:$0xff]  ;;  %239 = vst [vmem:[%s2076_s27 + $0xc0] sm:$0xff] %v238_v24  ;;  %241 = vst [vmem:[%s2076_s27 + $0xc8] sm:$0xff] %v240_v25  ;;  %v244_v27 = vld [vmem:[%s2071_s26 + $0x4e8] sm:$0xff] }
  0x1d   : > { %243 = vst [vmem:[%s2076_s27 + $0xd0] sm:$0xff] %v242_v26  ;;  %v246_v28 = vld [vmem:[%s2071_s26 + $0x540] sm:$0xff]  ;;  %v248_v29 = vld [vmem:[%s2071_s26 + $0x548] sm:$0xff]  ;;  %245 = vst [vmem:[%s2076_s27 + $0xd8] sm:$0xff] %v244_v27 }
  0x1e   : > { %247 = vst [vmem:[%s2076_s27 + $0xe0] sm:$0xff] %v246_v28  ;;  %249 = vst [vmem:[%s2076_s27 + $0xe8] sm:$0xff] %v248_v29  ;;  %v250_v30 = vld [vmem:[%s2071_s26 + $0x5a0] sm:$0xff]  ;;  %v252_v31 = vld [vmem:[%s2071_s26 + $0x5a8] sm:$0xff] }
  0x1f   : > { %251 = vst [vmem:[%s2076_s27 + $0xf0] sm:$0xff] %v250_v30  ;;  %253 = vst [vmem:[%s2076_s27 + $0xf8] sm:$0xff] %v252_v31 }
  0x20 PF: > { %p1641_p6 = scmp.ge.s32.totalorder %s2005_s16, 1  ;;  %p273_p7 = scmp.lt.s32.totalorder %s2005_s16, 7 }
  0x22   : > { %p274_p8 = pnand %p1641_p6, %p273_p7 }
  0x23   : > { %s280_s28 = sand.u32 (!%p274_p8), 1, %s1989_s12   ;;  %s1643_s29 = sshll.u32 (!%p274_p8), %s1997_s14, 6 }
  0x24   : > { %277 = sbr.rel (%p274_p8) target bundleno = 421 (0x1a5), region = 51  ;;  %s1642_s30 = sshll.u32 (!%p274_p8), %s280_s28, 8 }
  0x25   : > { %p326_p9 = scmp.lt.s32.totalorder (!%p274_p8), %s1643_s29, 383  ;;  %s2148_s8 = scalar_lea.vmem (!%p274_p8), [#allocation3], %s1642_s30 }
  0x26   : > { %p1646_p10 = scmp.ne.s32.totalorder (!%p274_p8), %s1997_s14, 0 }
  0x29   : > { %s2361_s29 = smov (!%p326_p9, %s1643_s29), 383  ;;  %356 = sbr.rel (%p1646_p10) target bundleno = 63 (0x3f), region = 59 }
  0x2a   : > { %s1765_s4 = sshll.u32 %s2361_s29, 3 }
  0x2b   : > { %s2146_s7 = scalar_lea.vmem %s2351_s1, %s1765_s4 }
  0x2e   : > { %v2007_v32 = vmov 0.0  }
  0x2f   : > { %357 = vst [vmem:[#allocation2 + $0xb0] sm:$0xff] %v2007_v32  ;;  %358 = vst [vmem:[#allocation2] sm:$0xff] %v2007_v32 }
  0x30   : > { %359 = vst [vmem:[#allocation2 + $0xd8] sm:$0xff] %v2007_v32  ;;  %360 = vst [vmem:[#allocation2 + $0x18] sm:$0xff] %v2007_v32 }
  0x31   : > { %361 = vst [vmem:[#allocation2 + $0x50] sm:$0xff] %v2007_v32  ;;  %362 = vst [vmem:[#allocation2 + $0x68] sm:$0xff] %v2007_v32 }
  0x32   : > { %363 = vst [vmem:[#allocation2 + $0x30] sm:$0xff] %v2007_v32  ;;  %364 = vst [vmem:[#allocation2 + $0x48] sm:$0xff] %v2007_v32 }
  0x33   : > { %365 = vst [vmem:[#allocation2 + $0x80] sm:$0xff] %v2007_v32  ;;  %366 = vst [vmem:[#allocation2 + $0x88] sm:$0xff] %v2007_v32 }
  0x34   : > { %367 = vst [vmem:[#allocation2 + $0xe8] sm:$0xff] %v2007_v32  ;;  %368 = vst [vmem:[#allocation2 + $0xb8] sm:$0xff] %v2007_v32 }
  0x35   : > { %369 = vst [vmem:[#allocation2 + $0x60] sm:$0xff] %v2007_v32  ;;  %370 = vst [vmem:[#allocation2 + $0xf0] sm:$0xff] %v2007_v32 }
  0x36   : > { %371 = vst [vmem:[#allocation2 + $0x8] sm:$0xff] %v2007_v32  ;;  %372 = vst [vmem:[#allocation2 + $0x78] sm:$0xff] %v2007_v32 }
  0x37   : > { %373 = vst [vmem:[#allocation2 + $0x38] sm:$0xff] %v2007_v32  ;;  %374 = vst [vmem:[#allocation2 + $0x58] sm:$0xff] %v2007_v32 }
  0x38   : > { %375 = vst [vmem:[#allocation2 + $0x40] sm:$0xff] %v2007_v32  ;;  %376 = vst [vmem:[#allocation2 + $0xc8] sm:$0xff] %v2007_v32 }
  0x39   : > { %377 = vst [vmem:[#allocation2 + $0xe0] sm:$0xff] %v2007_v32  ;;  %378 = vst [vmem:[#allocation2 + $0x90] sm:$0xff] %v2007_v32 }
  0x3a   : > { %379 = vst [vmem:[#allocation2 + $0x70] sm:$0xff] %v2007_v32  ;;  %380 = vst [vmem:[#allocation2 + $0xc0] sm:$0xff] %v2007_v32 }
  0x3b   : > { %381 = vst [vmem:[#allocation2 + $0xa8] sm:$0xff] %v2007_v32  ;;  %382 = vst [vmem:[#allocation2 + $0xd0] sm:$0xff] %v2007_v32 }
  0x3c   : > { %383 = vst [vmem:[#allocation2 + $0x10] sm:$0xff] %v2007_v32  ;;  %384 = vst [vmem:[#allocation2 + $0x28] sm:$0xff] %v2007_v32 }
  0x3d   : > { %385 = vst [vmem:[#allocation2 + $0xa0] sm:$0xff] %v2007_v32  ;;  %386 = vst [vmem:[#allocation2 + $0xf8] sm:$0xff] %v2007_v32 }
  0x3e   : > { %387 = vst [vmem:[#allocation2 + $0x20] sm:$0xff] %v2007_v32  ;;  %388 = vst [vmem:[#allocation2 + $0x98] sm:$0xff] %v2007_v32 }
  0x3f PF: > { %v1823_v33 = vld [vmem:[%s2146_s7 + $0x74] ss:$8 sps:$4 sm:$0xff]   ;;  %v1827_v35 = vld [vmem:[%s2146_s7 + $0x70] ss:$8 sps:$4 sm:$0xff]   ;;  %v1829_v37 = vld [vmem:[%s2146_s7 + $0x64] ss:$8 sps:$4 sm:$0xff]  }
  0x40   : > { %v1825_v34 = vld [vmem:[%s2146_s7 + $0x174] ss:$8 sps:$4 sm:$0xff]   ;;  %997 = vmatprep.subr.bf16.mxu0 %v1823_v33  ;;  %v1828_v36 = vld [vmem:[%s2146_s7 + $0x170] ss:$8 sps:$4 sm:$0xff]   ;;  %v1831_v38 = vld [vmem:[%s2146_s7 + $0x164] ss:$8 sps:$4 sm:$0xff]  }
  0x41   : > { %1110 = vmatprep.subr.bf16.mxu1 %v1825_v34  ;;  %998 = vmatpush1.bf16.msra.mxu0 %v1827_v35  ;;  %v1833_v39 = vld [vmem:[%s2146_s7 + $0x60] ss:$8 sps:$4 sm:$0xff]   ;;  %v1835_v41 = vld [vmem:[%s2146_s7 + $0x54] ss:$8 sps:$4 sm:$0xff]   ;;  %v1839_v43 = vld [vmem:[%s2146_s7 + $0x50] ss:$8 sps:$4 sm:$0xff]  }
  0x42   : > { %1111 = vmatpush1.bf16.msra.mxu1 %v1828_v36  ;;  %999 = vmatprep.subr.bf16.mxu0 %v1829_v37  ;;  %v1834_v40 = vld [vmem:[%s2146_s7 + $0x160] ss:$8 sps:$4 sm:$0xff]   ;;  %v1837_v42 = vld [vmem:[%s2146_s7 + $0x154] ss:$8 sps:$4 sm:$0xff]   ;;  %v1840_v44 = vld [vmem:[%s2146_s7 + $0x150] ss:$8 sps:$4 sm:$0xff]  }
  0x43   : > { %1112 = vmatprep.subr.bf16.mxu1 %v1831_v38  ;;  %v1841_v45 = vld [vmem:[%s2146_s7 + $0x44] ss:$8 sps:$4 sm:$0xff]   ;;  %v1845_v47 = vld [vmem:[%s2146_s7 + $0x40] ss:$8 sps:$4 sm:$0xff]   ;;  %v1847_v49 = vld [vmem:[%s2146_s7 + $0x34] ss:$8 sps:$4 sm:$0xff]  }
  0x44   : > { %v1843_v46 = vld [vmem:[%s2146_s7 + $0x144] ss:$8 sps:$4 sm:$0xff]   ;;  %v1846_v48 = vld [vmem:[%s2146_s7 + $0x140] ss:$8 sps:$4 sm:$0xff]   ;;  %v1849_v50 = vld [vmem:[%s2146_s7 + $0x134] ss:$8 sps:$4 sm:$0xff]  }
  0x45   : > { %1000 = vmatpush1.bf16.msra.mxu0 %v1833_v39  ;;  %v1851_v51 = vld [vmem:[%s2146_s7 + $0x30] ss:$8 sps:$4 sm:$0xff]   ;;  %v1853_v53 = vld [vmem:[%s2146_s7 + $0x24] ss:$8 sps:$4 sm:$0xff]   ;;  %v1857_v55 = vld [vmem:[%s2146_s7 + $0x20] ss:$8 sps:$4 sm:$0xff]  }
  0x46   : > { %1113 = vmatpush1.bf16.msra.mxu1 %v1834_v40  ;;  %1001 = vmatprep.subr.bf16.mxu0 %v1835_v41  ;;  %v1852_v52 = vld [vmem:[%s2146_s7 + $0x130] ss:$8 sps:$4 sm:$0xff]   ;;  %v1855_v54 = vld [vmem:[%s2146_s7 + $0x124] ss:$8 sps:$4 sm:$0xff]   ;;  %v1858_v56 = vld [vmem:[%s2146_s7 + $0x120] ss:$8 sps:$4 sm:$0xff]  }
  0x47   : > { %1114 = vmatprep.subr.bf16.mxu1 %v1837_v42  ;;  %v1859_v57 = vld [vmem:[%s2146_s7 + $0x14] ss:$8 sps:$4 sm:$0xff]   ;;  %v1863_v59 = vld [vmem:[%s2146_s7 + $0x10] ss:$8 sps:$4 sm:$0xff]   ;;  %v1865_v61 = vld [vmem:[%s2146_s7 + $0x4] ss:$8 sps:$4 sm:$0xff]  }
  0x48   : > { %v1861_v58 = vld [vmem:[%s2146_s7 + $0x114] ss:$8 sps:$4 sm:$0xff]   ;;  %v1864_v60 = vld [vmem:[%s2146_s7 + $0x110] ss:$8 sps:$4 sm:$0xff]   ;;  %v1867_v62 = vld [vmem:[%s2146_s7 + $0x104] ss:$8 sps:$4 sm:$0xff]  }
  0x49   : > { %1002 = vmatpush1.bf16.msra.mxu0 %v1839_v43  ;;  %v1869_v63 = vld [vmem:[%s2146_s7] ss:$8 sps:$4 sm:$0xff]   ;;  %v1871_v1 = vld [vmem:[%s2146_s7 + $0xf4] ss:$8 sps:$4 sm:$0xff]   ;;  %v1875_v3 = vld [vmem:[%s2146_s7 + $0xf0] ss:$8 sps:$4 sm:$0xff]  }
  0x4a   : > { %1115 = vmatpush1.bf16.msra.mxu1 %v1840_v44  ;;  %1003 = vmatprep.subr.bf16.mxu0 %v1841_v45  ;;  %v1870_v0 = vld [vmem:[%s2146_s7 + $0x100] ss:$8 sps:$4 sm:$0xff]   ;;  %v1873_v2 = vld [vmem:[%s2146_s7 + $0x1f4] ss:$8 sps:$4 sm:$0xff]   ;;  %v1876_v4 = vld [vmem:[%s2146_s7 + $0x1f0] ss:$8 sps:$4 sm:$0xff]  }
  0x4b   : > { %1116 = vmatprep.subr.bf16.mxu1 %v1843_v46  ;;  %v1877_v5 = vld [vmem:[%s2146_s7 + $0xe4] ss:$8 sps:$4 sm:$0xff]   ;;  %v1881_v7 = vld [vmem:[%s2146_s7 + $0xe0] ss:$8 sps:$4 sm:$0xff]   ;;  %v1883_v9 = vld [vmem:[%s2146_s7 + $0xd4] ss:$8 sps:$4 sm:$0xff]  }
  0x4c   : > { %v1879_v6 = vld [vmem:[%s2146_s7 + $0x1e4] ss:$8 sps:$4 sm:$0xff]   ;;  %v1882_v8 = vld [vmem:[%s2146_s7 + $0x1e0] ss:$8 sps:$4 sm:$0xff]   ;;  %v1885_v10 = vld [vmem:[%s2146_s7 + $0x1d4] ss:$8 sps:$4 sm:$0xff]  }
  0x4d   : > { %1004 = vmatpush1.bf16.msra.mxu0 %v1845_v47  ;;  %v1887_v11 = vld [vmem:[%s2146_s7 + $0xd0] ss:$8 sps:$4 sm:$0xff]   ;;  %v1889_v13 = vld [vmem:[%s2146_s7 + $0xc4] ss:$8 sps:$4 sm:$0xff]   ;;  %v1893_v15 = vld [vmem:[%s2146_s7 + $0xc0] ss:$8 sps:$4 sm:$0xff]  }
  0x4e   : > { %1117 = vmatpush1.bf16.msra.mxu1 %v1846_v48  ;;  %1005 = vmatprep.subr.bf16.mxu0 %v1847_v49  ;;  %v1888_v12 = vld [vmem:[%s2146_s7 + $0x1d0] ss:$8 sps:$4 sm:$0xff]   ;;  %v1891_v14 = vld [vmem:[%s2146_s7 + $0x1c4] ss:$8 sps:$4 sm:$0xff]   ;;  %v1894_v16 = vld [vmem:[%s2146_s7 + $0x1c0] ss:$8 sps:$4 sm:$0xff]  }
  0x4f   : > { %1118 = vmatprep.subr.bf16.mxu1 %v1849_v50  ;;  %v1895_v17 = vld [vmem:[%s2146_s7 + $0xb4] ss:$8 sps:$4 sm:$0xff]   ;;  %v1899_v21 = vld [vmem:[%s2146_s7 + $0xb0] ss:$8 sps:$4 sm:$0xff]   ;;  %v1901_v23 = vld [vmem:[%s2146_s7 + $0xa4] ss:$8 sps:$4 sm:$0xff]  }
  0x50   : > { %v1921_v18 = vld [vmem:[%s2148_s8 + $0x4] ss:$16 sps:$4 sm:$0xff]   ;;  %v1924_v20 = vld [vmem:[%s2148_s8 + $0xc] ss:$16 sps:$4 sm:$0xff]   ;;  %v1900_v22 = vld [vmem:[%s2146_s7 + $0x1b0] ss:$8 sps:$4 sm:$0xff]  }
  0x51   : > { %1006 = vmatpush1.bf16.msra.mxu0 %v1851_v51  ;;  %v1897_v19 = vld [vmem:[%s2146_s7 + $0x1b4] ss:$8 sps:$4 sm:$0xff]   ;;  %1029 = vmatprep.mubr.bf16.mxu0 %v1921_v18  ;;  %v1903_v24 = vld [vmem:[%s2146_s7 + $0x1a4] ss:$8 sps:$4 sm:$0xff]   ;;  %v1905_v25 = vld [vmem:[%s2146_s7 + $0xa0] ss:$8 sps:$4 sm:$0xff]  }
  0x52   : > { %1119 = vmatpush1.bf16.msra.mxu1 %v1852_v52  ;;  %1007 = vmatprep.subr.bf16.mxu0 %v1853_v53  ;;  %v1906_v26 = vld [vmem:[%s2146_s7 + $0x1a0] ss:$8 sps:$4 sm:$0xff]   ;;  %v1907_v27 = vld [vmem:[%s2146_s7 + $0x94] ss:$8 sps:$4 sm:$0xff]   ;;  %v1911_v29 = vld [vmem:[%s2146_s7 + $0x90] ss:$8 sps:$4 sm:$0xff]  }
  0x53   : > { %1120 = vmatprep.subr.bf16.mxu1 %v1855_v54  ;;  %1142 = vmatprep.mubr.bf16.mxu1 %v1924_v20  ;;  %v1909_v28 = vld [vmem:[%s2146_s7 + $0x194] ss:$8 sps:$4 sm:$0xff]   ;;  %v1912_v30 = vld [vmem:[%s2146_s7 + $0x190] ss:$8 sps:$4 sm:$0xff]   ;;  %v1913_v31 = vld [vmem:[%s2146_s7 + $0x84] ss:$8 sps:$4 sm:$0xff]  }
  0x54   : > { %v1915_v32 = vld [vmem:[%s2146_s7 + $0x184] ss:$8 sps:$4 sm:$0xff]   ;;  %v1917_v33 = vld [vmem:[%s2146_s7 + $0x80] ss:$8 sps:$4 sm:$0xff]   ;;  %p1743_p11 = scmp.ne.s32.totalorder %s1997_s14, 5 }
  0x55   : > { %1008 = vmatpush1.bf16.msra.mxu0 %v1857_v55  ;;  %v1918_v34 = vld [vmem:[%s2146_s7 + $0x180] ss:$8 sps:$4 sm:$0xff]   ;;  %v1925_v37 = vld [vmem:[%s2148_s8 + $0x24] ss:$16 sps:$4 sm:$0xff]   ;;  %v1927_v38 = vld [vmem:[%s2148_s8 + $0x2c] ss:$16 sps:$4 sm:$0xff]  }
  0x56   : > { %1121 = vmatpush1.bf16.msra.mxu1 %v1858_v56  ;;  %1009 = vmatprep.subr.bf16.mxu0 %v1859_v57  ;;  %v1919_v35 = vld [vmem:[%s2148_s8] ss:$16 sps:$4 sm:$0xff]   ;;  %v1922_v36 = vld [vmem:[%s2148_s8 + $0x8] ss:$16 sps:$4 sm:$0xff]   ;;  %v1931_v41 = vld [vmem:[%s2148_s8 + $0x44] ss:$16 sps:$4 sm:$0xff]  }
  0x57   : > { %1122 = vmatprep.subr.bf16.mxu1 %v1861_v58  ;;  %v1929_v39 = vld [vmem:[%s2148_s8 + $0x20] ss:$16 sps:$4 sm:$0xff]   ;;  %v1930_v40 = vld [vmem:[%s2148_s8 + $0x28] ss:$16 sps:$4 sm:$0xff]   ;;  %v1933_v42 = vld [vmem:[%s2148_s8 + $0x4c] ss:$16 sps:$4 sm:$0xff]  }
  0x58   : > { %v1935_v43 = vld [vmem:[%s2148_s8 + $0x40] ss:$16 sps:$4 sm:$0xff]   ;;  %v1936_v44 = vld [vmem:[%s2148_s8 + $0x48] ss:$16 sps:$4 sm:$0xff]   ;;  %v1937_v45 = vld [vmem:[%s2148_s8 + $0x64] ss:$16 sps:$4 sm:$0xff]  }
  0x59   : > { %1010 = vmatpush1.bf16.msra.mxu0 %v1863_v59  ;;  %v1939_v46 = vld [vmem:[%s2148_s8 + $0x6c] ss:$16 sps:$4 sm:$0xff]   ;;  %v1941_v47 = vld [vmem:[%s2148_s8 + $0x60] ss:$16 sps:$4 sm:$0xff]   ;;  %v1942_v48 = vld [vmem:[%s2148_s8 + $0x68] ss:$16 sps:$4 sm:$0xff]  }
  0x5a   : > { %1123 = vmatpush1.bf16.msra.mxu1 %v1864_v60  ;;  %1011 = vmatprep.subr.bf16.mxu0 %v1865_v61  ;;  %v1943_v49 = vld [vmem:[%s2148_s8 + $0x84] ss:$16 sps:$4 sm:$0xff]   ;;  %v1945_v50 = vld [vmem:[%s2148_s8 + $0x8c] ss:$16 sps:$4 sm:$0xff]   ;;  %v1947_v51 = vld [vmem:[%s2148_s8 + $0x80] ss:$16 sps:$4 sm:$0xff]  }
  0x5b   : > { %1124 = vmatprep.subr.bf16.mxu1 %v1867_v62  ;;  %v1948_v52 = vld [vmem:[%s2148_s8 + $0x88] ss:$16 sps:$4 sm:$0xff]   ;;  %v1949_v53 = vld [vmem:[%s2148_s8 + $0xa4] ss:$16 sps:$4 sm:$0xff]   ;;  %v1951_v54 = vld [vmem:[%s2148_s8 + $0xac] ss:$16 sps:$4 sm:$0xff]  }
  0x5c   : > { %v1953_v55 = vld [vmem:[%s2148_s8 + $0xa0] ss:$16 sps:$4 sm:$0xff]   ;;  %v1954_v56 = vld [vmem:[%s2148_s8 + $0xa8] ss:$16 sps:$4 sm:$0xff]   ;;  %v1955_v57 = vld [vmem:[%s2148_s8 + $0xc4] ss:$16 sps:$4 sm:$0xff]  }
  0x5d   : > { %1012 = vmatpush1.bf16.msra.mxu0 %v1869_v63  ;;  %v1957_v58 = vld [vmem:[%s2148_s8 + $0xcc] ss:$16 sps:$4 sm:$0xff]   ;;  %v1959_v59 = vld [vmem:[%s2148_s8 + $0xc0] ss:$16 sps:$4 sm:$0xff]   ;;  %v1960_v60 = vld [vmem:[%s2148_s8 + $0xc8] ss:$16 sps:$4 sm:$0xff]  }
  0x5e   : > { %1125 = vmatpush1.bf16.msra.mxu1 %v1870_v0  ;;  %1013 = vmatprep.subr.bf16.mxu0 %v1871_v1  ;;  %v1961_v61 = vld [vmem:[%s2148_s8 + $0xe4] ss:$16 sps:$4 sm:$0xff]   ;;  %v1963_v62 = vld [vmem:[%s2148_s8 + $0xec] ss:$16 sps:$4 sm:$0xff]   ;;  %v1965_v63 = vld [vmem:[%s2148_s8 + $0xe0] ss:$16 sps:$4 sm:$0xff]  }
  0x5f   : > { %1126 = vmatprep.subr.bf16.mxu1 %v1873_v2  ;;  %v1966_v0 = vld [vmem:[%s2148_s8 + $0xe8] ss:$16 sps:$4 sm:$0xff]   ;;  %v389_v2 = vld [vmem:[#allocation2 + $0xb0] sm:$0xff] }
  0x61   : > { %1014 = vmatpush2.bf16.msra.mxu0 %v1875_v3 }
  0x62   : > { %1127 = vmatpush2.bf16.msra.mxu1 %v1876_v4  ;;  %1015 = vmatprep.subr.bf16.mxu0 %v1877_v5 }
  0x63   : > { %1128 = vmatprep.subr.bf16.mxu1 %v1879_v6  ;;  %v390_v6 = vld [vmem:[#allocation2] sm:$0xff] }
  0x65   : > { %1016 = vmatpush2.bf16.msra.mxu0 %v1881_v7 }
  0x66   : > { %1129 = vmatpush2.bf16.msra.mxu1 %v1882_v8  ;;  %1017 = vmatprep.subr.bf16.mxu0 %v1883_v9 }
  0x67   : > { %1130 = vmatprep.subr.bf16.mxu1 %v1885_v10 }
  0x69   : > { %1018 = vmatpush2.bf16.msra.mxu0 %v1887_v11  ;;  %v391_v11 = vld [vmem:[#allocation2 + $0xd8] sm:$0xff] }
  0x6a   : > { %1131 = vmatpush2.bf16.msra.mxu1 %v1888_v12  ;;  %1019 = vmatprep.subr.bf16.mxu0 %v1889_v13 }
  0x6b   : > { %1132 = vmatprep.subr.bf16.mxu1 %v1891_v14 }
  0x6d   : > { %1020 = vmatpush2.bf16.msra.mxu0 %v1893_v15 }
  0x6e   : > { %1133 = vmatpush2.bf16.msra.mxu1 %v1894_v16  ;;  %1021 = vmatprep.subr.bf16.mxu0 %v1895_v17  ;;  %v392_v16 = vld [vmem:[#allocation2 + $0x18] sm:$0xff] }
  0x6f   : > { %1134 = vmatprep.subr.bf16.mxu1 %v1897_v19 }
  0x71   : > { %1022 = vmatpush2.bf16.msra.mxu0 %v1899_v21  ;;  %v393_v21 = vld [vmem:[#allocation2 + $0x50] sm:$0xff] }
  0x72   : > { %1135 = vmatpush2.bf16.msra.mxu1 %v1900_v22  ;;  %1023 = vmatprep.subr.bf16.mxu0 %v1901_v23 }
  0x73   : > { %1136 = vmatprep.subr.bf16.mxu1 %v1903_v24 }
  0x75   : > { %1024 = vmatpush2.bf16.msra.mxu0 %v1905_v25 }
  0x76   : > { %1137 = vmatpush2.bf16.msra.mxu1 %v1906_v26  ;;  %1025 = vmatprep.subr.bf16.mxu0 %v1907_v27  ;;  %v394_v26 = vld [vmem:[#allocation2 + $0x68] sm:$0xff] }
  0x77   : > { %1138 = vmatprep.subr.bf16.mxu1 %v1909_v28 }
  0x79   : > { %1026 = vmatpush2.bf16.msra.mxu0 %v1911_v29 }
  0x7a   : > { %1139 = vmatpush2.bf16.msra.mxu1 %v1912_v30  ;;  %1027 = vmatprep.subr.bf16.mxu0 %v1913_v31  ;;  %v395_v31 = vld [vmem:[#allocation2 + $0x30] sm:$0xff] }
  0x7b   : > { %1140 = vmatprep.subr.bf16.mxu1 %v1915_v32 }
  0x7d   : > { %1028 = vmatpush2.bf16.msra.mxu0 %v1917_v33 }
  0x7e   : > { %1141 = vmatpush2.bf16.msra.mxu1 %v1918_v34 }
  0x80   : > { %1030 = vmatmul.mubr.bf16.vlgmr.msra.gmra.mxu0 %v1919_v35 }
  0x81   : > { %1143 = vmatmul.mubr.bf16.vlgmr.msra.gmra.mxu1 %v1922_v36  ;;  %1039 = vmatprep.mubr.bf16.mxu0 %v1925_v37  ;;  %v396_v36 = vld [vmem:[#allocation2 + $0x48] sm:$0xff] }
  0x82   : > { %1152 = vmatprep.mubr.bf16.mxu1 %v1927_v38 }
  0x88   : > { %1040 = vmatmul.mubr.bf16.gmra.mxu0 %v1929_v39 }
  0x89   : > { %1153 = vmatmul.mubr.bf16.gmra.mxu1 %v1930_v40  ;;  %1049 = vmatprep.mubr.bf16.mxu0 %v1931_v41  ;;  %v397_v41 = vld [vmem:[#allocation2 + $0x80] sm:$0xff] }
  0x8a   : > { %1162 = vmatprep.mubr.bf16.mxu1 %v1933_v42 }
  0x90   : > { %1050 = vmatmul.mubr.bf16.gmra.mxu0 %v1935_v43 }
  0x91   : > { %1163 = vmatmul.mubr.bf16.gmra.mxu1 %v1936_v44  ;;  %1059 = vmatprep.mubr.bf16.mxu0 %v1937_v45 }
  0x92   : > { %1172 = vmatprep.mubr.bf16.mxu1 %v1939_v46  ;;  %v398_v46 = vld [vmem:[#allocation2 + $0x88] sm:$0xff] }
  0x98   : > { %1060 = vmatmul.mubr.bf16.gmra.mxu0 %v1941_v47 }
  0x99   : > { %1173 = vmatmul.mubr.bf16.gmra.mxu1 %v1942_v48  ;;  %1069 = vmatprep.mubr.bf16.mxu0 %v1943_v49 }
  0x9a   : > { %1182 = vmatprep.mubr.bf16.mxu1 %v1945_v50 }
  0xa0   : > { %1070 = vmatmul.mubr.bf16.gmra.mxu0 %v1947_v51  ;;  %v399_v51 = vld [vmem:[#allocation2 + $0xe8] sm:$0xff] }
  0xa1   : > { %1183 = vmatmul.mubr.bf16.gmra.mxu1 %v1948_v52  ;;  %1079 = vmatprep.mubr.bf16.mxu0 %v1949_v53 }
  0xa2   : > { %1192 = vmatprep.mubr.bf16.mxu1 %v1951_v54 }
  0xa8   : > { %1080 = vmatmul.mubr.bf16.gmra.mxu0 %v1953_v55 }
  0xa9   : > { %1193 = vmatmul.mubr.bf16.gmra.mxu1 %v1954_v56  ;;  %1089 = vmatprep.mubr.bf16.mxu0 %v1955_v57  ;;  %v400_v56 = vld [vmem:[#allocation2 + $0xb8] sm:$0xff] }
  0xaa   : > { %1202 = vmatprep.mubr.bf16.mxu1 %v1957_v58 }
  0xb0   : > { %1090 = vmatmul.mubr.bf16.gmra.mxu0 %v1959_v59 }
  0xb1   : > { %1203 = vmatmul.mubr.bf16.gmra.mxu1 %v1960_v60  ;;  %1099 = vmatprep.mubr.bf16.mxu0 %v1961_v61  ;;  %v401_v61 = vld [vmem:[#allocation2 + $0x60] sm:$0xff] }
  0xb2   : > { %1212 = vmatprep.mubr.bf16.mxu1 %v1963_v62 }
  0xb8   : > { %1100 = vmatmul.mubr.bf16.gmra.mxu0 %v1965_v63 }
  0xb9   : > { %1213 = vmatmul.mubr.bf16.gmra.mxu1 %v1966_v0 }
 0x140   : > { %v1031_v1 = vpop.f32.mrf.mxu0 }
 0x141   : > { %v1144_v3 = vpop.f32.mrf.mxu1 }
 0x142   : > { %v1145_v4 = vadd.f32 %v1144_v3, %v1031_v1  ;;  %v1033_v5 = vpop.f32.mrf.mxu0 }
 0x143   : > { %v1146_v7 = vpop.f32.mrf.mxu1 }
 0x144   : > { %v1223_v8 = vadd.f32 %v1145_v4, %v389_v2  ;;  %v1147_v9 = vadd.f32 %v1146_v7, %v1033_v5  ;;  %v1035_v10 = vpop.f32.mrf.mxu0  ;;  %v402_v2 = vld [vmem:[#allocation2 + $0xf0] sm:$0xff]  ;;  %v403_v7 = vld [vmem:[#allocation2 + $0x8] sm:$0xff] }
 0x145   : > { %v1148_v12 = vpop.f32.mrf.mxu1 }
 0x146   : > { %1255 = vst [vmem:[#allocation2 + $0xb0] sm:$0xff] %v1223_v8  ;;  %v1224_v13 = vadd.f32 %v1147_v9, %v390_v6  ;;  %v1149_v14 = vadd.f32 %v1148_v12, %v1035_v10  ;;  %v1037_v15 = vpop.f32.mrf.mxu0  ;;  %v404_v12 = vld [vmem:[#allocation2 + $0x78] sm:$0xff] }
 0x147   : > { %v1150_v17 = vpop.f32.mrf.mxu1 }
 0x148   : > { %1256 = vst [vmem:[#allocation2] sm:$0xff] %v1224_v13  ;;  %v1225_v18 = vadd.f32 %v1149_v14, %v391_v11  ;;  %v1151_v19 = vadd.f32 %v1150_v17, %v1037_v15  ;;  %v1041_v20 = vpop.f32.mrf.mxu0  ;;  %v405_v17 = vld [vmem:[#allocation2 + $0x38] sm:$0xff] }
 0x149   : > { %v1154_v22 = vpop.f32.mrf.mxu1 }
 0x14a   : > { %1257 = vst [vmem:[#allocation2 + $0xd8] sm:$0xff] %v1225_v18  ;;  %v1226_v23 = vadd.f32 %v1151_v19, %v392_v16  ;;  %v1155_v24 = vadd.f32 %v1154_v22, %v1041_v20  ;;  %v1043_v25 = vpop.f32.mrf.mxu0  ;;  %v406_v22 = vld [vmem:[#allocation2 + $0x58] sm:$0xff] }
 0x14b   : > { %v1156_v27 = vpop.f32.mrf.mxu1 }
 0x14c   : > { %1258 = vst [vmem:[#allocation2 + $0x18] sm:$0xff] %v1226_v23  ;;  %v1227_v28 = vadd.f32 %v1155_v24, %v393_v21  ;;  %v1157_v29 = vadd.f32 %v1156_v27, %v1043_v25  ;;  %v1045_v30 = vpop.f32.mrf.mxu0  ;;  %v407_v27 = vld [vmem:[#allocation2 + $0x40] sm:$0xff] }
 0x14d   : > { %v1158_v32 = vpop.f32.mrf.mxu1 }
 0x14e   : > { %1259 = vst [vmem:[#allocation2 + $0x50] sm:$0xff] %v1227_v28  ;;  %v1228_v33 = vadd.f32 %v1157_v29, %v394_v26  ;;  %v1159_v34 = vadd.f32 %v1158_v32, %v1045_v30  ;;  %v1047_v35 = vpop.f32.mrf.mxu0  ;;  %v408_v32 = vld [vmem:[#allocation2 + $0xc8] sm:$0xff] }
 0x14f   : > { %v1160_v37 = vpop.f32.mrf.mxu1 }
 0x150   : > { %1260 = vst [vmem:[#allocation2 + $0x68] sm:$0xff] %v1228_v33  ;;  %v1229_v38 = vadd.f32 %v1159_v34, %v395_v31  ;;  %v1161_v39 = vadd.f32 %v1160_v37, %v1047_v35  ;;  %v1051_v40 = vpop.f32.mrf.mxu0  ;;  %v409_v37 = vld [vmem:[#allocation2 + $0xe0] sm:$0xff] }
 0x151   : > { %v1164_v42 = vpop.f32.mrf.mxu1 }
 0x152   : > { %1261 = vst [vmem:[#allocation2 + $0x30] sm:$0xff] %v1229_v38  ;;  %v1230_v43 = vadd.f32 %v1161_v39, %v396_v36  ;;  %v1165_v44 = vadd.f32 %v1164_v42, %v1051_v40  ;;  %v1053_v45 = vpop.f32.mrf.mxu0  ;;  %v410_v42 = vld [vmem:[#allocation2 + $0x90] sm:$0xff] }
 0x153   : > { %v1166_v47 = vpop.f32.mrf.mxu1 }
 0x154   : > { %1262 = vst [vmem:[#allocation2 + $0x48] sm:$0xff] %v1230_v43  ;;  %v1231_v48 = vadd.f32 %v1165_v44, %v397_v41  ;;  %v1167_v49 = vadd.f32 %v1166_v47, %v1053_v45  ;;  %v1055_v50 = vpop.f32.mrf.mxu0  ;;  %v411_v47 = vld [vmem:[#allocation2 + $0x70] sm:$0xff] }
 0x155   : > { %v1168_v52 = vpop.f32.mrf.mxu1 }
 0x156   : > { %1263 = vst [vmem:[#allocation2 + $0x80] sm:$0xff] %v1231_v48  ;;  %v1232_v53 = vadd.f32 %v1167_v49, %v398_v46  ;;  %v1169_v54 = vadd.f32 %v1168_v52, %v1055_v50  ;;  %v1057_v55 = vpop.f32.mrf.mxu0  ;;  %v412_v52 = vld [vmem:[#allocation2 + $0xc0] sm:$0xff] }
 0x157   : > { %v1170_v57 = vpop.f32.mrf.mxu1 }
 0x158   : > { %1264 = vst [vmem:[#allocation2 + $0x88] sm:$0xff] %v1232_v53  ;;  %v1233_v58 = vadd.f32 %v1169_v54, %v399_v51  ;;  %v1171_v59 = vadd.f32 %v1170_v57, %v1057_v55  ;;  %v1061_v60 = vpop.f32.mrf.mxu0  ;;  %v413_v57 = vld [vmem:[#allocation2 + $0xa8] sm:$0xff] }
 0x159   : > { %v1174_v62 = vpop.f32.mrf.mxu1 }
 0x15a   : > { %1265 = vst [vmem:[#allocation2 + $0xe8] sm:$0xff] %v1233_v58  ;;  %v1234_v63 = vadd.f32 %v1171_v59, %v400_v56  ;;  %v1175_v0 = vadd.f32 %v1174_v62, %v1061_v60  ;;  %v1063_v1 = vpop.f32.mrf.mxu0  ;;  %v414_v62 = vld [vmem:[#allocation2 + $0xd0] sm:$0xff] }
 0x15b   : > { %v1176_v3 = vpop.f32.mrf.mxu1 }
 0x15c   : > { %1266 = vst [vmem:[#allocation2 + $0xb8] sm:$0xff] %v1234_v63  ;;  %v1235_v4 = vadd.f32 %v1175_v0, %v401_v61  ;;  %v1177_v5 = vadd.f32 %v1176_v3, %v1063_v1  ;;  %v1065_v6 = vpop.f32.mrf.mxu0  ;;  %v415_v3 = vld [vmem:[#allocation2 + $0x10] sm:$0xff] }
 0x15d   : > { %v1178_v8 = vpop.f32.mrf.mxu1 }
 0x15e   : > { %1267 = vst [vmem:[#allocation2 + $0x60] sm:$0xff] %v1235_v4  ;;  %v1236_v9 = vadd.f32 %v1177_v5, %v402_v2  ;;  %v1179_v10 = vadd.f32 %v1178_v8, %v1065_v6  ;;  %v1067_v11 = vpop.f32.mrf.mxu0  ;;  %v416_v8 = vld [vmem:[#allocation2 + $0x28] sm:$0xff] }
 0x15f   : > { %v1180_v13 = vpop.f32.mrf.mxu1 }
 0x160   : > { %1268 = vst [vmem:[#allocation2 + $0xf0] sm:$0xff] %v1236_v9  ;;  %v1237_v14 = vadd.f32 %v1179_v10, %v403_v7  ;;  %v1181_v15 = vadd.f32 %v1180_v13, %v1067_v11  ;;  %v1071_v16 = vpop.f32.mrf.mxu0  ;;  %v417_v13 = vld [vmem:[#allocation2 + $0xa0] sm:$0xff] }
 0x161   : > { %v1184_v18 = vpop.f32.mrf.mxu1 }
 0x162   : > { %1269 = vst [vmem:[#allocation2 + $0x8] sm:$0xff] %v1237_v14  ;;  %v1238_v19 = vadd.f32 %v1181_v15, %v404_v12  ;;  %v1185_v20 = vadd.f32 %v1184_v18, %v1071_v16  ;;  %v1073_v21 = vpop.f32.mrf.mxu0  ;;  %v418_v18 = vld [vmem:[#allocation2 + $0xf8] sm:$0xff] }
 0x163   : > { %v1186_v23 = vpop.f32.mrf.mxu1 }
 0x164   : > { %1270 = vst [vmem:[#allocation2 + $0x78] sm:$0xff] %v1238_v19  ;;  %v1239_v24 = vadd.f32 %v1185_v20, %v405_v17  ;;  %v1187_v25 = vadd.f32 %v1186_v23, %v1073_v21  ;;  %v1075_v26 = vpop.f32.mrf.mxu0  ;;  %v419_v23 = vld [vmem:[#allocation2 + $0x20] sm:$0xff] }
 0x165   : > { %v1188_v28 = vpop.f32.mrf.mxu1 }
 0x166   : > { %1271 = vst [vmem:[#allocation2 + $0x38] sm:$0xff] %v1239_v24  ;;  %v1240_v29 = vadd.f32 %v1187_v25, %v406_v22  ;;  %v1189_v30 = vadd.f32 %v1188_v28, %v1075_v26  ;;  %v1077_v31 = vpop.f32.mrf.mxu0  ;;  %v420_v28 = vld [vmem:[#allocation2 + $0x98] sm:$0xff] }
 0x167   : > { %v1190_v33 = vpop.f32.mrf.mxu1 }
 0x168   : > { %1272 = vst [vmem:[#allocation2 + $0x58] sm:$0xff] %v1240_v29  ;;  %v1241_v34 = vadd.f32 %v1189_v30, %v407_v27  ;;  %v1191_v35 = vadd.f32 %v1190_v33, %v1077_v31  ;;  %v1081_v36 = vpop.f32.mrf.mxu0 }
 0x169   : > { %v1194_v38 = vpop.f32.mrf.mxu1 }
 0x16a   : > { %1273 = vst [vmem:[#allocation2 + $0x40] sm:$0xff] %v1241_v34  ;;  %v1242_v39 = vadd.f32 %v1191_v35, %v408_v32  ;;  %v1195_v40 = vadd.f32 %v1194_v38, %v1081_v36  ;;  %v1083_v41 = vpop.f32.mrf.mxu0 }
 0x16b   : > { %v1196_v43 = vpop.f32.mrf.mxu1 }
 0x16c   : > { %1274 = vst [vmem:[#allocation2 + $0xc8] sm:$0xff] %v1242_v39  ;;  %v1243_v44 = vadd.f32 %v1195_v40, %v409_v37  ;;  %v1197_v45 = vadd.f32 %v1196_v43, %v1083_v41  ;;  %v1085_v46 = vpop.f32.mrf.mxu0 }
 0x16d   : > { %v1198_v48 = vpop.f32.mrf.mxu1 }
 0x16e   : > { %1275 = vst [vmem:[#allocation2 + $0xe0] sm:$0xff] %v1243_v44  ;;  %v1244_v49 = vadd.f32 %v1197_v45, %v410_v42  ;;  %v1199_v50 = vadd.f32 %v1198_v48, %v1085_v46  ;;  %v1087_v51 = vpop.f32.mrf.mxu0 }
 0x16f   : > { %v1200_v53 = vpop.f32.mrf.mxu1 }
 0x170   : > { %1276 = vst [vmem:[#allocation2 + $0x90] sm:$0xff] %v1244_v49  ;;  %v1245_v54 = vadd.f32 %v1199_v50, %v411_v47  ;;  %v1201_v55 = vadd.f32 %v1200_v53, %v1087_v51  ;;  %v1091_v56 = vpop.f32.mrf.mxu0 }
 0x171   : > { %v1204_v58 = vpop.f32.mrf.mxu1 }
 0x172   : > { %1277 = vst [vmem:[#allocation2 + $0x70] sm:$0xff] %v1245_v54  ;;  %v1246_v59 = vadd.f32 %v1201_v55, %v412_v52  ;;  %v1205_v60 = vadd.f32 %v1204_v58, %v1091_v56  ;;  %v1093_v61 = vpop.f32.mrf.mxu0 }
 0x173   : > { %v1206_v63 = vpop.f32.mrf.mxu1 }
 0x174   : > { %1278 = vst [vmem:[#allocation2 + $0xc0] sm:$0xff] %v1246_v59  ;;  %v1247_v0 = vadd.f32 %v1205_v60, %v413_v57  ;;  %v1207_v1 = vadd.f32 %v1206_v63, %v1093_v61  ;;  %v1095_v2 = vpop.f32.mrf.mxu0 }
 0x175   : > { %v1208_v4 = vpop.f32.mrf.mxu1 }
 0x176   : > { %1279 = vst [vmem:[#allocation2 + $0xa8] sm:$0xff] %v1247_v0  ;;  %v1248_v5 = vadd.f32 %v1207_v1, %v414_v62  ;;  %v1209_v6 = vadd.f32 %v1208_v4, %v1095_v2  ;;  %v1097_v7 = vpop.f32.mrf.mxu0 }
 0x177   : > { %v1210_v9 = vpop.f32.mrf.mxu1 }
 0x178   : > { %1280 = vst [vmem:[#allocation2 + $0xd0] sm:$0xff] %v1248_v5  ;;  %v1249_v10 = vadd.f32 %v1209_v6, %v415_v3  ;;  %v1211_v11 = vadd.f32 %v1210_v9, %v1097_v7  ;;  %v1101_v12 = vpop.f32.mrf.mxu0 }
 0x179   : > { %v1214_v14 = vpop.f32.mrf.mxu1 }
 0x17a   : > { %1281 = vst [vmem:[#allocation2 + $0x10] sm:$0xff] %v1249_v10  ;;  %v1250_v15 = vadd.f32 %v1211_v11, %v416_v8  ;;  %v1215_v16 = vadd.f32 %v1214_v14, %v1101_v12  ;;  %v1103_v17 = vpop.f32.mrf.mxu0 }
 0x17b   : > { %v1216_v19 = vpop.f32.mrf.mxu1 }
 0x17c   : > { %1282 = vst [vmem:[#allocation2 + $0x28] sm:$0xff] %v1250_v15  ;;  %v1251_v20 = vadd.f32 %v1215_v16, %v417_v13  ;;  %v1217_v21 = vadd.f32 %v1216_v19, %v1103_v17  ;;  %v1105_v22 = vpop.f32.mrf.mxu0 }
 0x17d   : > { %v1218_v24 = vpop.f32.mrf.mxu1 }
 0x17e   : > { %1283 = vst [vmem:[#allocation2 + $0xa0] sm:$0xff] %v1251_v20  ;;  %v1252_v25 = vadd.f32 %v1217_v21, %v418_v18  ;;  %v1219_v26 = vadd.f32 %v1218_v24, %v1105_v22  ;;  %v1107_v27 = vpop.f32.mrf.mxu0 }
 0x17f   : > { %v1220_v29 = vpop.f32.mrf.mxu1 }
 0x180   : > { %1284 = vst [vmem:[#allocation2 + $0xf8] sm:$0xff] %v1252_v25  ;;  %v1253_v30 = vadd.f32 %v1219_v26, %v419_v23  ;;  %v1221_v31 = vadd.f32 %v1220_v29, %v1107_v27  ;;  %1290 = sbr.rel (%p1743_p11) target bundleno = 421 (0x1a5), region = 63 }
 0x182   : > { %1285 = vst [vmem:[#allocation2 + $0x20] sm:$0xff] %v1253_v30  ;;  %v1254_v32 = vadd.f32 %v1221_v31, %v420_v28 }
 0x184   : > { %1286 = vst [vmem:[#allocation2 + $0x98] sm:$0xff] %v1254_v32 }
 0x185   : > { %v1325_v33 = vlaneseq  ;;  %v1323_v35 = vld [vmem:[%s2352_s2] sm:$0x3]  ;;  %v1291_v36 = vld [vmem:[#allocation2 + $0xb0] sm:$0xff]  ;;  %v1293_v40 = vld [vmem:[#allocation2 + $0xd8] sm:$0xff] }
 0x186   : > { %v1292_v37 = vld [vmem:[#allocation2] sm:$0xff]  ;;  %v1294_v41 = vld [vmem:[#allocation2 + $0x18] sm:$0xff]  ;;  %v1295_v42 = vld [vmem:[#allocation2 + $0x50] sm:$0xff] }
 0x187   : > { %v1326_v34 = vshrl.u32 %v1325_v33, 7  ;;  %v1296_v45 = vld [vmem:[#allocation2 + $0x68] sm:$0xff]  ;;  %v1297_v46 = vld [vmem:[#allocation2 + $0x30] sm:$0xff]  ;;  %v1299_v56 = vld [vmem:[#allocation2 + $0x80] sm:$0xff] }
 0x188   : > { %v1298_v47 = vld [vmem:[#allocation2 + $0x48] sm:$0xff]  ;;  %v1302_v63 = vld [vmem:[#allocation2 + $0xb8] sm:$0xff]  ;;  %v1303_v4 = vld [vmem:[#allocation2 + $0x60] sm:$0xff] }
 0x189   : > { %v1327_v38 = vsub.s32 0, %v1326_v34  ;;  %v1331_v39 = vsub.s32 1, %v1326_v34  ;;  %v1300_v57 = vld [vmem:[#allocation2 + $0x88] sm:$0xff]  ;;  %v1304_v5 = vld [vmem:[#allocation2 + $0xf0] sm:$0xff]  ;;  %v1306_v11 = vld [vmem:[#allocation2 + $0x78] sm:$0xff] }
 0x18a   : > { %v1301_v62 = vld [vmem:[#allocation2 + $0xe8] sm:$0xff]  ;;  %v1307_v16 = vld [vmem:[#allocation2 + $0x38] sm:$0xff]  ;;  %v1309_v26 = vld [vmem:[#allocation2 + $0x40] sm:$0xff] }
 0x18b   : > { %v2251_v43 = vrot.slane %v1323_v35, %v1327_v38  ;;  %v2253_v44 = vrot.slane %v1323_v35, %v1331_v39  ;;  %v1305_v10 = vld [vmem:[#allocation2 + $0x8] sm:$0xff]  ;;  %v1308_v21 = vld [vmem:[#allocation2 + $0x58] sm:$0xff]  ;;  %v1311_v32 = vld [vmem:[#allocation2 + $0xe0] sm:$0xff] }
 0x18c   : > { %v1310_v27 = vld [vmem:[#allocation2 + $0xc8] sm:$0xff]  ;;  %v1312_v33 = vld [vmem:[#allocation2 + $0x90] sm:$0xff]  ;;  %v1314_v39 = vld [vmem:[#allocation2 + $0xc0] sm:$0xff] }
 0x18d   : > { %v1335_v48 = vadd.f32 %v2251_v43, %v1291_v36  ;;  %v1336_v49 = vadd.f32 %v2253_v44, %v1292_v37  ;;  %v1337_v50 = vadd.f32 %v2251_v43, %v1293_v40  ;;  %v1338_v51 = vadd.f32 %v2253_v44, %v1294_v41  ;;  %v1313_v38 = vld [vmem:[#allocation2 + $0x70] sm:$0xff] }
 0x18e   : > { %v1339_v52 = vadd.f32 %v2251_v43, %v1295_v42  ;;  %v1340_v53 = vadd.f32 %v2253_v44, %v1296_v45  ;;  %v1341_v54 = vadd.f32 %v2251_v43, %v1297_v46  ;;  %v1342_v55 = vadd.f32 %v2253_v44, %v1298_v47  ;;  %v1315_v46 = vld [vmem:[#allocation2 + $0xa8] sm:$0xff] }
 0x18f   : > { %v1367_v58 = vmax.f32 %v1335_v48, 0.0  ;;  %v1368_v59 = vmax.f32 %v1336_v49, 0.0  ;;  %v1369_v60 = vmax.f32 %v1337_v50, 0.0  ;;  %v1370_v61 = vmax.f32 %v1338_v51, 0.0  ;;  %v1316_v51 = vld [vmem:[#allocation2 + $0xd0] sm:$0xff] }
 0x190   : > { %v1371_v0 = vmax.f32 %v1339_v52, 0.0  ;;  %v1372_v1 = vmax.f32 %v1340_v53, 0.0  ;;  %v1373_v2 = vmax.f32 %v1341_v54, 0.0  ;;  %v1374_v3 = vmax.f32 %v1342_v55, 0.0 }
 0x191   : > { %v1766_v6 = vpack.c.bf16 %v1368_v59, %v1367_v58  ;;  %v1767_v7 = vpack.c.bf16 %v1370_v61, %v1369_v60  ;;  %v1343_v8 = vadd.f32 %v2251_v43, %v1299_v56  ;;  %v1344_v9 = vadd.f32 %v2253_v44, %v1300_v57  ;;  %v1317_v56 = vld [vmem:[#allocation2 + $0x10] sm:$0xff]  ;;  %v1318_v57 = vld [vmem:[#allocation2 + $0x28] sm:$0xff] }
 0x192   : > { %v1768_v12 = vpack.c.bf16 %v1372_v1, %v1371_v0  ;;  %v1769_v13 = vpack.c.bf16 %v1374_v3, %v1373_v2  ;;  %v1345_v14 = vadd.f32 %v2251_v43, %v1301_v62  ;;  %v1346_v15 = vadd.f32 %v2253_v44, %v1302_v63  ;;  %v1319_v62 = vld [vmem:[#allocation2 + $0xa0] sm:$0xff]  ;;  %v1320_v63 = vld [vmem:[#allocation2 + $0xf8] sm:$0xff] }
 0x193   : > { %1495 = vst [vmem:[%s2353_s3] sm:$0xff] %v1766_v6  ;;  %1496 = vst [vmem:[%s2353_s3 + $0x8] sm:$0xff] %v1767_v7  ;;  %v1375_v17 = vmax.f32 %v1343_v8, 0.0  ;;  %v1376_v18 = vmax.f32 %v1344_v9, 0.0  ;;  %v1347_v19 = vadd.f32 %v2251_v43, %v1303_v4  ;;  %v1348_v20 = vadd.f32 %v2253_v44, %v1304_v5  ;;  %v1321_v4 = vld [vmem:[#allocation2 + $0x20] sm:$0xff]  ;;  %v1322_v5 = vld [vmem:[#allocation2 + $0x98] sm:$0xff] }
 0x194   : > { %1497 = vst [vmem:[%s2353_s3 + $0x10] sm:$0xff] %v1768_v12  ;;  %1498 = vst [vmem:[%s2353_s3 + $0x18] sm:$0xff] %v1769_v13  ;;  %v1377_v22 = vmax.f32 %v1345_v14, 0.0  ;;  %v1378_v23 = vmax.f32 %v1346_v15, 0.0  ;;  %v1349_v24 = vadd.f32 %v2251_v43, %v1305_v10  ;;  %v1350_v25 = vadd.f32 %v2253_v44, %v1306_v11 }
 0x195   : > { %v1770_v28 = vpack.c.bf16 %v1376_v18, %v1375_v17  ;;  %v1379_v29 = vmax.f32 %v1347_v19, 0.0  ;;  %v1380_v30 = vmax.f32 %v1348_v20, 0.0  ;;  %v1351_v31 = vadd.f32 %v2251_v43, %v1307_v16 }
 0x196   : > { %v1771_v34 = vpack.c.bf16 %v1378_v23, %v1377_v22  ;;  %v1381_v35 = vmax.f32 %v1349_v24, 0.0  ;;  %v1382_v36 = vmax.f32 %v1350_v25, 0.0  ;;  %v1352_v37 = vadd.f32 %v2253_v44, %v1308_v21 }
 0x197   : > { %1499 = vst [vmem:[%s2353_s3 + $0x20] sm:$0xff] %v1770_v28  ;;  %v1772_v40 = vpack.c.bf16 %v1380_v30, %v1379_v29  ;;  %v1383_v41 = vmax.f32 %v1351_v31, 0.0  ;;  %v1353_v42 = vadd.f32 %v2251_v43, %v1309_v26  ;;  %v1354_v45 = vadd.f32 %v2253_v44, %v1310_v27 }
 0x198   : > { %1500 = vst [vmem:[%s2353_s3 + $0x28] sm:$0xff] %v1771_v34  ;;  %v1773_v47 = vpack.c.bf16 %v1382_v36, %v1381_v35  ;;  %v1384_v48 = vmax.f32 %v1352_v37, 0.0  ;;  %v1355_v49 = vadd.f32 %v2251_v43, %v1311_v32  ;;  %v1356_v50 = vadd.f32 %v2253_v44, %v1312_v33 }
 0x199   : > { %1501 = vst [vmem:[%s2353_s3 + $0x30] sm:$0xff] %v1772_v40  ;;  %v1385_v52 = vmax.f32 %v1353_v42, 0.0  ;;  %v1386_v53 = vmax.f32 %v1354_v45, 0.0  ;;  %v1357_v54 = vadd.f32 %v2251_v43, %v1313_v38  ;;  %v1358_v55 = vadd.f32 %v2253_v44, %v1314_v39 }
 0x19a   : > { %1502 = vst [vmem:[%s2353_s3 + $0x38] sm:$0xff] %v1773_v47  ;;  %v1774_v58 = vpack.c.bf16 %v1384_v48, %v1383_v41  ;;  %v1387_v59 = vmax.f32 %v1355_v49, 0.0  ;;  %v1388_v60 = vmax.f32 %v1356_v50, 0.0  ;;  %v1359_v61 = vadd.f32 %v2251_v43, %v1315_v46 }
 0x19b   : > { %v1775_v0 = vpack.c.bf16 %v1386_v53, %v1385_v52  ;;  %v1389_v1 = vmax.f32 %v1357_v54, 0.0  ;;  %v1390_v2 = vmax.f32 %v1358_v55, 0.0  ;;  %v1360_v3 = vadd.f32 %v2253_v44, %v1316_v51 }
 0x19c   : > { %1503 = vst [vmem:[%s2353_s3 + $0x40] sm:$0xff] %v1774_v58  ;;  %v1776_v6 = vpack.c.bf16 %v1388_v60, %v1387_v59  ;;  %v1391_v7 = vmax.f32 %v1359_v61, 0.0  ;;  %v1361_v8 = vadd.f32 %v2251_v43, %v1317_v56  ;;  %v1362_v9 = vadd.f32 %v2253_v44, %v1318_v57 }
 0x19d   : > { %1504 = vst [vmem:[%s2353_s3 + $0x48] sm:$0xff] %v1775_v0  ;;  %v1777_v10 = vpack.c.bf16 %v1390_v2, %v1389_v1  ;;  %v1392_v11 = vmax.f32 %v1360_v3, 0.0  ;;  %v1363_v12 = vadd.f32 %v2251_v43, %v1319_v62  ;;  %v1364_v13 = vadd.f32 %v2253_v44, %v1320_v63 }
 0x19e   : > { %1505 = vst [vmem:[%s2353_s3 + $0x50] sm:$0xff] %v1776_v6  ;;  %v1393_v14 = vmax.f32 %v1361_v8, 0.0  ;;  %v1394_v15 = vmax.f32 %v1362_v9, 0.0  ;;  %v1365_v16 = vadd.f32 %v2251_v43, %v1321_v4  ;;  %v1366_v17 = vadd.f32 %v2253_v44, %v1322_v5 }
 0x19f   : > { %1506 = vst [vmem:[%s2353_s3 + $0x58] sm:$0xff] %v1777_v10  ;;  %v1778_v18 = vpack.c.bf16 %v1392_v11, %v1391_v7  ;;  %v1395_v19 = vmax.f32 %v1363_v12, 0.0  ;;  %v1396_v20 = vmax.f32 %v1364_v13, 0.0 }
 0x1a0   : > { %v1779_v21 = vpack.c.bf16 %v1394_v15, %v1393_v14  ;;  %v1397_v22 = vmax.f32 %v1365_v16, 0.0  ;;  %v1398_v23 = vmax.f32 %v1366_v17, 0.0 }
 0x1a1   : > { %1507 = vst [vmem:[%s2353_s3 + $0x60] sm:$0xff] %v1778_v18  ;;  %v1780_v24 = vpack.c.bf16 %v1396_v20, %v1395_v19 }
 0x1a2   : > { %1508 = vst [vmem:[%s2353_s3 + $0x68] sm:$0xff] %v1779_v21  ;;  %v1781_v43 = vpack.c.bf16 %v1398_v23, %v1397_v22 }
 0x1a3   : > { %1509 = vst [vmem:[%s2353_s3 + $0x70] sm:$0xff] %v1780_v24 }
 0x1a4   : > { %1510 = vst [vmem:[%s2353_s3 + $0x78] sm:$0xff] %v1781_v43 }
 0x1a5 PF: > { %s13_s16 = sadd.s32 1, %s2005_s16   ;;  %s2354_s12 = smov %s1993_s13 }
 0x1a6   : > { %p10_p12 = scmp.ge.s32.totalorder %s13_s16, 8   ;;  %s2355_s13 = smov %s2063_s20 }
 0x1a7   : > { %s2356_s14 = smov %s2001_s15  ;;  %s2357_s15 = smov %s2359_s17 }
 0x1a8   :  { %12 = sbr.rel (!%p10_p12) target bundleno = 3 (0x3), region = 104 }

// kernel: model_forward.50
= control target key start
LH: loop header
LB: loop body
LE: loop exit
PB: predicated region body
PF: predicated region fallthrough
CT: control target
= control target key end

     0   :  { %s2028_s12 = smov 0   ;;  %s2030_s13 = smov 0   ;;  %s2350_s0 = inlined_call_operand.vmem [shape: bf16[128,2560], index: 0, kind: input, shape index: {}]   ;;  %s2351_s1 = inlined_call_operand.vmem [shape: bf16[2560,256], index: 1, kind: input, shape index: {}]   ;;  %s2352_s2 = inlined_call_operand.vmem [shape: f32[1,256], index: 2, kind: input, shape index: {}]   ;;  %s2353_s3 = inlined_call_operand.vmem [shape: bf16[128,256], index: 3, kind: output, shape index: {}]  }
   0x1   :  { %s2032_s14 = smov 0   ;;  %s2034_s15 = smov 0  }
   0x2   :  { %s2036_s16 = smov 0  }
   0x3 LB: > { %s25_s17 = sadd.s32 1, %s2001_s15  ;;  %p48_p1 = scmp.ne.s32.totalorder %s1993_s13, %s1989_s12  ;;  %s2005_s16 = sphi %s2036_s16, %s13_s16   ;;  %s2001_s15 = sphi %s2034_s15, %s2357_s15   ;;  %s1997_s14 = sphi %s2032_s14, %s2356_s14   ;;  %s1993_s13 = sphi %s2030_s13, %s2355_s13   ;;  %s1989_s12 = sphi %s2028_s12, %s2354_s12  }
   0x4   : > { %p26_p0 = scmp.ge.s32.totalorder %s25_s17, 5  ;;  %p49_p2 = scmp.eq.s32.totalorder %s2005_s16, 0 }
   0x5   : > { %s41_s19 = sadd.s32 1, %s1993_s13  ;;  %p1637_p5 = scmp.ge.s32.totalorder %s2005_s16, 5 }
   0x6   : > { %s2359_s17 = smov (%p26_p0, %s25_s17), 0  ;;  %p50_p3 = por %p49_p2, %p48_p1 }
   0x7   : > { %s37_s18 = ssub.s32 %s2001_s15, %s2359_s17  ;;  %164 = sbr.rel (%p1637_p5) target bundleno = 32 (0x20), region = 20 }
   0x8   : > { %p39_p4 = scmp.eq.s32.totalorder %s37_s18, 0 }
   0xa   : > { %s2063_s20 = scalar_select %p39_p4, %s1993_s13, %s41_s19  }
   0xc   : > { %167 = sbr.rel (!%p50_p3) target bundleno = 32 (0x20), region = 24  ;;  %s169_s21 = sand.u32 (%p50_p3), 1, %s1993_s13  }
   0xd   : > { %s1764_s22 = sshll.u32 (%p50_p3), %s2001_s15, 4  ;;  %s1638_s23 = sshll.u32 (%p50_p3), %s169_s21, 8 }
   0xe   : > { %s2071_s26 = scalar_lea.vmem (%p50_p3), %s2350_s0, %s1764_s22  ;;  %s2076_s27 = scalar_lea.vmem (%p50_p3), [#allocation3], %s1638_s23 }
   0xf   : > { %v190_v0 = vld [vmem:[%s2071_s26] sm:$0xff] (%p50_p3)  ;;  %v192_v1 = vld [vmem:[%s2071_s26 + $0x8] sm:$0xff] (%p50_p3)  ;;  %v194_v2 = vld [vmem:[%s2071_s26 + $0x50] sm:$0xff] (%p50_p3) }
  0x10   : > { %191 = vst [vmem:[%s2076_s27] sm:$0xff] (%p50_p3), %v190_v0  ;;  %193 = vst [vmem:[%s2076_s27 + $0x8] sm:$0xff] (%p50_p3), %v192_v1  ;;  %v196_v3 = vld [vmem:[%s2071_s26 + $0x58] sm:$0xff] (%p50_p3)  ;;  %v198_v4 = vld [vmem:[%s2071_s26 + $0xa0] sm:$0xff] (%p50_p3) }
  0x11   : > { %195 = vst [vmem:[%s2076_s27 + $0x10] sm:$0xff] %v194_v2  ;;  %v200_v5 = vld [vmem:[%s2071_s26 + $0xa8] sm:$0xff]  ;;  %197 = vst [vmem:[%s2076_s27 + $0x18] sm:$0xff] %v196_v3  ;;  %v202_v6 = vld [vmem:[%s2071_s26 + $0xf0] sm:$0xff] }
  0x12   : > { %199 = vst [vmem:[%s2076_s27 + $0x20] sm:$0xff] %v198_v4  ;;  %201 = vst [vmem:[%s2076_s27 + $0x28] sm:$0xff] %v200_v5  ;;  %v204_v7 = vld [vmem:[%s2071_s26 + $0xf8] sm:$0xff]  ;;  %v206_v8 = vld [vmem:[%s2071_s26 + $0x140] sm:$0xff] }
  0x13   : > { %203 = vst [vmem:[%s2076_s27 + $0x30] sm:$0xff] %v202_v6  ;;  %205 = vst [vmem:[%s2076_s27 + $0x38] sm:$0xff] %v204_v7  ;;  %v208_v9 = vld [vmem:[%s2071_s26 + $0x148] sm:$0xff]  ;;  %v210_v10 = vld [vmem:[%s2071_s26 + $0x190] sm:$0xff] }
  0x14   : > { %207 = vst [vmem:[%s2076_s27 + $0x40] sm:$0xff] %v206_v8  ;;  %v212_v11 = vld [vmem:[%s2071_s26 + $0x198] sm:$0xff]  ;;  %209 = vst [vmem:[%s2076_s27 + $0x48] sm:$0xff] %v208_v9  ;;  %v214_v12 = vld [vmem:[%s2071_s26 + $0x1e0] sm:$0xff] }
  0x15   : > { %211 = vst [vmem:[%s2076_s27 + $0x50] sm:$0xff] %v210_v10  ;;  %213 = vst [vmem:[%s2076_s27 + $0x58] sm:$0xff] %v212_v11  ;;  %v216_v13 = vld [vmem:[%s2071_s26 + $0x1e8] sm:$0xff]  ;;  %v218_v14 = vld [vmem:[%s2071_s26 + $0x230] sm:$0xff] }
  0x16   : > { %215 = vst [vmem:[%s2076_s27 + $0x60] sm:$0xff] %v214_v12  ;;  %217 = vst [vmem:[%s2076_s27 + $0x68] sm:$0xff] %v216_v13  ;;  %v220_v15 = vld [vmem:[%s2071_s26 + $0x238] sm:$0xff]  ;;  %v222_v16 = vld [vmem:[%s2071_s26 + $0x280] sm:$0xff] }
  0x17   : > { %219 = vst [vmem:[%s2076_s27 + $0x70] sm:$0xff] %v218_v14  ;;  %v224_v17 = vld [vmem:[%s2071_s26 + $0x288] sm:$0xff]  ;;  %221 = vst [vmem:[%s2076_s27 + $0x78] sm:$0xff] %v220_v15  ;;  %v226_v18 = vld [vmem:[%s2071_s26 + $0x2d0] sm:$0xff] }
  0x18   : > { %223 = vst [vmem:[%s2076_s27 + $0x80] sm:$0xff] %v222_v16  ;;  %225 = vst [vmem:[%s2076_s27 + $0x88] sm:$0xff] %v224_v17  ;;  %v228_v19 = vld [vmem:[%s2071_s26 + $0x2d8] sm:$0xff]  ;;  %v230_v20 = vld [vmem:[%s2071_s26 + $0x320] sm:$0xff] }
  0x19   : > { %227 = vst [vmem:[%s2076_s27 + $0x90] sm:$0xff] %v226_v18  ;;  %229 = vst [vmem:[%s2076_s27 + $0x98] sm:$0xff] %v228_v19  ;;  %v232_v21 = vld [vmem:[%s2071_s26 + $0x328] sm:$0xff]  ;;  %v234_v22 = vld [vmem:[%s2071_s26 + $0x370] sm:$0xff] }
  0x1a   : > { %231 = vst [vmem:[%s2076_s27 + $0xa0] sm:$0xff] %v230_v20  ;;  %v236_v23 = vld [vmem:[%s2071_s26 + $0x378] sm:$0xff]  ;;  %233 = vst [vmem:[%s2076_s27 + $0xa8] sm:$0xff] %v232_v21  ;;  %v238_v24 = vld [vmem:[%s2071_s26 + $0x3c0] sm:$0xff] }
  0x1b   : > { %235 = vst [vmem:[%s2076_s27 + $0xb0] sm:$0xff] %v234_v22  ;;  %237 = vst [vmem:[%s2076_s27 + $0xb8] sm:$0xff] %v236_v23  ;;  %v240_v25 = vld [vmem:[%s2071_s26 + $0x3c8] sm:$0xff]  ;;  %v242_v26 = vld [vmem:[%s2071_s26 + $0x410] sm:$0xff] }
  0x1c   : > { %239 = vst [vmem:[%s2076_s27 + $0xc0] sm:$0xff] %v238_v24  ;;  %241 = vst [vmem:[%s2076_s27 + $0xc8] sm:$0xff] %v240_v25  ;;  %v244_v27 = vld [vmem:[%s2071_s26 + $0x418] sm:$0xff]  ;;  %v246_v28 = vld [vmem:[%s2071_s26 + $0x460] sm:$0xff] }
  0x1d   : > { %243 = vst [vmem:[%s2076_s27 + $0xd0] sm:$0xff] %v242_v26  ;;  %v248_v29 = vld [vmem:[%s2071_s26 + $0x468] sm:$0xff]  ;;  %245 = vst [vmem:[%s2076_s27 + $0xd8] sm:$0xff] %v244_v27  ;;  %v250_v30 = vld [vmem:[%s2071_s26 + $0x4b0] sm:$0xff] }
  0x1e   : > { %247 = vst [vmem:[%s2076_s27 + $0xe0] sm:$0xff] %v246_v28  ;;  %249 = vst [vmem:[%s2076_s27 + $0xe8] sm:$0xff] %v248_v29  ;;  %v252_v31 = vld [vmem:[%s2071_s26 + $0x4b8] sm:$0xff] }
  0x1f   : > { %251 = vst [vmem:[%s2076_s27 + $0xf0] sm:$0xff] %v250_v30  ;;  %253 = vst [vmem:[%s2076_s27 + $0xf8] sm:$0xff] %v252_v31 }
  0x20 PF: > { %p1641_p6 = scmp.ge.s32.totalorder %s2005_s16, 1  ;;  %p273_p7 = scmp.lt.s32.totalorder %s2005_s16, 6 }
  0x22   : > { %p274_p8 = pnand %p1641_p6, %p273_p7 }
  0x23   : > { %s280_s28 = sand.u32 (!%p274_p8), 1, %s1989_s12   ;;  %s1643_s29 = sshll.u32 (!%p274_p8), %s1997_s14, 6 }
  0x24   : > { %277 = sbr.rel (%p274_p8) target bundleno = 421 (0x1a5), region = 51  ;;  %s1642_s30 = sshll.u32 (!%p274_p8), %s280_s28, 8 }
  0x25   : > { %p326_p9 = scmp.lt.s32.totalorder (!%p274_p8), %s1643_s29, 319  ;;  %s2148_s8 = scalar_lea.vmem (!%p274_p8), [#allocation3], %s1642_s30 }
  0x26   : > { %p1646_p10 = scmp.ne.s32.totalorder (!%p274_p8), %s1997_s14, 0 }
  0x29   : > { %s2361_s29 = smov (!%p326_p9, %s1643_s29), 319  ;;  %356 = sbr.rel (%p1646_p10) target bundleno = 63 (0x3f), region = 59 }
  0x2a   : > { %s1765_s4 = sshll.u32 %s2361_s29, 3 }
  0x2b   : > { %s2146_s7 = scalar_lea.vmem %s2351_s1, %s1765_s4 }
  0x2e   : > { %v2007_v32 = vmov 0.0  }
  0x2f   : > { %357 = vst [vmem:[#allocation2 + $0xb0] sm:$0xff] %v2007_v32  ;;  %358 = vst [vmem:[#allocation2] sm:$0xff] %v2007_v32 }
  0x30   : > { %359 = vst [vmem:[#allocation2 + $0xd8] sm:$0xff] %v2007_v32  ;;  %360 = vst [vmem:[#allocation2 + $0x18] sm:$0xff] %v2007_v32 }
  0x31   : > { %361 = vst [vmem:[#allocation2 + $0x50] sm:$0xff] %v2007_v32  ;;  %362 = vst [vmem:[#allocation2 + $0x68] sm:$0xff] %v2007_v32 }
  0x32   : > { %363 = vst [vmem:[#allocation2 + $0x30] sm:$0xff] %v2007_v32  ;;  %364 = vst [vmem:[#allocation2 + $0x48] sm:$0xff] %v2007_v32 }
  0x33   : > { %365 = vst [vmem:[#allocation2 + $0x80] sm:$0xff] %v2007_v32  ;;  %366 = vst [vmem:[#allocation2 + $0x88] sm:$0xff] %v2007_v32 }
  0x34   : > { %367 = vst [vmem:[#allocation2 + $0xe8] sm:$0xff] %v2007_v32  ;;  %368 = vst [vmem:[#allocation2 + $0xb8] sm:$0xff] %v2007_v32 }
  0x35   : > { %369 = vst [vmem:[#allocation2 + $0x60] sm:$0xff] %v2007_v32  ;;  %370 = vst [vmem:[#allocation2 + $0xf0] sm:$0xff] %v2007_v32 }
  0x36   : > { %371 = vst [vmem:[#allocation2 + $0x8] sm:$0xff] %v2007_v32  ;;  %372 = vst [vmem:[#allocation2 + $0x78] sm:$0xff] %v2007_v32 }
  0x37   : > { %373 = vst [vmem:[#allocation2 + $0x38] sm:$0xff] %v2007_v32  ;;  %374 = vst [vmem:[#allocation2 + $0x58] sm:$0xff] %v2007_v32 }
  0x38   : > { %375 = vst [vmem:[#allocation2 + $0x40] sm:$0xff] %v2007_v32  ;;  %376 = vst [vmem:[#allocation2 + $0xc8] sm:$0xff] %v2007_v32 }
  0x39   : > { %377 = vst [vmem:[#allocation2 + $0xe0] sm:$0xff] %v2007_v32  ;;  %378 = vst [vmem:[#allocation2 + $0x90] sm:$0xff] %v2007_v32 }
  0x3a   : > { %379 = vst [vmem:[#allocation2 + $0x70] sm:$0xff] %v2007_v32  ;;  %380 = vst [vmem:[#allocation2 + $0xc0] sm:$0xff] %v2007_v32 }
  0x3b   : > { %381 = vst [vmem:[#allocation2 + $0xa8] sm:$0xff] %v2007_v32  ;;  %382 = vst [vmem:[#allocation2 + $0xd0] sm:$0xff] %v2007_v32 }
  0x3c   : > { %383 = vst [vmem:[#allocation2 + $0x10] sm:$0xff] %v2007_v32  ;;  %384 = vst [vmem:[#allocation2 + $0x28] sm:$0xff] %v2007_v32 }
  0x3d   : > { %385 = vst [vmem:[#allocation2 + $0xa0] sm:$0xff] %v2007_v32  ;;  %386 = vst [vmem:[#allocation2 + $0xf8] sm:$0xff] %v2007_v32 }
  0x3e   : > { %387 = vst [vmem:[#allocation2 + $0x20] sm:$0xff] %v2007_v32  ;;  %388 = vst [vmem:[#allocation2 + $0x98] sm:$0xff] %v2007_v32 }
  0x3f PF: > { %v1823_v33 = vld [vmem:[%s2146_s7 + $0x74] ss:$8 sps:$4 sm:$0xff]   ;;  %v1827_v35 = vld [vmem:[%s2146_s7 + $0x70] ss:$8 sps:$4 sm:$0xff]   ;;  %v1829_v37 = vld [vmem:[%s2146_s7 + $0x64] ss:$8 sps:$4 sm:$0xff]  }
  0x40   : > { %v1825_v34 = vld [vmem:[%s2146_s7 + $0x174] ss:$8 sps:$4 sm:$0xff]   ;;  %997 = vmatprep.subr.bf16.mxu0 %v1823_v33  ;;  %v1828_v36 = vld [vmem:[%s2146_s7 + $0x170] ss:$8 sps:$4 sm:$0xff]   ;;  %v1831_v38 = vld [vmem:[%s2146_s7 + $0x164] ss:$8 sps:$4 sm:$0xff]  }
  0x41   : > { %1110 = vmatprep.subr.bf16.mxu1 %v1825_v34  ;;  %998 = vmatpush1.bf16.msra.mxu0 %v1827_v35  ;;  %v1833_v39 = vld [vmem:[%s2146_s7 + $0x60] ss:$8 sps:$4 sm:$0xff]   ;;  %v1835_v41 = vld [vmem:[%s2146_s7 + $0x54] ss:$8 sps:$4 sm:$0xff]   ;;  %v1839_v43 = vld [vmem:[%s2146_s7 + $0x50] ss:$8 sps:$4 sm:$0xff]  }
  0x42   : > { %1111 = vmatpush1.bf16.msra.mxu1 %v1828_v36  ;;  %999 = vmatprep.subr.bf16.mxu0 %v1829_v37  ;;  %v1834_v40 = vld [vmem:[%s2146_s7 + $0x160] ss:$8 sps:$4 sm:$0xff]   ;;  %v1837_v42 = vld [vmem:[%s2146_s7 + $0x154] ss:$8 sps:$4 sm:$0xff]   ;;  %v1840_v44 = vld [vmem:[%s2146_s7 + $0x150] ss:$8 sps:$4 sm:$0xff]  }
  0x43   : > { %1112 = vmatprep.subr.bf16.mxu1 %v1831_v38  ;;  %v1841_v45 = vld [vmem:[%s2146_s7 + $0x44] ss:$8 sps:$4 sm:$0xff]   ;;  %v1845_v47 = vld [vmem:[%s2146_s7 + $0x40] ss:$8 sps:$4 sm:$0xff]   ;;  %v1847_v49 = vld [vmem:[%s2146_s7 + $0x34] ss:$8 sps:$4 sm:$0xff]  }
  0x44   : > { %v1843_v46 = vld [vmem:[%s2146_s7 + $0x144] ss:$8 sps:$4 sm:$0xff]   ;;  %v1846_v48 = vld [vmem:[%s2146_s7 + $0x140] ss:$8 sps:$4 sm:$0xff]   ;;  %v1849_v50 = vld [vmem:[%s2146_s7 + $0x134] ss:$8 sps:$4 sm:$0xff]  }
  0x45   : > { %1000 = vmatpush1.bf16.msra.mxu0 %v1833_v39  ;;  %v1851_v51 = vld [vmem:[%s2146_s7 + $0x30] ss:$8 sps:$4 sm:$0xff]   ;;  %v1853_v53 = vld [vmem:[%s2146_s7 + $0x24] ss:$8 sps:$4 sm:$0xff]   ;;  %v1857_v55 = vld [vmem:[%s2146_s7 + $0x20] ss:$8 sps:$4 sm:$0xff]  }
  0x46   : > { %1113 = vmatpush1.bf16.msra.mxu1 %v1834_v40  ;;  %1001 = vmatprep.subr.bf16.mxu0 %v1835_v41  ;;  %v1852_v52 = vld [vmem:[%s2146_s7 + $0x130] ss:$8 sps:$4 sm:$0xff]   ;;  %v1855_v54 = vld [vmem:[%s2146_s7 + $0x124] ss:$8 sps:$4 sm:$0xff]   ;;  %v1858_v56 = vld [vmem:[%s2146_s7 + $0x120] ss:$8 sps:$4 sm:$0xff]  }
  0x47   : > { %1114 = vmatprep.subr.bf16.mxu1 %v1837_v42  ;;  %v1859_v57 = vld [vmem:[%s2146_s7 + $0x14] ss:$8 sps:$4 sm:$0xff]   ;;  %v1863_v59 = vld [vmem:[%s2146_s7 + $0x10] ss:$8 sps:$4 sm:$0xff]   ;;  %v1865_v61 = vld [vmem:[%s2146_s7 + $0x4] ss:$8 sps:$4 sm:$0xff]  }
  0x48   : > { %v1861_v58 = vld [vmem:[%s2146_s7 + $0x114] ss:$8 sps:$4 sm:$0xff]   ;;  %v1864_v60 = vld [vmem:[%s2146_s7 + $0x110] ss:$8 sps:$4 sm:$0xff]   ;;  %v1867_v62 = vld [vmem:[%s2146_s7 + $0x104] ss:$8 sps:$4 sm:$0xff]  }
  0x49   : > { %1002 = vmatpush1.bf16.msra.mxu0 %v1839_v43  ;;  %v1869_v63 = vld [vmem:[%s2146_s7] ss:$8 sps:$4 sm:$0xff]   ;;  %v1871_v1 = vld [vmem:[%s2146_s7 + $0xf4] ss:$8 sps:$4 sm:$0xff]   ;;  %v1875_v3 = vld [vmem:[%s2146_s7 + $0xf0] ss:$8 sps:$4 sm:$0xff]  }
  0x4a   : > { %1115 = vmatpush1.bf16.msra.mxu1 %v1840_v44  ;;  %1003 = vmatprep.subr.bf16.mxu0 %v1841_v45  ;;  %v1870_v0 = vld [vmem:[%s2146_s7 + $0x100] ss:$8 sps:$4 sm:$0xff]   ;;  %v1873_v2 = vld [vmem:[%s2146_s7 + $0x1f4] ss:$8 sps:$4 sm:$0xff]   ;;  %v1876_v4 = vld [vmem:[%s2146_s7 + $0x1f0] ss:$8 sps:$4 sm:$0xff]  }
  0x4b   : > { %1116 = vmatprep.subr.bf16.mxu1 %v1843_v46  ;;  %v1877_v5 = vld [vmem:[%s2146_s7 + $0xe4] ss:$8 sps:$4 sm:$0xff]   ;;  %v1881_v7 = vld [vmem:[%s2146_s7 + $0xe0] ss:$8 sps:$4 sm:$0xff]   ;;  %v1883_v9 = vld [vmem:[%s2146_s7 + $0xd4] ss:$8 sps:$4 sm:$0xff]  }
  0x4c   : > { %v1879_v6 = vld [vmem:[%s2146_s7 + $0x1e4] ss:$8 sps:$4 sm:$0xff]   ;;  %v1882_v8 = vld [vmem:[%s2146_s7 + $0x1e0] ss:$8 sps:$4 sm:$0xff]   ;;  %v1885_v10 = vld [vmem:[%s2146_s7 + $0x1d4] ss:$8 sps:$4 sm:$0xff]  }
  0x4d   : > { %1004 = vmatpush1.bf16.msra.mxu0 %v1845_v47  ;;  %v1887_v11 = vld [vmem:[%s2146_s7 + $0xd0] ss:$8 sps:$4 sm:$0xff]   ;;  %v1889_v13 = vld [vmem:[%s2146_s7 + $0xc4] ss:$8 sps:$4 sm:$0xff]   ;;  %v1893_v15 = vld [vmem:[%s2146_s7 + $0xc0] ss:$8 sps:$4 sm:$0xff]  }
  0x4e   : > { %1117 = vmatpush1.bf16.msra.mxu1 %v1846_v48  ;;  %1005 = vmatprep.subr.bf16.mxu0 %v1847_v49  ;;  %v1888_v12 = vld [vmem:[%s2146_s7 + $0x1d0] ss:$8 sps:$4 sm:$0xff]   ;;  %v1891_v14 = vld [vmem:[%s2146_s7 + $0x1c4] ss:$8 sps:$4 sm:$0xff]   ;;  %v1894_v16 = vld [vmem:[%s2146_s7 + $0x1c0] ss:$8 sps:$4 sm:$0xff]  }
  0x4f   : > { %1118 = vmatprep.subr.bf16.mxu1 %v1849_v50  ;;  %v1895_v17 = vld [vmem:[%s2146_s7 + $0xb4] ss:$8 sps:$4 sm:$0xff]   ;;  %v1899_v21 = vld [vmem:[%s2146_s7 + $0xb0] ss:$8 sps:$4 sm:$0xff]   ;;  %v1901_v23 = vld [vmem:[%s2146_s7 + $0xa4] ss:$8 sps:$4 sm:$0xff]  }
  0x50   : > { %v1921_v18 = vld [vmem:[%s2148_s8 + $0x4] ss:$16 sps:$4 sm:$0xff]   ;;  %v1924_v20 = vld [vmem:[%s2148_s8 + $0xc] ss:$16 sps:$4 sm:$0xff]   ;;  %v1900_v22 = vld [vmem:[%s2146_s7 + $0x1b0] ss:$8 sps:$4 sm:$0xff]  }
  0x51   : > { %1006 = vmatpush1.bf16.msra.mxu0 %v1851_v51  ;;  %v1897_v19 = vld [vmem:[%s2146_s7 + $0x1b4] ss:$8 sps:$4 sm:$0xff]   ;;  %1029 = vmatprep.mubr.bf16.mxu0 %v1921_v18  ;;  %v1903_v24 = vld [vmem:[%s2146_s7 + $0x1a4] ss:$8 sps:$4 sm:$0xff]   ;;  %v1905_v25 = vld [vmem:[%s2146_s7 + $0xa0] ss:$8 sps:$4 sm:$0xff]  }
  0x52   : > { %1119 = vmatpush1.bf16.msra.mxu1 %v1852_v52  ;;  %1007 = vmatprep.subr.bf16.mxu0 %v1853_v53  ;;  %v1906_v26 = vld [vmem:[%s2146_s7 + $0x1a0] ss:$8 sps:$4 sm:$0xff]   ;;  %v1907_v27 = vld [vmem:[%s2146_s7 + $0x94] ss:$8 sps:$4 sm:$0xff]   ;;  %v1911_v29 = vld [vmem:[%s2146_s7 + $0x90] ss:$8 sps:$4 sm:$0xff]  }
  0x53   : > { %1120 = vmatprep.subr.bf16.mxu1 %v1855_v54  ;;  %1142 = vmatprep.mubr.bf16.mxu1 %v1924_v20  ;;  %v1909_v28 = vld [vmem:[%s2146_s7 + $0x194] ss:$8 sps:$4 sm:$0xff]   ;;  %v1912_v30 = vld [vmem:[%s2146_s7 + $0x190] ss:$8 sps:$4 sm:$0xff]   ;;  %v1913_v31 = vld [vmem:[%s2146_s7 + $0x84] ss:$8 sps:$4 sm:$0xff]  }
  0x54   : > { %v1915_v32 = vld [vmem:[%s2146_s7 + $0x184] ss:$8 sps:$4 sm:$0xff]   ;;  %v1917_v33 = vld [vmem:[%s2146_s7 + $0x80] ss:$8 sps:$4 sm:$0xff]   ;;  %p1743_p11 = scmp.ne.s32.totalorder %s1997_s14, 4 }
  0x55   : > { %1008 = vmatpush1.bf16.msra.mxu0 %v1857_v55  ;;  %v1918_v34 = vld [vmem:[%s2146_s7 + $0x180] ss:$8 sps:$4 sm:$0xff]   ;;  %v1925_v37 = vld [vmem:[%s2148_s8 + $0x24] ss:$16 sps:$4 sm:$0xff]   ;;  %v1927_v38 = vld [vmem:[%s2148_s8 + $0x2c] ss:$16 sps:$4 sm:$0xff]  }
  0x56   : > { %1121 = vmatpush1.bf16.msra.mxu1 %v1858_v56  ;;  %1009 = vmatprep.subr.bf16.mxu0 %v1859_v57  ;;  %v1919_v35 = vld [vmem:[%s2148_s8] ss:$16 sps:$4 sm:$0xff]   ;;  %v1922_v36 = vld [vmem:[%s2148_s8 + $0x8] ss:$16 sps:$4 sm:$0xff]   ;;  %v1931_v41 = vld [vmem:[%s2148_s8 + $0x44] ss:$16 sps:$4 sm:$0xff]  }
  0x57   : > { %1122 = vmatprep.subr.bf16.mxu1 %v1861_v58  ;;  %v1929_v39 = vld [vmem:[%s2148_s8 + $0x20] ss:$16 sps:$4 sm:$0xff]   ;;  %v1930_v40 = vld [vmem:[%s2148_s8 + $0x28] ss:$16 sps:$4 sm:$0xff]   ;;  %v1933_v42 = vld [vmem:[%s2148_s8 + $0x4c] ss:$16 sps:$4 sm:$0xff]  }
  0x58   : > { %v1935_v43 = vld [vmem:[%s2148_s8 + $0x40] ss:$16 sps:$4 sm:$0xff]   ;;  %v1936_v44 = vld [vmem:[%s2148_s8 + $0x48] ss:$16 sps:$4 sm:$0xff]   ;;  %v1937_v45 = vld [vmem:[%s2148_s8 + $0x64] ss:$16 sps:$4 sm:$0xff]  }
  0x59   : > { %1010 = vmatpush1.bf16.msra.mxu0 %v1863_v59  ;;  %v1939_v46 = vld [vmem:[%s2148_s8 + $0x6c] ss:$16 sps:$4 sm:$0xff]   ;;  %v1941_v47 = vld [vmem:[%s2148_s8 + $0x60] ss:$16 sps:$4 sm:$0xff]   ;;  %v1942_v48 = vld [vmem:[%s2148_s8 + $0x68] ss:$16 sps:$4 sm:$0xff]  }
  0x5a   : > { %1123 = vmatpush1.bf16.msra.mxu1 %v1864_v60  ;;  %1011 = vmatprep.subr.bf16.mxu0 %v1865_v61  ;;  %v1943_v49 = vld [vmem:[%s2148_s8 + $0x84] ss:$16 sps:$4 sm:$0xff]   ;;  %v1945_v50 = vld [vmem:[%s2148_s8 + $0x8c] ss:$16 sps:$4 sm:$0xff]   ;;  %v1947_v51 = vld [vmem:[%s2148_s8 + $0x80] ss:$16 sps:$4 sm:$0xff]  }
  0x5b   : > { %1124 = vmatprep.subr.bf16.mxu1 %v1867_v62  ;;  %v1948_v52 = vld [vmem:[%s2148_s8 + $0x88] ss:$16 sps:$4 sm:$0xff]   ;;  %v1949_v53 = vld [vmem:[%s2148_s8 + $0xa4] ss:$16 sps:$4 sm:$0xff]   ;;  %v1951_v54 = vld [vmem:[%s2148_s8 + $0xac] ss:$16 sps:$4 sm:$0xff]  }
  0x5c   : > { %v1953_v55 = vld [vmem:[%s2148_s8 + $0xa0] ss:$16 sps:$4 sm:$0xff]   ;;  %v1954_v56 = vld [vmem:[%s2148_s8 + $0xa8] ss:$16 sps:$4 sm:$0xff]   ;;  %v1955_v57 = vld [vmem:[%s2148_s8 + $0xc4] ss:$16 sps:$4 sm:$0xff]  }
  0x5d   : > { %1012 = vmatpush1.bf16.msra.mxu0 %v1869_v63  ;;  %v1957_v58 = vld [vmem:[%s2148_s8 + $0xcc] ss:$16 sps:$4 sm:$0xff]   ;;  %v1959_v59 = vld [vmem:[%s2148_s8 + $0xc0] ss:$16 sps:$4 sm:$0xff]   ;;  %v1960_v60 = vld [vmem:[%s2148_s8 + $0xc8] ss:$16 sps:$4 sm:$0xff]  }
  0x5e   : > { %1125 = vmatpush1.bf16.msra.mxu1 %v1870_v0  ;;  %1013 = vmatprep.subr.bf16.mxu0 %v1871_v1  ;;  %v1961_v61 = vld [vmem:[%s2148_s8 + $0xe4] ss:$16 sps:$4 sm:$0xff]   ;;  %v1963_v62 = vld [vmem:[%s2148_s8 + $0xec] ss:$16 sps:$4 sm:$0xff]   ;;  %v1965_v63 = vld [vmem:[%s2148_s8 + $0xe0] ss:$16 sps:$4 sm:$0xff]  }
  0x5f   : > { %1126 = vmatprep.subr.bf16.mxu1 %v1873_v2  ;;  %v1966_v0 = vld [vmem:[%s2148_s8 + $0xe8] ss:$16 sps:$4 sm:$0xff]   ;;  %v389_v2 = vld [vmem:[#allocation2 + $0xb0] sm:$0xff] }
  0x61   : > { %1014 = vmatpush2.bf16.msra.mxu0 %v1875_v3 }
  0x62   : > { %1127 = vmatpush2.bf16.msra.mxu1 %v1876_v4  ;;  %1015 = vmatprep.subr.bf16.mxu0 %v1877_v5 }
  0x63   : > { %1128 = vmatprep.subr.bf16.mxu1 %v1879_v6  ;;  %v390_v6 = vld [vmem:[#allocation2] sm:$0xff] }
  0x65   : > { %1016 = vmatpush2.bf16.msra.mxu0 %v1881_v7 }
  0x66   : > { %1129 = vmatpush2.bf16.msra.mxu1 %v1882_v8  ;;  %1017 = vmatprep.subr.bf16.mxu0 %v1883_v9 }
  0x67   : > { %1130 = vmatprep.subr.bf16.mxu1 %v1885_v10 }
  0x69   : > { %1018 = vmatpush2.bf16.msra.mxu0 %v1887_v11  ;;  %v391_v11 = vld [vmem:[#allocation2 + $0xd8] sm:$0xff] }
  0x6a   : > { %1131 = vmatpush2.bf16.msra.mxu1 %v1888_v12  ;;  %1019 = vmatprep.subr.bf16.mxu0 %v1889_v13 }
  0x6b   : > { %1132 = vmatprep.subr.bf16.mxu1 %v1891_v14 }
  0x6d   : > { %1020 = vmatpush2.bf16.msra.mxu0 %v1893_v15 }
  0x6e   : > { %1133 = vmatpush2.bf16.msra.mxu1 %v1894_v16  ;;  %1021 = vmatprep.subr.bf16.mxu0 %v1895_v17  ;;  %v392_v16 = vld [vmem:[#allocation2 + $0x18] sm:$0xff] }
  0x6f   : > { %1134 = vmatprep.subr.bf16.mxu1 %v1897_v19 }
  0x71   : > { %1022 = vmatpush2.bf16.msra.mxu0 %v1899_v21  ;;  %v393_v21 = vld [vmem:[#allocation2 + $0x50] sm:$0xff] }
  0x72   : > { %1135 = vmatpush2.bf16.msra.mxu1 %v1900_v22  ;;  %1023 = vmatprep.subr.bf16.mxu0 %v1901_v23 }
  0x73   : > { %1136 = vmatprep.subr.bf16.mxu1 %v1903_v24 }
  0x75   : > { %1024 = vmatpush2.bf16.msra.mxu0 %v1905_v25 }
  0x76   : > { %1137 = vmatpush2.bf16.msra.mxu1 %v1906_v26  ;;  %1025 = vmatprep.subr.bf16.mxu0 %v1907_v27  ;;  %v394_v26 = vld [vmem:[#allocation2 + $0x68] sm:$0xff] }
  0x77   : > { %1138 = vmatprep.subr.bf16.mxu1 %v1909_v28 }
  0x79   : > { %1026 = vmatpush2.bf16.msra.mxu0 %v1911_v29 }
  0x7a   : > { %1139 = vmatpush2.bf16.msra.mxu1 %v1912_v30  ;;  %1027 = vmatprep.subr.bf16.mxu0 %v1913_v31  ;;  %v395_v31 = vld [vmem:[#allocation2 + $0x30] sm:$0xff] }
  0x7b   : > { %1140 = vmatprep.subr.bf16.mxu1 %v1915_v32 }
  0x7d   : > { %1028 = vmatpush2.bf16.msra.mxu0 %v1917_v33 }
  0x7e   : > { %1141 = vmatpush2.bf16.msra.mxu1 %v1918_v34 }
  0x80   : > { %1030 = vmatmul.mubr.bf16.vlgmr.msra.gmra.mxu0 %v1919_v35 }
  0x81   : > { %1143 = vmatmul.mubr.bf16.vlgmr.msra.gmra.mxu1 %v1922_v36  ;;  %1039 = vmatprep.mubr.bf16.mxu0 %v1925_v37  ;;  %v396_v36 = vld [vmem:[#allocation2 + $0x48] sm:$0xff] }
  0x82   : > { %1152 = vmatprep.mubr.bf16.mxu1 %v1927_v38 }
  0x88   : > { %1040 = vmatmul.mubr.bf16.gmra.mxu0 %v1929_v39 }
  0x89   : > { %1153 = vmatmul.mubr.bf16.gmra.mxu1 %v1930_v40  ;;  %1049 = vmatprep.mubr.bf16.mxu0 %v1931_v41  ;;  %v397_v41 = vld [vmem:[#allocation2 + $0x80] sm:$0xff] }
  0x8a   : > { %1162 = vmatprep.mubr.bf16.mxu1 %v1933_v42 }
  0x90   : > { %1050 = vmatmul.mubr.bf16.gmra.mxu0 %v1935_v43 }
  0x91   : > { %1163 = vmatmul.mubr.bf16.gmra.mxu1 %v1936_v44  ;;  %1059 = vmatprep.mubr.bf16.mxu0 %v1937_v45 }
  0x92   : > { %1172 = vmatprep.mubr.bf16.mxu1 %v1939_v46  ;;  %v398_v46 = vld [vmem:[#allocation2 + $0x88] sm:$0xff] }
  0x98   : > { %1060 = vmatmul.mubr.bf16.gmra.mxu0 %v1941_v47 }
  0x99   : > { %1173 = vmatmul.mubr.bf16.gmra.mxu1 %v1942_v48  ;;  %1069 = vmatprep.mubr.bf16.mxu0 %v1943_v49 }
  0x9a   : > { %1182 = vmatprep.mubr.bf16.mxu1 %v1945_v50 }
  0xa0   : > { %1070 = vmatmul.mubr.bf16.gmra.mxu0 %v1947_v51  ;;  %v399_v51 = vld [vmem:[#allocation2 + $0xe8] sm:$0xff] }
  0xa1   : > { %1183 = vmatmul.mubr.bf16.gmra.mxu1 %v1948_v52  ;;  %1079 = vmatprep.mubr.bf16.mxu0 %v1949_v53 }
  0xa2   : > { %1192 = vmatprep.mubr.bf16.mxu1 %v1951_v54 }
  0xa8   : > { %1080 = vmatmul.mubr.bf16.gmra.mxu0 %v1953_v55 }
  0xa9   : > { %1193 = vmatmul.mubr.bf16.gmra.mxu1 %v1954_v56  ;;  %1089 = vmatprep.mubr.bf16.mxu0 %v1955_v57  ;;  %v400_v56 = vld [vmem:[#allocation2 + $0xb8] sm:$0xff] }
  0xaa   : > { %1202 = vmatprep.mubr.bf16.mxu1 %v1957_v58 }
  0xb0   : > { %1090 = vmatmul.mubr.bf16.gmra.mxu0 %v1959_v59 }
  0xb1   : > { %1203 = vmatmul.mubr.bf16.gmra.mxu1 %v1960_v60  ;;  %1099 = vmatprep.mubr.bf16.mxu0 %v1961_v61  ;;  %v401_v61 = vld [vmem:[#allocation2 + $0x60] sm:$0xff] }
  0xb2   : > { %1212 = vmatprep.mubr.bf16.mxu1 %v1963_v62 }
  0xb8   : > { %1100 = vmatmul.mubr.bf16.gmra.mxu0 %v1965_v63 }
  0xb9   : > { %1213 = vmatmul.mubr.bf16.gmra.mxu1 %v1966_v0 }
 0x140   : > { %v1031_v1 = vpop.f32.mrf.mxu0 }
 0x141   : > { %v1144_v3 = vpop.f32.mrf.mxu1 }
 0x142   : > { %v1145_v4 = vadd.f32 %v1144_v3, %v1031_v1  ;;  %v1033_v5 = vpop.f32.mrf.mxu0 }
 0x143   : > { %v1146_v7 = vpop.f32.mrf.mxu1 }
 0x144   : > { %v1223_v8 = vadd.f32 %v1145_v4, %v389_v2  ;;  %v1147_v9 = vadd.f32 %v1146_v7, %v1033_v5  ;;  %v1035_v10 = vpop.f32.mrf.mxu0  ;;  %v402_v2 = vld [vmem:[#allocation2 + $0xf0] sm:$0xff]  ;;  %v403_v7 = vld [vmem:[#allocation2 + $0x8] sm:$0xff] }
 0x145   : > { %v1148_v12 = vpop.f32.mrf.mxu1 }
 0x146   : > { %1255 = vst [vmem:[#allocation2 + $0xb0] sm:$0xff] %v1223_v8  ;;  %v1224_v13 = vadd.f32 %v1147_v9, %v390_v6  ;;  %v1149_v14 = vadd.f32 %v1148_v12, %v1035_v10  ;;  %v1037_v15 = vpop.f32.mrf.mxu0  ;;  %v404_v12 = vld [vmem:[#allocation2 + $0x78] sm:$0xff] }
 0x147   : > { %v1150_v17 = vpop.f32.mrf.mxu1 }
 0x148   : > { %1256 = vst [vmem:[#allocation2] sm:$0xff] %v1224_v13  ;;  %v1225_v18 = vadd.f32 %v1149_v14, %v391_v11  ;;  %v1151_v19 = vadd.f32 %v1150_v17, %v1037_v15  ;;  %v1041_v20 = vpop.f32.mrf.mxu0  ;;  %v405_v17 = vld [vmem:[#allocation2 + $0x38] sm:$0xff] }
 0x149   : > { %v1154_v22 = vpop.f32.mrf.mxu1 }
 0x14a   : > { %1257 = vst [vmem:[#allocation2 + $0xd8] sm:$0xff] %v1225_v18  ;;  %v1226_v23 = vadd.f32 %v1151_v19, %v392_v16  ;;  %v1155_v24 = vadd.f32 %v1154_v22, %v1041_v20  ;;  %v1043_v25 = vpop.f32.mrf.mxu0  ;;  %v406_v22 = vld [vmem:[#allocation2 + $0x58] sm:$0xff] }
 0x14b   : > { %v1156_v27 = vpop.f32.mrf.mxu1 }
 0x14c   : > { %1258 = vst [vmem:[#allocation2 + $0x18] sm:$0xff] %v1226_v23  ;;  %v1227_v28 = vadd.f32 %v1155_v24, %v393_v21  ;;  %v1157_v29 = vadd.f32 %v1156_v27, %v1043_v25  ;;  %v1045_v30 = vpop.f32.mrf.mxu0  ;;  %v407_v27 = vld [vmem:[#allocation2 + $0x40] sm:$0xff] }
 0x14d   : > { %v1158_v32 = vpop.f32.mrf.mxu1 }
 0x14e   : > { %1259 = vst [vmem:[#allocation2 + $0x50] sm:$0xff] %v1227_v28  ;;  %v1228_v33 = vadd.f32 %v1157_v29, %v394_v26  ;;  %v1159_v34 = vadd.f32 %v1158_v32, %v1045_v30  ;;  %v1047_v35 = vpop.f32.mrf.mxu0  ;;  %v408_v32 = vld [vmem:[#allocation2 + $0xc8] sm:$0xff] }
 0x14f   : > { %v1160_v37 = vpop.f32.mrf.mxu1 }
 0x150   : > { %1260 = vst [vmem:[#allocation2 + $0x68] sm:$0xff] %v1228_v33  ;;  %v1229_v38 = vadd.f32 %v1159_v34, %v395_v31  ;;  %v1161_v39 = vadd.f32 %v1160_v37, %v1047_v35  ;;  %v1051_v40 = vpop.f32.mrf.mxu0  ;;  %v409_v37 = vld [vmem:[#allocation2 + $0xe0] sm:$0xff] }
 0x151   : > { %v1164_v42 = vpop.f32.mrf.mxu1 }
 0x152   : > { %1261 = vst [vmem:[#allocation2 + $0x30] sm:$0xff] %v1229_v38  ;;  %v1230_v43 = vadd.f32 %v1161_v39, %v396_v36  ;;  %v1165_v44 = vadd.f32 %v1164_v42, %v1051_v40  ;;  %v1053_v45 = vpop.f32.mrf.mxu0  ;;  %v410_v42 = vld [vmem:[#allocation2 + $0x90] sm:$0xff] }
 0x153   : > { %v1166_v47 = vpop.f32.mrf.mxu1 }
 0x154   : > { %1262 = vst [vmem:[#allocation2 + $0x48] sm:$0xff] %v1230_v43  ;;  %v1231_v48 = vadd.f32 %v1165_v44, %v397_v41  ;;  %v1167_v49 = vadd.f32 %v1166_v47, %v1053_v45  ;;  %v1055_v50 = vpop.f32.mrf.mxu0  ;;  %v411_v47 = vld [vmem:[#allocation2 + $0x70] sm:$0xff] }
 0x155   : > { %v1168_v52 = vpop.f32.mrf.mxu1 }
 0x156   : > { %1263 = vst [vmem:[#allocation2 + $0x80] sm:$0xff] %v1231_v48  ;;  %v1232_v53 = vadd.f32 %v1167_v49, %v398_v46  ;;  %v1169_v54 = vadd.f32 %v1168_v52, %v1055_v50  ;;  %v1057_v55 = vpop.f32.mrf.mxu0  ;;  %v412_v52 = vld [vmem:[#allocation2 + $0xc0] sm:$0xff] }
 0x157   : > { %v1170_v57 = vpop.f32.mrf.mxu1 }
 0x158   : > { %1264 = vst [vmem:[#allocation2 + $0x88] sm:$0xff] %v1232_v53  ;;  %v1233_v58 = vadd.f32 %v1169_v54, %v399_v51  ;;  %v1171_v59 = vadd.f32 %v1170_v57, %v1057_v55  ;;  %v1061_v60 = vpop.f32.mrf.mxu0  ;;  %v413_v57 = vld [vmem:[#allocation2 + $0xa8] sm:$0xff] }
 0x159   : > { %v1174_v62 = vpop.f32.mrf.mxu1 }
 0x15a   : > { %1265 = vst [vmem:[#allocation2 + $0xe8] sm:$0xff] %v1233_v58  ;;  %v1234_v63 = vadd.f32 %v1171_v59, %v400_v56  ;;  %v1175_v0 = vadd.f32 %v1174_v62, %v1061_v60  ;;  %v1063_v1 = vpop.f32.mrf.mxu0  ;;  %v414_v62 = vld [vmem:[#allocation2 + $0xd0] sm:$0xff] }
 0x15b   : > { %v1176_v3 = vpop.f32.mrf.mxu1 }
 0x15c   : > { %1266 = vst [vmem:[#allocation2 + $0xb8] sm:$0xff] %v1234_v63  ;;  %v1235_v4 = vadd.f32 %v1175_v0, %v401_v61  ;;  %v1177_v5 = vadd.f32 %v1176_v3, %v1063_v1  ;;  %v1065_v6 = vpop.f32.mrf.mxu0  ;;  %v415_v3 = vld [vmem:[#allocation2 + $0x10] sm:$0xff] }
 0x15d   : > { %v1178_v8 = vpop.f32.mrf.mxu1 }
 0x15e   : > { %1267 = vst [vmem:[#allocation2 + $0x60] sm:$0xff] %v1235_v4  ;;  %v1236_v9 = vadd.f32 %v1177_v5, %v402_v2  ;;  %v1179_v10 = vadd.f32 %v1178_v8, %v1065_v6  ;;  %v1067_v11 = vpop.f32.mrf.mxu0  ;;  %v416_v8 = vld [vmem:[#allocation2 + $0x28] sm:$0xff] }
 0x15f   : > { %v1180_v13 = vpop.f32.mrf.mxu1 }
 0x160   : > { %1268 = vst [vmem:[#allocation2 + $0xf0] sm:$0xff] %v1236_v9  ;;  %v1237_v14 = vadd.f32 %v1179_v10, %v403_v7  ;;  %v1181_v15 = vadd.f32 %v1180_v13, %v1067_v11  ;;  %v1071_v16 = vpop.f32.mrf.mxu0  ;;  %v417_v13 = vld [vmem:[#allocation2 + $0xa0] sm:$0xff] }
 0x161   : > { %v1184_v18 = vpop.f32.mrf.mxu1 }
 0x162   : > { %1269 = vst [vmem:[#allocation2 + $0x8] sm:$0xff] %v1237_v14  ;;  %v1238_v19 = vadd.f32 %v1181_v15, %v404_v12  ;;  %v1185_v20 = vadd.f32 %v1184_v18, %v1071_v16  ;;  %v1073_v21 = vpop.f32.mrf.mxu0  ;;  %v418_v18 = vld [vmem:[#allocation2 + $0xf8] sm:$0xff] }
 0x163   : > { %v1186_v23 = vpop.f32.mrf.mxu1 }
 0x164   : > { %1270 = vst [vmem:[#allocation2 + $0x78] sm:$0xff] %v1238_v19  ;;  %v1239_v24 = vadd.f32 %v1185_v20, %v405_v17  ;;  %v1187_v25 = vadd.f32 %v1186_v23, %v1073_v21  ;;  %v1075_v26 = vpop.f32.mrf.mxu0  ;;  %v419_v23 = vld [vmem:[#allocation2 + $0x20] sm:$0xff] }
 0x165   : > { %v1188_v28 = vpop.f32.mrf.mxu1 }
 0x166   : > { %1271 = vst [vmem:[#allocation2 + $0x38] sm:$0xff] %v1239_v24  ;;  %v1240_v29 = vadd.f32 %v1187_v25, %v406_v22  ;;  %v1189_v30 = vadd.f32 %v1188_v28, %v1075_v26  ;;  %v1077_v31 = vpop.f32.mrf.mxu0  ;;  %v420_v28 = vld [vmem:[#allocation2 + $0x98] sm:$0xff] }
 0x167   : > { %v1190_v33 = vpop.f32.mrf.mxu1 }
 0x168   : > { %1272 = vst [vmem:[#allocation2 + $0x58] sm:$0xff] %v1240_v29  ;;  %v1241_v34 = vadd.f32 %v1189_v30, %v407_v27  ;;  %v1191_v35 = vadd.f32 %v1190_v33, %v1077_v31  ;;  %v1081_v36 = vpop.f32.mrf.mxu0 }
 0x169   : > { %v1194_v38 = vpop.f32.mrf.mxu1 }
 0x16a   : > { %1273 = vst [vmem:[#allocation2 + $0x40] sm:$0xff] %v1241_v34  ;;  %v1242_v39 = vadd.f32 %v1191_v35, %v408_v32  ;;  %v1195_v40 = vadd.f32 %v1194_v38, %v1081_v36  ;;  %v1083_v41 = vpop.f32.mrf.mxu0 }
 0x16b   : > { %v1196_v43 = vpop.f32.mrf.mxu1 }
 0x16c   : > { %1274 = vst [vmem:[#allocation2 + $0xc8] sm:$0xff] %v1242_v39  ;;  %v1243_v44 = vadd.f32 %v1195_v40, %v409_v37  ;;  %v1197_v45 = vadd.f32 %v1196_v43, %v1083_v41  ;;  %v1085_v46 = vpop.f32.mrf.mxu0 }
 0x16d   : > { %v1198_v48 = vpop.f32.mrf.mxu1 }
 0x16e   : > { %1275 = vst [vmem:[#allocation2 + $0xe0] sm:$0xff] %v1243_v44  ;;  %v1244_v49 = vadd.f32 %v1197_v45, %v410_v42  ;;  %v1199_v50 = vadd.f32 %v1198_v48, %v1085_v46  ;;  %v1087_v51 = vpop.f32.mrf.mxu0 }
 0x16f   : > { %v1200_v53 = vpop.f32.mrf.mxu1 }
 0x170   : > { %1276 = vst [vmem:[#allocation2 + $0x90] sm:$0xff] %v1244_v49  ;;  %v1245_v54 = vadd.f32 %v1199_v50, %v411_v47  ;;  %v1201_v55 = vadd.f32 %v1200_v53, %v1087_v51  ;;  %v1091_v56 = vpop.f32.mrf.mxu0 }
 0x171   : > { %v1204_v58 = vpop.f32.mrf.mxu1 }
 0x172   : > { %1277 = vst [vmem:[#allocation2 + $0x70] sm:$0xff] %v1245_v54  ;;  %v1246_v59 = vadd.f32 %v1201_v55, %v412_v52  ;;  %v1205_v60 = vadd.f32 %v1204_v58, %v1091_v56  ;;  %v1093_v61 = vpop.f32.mrf.mxu0 }
 0x173   : > { %v1206_v63 = vpop.f32.mrf.mxu1 }
 0x174   : > { %1278 = vst [vmem:[#allocation2 + $0xc0] sm:$0xff] %v1246_v59  ;;  %v1247_v0 = vadd.f32 %v1205_v60, %v413_v57  ;;  %v1207_v1 = vadd.f32 %v1206_v63, %v1093_v61  ;;  %v1095_v2 = vpop.f32.mrf.mxu0 }
 0x175   : > { %v1208_v4 = vpop.f32.mrf.mxu1 }
 0x176   : > { %1279 = vst [vmem:[#allocation2 + $0xa8] sm:$0xff] %v1247_v0  ;;  %v1248_v5 = vadd.f32 %v1207_v1, %v414_v62  ;;  %v1209_v6 = vadd.f32 %v1208_v4, %v1095_v2  ;;  %v1097_v7 = vpop.f32.mrf.mxu0 }
 0x177   : > { %v1210_v9 = vpop.f32.mrf.mxu1 }
 0x178   : > { %1280 = vst [vmem:[#allocation2 + $0xd0] sm:$0xff] %v1248_v5  ;;  %v1249_v10 = vadd.f32 %v1209_v6, %v415_v3  ;;  %v1211_v11 = vadd.f32 %v1210_v9, %v1097_v7  ;;  %v1101_v12 = vpop.f32.mrf.mxu0 }
 0x179   : > { %v1214_v14 = vpop.f32.mrf.mxu1 }
 0x17a   : > { %1281 = vst [vmem:[#allocation2 + $0x10] sm:$0xff] %v1249_v10  ;;  %v1250_v15 = vadd.f32 %v1211_v11, %v416_v8  ;;  %v1215_v16 = vadd.f32 %v1214_v14, %v1101_v12  ;;  %v1103_v17 = vpop.f32.mrf.mxu0 }
 0x17b   : > { %v1216_v19 = vpop.f32.mrf.mxu1 }
 0x17c   : > { %1282 = vst [vmem:[#allocation2 + $0x28] sm:$0xff] %v1250_v15  ;;  %v1251_v20 = vadd.f32 %v1215_v16, %v417_v13  ;;  %v1217_v21 = vadd.f32 %v1216_v19, %v1103_v17  ;;  %v1105_v22 = vpop.f32.mrf.mxu0 }
 0x17d   : > { %v1218_v24 = vpop.f32.mrf.mxu1 }
 0x17e   : > { %1283 = vst [vmem:[#allocation2 + $0xa0] sm:$0xff] %v1251_v20  ;;  %v1252_v25 = vadd.f32 %v1217_v21, %v418_v18  ;;  %v1219_v26 = vadd.f32 %v1218_v24, %v1105_v22  ;;  %v1107_v27 = vpop.f32.mrf.mxu0 }
 0x17f   : > { %v1220_v29 = vpop.f32.mrf.mxu1 }
 0x180   : > { %1284 = vst [vmem:[#allocation2 + $0xf8] sm:$0xff] %v1252_v25  ;;  %v1253_v30 = vadd.f32 %v1219_v26, %v419_v23  ;;  %v1221_v31 = vadd.f32 %v1220_v29, %v1107_v27  ;;  %1290 = sbr.rel (%p1743_p11) target bundleno = 421 (0x1a5), region = 63 }
 0x182   : > { %1285 = vst [vmem:[#allocation2 + $0x20] sm:$0xff] %v1253_v30  ;;  %v1254_v32 = vadd.f32 %v1221_v31, %v420_v28 }
 0x184   : > { %1286 = vst [vmem:[#allocation2 + $0x98] sm:$0xff] %v1254_v32 }
 0x185   : > { %v1325_v33 = vlaneseq  ;;  %v1323_v35 = vld [vmem:[%s2352_s2] sm:$0x3]  ;;  %v1291_v36 = vld [vmem:[#allocation2 + $0xb0] sm:$0xff]  ;;  %v1293_v40 = vld [vmem:[#allocation2 + $0xd8] sm:$0xff] }
 0x186   : > { %v1292_v37 = vld [vmem:[#allocation2] sm:$0xff]  ;;  %v1294_v41 = vld [vmem:[#allocation2 + $0x18] sm:$0xff]  ;;  %v1295_v42 = vld [vmem:[#allocation2 + $0x50] sm:$0xff] }
 0x187   : > { %v1326_v34 = vshrl.u32 %v1325_v33, 7  ;;  %v1296_v45 = vld [vmem:[#allocation2 + $0x68] sm:$0xff]  ;;  %v1297_v46 = vld [vmem:[#allocation2 + $0x30] sm:$0xff]  ;;  %v1299_v56 = vld [vmem:[#allocation2 + $0x80] sm:$0xff] }
 0x188   : > { %v1298_v47 = vld [vmem:[#allocation2 + $0x48] sm:$0xff]  ;;  %v1302_v63 = vld [vmem:[#allocation2 + $0xb8] sm:$0xff]  ;;  %v1303_v4 = vld [vmem:[#allocation2 + $0x60] sm:$0xff] }
 0x189   : > { %v1327_v38 = vsub.s32 0, %v1326_v34  ;;  %v1331_v39 = vsub.s32 1, %v1326_v34  ;;  %v1300_v57 = vld [vmem:[#allocation2 + $0x88] sm:$0xff]  ;;  %v1304_v5 = vld [vmem:[#allocation2 + $0xf0] sm:$0xff]  ;;  %v1306_v11 = vld [vmem:[#allocation2 + $0x78] sm:$0xff] }
 0x18a   : > { %v1301_v62 = vld [vmem:[#allocation2 + $0xe8] sm:$0xff]  ;;  %v1307_v16 = vld [vmem:[#allocation2 + $0x38] sm:$0xff]  ;;  %v1309_v26 = vld [vmem:[#allocation2 + $0x40] sm:$0xff] }
 0x18b   : > { %v2251_v43 = vrot.slane %v1323_v35, %v1327_v38  ;;  %v2253_v44 = vrot.slane %v1323_v35, %v1331_v39  ;;  %v1305_v10 = vld [vmem:[#allocation2 + $0x8] sm:$0xff]  ;;  %v1308_v21 = vld [vmem:[#allocation2 + $0x58] sm:$0xff]  ;;  %v1311_v32 = vld [vmem:[#allocation2 + $0xe0] sm:$0xff] }
 0x18c   : > { %v1310_v27 = vld [vmem:[#allocation2 + $0xc8] sm:$0xff]  ;;  %v1312_v33 = vld [vmem:[#allocation2 + $0x90] sm:$0xff]  ;;  %v1314_v39 = vld [vmem:[#allocation2 + $0xc0] sm:$0xff] }
 0x18d   : > { %v1335_v48 = vadd.f32 %v2251_v43, %v1291_v36  ;;  %v1336_v49 = vadd.f32 %v2253_v44, %v1292_v37  ;;  %v1337_v50 = vadd.f32 %v2251_v43, %v1293_v40  ;;  %v1338_v51 = vadd.f32 %v2253_v44, %v1294_v41  ;;  %v1313_v38 = vld [vmem:[#allocation2 + $0x70] sm:$0xff] }
 0x18e   : > { %v1339_v52 = vadd.f32 %v2251_v43, %v1295_v42  ;;  %v1340_v53 = vadd.f32 %v2253_v44, %v1296_v45  ;;  %v1341_v54 = vadd.f32 %v2251_v43, %v1297_v46  ;;  %v1342_v55 = vadd.f32 %v2253_v44, %v1298_v47  ;;  %v1315_v46 = vld [vmem:[#allocation2 + $0xa8] sm:$0xff] }
 0x18f   : > { %v1367_v58 = vmax.f32 %v1335_v48, 0.0  ;;  %v1368_v59 = vmax.f32 %v1336_v49, 0.0  ;;  %v1369_v60 = vmax.f32 %v1337_v50, 0.0  ;;  %v1370_v61 = vmax.f32 %v1338_v51, 0.0  ;;  %v1316_v51 = vld [vmem:[#allocation2 + $0xd0] sm:$0xff] }
 0x190   : > { %v1371_v0 = vmax.f32 %v1339_v52, 0.0  ;;  %v1372_v1 = vmax.f32 %v1340_v53, 0.0  ;;  %v1373_v2 = vmax.f32 %v1341_v54, 0.0  ;;  %v1374_v3 = vmax.f32 %v1342_v55, 0.0 }
 0x191   : > { %v1766_v6 = vpack.c.bf16 %v1368_v59, %v1367_v58  ;;  %v1767_v7 = vpack.c.bf16 %v1370_v61, %v1369_v60  ;;  %v1343_v8 = vadd.f32 %v2251_v43, %v1299_v56  ;;  %v1344_v9 = vadd.f32 %v2253_v44, %v1300_v57  ;;  %v1317_v56 = vld [vmem:[#allocation2 + $0x10] sm:$0xff]  ;;  %v1318_v57 = vld [vmem:[#allocation2 + $0x28] sm:$0xff] }
 0x192   : > { %v1768_v12 = vpack.c.bf16 %v1372_v1, %v1371_v0  ;;  %v1769_v13 = vpack.c.bf16 %v1374_v3, %v1373_v2  ;;  %v1345_v14 = vadd.f32 %v2251_v43, %v1301_v62  ;;  %v1346_v15 = vadd.f32 %v2253_v44, %v1302_v63  ;;  %v1319_v62 = vld [vmem:[#allocation2 + $0xa0] sm:$0xff]  ;;  %v1320_v63 = vld [vmem:[#allocation2 + $0xf8] sm:$0xff] }
 0x193   : > { %1495 = vst [vmem:[%s2353_s3] sm:$0xff] %v1766_v6  ;;  %1496 = vst [vmem:[%s2353_s3 + $0x8] sm:$0xff] %v1767_v7  ;;  %v1375_v17 = vmax.f32 %v1343_v8, 0.0  ;;  %v1376_v18 = vmax.f32 %v1344_v9, 0.0  ;;  %v1347_v19 = vadd.f32 %v2251_v43, %v1303_v4  ;;  %v1348_v20 = vadd.f32 %v2253_v44, %v1304_v5  ;;  %v1321_v4 = vld [vmem:[#allocation2 + $0x20] sm:$0xff]  ;;  %v1322_v5 = vld [vmem:[#allocation2 + $0x98] sm:$0xff] }
 0x194   : > { %1497 = vst [vmem:[%s2353_s3 + $0x10] sm:$0xff] %v1768_v12  ;;  %1498 = vst [vmem:[%s2353_s3 + $0x18] sm:$0xff] %v1769_v13  ;;  %v1377_v22 = vmax.f32 %v1345_v14, 0.0  ;;  %v1378_v23 = vmax.f32 %v1346_v15, 0.0  ;;  %v1349_v24 = vadd.f32 %v2251_v43, %v1305_v10  ;;  %v1350_v25 = vadd.f32 %v2253_v44, %v1306_v11 }
 0x195   : > { %v1770_v28 = vpack.c.bf16 %v1376_v18, %v1375_v17  ;;  %v1379_v29 = vmax.f32 %v1347_v19, 0.0  ;;  %v1380_v30 = vmax.f32 %v1348_v20, 0.0  ;;  %v1351_v31 = vadd.f32 %v2251_v43, %v1307_v16 }
 0x196   : > { %v1771_v34 = vpack.c.bf16 %v1378_v23, %v1377_v22  ;;  %v1381_v35 = vmax.f32 %v1349_v24, 0.0  ;;  %v1382_v36 = vmax.f32 %v1350_v25, 0.0  ;;  %v1352_v37 = vadd.f32 %v2253_v44, %v1308_v21 }
 0x197   : > { %1499 = vst [vmem:[%s2353_s3 + $0x20] sm:$0xff] %v1770_v28  ;;  %v1772_v40 = vpack.c.bf16 %v1380_v30, %v1379_v29  ;;  %v1383_v41 = vmax.f32 %v1351_v31, 0.0  ;;  %v1353_v42 = vadd.f32 %v2251_v43, %v1309_v26  ;;  %v1354_v45 = vadd.f32 %v2253_v44, %v1310_v27 }
 0x198   : > { %1500 = vst [vmem:[%s2353_s3 + $0x28] sm:$0xff] %v1771_v34  ;;  %v1773_v47 = vpack.c.bf16 %v1382_v36, %v1381_v35  ;;  %v1384_v48 = vmax.f32 %v1352_v37, 0.0  ;;  %v1355_v49 = vadd.f32 %v2251_v43, %v1311_v32  ;;  %v1356_v50 = vadd.f32 %v2253_v44, %v1312_v33 }
 0x199   : > { %1501 = vst [vmem:[%s2353_s3 + $0x30] sm:$0xff] %v1772_v40  ;;  %v1385_v52 = vmax.f32 %v1353_v42, 0.0  ;;  %v1386_v53 = vmax.f32 %v1354_v45, 0.0  ;;  %v1357_v54 = vadd.f32 %v2251_v43, %v1313_v38  ;;  %v1358_v55 = vadd.f32 %v2253_v44, %v1314_v39 }
 0x19a   : > { %1502 = vst [vmem:[%s2353_s3 + $0x38] sm:$0xff] %v1773_v47  ;;  %v1774_v58 = vpack.c.bf16 %v1384_v48, %v1383_v41  ;;  %v1387_v59 = vmax.f32 %v1355_v49, 0.0  ;;  %v1388_v60 = vmax.f32 %v1356_v50, 0.0  ;;  %v1359_v61 = vadd.f32 %v2251_v43, %v1315_v46 }
 0x19b   : > { %v1775_v0 = vpack.c.bf16 %v1386_v53, %v1385_v52  ;;  %v1389_v1 = vmax.f32 %v1357_v54, 0.0  ;;  %v1390_v2 = vmax.f32 %v1358_v55, 0.0  ;;  %v1360_v3 = vadd.f32 %v2253_v44, %v1316_v51 }
 0x19c   : > { %1503 = vst [vmem:[%s2353_s3 + $0x40] sm:$0xff] %v1774_v58  ;;  %v1776_v6 = vpack.c.bf16 %v1388_v60, %v1387_v59  ;;  %v1391_v7 = vmax.f32 %v1359_v61, 0.0  ;;  %v1361_v8 = vadd.f32 %v2251_v43, %v1317_v56  ;;  %v1362_v9 = vadd.f32 %v2253_v44, %v1318_v57 }
 0x19d   : > { %1504 = vst [vmem:[%s2353_s3 + $0x48] sm:$0xff] %v1775_v0  ;;  %v1777_v10 = vpack.c.bf16 %v1390_v2, %v1389_v1  ;;  %v1392_v11 = vmax.f32 %v1360_v3, 0.0  ;;  %v1363_v12 = vadd.f32 %v2251_v43, %v1319_v62  ;;  %v1364_v13 = vadd.f32 %v2253_v44, %v1320_v63 }
 0x19e   : > { %1505 = vst [vmem:[%s2353_s3 + $0x50] sm:$0xff] %v1776_v6  ;;  %v1393_v14 = vmax.f32 %v1361_v8, 0.0  ;;  %v1394_v15 = vmax.f32 %v1362_v9, 0.0  ;;  %v1365_v16 = vadd.f32 %v2251_v43, %v1321_v4  ;;  %v1366_v17 = vadd.f32 %v2253_v44, %v1322_v5 }
 0x19f   : > { %1506 = vst [vmem:[%s2353_s3 + $0x58] sm:$0xff] %v1777_v10  ;;  %v1778_v18 = vpack.c.bf16 %v1392_v11, %v1391_v7  ;;  %v1395_v19 = vmax.f32 %v1363_v12, 0.0  ;;  %v1396_v20 = vmax.f32 %v1364_v13, 0.0 }
 0x1a0   : > { %v1779_v21 = vpack.c.bf16 %v1394_v15, %v1393_v14  ;;  %v1397_v22 = vmax.f32 %v1365_v16, 0.0  ;;  %v1398_v23 = vmax.f32 %v1366_v17, 0.0 }
 0x1a1   : > { %1507 = vst [vmem:[%s2353_s3 + $0x60] sm:$0xff] %v1778_v18  ;;  %v1780_v24 = vpack.c.bf16 %v1396_v20, %v1395_v19 }
 0x1a2   : > { %1508 = vst [vmem:[%s2353_s3 + $0x68] sm:$0xff] %v1779_v21  ;;  %v1781_v43 = vpack.c.bf16 %v1398_v23, %v1397_v22 }
 0x1a3   : > { %1509 = vst [vmem:[%s2353_s3 + $0x70] sm:$0xff] %v1780_v24 }
 0x1a4   : > { %1510 = vst [vmem:[%s2353_s3 + $0x78] sm:$0xff] %v1781_v43 }
 0x1a5 PF: > { %s13_s16 = sadd.s32 1, %s2005_s16   ;;  %s2354_s12 = smov %s1993_s13 }
 0x1a6   : > { %p10_p12 = scmp.ge.s32.totalorder %s13_s16, 7   ;;  %s2355_s13 = smov %s2063_s20 }
 0x1a7   : > { %s2356_s14 = smov %s2001_s15  ;;  %s2357_s15 = smov %s2359_s17 }
 0x1a8   :  { %12 = sbr.rel (!%p10_p12) target bundleno = 3 (0x3), region = 104 }

// kernel: model_forward.51
= control target key start
LH: loop header
LB: loop body
LE: loop exit
PB: predicated region body
PF: predicated region fallthrough
CT: control target
= control target key end

     0   :  { %s923_s1 = inlined_call_operand.vmem [shape: bf16[256,128], index: 1, kind: input, shape index: {}]   ;;  %s924_s0 = inlined_call_operand.vmem [shape: bf16[128,256], index: 0, kind: input, shape index: {}]   ;;  %s925_s2 = inlined_call_operand.vmem [shape: f32[1,128], index: 2, kind: input, shape index: {}]   ;;  %s926_s3 = inlined_call_operand.vmem [shape: bf16[128,128], index: 3, kind: output, shape index: {}]  }
   0x1   :  { %v722_v0 = vld [vmem:[%s923_s1 + $0x78] sm:$0xff]   ;;  %v724_v2 = vld [vmem:[%s923_s1 + $0x70] sm:$0xff]   ;;  %v726_v4 = vld [vmem:[%s923_s1 + $0x68] sm:$0xff]  }
   0x2   :  { %v723_v1 = vld [vmem:[%s923_s1 + $0x38] sm:$0xff]   ;;  %642 = vmatprep.subr.bf16.mxu0 %v722_v0  ;;  %706 = vmatprep.subr.bf16.mxu1 %v722_v0  ;;  %v725_v3 = vld [vmem:[%s923_s1 + $0x30] sm:$0xff]   ;;  %v727_v5 = vld [vmem:[%s923_s1 + $0x28] sm:$0xff]  }
   0x3   :  { %643 = vmatpush3.bf16.msra.mxu0 %v723_v1  ;;  %714 = vmatpush3.bf16.msra.mxu1 %v723_v1  ;;  %v728_v6 = vld [vmem:[%s923_s1 + $0x60] sm:$0xff]   ;;  %v730_v8 = vld [vmem:[%s923_s1 + $0x58] sm:$0xff]   ;;  %v732_v10 = vld [vmem:[%s923_s1 + $0x50] sm:$0xff]  }
   0x4   :  { %644 = vmatprep.subr.bf16.mxu0 %v724_v2  ;;  %707 = vmatprep.subr.bf16.mxu1 %v724_v2  ;;  %v729_v7 = vld [vmem:[%s923_s1 + $0x20] sm:$0xff]   ;;  %v731_v9 = vld [vmem:[%s923_s1 + $0x18] sm:$0xff]   ;;  %v733_v13 = vld [vmem:[%s923_s1 + $0x10] sm:$0xff]  }
   0x5   :  { %v740_v11 = vld [vmem:[%s924_s0 + $0x4] ss:$8 sps:$4 sm:$0xff]   ;;  %v738_v18 = vld [vmem:[%s924_s0] ss:$8 sps:$4 sm:$0xff]   ;;  %v744_v20 = vld [vmem:[%s924_s0 + $0x14] ss:$8 sps:$4 sm:$0xff]  }
   0x6   :  { %v743_v12 = vld [vmem:[%s924_s0 + $0x44] ss:$8 sps:$4 sm:$0xff]   ;;  %307 = vmatprep.mubr.bf16.mxu0 %v740_v11  ;;  %v741_v19 = vld [vmem:[%s924_s0 + $0x40] ss:$8 sps:$4 sm:$0xff]   ;;  %v746_v21 = vld [vmem:[%s924_s0 + $0x54] ss:$8 sps:$4 sm:$0xff]  }
   0x7   :  { %645 = vmatpush3.bf16.msra.mxu0 %v725_v3  ;;  %715 = vmatpush3.bf16.msra.mxu1 %v725_v3  ;;  %v734_v14 = vld [vmem:[%s923_s1 + $0x48] sm:$0xff]   ;;  %v736_v16 = vld [vmem:[%s923_s1 + $0x40] sm:$0xff]   ;;  %v748_v22 = vld [vmem:[%s924_s0 + $0x10] ss:$8 sps:$4 sm:$0xff]  }
   0x8   :  { %646 = vmatprep.subr.bf16.mxu0 %v726_v4  ;;  %708 = vmatprep.subr.bf16.mxu1 %v726_v4  ;;  %v735_v15 = vld [vmem:[%s923_s1 + $0x8] sm:$0xff]   ;;  %v737_v17 = vld [vmem:[%s923_s1] sm:$0xff]   ;;  %v749_v23 = vld [vmem:[%s924_s0 + $0x50] ss:$8 sps:$4 sm:$0xff]  }
   0x9   :  { %339 = vmatprep.mubr.bf16.mxu1 %v743_v12  ;;  %v750_v24 = vld [vmem:[%s924_s0 + $0x24] ss:$8 sps:$4 sm:$0xff]   ;;  %v754_v26 = vld [vmem:[%s924_s0 + $0x20] ss:$8 sps:$4 sm:$0xff]   ;;  %v756_v28 = vld [vmem:[%s924_s0 + $0x34] ss:$8 sps:$4 sm:$0xff]  }
   0xa   :  { %v752_v25 = vld [vmem:[%s924_s0 + $0x64] ss:$8 sps:$4 sm:$0xff]   ;;  %v755_v27 = vld [vmem:[%s924_s0 + $0x60] ss:$8 sps:$4 sm:$0xff]   ;;  %v758_v29 = vld [vmem:[%s924_s0 + $0x74] ss:$8 sps:$4 sm:$0xff]  }
   0xb   :  { %647 = vmatpush3.bf16.msra.mxu0 %v727_v5  ;;  %716 = vmatpush3.bf16.msra.mxu1 %v727_v5  ;;  %v760_v30 = vld [vmem:[%s924_s0 + $0x30] ss:$8 sps:$4 sm:$0xff]   ;;  %v881_v40 = vld [vmem:[%s925_s2] ss:$0 sm:$0xff] }
   0xc   :  { %648 = vmatprep.subr.bf16.mxu0 %v728_v6  ;;  %709 = vmatprep.subr.bf16.mxu1 %v728_v6  ;;  %v761_v31 = vld [vmem:[%s924_s0 + $0x70] ss:$8 sps:$4 sm:$0xff]  }
   0xf   :  { %649 = vmatpush3.bf16.msra.mxu0 %v729_v7  ;;  %717 = vmatpush3.bf16.msra.mxu1 %v729_v7 }
  0x10   :  { %650 = vmatprep.subr.bf16.mxu0 %v730_v8  ;;  %710 = vmatprep.subr.bf16.mxu1 %v730_v8 }
  0x13   :  { %651 = vmatpush3.bf16.msra.mxu0 %v731_v9  ;;  %718 = vmatpush3.bf16.msra.mxu1 %v731_v9 }
  0x14   :  { %652 = vmatprep.subr.bf16.mxu0 %v732_v10  ;;  %711 = vmatprep.subr.bf16.mxu1 %v732_v10 }
  0x17   :  { %653 = vmatpush3.bf16.msra.mxu0 %v733_v13  ;;  %719 = vmatpush3.bf16.msra.mxu1 %v733_v13 }
  0x18   :  { %654 = vmatprep.subr.bf16.mxu0 %v734_v14  ;;  %712 = vmatprep.subr.bf16.mxu1 %v734_v14 }
  0x1b   :  { %655 = vmatpush3.bf16.msra.mxu0 %v735_v15  ;;  %720 = vmatpush3.bf16.msra.mxu1 %v735_v15 }
  0x1c   :  { %656 = vmatprep.subr.bf16.mxu0 %v736_v16  ;;  %713 = vmatprep.subr.bf16.mxu1 %v736_v16 }
  0x1f   :  { %657 = vmatpush3.bf16.msra.mxu0 %v737_v17  ;;  %721 = vmatpush3.bf16.msra.mxu1 %v737_v17 }
  0x22   :  { %308 = vmatmul.mubr.bf16.vlgmr.msra.gmra.mxu0 %v738_v18  ;;  %340 = vmatmul.mubr.bf16.vlgmr.msra.gmra.mxu1 %v741_v19 }
  0x23   :  { %315 = vmatprep.mubr.bf16.mxu0 %v744_v20  ;;  %347 = vmatprep.mubr.bf16.mxu1 %v746_v21 }
  0x2a   :  { %316 = vmatmul.mubr.bf16.gmra.mxu0 %v748_v22  ;;  %348 = vmatmul.mubr.bf16.gmra.mxu1 %v749_v23 }
  0x2b   :  { %323 = vmatprep.mubr.bf16.mxu0 %v750_v24  ;;  %355 = vmatprep.mubr.bf16.mxu1 %v752_v25 }
  0x32   :  { %324 = vmatmul.mubr.bf16.gmra.mxu0 %v754_v26  ;;  %356 = vmatmul.mubr.bf16.gmra.mxu1 %v755_v27 }
  0x33   :  { %331 = vmatprep.mubr.bf16.mxu0 %v756_v28  ;;  %363 = vmatprep.mubr.bf16.mxu1 %v758_v29 }
  0x3a   :  { %332 = vmatmul.mubr.bf16.gmra.mxu0 %v760_v30  ;;  %364 = vmatmul.mubr.bf16.gmra.mxu1 %v761_v31 }
  0xe2   :  { %v658_v32 = vpop.f32.mrf.mxu0  ;;  %v682_v33 = vpop.f32.mrf.mxu1 }
  0xe4   :  { %v659_v34 = vpop.f32.mrf.mxu0  ;;  %v683_v35 = vpop.f32.mrf.mxu1 }
  0xe5   :  { %v660_v38 = vadd.f32 %v659_v34, %v658_v32  ;;  %v684_v39 = vadd.f32 %v683_v35, %v682_v33 }
  0xe6   :  { %v661_v36 = vpop.f32.mrf.mxu0  ;;  %v685_v37 = vpop.f32.mrf.mxu1 }
  0xe7   :  { %v430_v47 = vadd.f32 %v660_v38, %v881_v40  ;;  %v438_v48 = vadd.f32 %v684_v39, %v881_v40 }
  0xe8   :  { %v662_v41 = vpop.f32.mrf.mxu0  ;;  %v686_v42 = vpop.f32.mrf.mxu1 }
  0xe9   :  { %v663_v43 = vadd.f32 %v662_v41, %v661_v36  ;;  %v687_v44 = vadd.f32 %v686_v42, %v685_v37 }
  0xea   :  { %v664_v45 = vpop.f32.mrf.mxu0  ;;  %v688_v46 = vpop.f32.mrf.mxu1 }
  0xeb   :  { %v431_v49 = vadd.f32 %v663_v43, %v881_v40  ;;  %v439_v50 = vadd.f32 %v687_v44, %v881_v40 }
  0xec   :  { %v665_v51 = vpop.f32.mrf.mxu0  ;;  %v689_v52 = vpop.f32.mrf.mxu1 }
  0xed   :  { %v598_v53 = vpack.c.bf16 %v431_v49, %v430_v47  ;;  %v618_v54 = vpack.c.bf16 %v439_v50, %v438_v48  ;;  %v666_v57 = vadd.f32 %v665_v51, %v664_v45  ;;  %v690_v58 = vadd.f32 %v689_v52, %v688_v46 }
  0xee   :  { %v667_v55 = vpop.f32.mrf.mxu0  ;;  %v691_v56 = vpop.f32.mrf.mxu1 }
  0xef   :  { %599 = vst [vmem:[%s926_s3] sm:$0xff] %v598_v53   ;;  %638 = vst [vmem:[%s926_s3 + $0x20] sm:$0xff] %v618_v54   ;;  %v432_v1 = vadd.f32 %v666_v57, %v881_v40  ;;  %v440_v2 = vadd.f32 %v690_v58, %v881_v40 }
  0xf0   :  { %v668_v59 = vpop.f32.mrf.mxu0  ;;  %v692_v60 = vpop.f32.mrf.mxu1 }
  0xf1   :  { %v669_v61 = vadd.f32 %v668_v59, %v667_v55  ;;  %v693_v62 = vadd.f32 %v692_v60, %v691_v56 }
  0xf2   :  { %v670_v63 = vpop.f32.mrf.mxu0  ;;  %v694_v0 = vpop.f32.mrf.mxu1 }
  0xf3   :  { %v433_v3 = vadd.f32 %v669_v61, %v881_v40  ;;  %v441_v4 = vadd.f32 %v693_v62, %v881_v40 }
  0xf4   :  { %v671_v5 = vpop.f32.mrf.mxu0  ;;  %v695_v6 = vpop.f32.mrf.mxu1 }
  0xf5   :  { %v603_v7 = vpack.c.bf16 %v433_v3, %v432_v1  ;;  %v623_v8 = vpack.c.bf16 %v441_v4, %v440_v2  ;;  %v672_v11 = vadd.f32 %v671_v5, %v670_v63  ;;  %v696_v12 = vadd.f32 %v695_v6, %v694_v0 }
  0xf6   :  { %v673_v9 = vpop.f32.mrf.mxu0  ;;  %v697_v10 = vpop.f32.mrf.mxu1 }
  0xf7   :  { %635 = vst [vmem:[%s926_s3 + $0x8] sm:$0xff] %v603_v7   ;;  %639 = vst [vmem:[%s926_s3 + $0x28] sm:$0xff] %v623_v8   ;;  %v434_v19 = vadd.f32 %v672_v11, %v881_v40  ;;  %v442_v20 = vadd.f32 %v696_v12, %v881_v40 }
  0xf8   :  { %v674_v13 = vpop.f32.mrf.mxu0  ;;  %v698_v14 = vpop.f32.mrf.mxu1 }
  0xf9   :  { %v675_v15 = vadd.f32 %v674_v13, %v673_v9  ;;  %v699_v16 = vadd.f32 %v698_v14, %v697_v10 }
  0xfa   :  { %v676_v17 = vpop.f32.mrf.mxu0  ;;  %v700_v18 = vpop.f32.mrf.mxu1 }
  0xfb   :  { %v435_v21 = vadd.f32 %v675_v15, %v881_v40  ;;  %v443_v22 = vadd.f32 %v699_v16, %v881_v40 }
  0xfc   :  { %v677_v23 = vpop.f32.mrf.mxu0  ;;  %v701_v24 = vpop.f32.mrf.mxu1 }
  0xfd   :  { %v608_v25 = vpack.c.bf16 %v435_v21, %v434_v19  ;;  %v628_v26 = vpack.c.bf16 %v443_v22, %v442_v20  ;;  %v678_v29 = vadd.f32 %v677_v23, %v676_v17  ;;  %v702_v30 = vadd.f32 %v701_v24, %v700_v18 }
  0xfe   :  { %v679_v27 = vpop.f32.mrf.mxu0  ;;  %v703_v28 = vpop.f32.mrf.mxu1 }
  0xff   :  { %636 = vst [vmem:[%s926_s3 + $0x10] sm:$0xff] %v608_v25   ;;  %640 = vst [vmem:[%s926_s3 + $0x30] sm:$0xff] %v628_v26   ;;  %v436_v35 = vadd.f32 %v678_v29, %v881_v40  ;;  %v444_v36 = vadd.f32 %v702_v30, %v881_v40 }
 0x100   :  { %v680_v31 = vpop.f32.mrf.mxu0  ;;  %v704_v32 = vpop.f32.mrf.mxu1 }
 0x101   :  { %v681_v33 = vadd.f32 %v680_v31, %v679_v27  ;;  %v705_v34 = vadd.f32 %v704_v32, %v703_v28 }
 0x103   :  { %v437_v37 = vadd.f32 %v681_v33, %v881_v40  ;;  %v445_v38 = vadd.f32 %v705_v34, %v881_v40 }
 0x105   :  { %v613_v39 = vpack.c.bf16 %v437_v37, %v436_v35  ;;  %v633_v41 = vpack.c.bf16 %v445_v38, %v444_v36 }
 0x107   :  { %637 = vst [vmem:[%s926_s3 + $0x18] sm:$0xff] %v613_v39   ;;  %641 = vst [vmem:[%s926_s3 + $0x38] sm:$0xff] %v633_v41  }

// kernel: model_forward.48
= control target key start
LH: loop header
LB: loop body
LE: loop exit
PB: predicated region body
PF: predicated region fallthrough
CT: control target
= control target key end

     0   :  { %s3472_s15 = smov 0   ;;  %s3474_s16 = smov 0   ;;  %s4112_s0 = inlined_call_operand.vmem [shape: bf16[128,2560], index: 0, kind: input, shape index: {}]   ;;  %s4113_s1 = inlined_call_operand.vmem [shape: bf16[2560,256], index: 1, kind: input, shape index: {}]   ;;  %s4114_s2 = inlined_call_operand.vmem [shape: bf16[2560,256], index: 2, kind: input, shape index: {}]   ;;  %s4115_s3 = inlined_call_operand.vmem [shape: bf16[128,256], index: 3, kind: input, shape index: {}]   ;;  %s4116_s4 = inlined_call_operand.vmem [shape: bf16[128,256], index: 4, kind: output, shape index: {}]  }
   0x1   :  { %s3476_s17 = smov 0   ;;  %s3478_s18 = smov 0  }
   0x2   :  { %s3480_s19 = smov 0  }
   0x3 LB: > { %s26_s20 = sadd.s32 1, %s3440_s18  ;;  %p49_p1 = scmp.ne.s32.totalorder %s3432_s16, %s3428_s15  ;;  %s3444_s19 = sphi %s3480_s19, %s14_s19   ;;  %s3440_s18 = sphi %s3478_s18, %s4120_s18   ;;  %s3436_s17 = sphi %s3476_s17, %s4119_s17   ;;  %s3432_s16 = sphi %s3474_s16, %s4118_s16   ;;  %s3428_s15 = sphi %s3472_s15, %s4117_s15  }
   0x4   : > { %p27_p0 = scmp.ge.s32.totalorder %s26_s20, 5  ;;  %p50_p2 = scmp.eq.s32.totalorder %s3444_s19, 0 }
   0x5   : > { %s42_s22 = sadd.s32 1, %s3432_s16  ;;  %p2752_p5 = scmp.ge.s32.totalorder %s3444_s19, 5 }
   0x6   : > { %s4122_s20 = smov (%p27_p0, %s26_s20), 0  ;;  %p51_p3 = por %p50_p2, %p49_p1 }
   0x7   : > { %s38_s21 = ssub.s32 %s3440_s18, %s4122_s20  ;;  %202 = sbr.rel (%p2752_p5) target bundleno = 32 (0x20), region = 20 }
   0x8   : > { %p40_p4 = scmp.eq.s32.totalorder %s38_s21, 0 }
   0xa   : > { %s3507_s23 = scalar_select %p40_p4, %s3432_s16, %s42_s22  }
   0xc   : > { %205 = sbr.rel (!%p51_p3) target bundleno = 32 (0x20), region = 24  ;;  %s207_s24 = sand.u32 (%p51_p3), 1, %s3432_s16  }
   0xd   : > { %s2978_s25 = sshll.u32 (%p51_p3), %s3440_s18, 4  ;;  %s2753_s26 = sshll.u32 (%p51_p3), %s207_s24, 8 }
   0xe   : > { %s3515_s29 = scalar_lea.vmem (%p51_p3), %s4112_s0, %s2978_s25  ;;  %s3520_s30 = scalar_lea.vmem (%p51_p3), [#allocation4], %s2753_s26 }
   0xf   : > { %v228_v0 = vld [vmem:[%s3515_s29] sm:$0xff] (%p51_p3)  ;;  %v230_v1 = vld [vmem:[%s3515_s29 + $0x8] sm:$0xff] (%p51_p3)  ;;  %v232_v2 = vld [vmem:[%s3515_s29 + $0x50] sm:$0xff] (%p51_p3) }
  0x10   : > { %229 = vst [vmem:[%s3520_s30] sm:$0xff] (%p51_p3), %v228_v0  ;;  %231 = vst [vmem:[%s3520_s30 + $0x8] sm:$0xff] (%p51_p3), %v230_v1  ;;  %v234_v3 = vld [vmem:[%s3515_s29 + $0x58] sm:$0xff] (%p51_p3)  ;;  %v236_v4 = vld [vmem:[%s3515_s29 + $0xa0] sm:$0xff] (%p51_p3) }
  0x11   : > { %233 = vst [vmem:[%s3520_s30 + $0x10] sm:$0xff] %v232_v2  ;;  %v238_v5 = vld [vmem:[%s3515_s29 + $0xa8] sm:$0xff]  ;;  %235 = vst [vmem:[%s3520_s30 + $0x18] sm:$0xff] %v234_v3  ;;  %v240_v6 = vld [vmem:[%s3515_s29 + $0xf0] sm:$0xff] }
  0x12   : > { %237 = vst [vmem:[%s3520_s30 + $0x20] sm:$0xff] %v236_v4  ;;  %239 = vst [vmem:[%s3520_s30 + $0x28] sm:$0xff] %v238_v5  ;;  %v242_v7 = vld [vmem:[%s3515_s29 + $0xf8] sm:$0xff]  ;;  %v244_v8 = vld [vmem:[%s3515_s29 + $0x140] sm:$0xff] }
  0x13   : > { %241 = vst [vmem:[%s3520_s30 + $0x30] sm:$0xff] %v240_v6  ;;  %243 = vst [vmem:[%s3520_s30 + $0x38] sm:$0xff] %v242_v7  ;;  %v246_v9 = vld [vmem:[%s3515_s29 + $0x148] sm:$0xff]  ;;  %v248_v10 = vld [vmem:[%s3515_s29 + $0x190] sm:$0xff] }
  0x14   : > { %245 = vst [vmem:[%s3520_s30 + $0x40] sm:$0xff] %v244_v8  ;;  %v250_v11 = vld [vmem:[%s3515_s29 + $0x198] sm:$0xff]  ;;  %247 = vst [vmem:[%s3520_s30 + $0x48] sm:$0xff] %v246_v9  ;;  %v252_v12 = vld [vmem:[%s3515_s29 + $0x1e0] sm:$0xff] }
  0x15   : > { %249 = vst [vmem:[%s3520_s30 + $0x50] sm:$0xff] %v248_v10  ;;  %251 = vst [vmem:[%s3520_s30 + $0x58] sm:$0xff] %v250_v11  ;;  %v254_v13 = vld [vmem:[%s3515_s29 + $0x1e8] sm:$0xff]  ;;  %v256_v14 = vld [vmem:[%s3515_s29 + $0x230] sm:$0xff] }
  0x16   : > { %253 = vst [vmem:[%s3520_s30 + $0x60] sm:$0xff] %v252_v12  ;;  %255 = vst [vmem:[%s3520_s30 + $0x68] sm:$0xff] %v254_v13  ;;  %v258_v15 = vld [vmem:[%s3515_s29 + $0x238] sm:$0xff]  ;;  %v260_v16 = vld [vmem:[%s3515_s29 + $0x280] sm:$0xff] }
  0x17   : > { %257 = vst [vmem:[%s3520_s30 + $0x70] sm:$0xff] %v256_v14  ;;  %v262_v17 = vld [vmem:[%s3515_s29 + $0x288] sm:$0xff]  ;;  %259 = vst [vmem:[%s3520_s30 + $0x78] sm:$0xff] %v258_v15  ;;  %v264_v18 = vld [vmem:[%s3515_s29 + $0x2d0] sm:$0xff] }
  0x18   : > { %261 = vst [vmem:[%s3520_s30 + $0x80] sm:$0xff] %v260_v16  ;;  %263 = vst [vmem:[%s3520_s30 + $0x88] sm:$0xff] %v262_v17  ;;  %v266_v19 = vld [vmem:[%s3515_s29 + $0x2d8] sm:$0xff]  ;;  %v268_v20 = vld [vmem:[%s3515_s29 + $0x320] sm:$0xff] }
  0x19   : > { %265 = vst [vmem:[%s3520_s30 + $0x90] sm:$0xff] %v264_v18  ;;  %267 = vst [vmem:[%s3520_s30 + $0x98] sm:$0xff] %v266_v19  ;;  %v270_v21 = vld [vmem:[%s3515_s29 + $0x328] sm:$0xff]  ;;  %v272_v22 = vld [vmem:[%s3515_s29 + $0x370] sm:$0xff] }
  0x1a   : > { %269 = vst [vmem:[%s3520_s30 + $0xa0] sm:$0xff] %v268_v20  ;;  %v274_v23 = vld [vmem:[%s3515_s29 + $0x378] sm:$0xff]  ;;  %271 = vst [vmem:[%s3520_s30 + $0xa8] sm:$0xff] %v270_v21  ;;  %v276_v24 = vld [vmem:[%s3515_s29 + $0x3c0] sm:$0xff] }
  0x1b   : > { %273 = vst [vmem:[%s3520_s30 + $0xb0] sm:$0xff] %v272_v22  ;;  %275 = vst [vmem:[%s3520_s30 + $0xb8] sm:$0xff] %v274_v23  ;;  %v278_v25 = vld [vmem:[%s3515_s29 + $0x3c8] sm:$0xff]  ;;  %v280_v26 = vld [vmem:[%s3515_s29 + $0x410] sm:$0xff] }
  0x1c   : > { %277 = vst [vmem:[%s3520_s30 + $0xc0] sm:$0xff] %v276_v24  ;;  %279 = vst [vmem:[%s3520_s30 + $0xc8] sm:$0xff] %v278_v25  ;;  %v282_v27 = vld [vmem:[%s3515_s29 + $0x418] sm:$0xff]  ;;  %v284_v28 = vld [vmem:[%s3515_s29 + $0x460] sm:$0xff] }
  0x1d   : > { %281 = vst [vmem:[%s3520_s30 + $0xd0] sm:$0xff] %v280_v26  ;;  %v286_v29 = vld [vmem:[%s3515_s29 + $0x468] sm:$0xff]  ;;  %283 = vst [vmem:[%s3520_s30 + $0xd8] sm:$0xff] %v282_v27  ;;  %v288_v30 = vld [vmem:[%s3515_s29 + $0x4b0] sm:$0xff] }
  0x1e   : > { %285 = vst [vmem:[%s3520_s30 + $0xe0] sm:$0xff] %v284_v28  ;;  %287 = vst [vmem:[%s3520_s30 + $0xe8] sm:$0xff] %v286_v29  ;;  %v290_v31 = vld [vmem:[%s3515_s29 + $0x4b8] sm:$0xff] }
  0x1f   : > { %289 = vst [vmem:[%s3520_s30 + $0xf0] sm:$0xff] %v288_v30  ;;  %291 = vst [vmem:[%s3520_s30 + $0xf8] sm:$0xff] %v290_v31 }
  0x20 PF: > { %p2756_p6 = scmp.ge.s32.totalorder %s3444_s19, 1  ;;  %p326_p7 = scmp.lt.s32.totalorder %s3444_s19, 6 }
  0x22   : > { %p327_p8 = pnand %p2756_p6, %p326_p7 }
  0x23   : > { %s333_s5 = sand.u32 (!%p327_p8), 1, %s3428_s15   ;;  %s2758_s6 = sshll.u32 (!%p327_p8), %s3436_s17, 6 }
  0x24   : > { %330 = sbr.rel (%p327_p8) target bundleno = 556 (0x22c), region = 55  ;;  %s2757_s7 = sshll.u32 (!%p327_p8), %s333_s5, 8 }
  0x25   : > { %p397_p9 = scmp.lt.s32.totalorder (!%p327_p8), %s2758_s6, 319  ;;  %s3597_s21 = scalar_lea.vmem (!%p327_p8), [#allocation4], %s2757_s7 }
  0x26   : > { %p2764_p10 = scmp.ne.s32.totalorder (!%p327_p8), %s3436_s17, 0 }
  0x29   : > { %s4124_s6 = smov (!%p397_p9, %s2758_s6), 319  ;;  %446 = sbr.rel (%p2764_p10) target bundleno = 79 (0x4f), region = 63 }
  0x2a   : > { %s2979_s8 = sshll.u32 %s4124_s6, 3 }
  0x2b   : > { %s3590_s11 = scalar_lea.vmem %s4113_s1, %s2979_s8  ;;  %s3595_s14 = scalar_lea.vmem %s4114_s2, %s2979_s8 }
  0x2e   : > { %v3446_v32 = vmov 0.0  }
  0x2f   : > { %447 = vst [vmem:[#allocation2 + $0xb0] sm:$0xff] %v3446_v32  ;;  %448 = vst [vmem:[#allocation2] sm:$0xff] %v3446_v32 }
  0x30   : > { %449 = vst [vmem:[#allocation2 + $0xd8] sm:$0xff] %v3446_v32  ;;  %450 = vst [vmem:[#allocation2 + $0x18] sm:$0xff] %v3446_v32 }
  0x31   : > { %451 = vst [vmem:[#allocation2 + $0x50] sm:$0xff] %v3446_v32  ;;  %452 = vst [vmem:[#allocation2 + $0x68] sm:$0xff] %v3446_v32 }
  0x32   : > { %453 = vst [vmem:[#allocation2 + $0x30] sm:$0xff] %v3446_v32  ;;  %454 = vst [vmem:[#allocation2 + $0x48] sm:$0xff] %v3446_v32 }
  0x33   : > { %455 = vst [vmem:[#allocation2 + $0x80] sm:$0xff] %v3446_v32  ;;  %456 = vst [vmem:[#allocation2 + $0x88] sm:$0xff] %v3446_v32 }
  0x34   : > { %457 = vst [vmem:[#allocation2 + $0xe8] sm:$0xff] %v3446_v32  ;;  %458 = vst [vmem:[#allocation2 + $0xb8] sm:$0xff] %v3446_v32 }
  0x35   : > { %459 = vst [vmem:[#allocation2 + $0x60] sm:$0xff] %v3446_v32  ;;  %460 = vst [vmem:[#allocation2 + $0xf0] sm:$0xff] %v3446_v32 }
  0x36   : > { %461 = vst [vmem:[#allocation2 + $0x8] sm:$0xff] %v3446_v32  ;;  %462 = vst [vmem:[#allocation2 + $0x78] sm:$0xff] %v3446_v32 }
  0x37   : > { %463 = vst [vmem:[#allocation2 + $0x38] sm:$0xff] %v3446_v32  ;;  %464 = vst [vmem:[#allocation2 + $0x58] sm:$0xff] %v3446_v32 }
  0x38   : > { %465 = vst [vmem:[#allocation2 + $0x40] sm:$0xff] %v3446_v32  ;;  %466 = vst [vmem:[#allocation2 + $0xc8] sm:$0xff] %v3446_v32 }
  0x39   : > { %467 = vst [vmem:[#allocation2 + $0xe0] sm:$0xff] %v3446_v32  ;;  %468 = vst [vmem:[#allocation2 + $0x90] sm:$0xff] %v3446_v32 }
  0x3a   : > { %469 = vst [vmem:[#allocation2 + $0x70] sm:$0xff] %v3446_v32  ;;  %470 = vst [vmem:[#allocation2 + $0xc0] sm:$0xff] %v3446_v32 }
  0x3b   : > { %471 = vst [vmem:[#allocation2 + $0xa8] sm:$0xff] %v3446_v32  ;;  %472 = vst [vmem:[#allocation2 + $0xd0] sm:$0xff] %v3446_v32 }
  0x3c   : > { %473 = vst [vmem:[#allocation2 + $0x10] sm:$0xff] %v3446_v32  ;;  %474 = vst [vmem:[#allocation2 + $0x28] sm:$0xff] %v3446_v32 }
  0x3d   : > { %475 = vst [vmem:[#allocation2 + $0xa0] sm:$0xff] %v3446_v32  ;;  %476 = vst [vmem:[#allocation2 + $0xf8] sm:$0xff] %v3446_v32 }
  0x3e   : > { %477 = vst [vmem:[#allocation2 + $0x20] sm:$0xff] %v3446_v32  ;;  %478 = vst [vmem:[#allocation2 + $0x98] sm:$0xff] %v3446_v32 }
  0x3f   : > { %479 = vst [vmem:[#allocation3 + $0x80] sm:$0xff] %v3446_v32  ;;  %480 = vst [vmem:[#allocation3 + $0xc8] sm:$0xff] %v3446_v32 }
  0x40   : > { %481 = vst [vmem:[#allocation3 + $0xe8] sm:$0xff] %v3446_v32  ;;  %482 = vst [vmem:[#allocation3 + $0x78] sm:$0xff] %v3446_v32 }
  0x41   : > { %483 = vst [vmem:[#allocation3 + $0x8] sm:$0xff] %v3446_v32  ;;  %484 = vst [vmem:[#allocation3 + $0x90] sm:$0xff] %v3446_v32 }
  0x42   : > { %485 = vst [vmem:[#allocation3 + $0x58] sm:$0xff] %v3446_v32  ;;  %486 = vst [vmem:[#allocation3 + $0xa8] sm:$0xff] %v3446_v32 }
  0x43   : > { %487 = vst [vmem:[#allocation3 + $0xd0] sm:$0xff] %v3446_v32  ;;  %488 = vst [vmem:[#allocation3 + $0xb0] sm:$0xff] %v3446_v32 }
  0x44   : > { %489 = vst [vmem:[#allocation3 + $0x38] sm:$0xff] %v3446_v32  ;;  %490 = vst [vmem:[#allocation3 + $0x40] sm:$0xff] %v3446_v32 }
  0x45   : > { %491 = vst [vmem:[#allocation3 + $0xe0] sm:$0xff] %v3446_v32  ;;  %492 = vst [vmem:[#allocation3 + $0x60] sm:$0xff] %v3446_v32 }
  0x46   : > { %493 = vst [vmem:[#allocation3 + $0x18] sm:$0xff] %v3446_v32  ;;  %494 = vst [vmem:[#allocation3 + $0x68] sm:$0xff] %v3446_v32 }
  0x47   : > { %495 = vst [vmem:[#allocation3 + $0x10] sm:$0xff] %v3446_v32  ;;  %496 = vst [vmem:[#allocation3 + $0x70] sm:$0xff] %v3446_v32 }
  0x48   : > { %497 = vst [vmem:[#allocation3 + $0x50] sm:$0xff] %v3446_v32  ;;  %498 = vst [vmem:[#allocation3 + $0xa0] sm:$0xff] %v3446_v32 }
  0x49   : > { %499 = vst [vmem:[#allocation3 + $0xd8] sm:$0xff] %v3446_v32  ;;  %500 = vst [vmem:[#allocation3 + $0x30] sm:$0xff] %v3446_v32 }
  0x4a   : > { %501 = vst [vmem:[#allocation3 + $0x20] sm:$0xff] %v3446_v32  ;;  %502 = vst [vmem:[#allocation3 + $0xf0] sm:$0xff] %v3446_v32 }
  0x4b   : > { %503 = vst [vmem:[#allocation3 + $0x88] sm:$0xff] %v3446_v32  ;;  %504 = vst [vmem:[#allocation3 + $0x48] sm:$0xff] %v3446_v32 }
  0x4c   : > { %505 = vst [vmem:[#allocation3 + $0xf8] sm:$0xff] %v3446_v32  ;;  %506 = vst [vmem:[#allocation3 + $0xc0] sm:$0xff] %v3446_v32 }
  0x4d   : > { %507 = vst [vmem:[#allocation3 + $0xb8] sm:$0xff] %v3446_v32  ;;  %508 = vst [vmem:[#allocation3] sm:$0xff] %v3446_v32 }
  0x4e   : > { %509 = vst [vmem:[#allocation3 + $0x28] sm:$0xff] %v3446_v32  ;;  %510 = vst [vmem:[#allocation3 + $0x98] sm:$0xff] %v3446_v32 }
  0x4f PF: > { %v3038_v33 = vld [vmem:[%s3590_s11 + $0x74] ss:$8 sps:$4 sm:$0xff]   ;;  %v3042_v35 = vld [vmem:[%s3590_s11 + $0x70] ss:$8 sps:$4 sm:$0xff]   ;;  %v3044_v37 = vld [vmem:[%s3590_s11 + $0x64] ss:$8 sps:$4 sm:$0xff]  }
  0x50   : > { %v3040_v34 = vld [vmem:[%s3590_s11 + $0x174] ss:$8 sps:$4 sm:$0xff]   ;;  %1119 = vmatprep.subr.bf16.mxu0 %v3038_v33  ;;  %v3043_v36 = vld [vmem:[%s3590_s11 + $0x170] ss:$8 sps:$4 sm:$0xff]   ;;  %v3046_v38 = vld [vmem:[%s3590_s11 + $0x164] ss:$8 sps:$4 sm:$0xff]  }
  0x51   : > { %1232 = vmatprep.subr.bf16.mxu1 %v3040_v34  ;;  %1120 = vmatpush1.bf16.msra.mxu0 %v3042_v35  ;;  %v3048_v39 = vld [vmem:[%s3590_s11 + $0x60] ss:$8 sps:$4 sm:$0xff]   ;;  %v3050_v41 = vld [vmem:[%s3590_s11 + $0x54] ss:$8 sps:$4 sm:$0xff]   ;;  %v3054_v43 = vld [vmem:[%s3590_s11 + $0x50] ss:$8 sps:$4 sm:$0xff]  }
  0x52   : > { %1233 = vmatpush1.bf16.msra.mxu1 %v3043_v36  ;;  %1121 = vmatprep.subr.bf16.mxu0 %v3044_v37  ;;  %v3049_v40 = vld [vmem:[%s3590_s11 + $0x160] ss:$8 sps:$4 sm:$0xff]   ;;  %v3052_v42 = vld [vmem:[%s3590_s11 + $0x154] ss:$8 sps:$4 sm:$0xff]   ;;  %v3055_v44 = vld [vmem:[%s3590_s11 + $0x150] ss:$8 sps:$4 sm:$0xff]  }
  0x53   : > { %1234 = vmatprep.subr.bf16.mxu1 %v3046_v38  ;;  %v3056_v45 = vld [vmem:[%s3590_s11 + $0x44] ss:$8 sps:$4 sm:$0xff]   ;;  %v3060_v47 = vld [vmem:[%s3590_s11 + $0x40] ss:$8 sps:$4 sm:$0xff]   ;;  %v3062_v49 = vld [vmem:[%s3590_s11 + $0x34] ss:$8 sps:$4 sm:$0xff]  }
  0x54   : > { %v3058_v46 = vld [vmem:[%s3590_s11 + $0x144] ss:$8 sps:$4 sm:$0xff]   ;;  %v3061_v48 = vld [vmem:[%s3590_s11 + $0x140] ss:$8 sps:$4 sm:$0xff]   ;;  %v3064_v50 = vld [vmem:[%s3590_s11 + $0x134] ss:$8 sps:$4 sm:$0xff]  }
  0x55   : > { %1122 = vmatpush1.bf16.msra.mxu0 %v3048_v39  ;;  %v3066_v51 = vld [vmem:[%s3590_s11 + $0x30] ss:$8 sps:$4 sm:$0xff]   ;;  %v3068_v53 = vld [vmem:[%s3590_s11 + $0x24] ss:$8 sps:$4 sm:$0xff]   ;;  %v3072_v55 = vld [vmem:[%s3590_s11 + $0x20] ss:$8 sps:$4 sm:$0xff]  }
  0x56   : > { %1235 = vmatpush1.bf16.msra.mxu1 %v3049_v40  ;;  %1123 = vmatprep.subr.bf16.mxu0 %v3050_v41  ;;  %v3067_v52 = vld [vmem:[%s3590_s11 + $0x130] ss:$8 sps:$4 sm:$0xff]   ;;  %v3070_v54 = vld [vmem:[%s3590_s11 + $0x124] ss:$8 sps:$4 sm:$0xff]   ;;  %v3073_v56 = vld [vmem:[%s3590_s11 + $0x120] ss:$8 sps:$4 sm:$0xff]  }
  0x57   : > { %1236 = vmatprep.subr.bf16.mxu1 %v3052_v42  ;;  %v3074_v57 = vld [vmem:[%s3590_s11 + $0x14] ss:$8 sps:$4 sm:$0xff]   ;;  %v3078_v59 = vld [vmem:[%s3590_s11 + $0x10] ss:$8 sps:$4 sm:$0xff]   ;;  %v3080_v61 = vld [vmem:[%s3590_s11 + $0x4] ss:$8 sps:$4 sm:$0xff]  }
  0x58   : > { %v3076_v58 = vld [vmem:[%s3590_s11 + $0x114] ss:$8 sps:$4 sm:$0xff]   ;;  %v3079_v60 = vld [vmem:[%s3590_s11 + $0x110] ss:$8 sps:$4 sm:$0xff]   ;;  %v3082_v62 = vld [vmem:[%s3590_s11 + $0x104] ss:$8 sps:$4 sm:$0xff]  }
  0x59   : > { %1124 = vmatpush1.bf16.msra.mxu0 %v3054_v43  ;;  %v3084_v63 = vld [vmem:[%s3590_s11] ss:$8 sps:$4 sm:$0xff]   ;;  %v3086_v1 = vld [vmem:[%s3590_s11 + $0xf4] ss:$8 sps:$4 sm:$0xff]   ;;  %v3090_v3 = vld [vmem:[%s3590_s11 + $0xf0] ss:$8 sps:$4 sm:$0xff]  }
  0x5a   : > { %1237 = vmatpush1.bf16.msra.mxu1 %v3055_v44  ;;  %1125 = vmatprep.subr.bf16.mxu0 %v3056_v45  ;;  %v3085_v0 = vld [vmem:[%s3590_s11 + $0x100] ss:$8 sps:$4 sm:$0xff]   ;;  %v3088_v2 = vld [vmem:[%s3590_s11 + $0x1f4] ss:$8 sps:$4 sm:$0xff]   ;;  %v3091_v4 = vld [vmem:[%s3590_s11 + $0x1f0] ss:$8 sps:$4 sm:$0xff]  }
  0x5b   : > { %1238 = vmatprep.subr.bf16.mxu1 %v3058_v46  ;;  %v3092_v5 = vld [vmem:[%s3590_s11 + $0xe4] ss:$8 sps:$4 sm:$0xff]   ;;  %v3096_v7 = vld [vmem:[%s3590_s11 + $0xe0] ss:$8 sps:$4 sm:$0xff]   ;;  %v3098_v9 = vld [vmem:[%s3590_s11 + $0xd4] ss:$8 sps:$4 sm:$0xff]  }
  0x5c   : > { %v3094_v6 = vld [vmem:[%s3590_s11 + $0x1e4] ss:$8 sps:$4 sm:$0xff]   ;;  %v3097_v8 = vld [vmem:[%s3590_s11 + $0x1e0] ss:$8 sps:$4 sm:$0xff]   ;;  %v3100_v10 = vld [vmem:[%s3590_s11 + $0x1d4] ss:$8 sps:$4 sm:$0xff]  }
  0x5d   : > { %1126 = vmatpush1.bf16.msra.mxu0 %v3060_v47  ;;  %v3102_v11 = vld [vmem:[%s3590_s11 + $0xd0] ss:$8 sps:$4 sm:$0xff]   ;;  %v3104_v13 = vld [vmem:[%s3590_s11 + $0xc4] ss:$8 sps:$4 sm:$0xff]   ;;  %v3108_v15 = vld [vmem:[%s3590_s11 + $0xc0] ss:$8 sps:$4 sm:$0xff]  }
  0x5e   : > { %1239 = vmatpush1.bf16.msra.mxu1 %v3061_v48  ;;  %1127 = vmatprep.subr.bf16.mxu0 %v3062_v49  ;;  %v3103_v12 = vld [vmem:[%s3590_s11 + $0x1d0] ss:$8 sps:$4 sm:$0xff]   ;;  %v3106_v14 = vld [vmem:[%s3590_s11 + $0x1c4] ss:$8 sps:$4 sm:$0xff]   ;;  %v3109_v16 = vld [vmem:[%s3590_s11 + $0x1c0] ss:$8 sps:$4 sm:$0xff]  }
  0x5f   : > { %1240 = vmatprep.subr.bf16.mxu1 %v3064_v50  ;;  %v3110_v17 = vld [vmem:[%s3590_s11 + $0xb4] ss:$8 sps:$4 sm:$0xff]   ;;  %v3114_v21 = vld [vmem:[%s3590_s11 + $0xb0] ss:$8 sps:$4 sm:$0xff]   ;;  %v3116_v23 = vld [vmem:[%s3590_s11 + $0xa4] ss:$8 sps:$4 sm:$0xff]  }
  0x60   : > { %v3714_v18 = vld [vmem:[%s3597_s21 + $0x4] ss:$16 sps:$4 sm:$0xff]   ;;  %v3718_v20 = vld [vmem:[%s3597_s21 + $0xc] ss:$16 sps:$4 sm:$0xff]   ;;  %v3115_v22 = vld [vmem:[%s3590_s11 + $0x1b0] ss:$8 sps:$4 sm:$0xff]  }
  0x61   : > { %1128 = vmatpush1.bf16.msra.mxu0 %v3066_v51  ;;  %v3112_v19 = vld [vmem:[%s3590_s11 + $0x1b4] ss:$8 sps:$4 sm:$0xff]   ;;  %1151 = vmatprep.mubr.bf16.mxu0 %v3714_v18  ;;  %v3118_v24 = vld [vmem:[%s3590_s11 + $0x1a4] ss:$8 sps:$4 sm:$0xff]   ;;  %v3120_v25 = vld [vmem:[%s3590_s11 + $0xa0] ss:$8 sps:$4 sm:$0xff]  }
  0x62   : > { %1241 = vmatpush1.bf16.msra.mxu1 %v3067_v52  ;;  %1129 = vmatprep.subr.bf16.mxu0 %v3068_v53  ;;  %v3121_v26 = vld [vmem:[%s3590_s11 + $0x1a0] ss:$8 sps:$4 sm:$0xff]   ;;  %v3122_v27 = vld [vmem:[%s3590_s11 + $0x94] ss:$8 sps:$4 sm:$0xff]   ;;  %v3126_v29 = vld [vmem:[%s3590_s11 + $0x90] ss:$8 sps:$4 sm:$0xff]  }
  0x63   : > { %1242 = vmatprep.subr.bf16.mxu1 %v3070_v54  ;;  %1264 = vmatprep.mubr.bf16.mxu1 %v3718_v20  ;;  %v3124_v28 = vld [vmem:[%s3590_s11 + $0x194] ss:$8 sps:$4 sm:$0xff]   ;;  %v3127_v30 = vld [vmem:[%s3590_s11 + $0x190] ss:$8 sps:$4 sm:$0xff]   ;;  %v3128_v31 = vld [vmem:[%s3590_s11 + $0x84] ss:$8 sps:$4 sm:$0xff]  }
  0x64   : > { %v3130_v32 = vld [vmem:[%s3590_s11 + $0x184] ss:$8 sps:$4 sm:$0xff]   ;;  %v3132_v33 = vld [vmem:[%s3590_s11 + $0x80] ss:$8 sps:$4 sm:$0xff]   ;;  %v3142_v35 = vld [vmem:[%s3595_s14 + $0x74] ss:$8 sps:$4 sm:$0xff]  }
  0x65   : > { %1130 = vmatpush1.bf16.msra.mxu0 %v3072_v55  ;;  %v3133_v34 = vld [vmem:[%s3590_s11 + $0x180] ss:$8 sps:$4 sm:$0xff]   ;;  %v3145_v36 = vld [vmem:[%s3595_s14 + $0x174] ss:$8 sps:$4 sm:$0xff]   ;;  %v3140_v39 = vld [vmem:[%s3595_s14 + $0x70] ss:$8 sps:$4 sm:$0xff]  }
  0x66   : > { %1243 = vmatpush1.bf16.msra.mxu1 %v3073_v56  ;;  %1131 = vmatprep.subr.bf16.mxu0 %v3074_v57  ;;  %v3739_v37 = vld [vmem:[%s3597_s21] ss:$16 sps:$4 sm:$0xff]   ;;  %v3742_v38 = vld [vmem:[%s3597_s21 + $0x8] ss:$16 sps:$4 sm:$0xff]   ;;  %v3148_v41 = vld [vmem:[%s3595_s14 + $0x64] ss:$8 sps:$4 sm:$0xff]  }
  0x67   : > { %1244 = vmatprep.subr.bf16.mxu1 %v3076_v58  ;;  %v3143_v40 = vld [vmem:[%s3595_s14 + $0x170] ss:$8 sps:$4 sm:$0xff]   ;;  %v3151_v42 = vld [vmem:[%s3595_s14 + $0x164] ss:$8 sps:$4 sm:$0xff]   ;;  %v3146_v45 = vld [vmem:[%s3595_s14 + $0x60] ss:$8 sps:$4 sm:$0xff]  }
  0x68   : > { %v3749_v43 = vld [vmem:[%s3597_s21 + $0x24] ss:$16 sps:$4 sm:$0xff]   ;;  %v3752_v44 = vld [vmem:[%s3597_s21 + $0x2c] ss:$16 sps:$4 sm:$0xff]   ;;  %v3149_v46 = vld [vmem:[%s3595_s14 + $0x160] ss:$8 sps:$4 sm:$0xff]  }
  0x69   : > { %1132 = vmatpush1.bf16.msra.mxu0 %v3078_v59  ;;  %v3160_v47 = vld [vmem:[%s3595_s14 + $0x54] ss:$8 sps:$4 sm:$0xff]   ;;  %v3763_v49 = vld [vmem:[%s3597_s21 + $0x20] ss:$16 sps:$4 sm:$0xff]   ;;  %v3766_v50 = vld [vmem:[%s3597_s21 + $0x28] ss:$16 sps:$4 sm:$0xff]  }
  0x6a   : > { %1245 = vmatpush1.bf16.msra.mxu1 %v3079_v60  ;;  %1133 = vmatprep.subr.bf16.mxu0 %v3080_v61  ;;  %v3163_v48 = vld [vmem:[%s3595_s14 + $0x154] ss:$8 sps:$4 sm:$0xff]   ;;  %v3158_v51 = vld [vmem:[%s3595_s14 + $0x50] ss:$8 sps:$4 sm:$0xff]   ;;  %v3166_v53 = vld [vmem:[%s3595_s14 + $0x44] ss:$8 sps:$4 sm:$0xff]  }
  0x6b   : > { %1246 = vmatprep.subr.bf16.mxu1 %v3082_v62  ;;  %v3161_v52 = vld [vmem:[%s3595_s14 + $0x150] ss:$8 sps:$4 sm:$0xff]   ;;  %v3169_v54 = vld [vmem:[%s3595_s14 + $0x144] ss:$8 sps:$4 sm:$0xff]   ;;  %v3164_v57 = vld [vmem:[%s3595_s14 + $0x40] ss:$8 sps:$4 sm:$0xff]  }
  0x6c   : > { %v3773_v55 = vld [vmem:[%s3597_s21 + $0x44] ss:$16 sps:$4 sm:$0xff]   ;;  %v3776_v56 = vld [vmem:[%s3597_s21 + $0x4c] ss:$16 sps:$4 sm:$0xff]   ;;  %v3167_v58 = vld [vmem:[%s3595_s14 + $0x140] ss:$8 sps:$4 sm:$0xff]  }
  0x6d   : > { %1134 = vmatpush1.bf16.msra.mxu0 %v3084_v63  ;;  %v3178_v59 = vld [vmem:[%s3595_s14 + $0x34] ss:$8 sps:$4 sm:$0xff]   ;;  %v3787_v61 = vld [vmem:[%s3597_s21 + $0x40] ss:$16 sps:$4 sm:$0xff]   ;;  %v3790_v62 = vld [vmem:[%s3597_s21 + $0x48] ss:$16 sps:$4 sm:$0xff]  }
  0x6e   : > { %1247 = vmatpush1.bf16.msra.mxu1 %v3085_v0  ;;  %1135 = vmatprep.subr.bf16.mxu0 %v3086_v1  ;;  %v3181_v60 = vld [vmem:[%s3595_s14 + $0x134] ss:$8 sps:$4 sm:$0xff]   ;;  %v3176_v63 = vld [vmem:[%s3595_s14 + $0x30] ss:$8 sps:$4 sm:$0xff]   ;;  %v3184_v1 = vld [vmem:[%s3595_s14 + $0x24] ss:$8 sps:$4 sm:$0xff]  }
  0x6f   : > { %1248 = vmatprep.subr.bf16.mxu1 %v3088_v2  ;;  %v3179_v0 = vld [vmem:[%s3595_s14 + $0x130] ss:$8 sps:$4 sm:$0xff]   ;;  %v3187_v2 = vld [vmem:[%s3595_s14 + $0x124] ss:$8 sps:$4 sm:$0xff]   ;;  %p2925_p11 = scmp.ne.s32.totalorder %s3436_s17, 4 }
  0x71   : > { %1136 = vmatpush2.bf16.msra.mxu0 %v3090_v3  ;;  %v3797_v3 = vld [vmem:[%s3597_s21 + $0x64] ss:$16 sps:$4 sm:$0xff]  }
  0x72   : > { %1249 = vmatpush2.bf16.msra.mxu1 %v3091_v4  ;;  %1137 = vmatprep.subr.bf16.mxu0 %v3092_v5  ;;  %v3800_v4 = vld [vmem:[%s3597_s21 + $0x6c] ss:$16 sps:$4 sm:$0xff]   ;;  %v3182_v5 = vld [vmem:[%s3595_s14 + $0x20] ss:$8 sps:$4 sm:$0xff]  }
  0x73   : > { %1250 = vmatprep.subr.bf16.mxu1 %v3094_v6  ;;  %v3185_v6 = vld [vmem:[%s3595_s14 + $0x120] ss:$8 sps:$4 sm:$0xff]  }
  0x75   : > { %1138 = vmatpush2.bf16.msra.mxu0 %v3096_v7  ;;  %v3196_v7 = vld [vmem:[%s3595_s14 + $0x14] ss:$8 sps:$4 sm:$0xff]  }
  0x76   : > { %1251 = vmatpush2.bf16.msra.mxu1 %v3097_v8  ;;  %1139 = vmatprep.subr.bf16.mxu0 %v3098_v9  ;;  %v3199_v8 = vld [vmem:[%s3595_s14 + $0x114] ss:$8 sps:$4 sm:$0xff]   ;;  %v3811_v9 = vld [vmem:[%s3597_s21 + $0x60] ss:$16 sps:$4 sm:$0xff]  }
  0x77   : > { %1252 = vmatprep.subr.bf16.mxu1 %v3100_v10  ;;  %v3814_v10 = vld [vmem:[%s3597_s21 + $0x68] ss:$16 sps:$4 sm:$0xff]  }
  0x79   : > { %1140 = vmatpush2.bf16.msra.mxu0 %v3102_v11  ;;  %v3194_v11 = vld [vmem:[%s3595_s14 + $0x10] ss:$8 sps:$4 sm:$0xff]  }
  0x7a   : > { %1253 = vmatpush2.bf16.msra.mxu1 %v3103_v12  ;;  %1141 = vmatprep.subr.bf16.mxu0 %v3104_v13  ;;  %v3197_v12 = vld [vmem:[%s3595_s14 + $0x110] ss:$8 sps:$4 sm:$0xff]   ;;  %v3202_v13 = vld [vmem:[%s3595_s14 + $0x4] ss:$8 sps:$4 sm:$0xff]  }
  0x7b   : > { %1254 = vmatprep.subr.bf16.mxu1 %v3106_v14  ;;  %v3205_v14 = vld [vmem:[%s3595_s14 + $0x104] ss:$8 sps:$4 sm:$0xff]  }
  0x7d   : > { %1142 = vmatpush2.bf16.msra.mxu0 %v3108_v15  ;;  %v3821_v15 = vld [vmem:[%s3597_s21 + $0x84] ss:$16 sps:$4 sm:$0xff]  }
  0x7e   : > { %1255 = vmatpush2.bf16.msra.mxu1 %v3109_v16  ;;  %1143 = vmatprep.subr.bf16.mxu0 %v3110_v17  ;;  %v3824_v16 = vld [vmem:[%s3597_s21 + $0x8c] ss:$16 sps:$4 sm:$0xff]   ;;  %v3200_v17 = vld [vmem:[%s3595_s14] ss:$8 sps:$4 sm:$0xff]  }
  0x7f   : > { %1256 = vmatprep.subr.bf16.mxu1 %v3112_v19  ;;  %v3203_v19 = vld [vmem:[%s3595_s14 + $0x100] ss:$8 sps:$4 sm:$0xff]  }
  0x81   : > { %1144 = vmatpush2.bf16.msra.mxu0 %v3114_v21  ;;  %v3214_v21 = vld [vmem:[%s3595_s14 + $0xf4] ss:$8 sps:$4 sm:$0xff]  }
  0x82   : > { %1257 = vmatpush2.bf16.msra.mxu1 %v3115_v22  ;;  %1145 = vmatprep.subr.bf16.mxu0 %v3116_v23  ;;  %v3217_v22 = vld [vmem:[%s3595_s14 + $0x1f4] ss:$8 sps:$4 sm:$0xff]   ;;  %v3835_v23 = vld [vmem:[%s3597_s21 + $0x80] ss:$16 sps:$4 sm:$0xff]  }
  0x83   : > { %1258 = vmatprep.subr.bf16.mxu1 %v3118_v24  ;;  %v3838_v24 = vld [vmem:[%s3597_s21 + $0x88] ss:$16 sps:$4 sm:$0xff]  }
  0x85   : > { %1146 = vmatpush2.bf16.msra.mxu0 %v3120_v25  ;;  %v3212_v25 = vld [vmem:[%s3595_s14 + $0xf0] ss:$8 sps:$4 sm:$0xff]  }
  0x86   : > { %1259 = vmatpush2.bf16.msra.mxu1 %v3121_v26  ;;  %1147 = vmatprep.subr.bf16.mxu0 %v3122_v27  ;;  %v3215_v26 = vld [vmem:[%s3595_s14 + $0x1f0] ss:$8 sps:$4 sm:$0xff]   ;;  %v3220_v27 = vld [vmem:[%s3595_s14 + $0xe4] ss:$8 sps:$4 sm:$0xff]  }
  0x87   : > { %1260 = vmatprep.subr.bf16.mxu1 %v3124_v28  ;;  %v3223_v28 = vld [vmem:[%s3595_s14 + $0x1e4] ss:$8 sps:$4 sm:$0xff]  }
  0x89   : > { %1148 = vmatpush2.bf16.msra.mxu0 %v3126_v29  ;;  %v3845_v29 = vld [vmem:[%s3597_s21 + $0xa4] ss:$16 sps:$4 sm:$0xff]  }
  0x8a   : > { %1261 = vmatpush2.bf16.msra.mxu1 %v3127_v30  ;;  %1149 = vmatprep.subr.bf16.mxu0 %v3128_v31  ;;  %v3848_v30 = vld [vmem:[%s3597_s21 + $0xac] ss:$16 sps:$4 sm:$0xff]   ;;  %v3218_v31 = vld [vmem:[%s3595_s14 + $0xe0] ss:$8 sps:$4 sm:$0xff]  }
  0x8b   : > { %1262 = vmatprep.subr.bf16.mxu1 %v3130_v32  ;;  %v3221_v32 = vld [vmem:[%s3595_s14 + $0x1e0] ss:$8 sps:$4 sm:$0xff]  }
  0x8d   : > { %1150 = vmatpush2.bf16.msra.mxu0 %v3132_v33  ;;  %v3232_v33 = vld [vmem:[%s3595_s14 + $0xd4] ss:$8 sps:$4 sm:$0xff]  }
  0x8e   : > { %1263 = vmatpush2.bf16.msra.mxu1 %v3133_v34  ;;  %1825 = vmatprep.subr.bf16.mxu0 %v3142_v35  ;;  %v3235_v34 = vld [vmem:[%s3595_s14 + $0x1d4] ss:$8 sps:$4 sm:$0xff]   ;;  %v3859_v35 = vld [vmem:[%s3597_s21 + $0xa0] ss:$16 sps:$4 sm:$0xff]  }
  0x8f   : > { %1938 = vmatprep.subr.bf16.mxu1 %v3145_v36  ;;  %v3862_v36 = vld [vmem:[%s3597_s21 + $0xa8] ss:$16 sps:$4 sm:$0xff]  }
  0x90   : > { %1152 = vmatmul.mubr.bf16.vlgmr.msra.gmra.mxu0 %v3739_v37 }
  0x91   : > { %1265 = vmatmul.mubr.bf16.vlgmr.msra.gmra.mxu1 %v3742_v38  ;;  %1826 = vmatpush1.bf16.msra.mxu0 %v3140_v39  ;;  %v3230_v39 = vld [vmem:[%s3595_s14 + $0xd0] ss:$8 sps:$4 sm:$0xff]  }
  0x92   : > { %1939 = vmatpush1.bf16.msra.mxu1 %v3143_v40  ;;  %1827 = vmatprep.subr.bf16.mxu0 %v3148_v41  ;;  %v3233_v40 = vld [vmem:[%s3595_s14 + $0x1d0] ss:$8 sps:$4 sm:$0xff]   ;;  %v3238_v41 = vld [vmem:[%s3595_s14 + $0xc4] ss:$8 sps:$4 sm:$0xff]  }
  0x93   : > { %1940 = vmatprep.subr.bf16.mxu1 %v3151_v42  ;;  %1161 = vmatprep.mubr.bf16.mxu0 %v3749_v43  ;;  %v3241_v42 = vld [vmem:[%s3595_s14 + $0x1c4] ss:$8 sps:$4 sm:$0xff]  }
  0x94   : > { %1274 = vmatprep.mubr.bf16.mxu1 %v3752_v44 }
  0x95   : > { %1828 = vmatpush1.bf16.msra.mxu0 %v3146_v45  ;;  %v3869_v45 = vld [vmem:[%s3597_s21 + $0xc4] ss:$16 sps:$4 sm:$0xff]  }
  0x96   : > { %1941 = vmatpush1.bf16.msra.mxu1 %v3149_v46  ;;  %1829 = vmatprep.subr.bf16.mxu0 %v3160_v47  ;;  %v3872_v46 = vld [vmem:[%s3597_s21 + $0xcc] ss:$16 sps:$4 sm:$0xff]   ;;  %v3236_v47 = vld [vmem:[%s3595_s14 + $0xc0] ss:$8 sps:$4 sm:$0xff]  }
  0x97   : > { %1942 = vmatprep.subr.bf16.mxu1 %v3163_v48  ;;  %v3239_v48 = vld [vmem:[%s3595_s14 + $0x1c0] ss:$8 sps:$4 sm:$0xff]  }
  0x98   : > { %1162 = vmatmul.mubr.bf16.gmra.mxu0 %v3763_v49 }
  0x99   : > { %1275 = vmatmul.mubr.bf16.gmra.mxu1 %v3766_v50  ;;  %1830 = vmatpush1.bf16.msra.mxu0 %v3158_v51  ;;  %v3250_v51 = vld [vmem:[%s3595_s14 + $0xb4] ss:$8 sps:$4 sm:$0xff]  }
  0x9a   : > { %1943 = vmatpush1.bf16.msra.mxu1 %v3161_v52  ;;  %1831 = vmatprep.subr.bf16.mxu0 %v3166_v53  ;;  %v3253_v52 = vld [vmem:[%s3595_s14 + $0x1b4] ss:$8 sps:$4 sm:$0xff]   ;;  %v3883_v53 = vld [vmem:[%s3597_s21 + $0xc0] ss:$16 sps:$4 sm:$0xff]  }
  0x9b   : > { %1944 = vmatprep.subr.bf16.mxu1 %v3169_v54  ;;  %1171 = vmatprep.mubr.bf16.mxu0 %v3773_v55  ;;  %v3886_v54 = vld [vmem:[%s3597_s21 + $0xc8] ss:$16 sps:$4 sm:$0xff]  }
  0x9c   : > { %1284 = vmatprep.mubr.bf16.mxu1 %v3776_v56 }
  0x9d   : > { %1832 = vmatpush1.bf16.msra.mxu0 %v3164_v57  ;;  %v3248_v57 = vld [vmem:[%s3595_s14 + $0xb0] ss:$8 sps:$4 sm:$0xff]  }
  0x9e   : > { %1945 = vmatpush1.bf16.msra.mxu1 %v3167_v58  ;;  %1833 = vmatprep.subr.bf16.mxu0 %v3178_v59  ;;  %v3251_v58 = vld [vmem:[%s3595_s14 + $0x1b0] ss:$8 sps:$4 sm:$0xff]   ;;  %v3256_v59 = vld [vmem:[%s3595_s14 + $0xa4] ss:$8 sps:$4 sm:$0xff]  }
  0x9f   : > { %1946 = vmatprep.subr.bf16.mxu1 %v3181_v60  ;;  %v3259_v60 = vld [vmem:[%s3595_s14 + $0x1a4] ss:$8 sps:$4 sm:$0xff]  }
  0xa0   : > { %1172 = vmatmul.mubr.bf16.gmra.mxu0 %v3787_v61 }
  0xa1   : > { %1285 = vmatmul.mubr.bf16.gmra.mxu1 %v3790_v62  ;;  %1834 = vmatpush1.bf16.msra.mxu0 %v3176_v63  ;;  %v3260_v63 = vld [vmem:[%s3597_s21 + $0xe4] ss:$16 sps:$4 sm:$0xff]  }
  0xa2   : > { %1947 = vmatpush1.bf16.msra.mxu1 %v3179_v0  ;;  %1835 = vmatprep.subr.bf16.mxu0 %v3184_v1  ;;  %v3262_v0 = vld [vmem:[%s3597_s21 + $0xec] ss:$16 sps:$4 sm:$0xff]   ;;  %v3254_v1 = vld [vmem:[%s3595_s14 + $0xa0] ss:$8 sps:$4 sm:$0xff]  }
  0xa3   : > { %1948 = vmatprep.subr.bf16.mxu1 %v3187_v2  ;;  %1181 = vmatprep.mubr.bf16.mxu0 %v3797_v3  ;;  %v3257_v2 = vld [vmem:[%s3595_s14 + $0x1a0] ss:$8 sps:$4 sm:$0xff]  }
  0xa4   : > { %1294 = vmatprep.mubr.bf16.mxu1 %v3800_v4 }
  0xa5   : > { %1836 = vmatpush1.bf16.msra.mxu0 %v3182_v5  ;;  %v3268_v5 = vld [vmem:[%s3595_s14 + $0x94] ss:$8 sps:$4 sm:$0xff]  }
  0xa6   : > { %1949 = vmatpush1.bf16.msra.mxu1 %v3185_v6  ;;  %1837 = vmatprep.subr.bf16.mxu0 %v3196_v7  ;;  %v3271_v6 = vld [vmem:[%s3595_s14 + $0x194] ss:$8 sps:$4 sm:$0xff]   ;;  %v3264_v7 = vld [vmem:[%s3597_s21 + $0xe0] ss:$16 sps:$4 sm:$0xff]  }
  0xa7   : > { %1950 = vmatprep.subr.bf16.mxu1 %v3199_v8  ;;  %v3265_v8 = vld [vmem:[%s3597_s21 + $0xe8] ss:$16 sps:$4 sm:$0xff]  }
  0xa8   : > { %1182 = vmatmul.mubr.bf16.gmra.mxu0 %v3811_v9 }
  0xa9   : > { %1295 = vmatmul.mubr.bf16.gmra.mxu1 %v3814_v10  ;;  %1838 = vmatpush1.bf16.msra.mxu0 %v3194_v11  ;;  %v3266_v11 = vld [vmem:[%s3595_s14 + $0x90] ss:$8 sps:$4 sm:$0xff]  }
  0xaa   : > { %1951 = vmatpush1.bf16.msra.mxu1 %v3197_v12  ;;  %1839 = vmatprep.subr.bf16.mxu0 %v3202_v13  ;;  %v3269_v12 = vld [vmem:[%s3595_s14 + $0x190] ss:$8 sps:$4 sm:$0xff]   ;;  %v3274_v13 = vld [vmem:[%s3595_s14 + $0x84] ss:$8 sps:$4 sm:$0xff]  }
  0xab   : > { %1952 = vmatprep.subr.bf16.mxu1 %v3205_v14  ;;  %1191 = vmatprep.mubr.bf16.mxu0 %v3821_v15  ;;  %v3277_v14 = vld [vmem:[%s3595_s14 + $0x184] ss:$8 sps:$4 sm:$0xff]  }
  0xac   : > { %1304 = vmatprep.mubr.bf16.mxu1 %v3824_v16 }
  0xad   : > { %1840 = vmatpush1.bf16.msra.mxu0 %v3200_v17  ;;  %v3272_v17 = vld [vmem:[%s3595_s14 + $0x80] ss:$8 sps:$4 sm:$0xff]  }
  0xae   : > { %1953 = vmatpush1.bf16.msra.mxu1 %v3203_v19  ;;  %1841 = vmatprep.subr.bf16.mxu0 %v3214_v21  ;;  %v3275_v19 = vld [vmem:[%s3595_s14 + $0x180] ss:$8 sps:$4 sm:$0xff]  }
  0xaf   : > { %1954 = vmatprep.subr.bf16.mxu1 %v3217_v22 }
  0xb0   : > { %1192 = vmatmul.mubr.bf16.gmra.mxu0 %v3835_v23 }
  0xb1   : > { %1305 = vmatmul.mubr.bf16.gmra.mxu1 %v3838_v24  ;;  %1842 = vmatpush2.bf16.msra.mxu0 %v3212_v25 }
  0xb2   : > { %1955 = vmatpush2.bf16.msra.mxu1 %v3215_v26  ;;  %1843 = vmatprep.subr.bf16.mxu0 %v3220_v27 }
  0xb3   : > { %1956 = vmatprep.subr.bf16.mxu1 %v3223_v28  ;;  %1201 = vmatprep.mubr.bf16.mxu0 %v3845_v29  ;;  %v548_v28 = vld [vmem:[#allocation2 + $0x68] sm:$0xff] }
  0xb4   : > { %1314 = vmatprep.mubr.bf16.mxu1 %v3848_v30 }
  0xb5   : > { %1844 = vmatpush2.bf16.msra.mxu0 %v3218_v31 }
  0xb6   : > { %1957 = vmatpush2.bf16.msra.mxu1 %v3221_v32  ;;  %1845 = vmatprep.subr.bf16.mxu0 %v3232_v33  ;;  %v549_v33 = vld [vmem:[#allocation2 + $0x30] sm:$0xff] }
  0xb7   : > { %1958 = vmatprep.subr.bf16.mxu1 %v3235_v34 }
  0xb8   : > { %1202 = vmatmul.mubr.bf16.gmra.mxu0 %v3859_v35 }
  0xb9   : > { %1315 = vmatmul.mubr.bf16.gmra.mxu1 %v3862_v36  ;;  %1846 = vmatpush2.bf16.msra.mxu0 %v3230_v39 }
  0xba   : > { %1959 = vmatpush2.bf16.msra.mxu1 %v3233_v40  ;;  %1847 = vmatprep.subr.bf16.mxu0 %v3238_v41  ;;  %v550_v40 = vld [vmem:[#allocation2 + $0x48] sm:$0xff] }
  0xbb   : > { %1960 = vmatprep.subr.bf16.mxu1 %v3241_v42  ;;  %1211 = vmatprep.mubr.bf16.mxu0 %v3869_v45 }
  0xbc   : > { %1324 = vmatprep.mubr.bf16.mxu1 %v3872_v46 }
  0xbd   : > { %1848 = vmatpush2.bf16.msra.mxu0 %v3236_v47  ;;  %v551_v47 = vld [vmem:[#allocation2 + $0x80] sm:$0xff] }
  0xbe   : > { %1961 = vmatpush2.bf16.msra.mxu1 %v3239_v48  ;;  %1849 = vmatprep.subr.bf16.mxu0 %v3250_v51 }
  0xbf   : > { %1962 = vmatprep.subr.bf16.mxu1 %v3253_v52 }
  0xc0   : > { %1212 = vmatmul.mubr.bf16.gmra.mxu0 %v3883_v53 }
  0xc1   : > { %1325 = vmatmul.mubr.bf16.gmra.mxu1 %v3886_v54  ;;  %1850 = vmatpush2.bf16.msra.mxu0 %v3248_v57 }
  0xc2   : > { %1963 = vmatpush2.bf16.msra.mxu1 %v3251_v58  ;;  %1851 = vmatprep.subr.bf16.mxu0 %v3256_v59 }
  0xc3   : > { %1964 = vmatprep.subr.bf16.mxu1 %v3259_v60  ;;  %1221 = vmatprep.mubr.bf16.mxu0 %v3260_v63 }
  0xc4   : > { %1334 = vmatprep.mubr.bf16.mxu1 %v3262_v0 }
  0xc5   : > { %1852 = vmatpush2.bf16.msra.mxu0 %v3254_v1 }
  0xc6   : > { %1965 = vmatpush2.bf16.msra.mxu1 %v3257_v2  ;;  %1853 = vmatprep.subr.bf16.mxu0 %v3268_v5 }
  0xc7   : > { %1966 = vmatprep.subr.bf16.mxu1 %v3271_v6  ;;  %v554_v6 = vld [vmem:[#allocation2 + $0xb8] sm:$0xff] }
  0xc8   : > { %1222 = vmatmul.mubr.bf16.gmra.mxu0 %v3264_v7 }
  0xc9   : > { %1335 = vmatmul.mubr.bf16.gmra.mxu1 %v3265_v8  ;;  %1854 = vmatpush2.bf16.msra.mxu0 %v3266_v11 }
  0xca   : > { %1967 = vmatpush2.bf16.msra.mxu1 %v3269_v12  ;;  %1855 = vmatprep.subr.bf16.mxu0 %v3274_v13  ;;  %v555_v13 = vld [vmem:[#allocation2 + $0x60] sm:$0xff] }
  0xcb   : > { %1968 = vmatprep.subr.bf16.mxu1 %v3277_v14  ;;  %1857 = vmatprep.mubr.bf16.mxu0 %v3714_v18 }
  0xcc   : > { %1970 = vmatprep.mubr.bf16.mxu1 %v3718_v20  ;;  %v543_v20 = vld [vmem:[#allocation2 + $0xb0] sm:$0xff] }
  0xcd   : > { %1856 = vmatpush2.bf16.msra.mxu0 %v3272_v17 }
  0xce   : > { %1969 = vmatpush2.bf16.msra.mxu1 %v3275_v19 }
  0xd0   : > { %1858 = vmatmul.mubr.bf16.vlgmr.msra.gmra.mxu0 %v3739_v37 }
  0xd1   : > { %1971 = vmatmul.mubr.bf16.vlgmr.msra.gmra.mxu1 %v3742_v38  ;;  %1867 = vmatprep.mubr.bf16.mxu0 %v3749_v43 }
  0xd2   : > { %1980 = vmatprep.mubr.bf16.mxu1 %v3752_v44  ;;  %v544_v44 = vld [vmem:[#allocation2] sm:$0xff] }
  0xd8   : > { %1868 = vmatmul.mubr.bf16.gmra.mxu0 %v3763_v49 }
  0xd9   : > { %1981 = vmatmul.mubr.bf16.gmra.mxu1 %v3766_v50  ;;  %1877 = vmatprep.mubr.bf16.mxu0 %v3773_v55 }
  0xda   : > { %1990 = vmatprep.mubr.bf16.mxu1 %v3776_v56 }
  0xe0   : > { %1878 = vmatmul.mubr.bf16.gmra.mxu0 %v3787_v61  ;;  %v545_v61 = vld [vmem:[#allocation2 + $0xd8] sm:$0xff] }
  0xe1   : > { %1991 = vmatmul.mubr.bf16.gmra.mxu1 %v3790_v62  ;;  %1887 = vmatprep.mubr.bf16.mxu0 %v3797_v3 }
  0xe2   : > { %2000 = vmatprep.mubr.bf16.mxu1 %v3800_v4 }
  0xe8   : > { %1888 = vmatmul.mubr.bf16.gmra.mxu0 %v3811_v9 }
  0xe9   : > { %2001 = vmatmul.mubr.bf16.gmra.mxu1 %v3814_v10  ;;  %1897 = vmatprep.mubr.bf16.mxu0 %v3821_v15  ;;  %v546_v10 = vld [vmem:[#allocation2 + $0x18] sm:$0xff] }
  0xea   : > { %2010 = vmatprep.mubr.bf16.mxu1 %v3824_v16 }
  0xf0   : > { %1898 = vmatmul.mubr.bf16.gmra.mxu0 %v3835_v23  ;;  %v547_v23 = vld [vmem:[#allocation2 + $0x50] sm:$0xff] }
  0xf1   : > { %2011 = vmatmul.mubr.bf16.gmra.mxu1 %v3838_v24  ;;  %1907 = vmatprep.mubr.bf16.mxu0 %v3845_v29 }
  0xf2   : > { %2020 = vmatprep.mubr.bf16.mxu1 %v3848_v30 }
  0xf8   : > { %1908 = vmatmul.mubr.bf16.gmra.mxu0 %v3859_v35 }
  0xf9   : > { %2021 = vmatmul.mubr.bf16.gmra.mxu1 %v3862_v36  ;;  %1917 = vmatprep.mubr.bf16.mxu0 %v3869_v45 }
  0xfa   : > { %2030 = vmatprep.mubr.bf16.mxu1 %v3872_v46 }
 0x100   : > { %1918 = vmatmul.mubr.bf16.gmra.mxu0 %v3883_v53 }
 0x101   : > { %2031 = vmatmul.mubr.bf16.gmra.mxu1 %v3886_v54  ;;  %1927 = vmatprep.mubr.bf16.mxu0 %v3260_v63  ;;  %v552_v54 = vld [vmem:[#allocation2 + $0x88] sm:$0xff] }
 0x102   : > { %2040 = vmatprep.mubr.bf16.mxu1 %v3262_v0  ;;  %v553_v63 = vld [vmem:[#allocation2 + $0xe8] sm:$0xff] }
 0x108   : > { %1928 = vmatmul.mubr.bf16.gmra.mxu0 %v3264_v7 }
 0x109   : > { %2041 = vmatmul.mubr.bf16.gmra.mxu1 %v3265_v8 }
 0x150   : > { %v1153_v18 = vpop.f32.mrf.mxu0 }
 0x151   : > { %v1266_v37 = vpop.f32.mrf.mxu1 }
 0x152   : > { %v1267_v38 = vadd.f32 %v1266_v37, %v1153_v18  ;;  %v1155_v43 = vpop.f32.mrf.mxu0 }
 0x153   : > { %v1268_v49 = vpop.f32.mrf.mxu1 }
 0x154   : > { %v1345_v50 = vadd.f32 %v1267_v38, %v543_v20  ;;  %v1269_v55 = vadd.f32 %v1268_v49, %v1155_v43  ;;  %v1157_v56 = vpop.f32.mrf.mxu0  ;;  %v556_v20 = vld [vmem:[#allocation2 + $0xf0] sm:$0xff]  ;;  %v557_v49 = vld [vmem:[#allocation2 + $0x8] sm:$0xff] }
 0x155   : > { %v1270_v62 = vpop.f32.mrf.mxu1 }
 0x156   : > { %1377 = vst [vmem:[#allocation2 + $0xb0] sm:$0xff] %v1345_v50  ;;  %v1346_v3 = vadd.f32 %v1269_v55, %v544_v44  ;;  %v1271_v4 = vadd.f32 %v1270_v62, %v1157_v56  ;;  %v1159_v9 = vpop.f32.mrf.mxu0  ;;  %v558_v62 = vld [vmem:[#allocation2 + $0x78] sm:$0xff] }
 0x157   : > { %v1272_v15 = vpop.f32.mrf.mxu1 }
 0x158   : > { %1378 = vst [vmem:[#allocation2] sm:$0xff] %v1346_v3  ;;  %v1347_v16 = vadd.f32 %v1271_v4, %v545_v61  ;;  %v1273_v21 = vadd.f32 %v1272_v15, %v1159_v9  ;;  %v1163_v22 = vpop.f32.mrf.mxu0  ;;  %v559_v15 = vld [vmem:[#allocation2 + $0x38] sm:$0xff] }
 0x159   : > { %v1276_v24 = vpop.f32.mrf.mxu1 }
 0x15a   : > { %1379 = vst [vmem:[#allocation2 + $0xd8] sm:$0xff] %v1347_v16  ;;  %v1348_v25 = vadd.f32 %v1273_v21, %v546_v10  ;;  %v1277_v26 = vadd.f32 %v1276_v24, %v1163_v22  ;;  %v1165_v27 = vpop.f32.mrf.mxu0  ;;  %v560_v24 = vld [vmem:[#allocation2 + $0x58] sm:$0xff] }
 0x15b   : > { %v1278_v29 = vpop.f32.mrf.mxu1 }
 0x15c   : > { %1380 = vst [vmem:[#allocation2 + $0x18] sm:$0xff] %v1348_v25  ;;  %v1349_v30 = vadd.f32 %v1277_v26, %v547_v23  ;;  %v1279_v31 = vadd.f32 %v1278_v29, %v1165_v27  ;;  %v1167_v32 = vpop.f32.mrf.mxu0  ;;  %v561_v29 = vld [vmem:[#allocation2 + $0x40] sm:$0xff] }
 0x15d   : > { %v1280_v34 = vpop.f32.mrf.mxu1 }
 0x15e   : > { %1381 = vst [vmem:[#allocation2 + $0x50] sm:$0xff] %v1349_v30  ;;  %v1350_v35 = vadd.f32 %v1279_v31, %v548_v28  ;;  %v1281_v36 = vadd.f32 %v1280_v34, %v1167_v32  ;;  %v1169_v39 = vpop.f32.mrf.mxu0  ;;  %v562_v34 = vld [vmem:[#allocation2 + $0xc8] sm:$0xff] }
 0x15f   : > { %v1282_v41 = vpop.f32.mrf.mxu1 }
 0x160   : > { %1382 = vst [vmem:[#allocation2 + $0x68] sm:$0xff] %v1350_v35  ;;  %v1351_v42 = vadd.f32 %v1281_v36, %v549_v33  ;;  %v1283_v45 = vadd.f32 %v1282_v41, %v1169_v39  ;;  %v1173_v46 = vpop.f32.mrf.mxu0  ;;  %v563_v41 = vld [vmem:[#allocation2 + $0xe0] sm:$0xff] }
 0x161   : > { %v1286_v48 = vpop.f32.mrf.mxu1 }
 0x162   : > { %1383 = vst [vmem:[#allocation2 + $0x30] sm:$0xff] %v1351_v42  ;;  %v1352_v51 = vadd.f32 %v1283_v45, %v550_v40  ;;  %v1287_v52 = vadd.f32 %v1286_v48, %v1173_v46  ;;  %v1175_v53 = vpop.f32.mrf.mxu0  ;;  %v564_v48 = vld [vmem:[#allocation2 + $0x90] sm:$0xff] }
 0x163   : > { %v1288_v57 = vpop.f32.mrf.mxu1 }
 0x164   : > { %1384 = vst [vmem:[#allocation2 + $0x48] sm:$0xff] %v1352_v51  ;;  %v1353_v58 = vadd.f32 %v1287_v52, %v551_v47  ;;  %v1289_v59 = vadd.f32 %v1288_v57, %v1175_v53  ;;  %v1177_v60 = vpop.f32.mrf.mxu0  ;;  %v565_v57 = vld [vmem:[#allocation2 + $0x70] sm:$0xff] }
 0x165   : > { %v1290_v0 = vpop.f32.mrf.mxu1 }
 0x166   : > { %1385 = vst [vmem:[#allocation2 + $0x80] sm:$0xff] %v1353_v58  ;;  %v1354_v1 = vadd.f32 %v1289_v59, %v552_v54  ;;  %v1291_v2 = vadd.f32 %v1290_v0, %v1177_v60  ;;  %v1179_v5 = vpop.f32.mrf.mxu0  ;;  %v566_v0 = vld [vmem:[#allocation2 + $0xc0] sm:$0xff] }
 0x167   : > { %v1292_v7 = vpop.f32.mrf.mxu1 }
 0x168   : > { %1386 = vst [vmem:[#allocation2 + $0x88] sm:$0xff] %v1354_v1  ;;  %v1355_v8 = vadd.f32 %v1291_v2, %v553_v63  ;;  %v1293_v11 = vadd.f32 %v1292_v7, %v1179_v5  ;;  %v1183_v12 = vpop.f32.mrf.mxu0  ;;  %v567_v7 = vld [vmem:[#allocation2 + $0xa8] sm:$0xff] }
 0x169   : > { %v1296_v14 = vpop.f32.mrf.mxu1 }
 0x16a   : > { %1387 = vst [vmem:[#allocation2 + $0xe8] sm:$0xff] %v1355_v8  ;;  %v1356_v17 = vadd.f32 %v1293_v11, %v554_v6  ;;  %v1297_v19 = vadd.f32 %v1296_v14, %v1183_v12  ;;  %v1185_v18 = vpop.f32.mrf.mxu0  ;;  %v568_v14 = vld [vmem:[#allocation2 + $0xd0] sm:$0xff] }
 0x16b   : > { %v1298_v37 = vpop.f32.mrf.mxu1 }
 0x16c   : > { %1388 = vst [vmem:[#allocation2 + $0xb8] sm:$0xff] %v1356_v17  ;;  %v1357_v38 = vadd.f32 %v1297_v19, %v555_v13  ;;  %v1299_v43 = vadd.f32 %v1298_v37, %v1185_v18  ;;  %v1187_v44 = vpop.f32.mrf.mxu0  ;;  %v569_v37 = vld [vmem:[#allocation2 + $0x10] sm:$0xff] }
 0x16d   : > { %v1300_v50 = vpop.f32.mrf.mxu1 }
 0x16e   : > { %1389 = vst [vmem:[#allocation2 + $0x60] sm:$0xff] %v1357_v38  ;;  %v1358_v55 = vadd.f32 %v1299_v43, %v556_v20  ;;  %v1301_v56 = vadd.f32 %v1300_v50, %v1187_v44  ;;  %v1189_v61 = vpop.f32.mrf.mxu0  ;;  %v570_v50 = vld [vmem:[#allocation2 + $0x28] sm:$0xff] }
 0x16f   : > { %v1302_v3 = vpop.f32.mrf.mxu1 }
 0x170   : > { %1390 = vst [vmem:[#allocation2 + $0xf0] sm:$0xff] %v1358_v55  ;;  %v1359_v4 = vadd.f32 %v1301_v56, %v557_v49  ;;  %v1303_v9 = vadd.f32 %v1302_v3, %v1189_v61  ;;  %v1193_v10 = vpop.f32.mrf.mxu0  ;;  %v571_v3 = vld [vmem:[#allocation2 + $0xa0] sm:$0xff] }
 0x171   : > { %v1306_v16 = vpop.f32.mrf.mxu1 }
 0x172   : > { %1391 = vst [vmem:[#allocation2 + $0x8] sm:$0xff] %v1359_v4  ;;  %v1360_v21 = vadd.f32 %v1303_v9, %v558_v62  ;;  %v1307_v22 = vadd.f32 %v1306_v16, %v1193_v10  ;;  %v1195_v23 = vpop.f32.mrf.mxu0  ;;  %v572_v16 = vld [vmem:[#allocation2 + $0xf8] sm:$0xff] }
 0x173   : > { %v1308_v25 = vpop.f32.mrf.mxu1 }
 0x174   : > { %1392 = vst [vmem:[#allocation2 + $0x78] sm:$0xff] %v1360_v21  ;;  %v1361_v26 = vadd.f32 %v1307_v22, %v559_v15  ;;  %v1309_v27 = vadd.f32 %v1308_v25, %v1195_v23  ;;  %v1197_v28 = vpop.f32.mrf.mxu0  ;;  %v573_v25 = vld [vmem:[#allocation2 + $0x20] sm:$0xff] }
 0x175   : > { %v1310_v30 = vpop.f32.mrf.mxu1 }
 0x176   : > { %1393 = vst [vmem:[#allocation2 + $0x38] sm:$0xff] %v1361_v26  ;;  %v1362_v31 = vadd.f32 %v1309_v27, %v560_v24  ;;  %v1311_v32 = vadd.f32 %v1310_v30, %v1197_v28  ;;  %v1199_v33 = vpop.f32.mrf.mxu0  ;;  %v574_v30 = vld [vmem:[#allocation2 + $0x98] sm:$0xff] }
 0x177   : > { %v1312_v35 = vpop.f32.mrf.mxu1 }
 0x178   : > { %1394 = vst [vmem:[#allocation2 + $0x58] sm:$0xff] %v1362_v31  ;;  %v1363_v36 = vadd.f32 %v1311_v32, %v561_v29  ;;  %v1313_v39 = vadd.f32 %v1312_v35, %v1199_v33  ;;  %v1203_v40 = vpop.f32.mrf.mxu0  ;;  %v1409_v35 = vld [vmem:[#allocation3 + $0x80] sm:$0xff] }
 0x179   : > { %v1316_v42 = vpop.f32.mrf.mxu1 }
 0x17a   : > { %1395 = vst [vmem:[#allocation2 + $0x40] sm:$0xff] %v1363_v36  ;;  %v1364_v45 = vadd.f32 %v1313_v39, %v562_v34  ;;  %v1317_v46 = vadd.f32 %v1316_v42, %v1203_v40  ;;  %v1205_v47 = vpop.f32.mrf.mxu0  ;;  %v1410_v42 = vld [vmem:[#allocation3 + $0xc8] sm:$0xff] }
 0x17b   : > { %v1318_v51 = vpop.f32.mrf.mxu1 }
 0x17c   : > { %1396 = vst [vmem:[#allocation2 + $0xc8] sm:$0xff] %v1364_v45  ;;  %v1365_v52 = vadd.f32 %v1317_v46, %v563_v41  ;;  %v1319_v53 = vadd.f32 %v1318_v51, %v1205_v47  ;;  %v1207_v54 = vpop.f32.mrf.mxu0  ;;  %v1411_v51 = vld [vmem:[#allocation3 + $0xe8] sm:$0xff] }
 0x17d   : > { %v1320_v58 = vpop.f32.mrf.mxu1 }
 0x17e   : > { %1397 = vst [vmem:[#allocation2 + $0xe0] sm:$0xff] %v1365_v52  ;;  %v1366_v59 = vadd.f32 %v1319_v53, %v564_v48  ;;  %v1321_v60 = vadd.f32 %v1320_v58, %v1207_v54  ;;  %v1209_v63 = vpop.f32.mrf.mxu0  ;;  %v1412_v58 = vld [vmem:[#allocation3 + $0x78] sm:$0xff] }
 0x17f   : > { %v1322_v1 = vpop.f32.mrf.mxu1 }
 0x180   : > { %1398 = vst [vmem:[#allocation2 + $0x90] sm:$0xff] %v1366_v59  ;;  %v1367_v2 = vadd.f32 %v1321_v60, %v565_v57  ;;  %v1323_v5 = vadd.f32 %v1322_v1, %v1209_v63  ;;  %v1213_v6 = vpop.f32.mrf.mxu0  ;;  %v1413_v1 = vld [vmem:[#allocation3 + $0x8] sm:$0xff] }
 0x181   : > { %v1326_v8 = vpop.f32.mrf.mxu1 }
 0x182   : > { %1399 = vst [vmem:[#allocation2 + $0x70] sm:$0xff] %v1367_v2  ;;  %v1368_v11 = vadd.f32 %v1323_v5, %v566_v0  ;;  %v1327_v12 = vadd.f32 %v1326_v8, %v1213_v6  ;;  %v1215_v13 = vpop.f32.mrf.mxu0  ;;  %v1414_v8 = vld [vmem:[#allocation3 + $0x90] sm:$0xff] }
 0x183   : > { %v1328_v17 = vpop.f32.mrf.mxu1 }
 0x184   : > { %1400 = vst [vmem:[#allocation2 + $0xc0] sm:$0xff] %v1368_v11  ;;  %v1369_v19 = vadd.f32 %v1327_v12, %v567_v7  ;;  %v1329_v18 = vadd.f32 %v1328_v17, %v1215_v13  ;;  %v1217_v20 = vpop.f32.mrf.mxu0  ;;  %v1415_v17 = vld [vmem:[#allocation3 + $0x58] sm:$0xff] }
 0x185   : > { %v1330_v38 = vpop.f32.mrf.mxu1 }
 0x186   : > { %1401 = vst [vmem:[#allocation2 + $0xa8] sm:$0xff] %v1369_v19  ;;  %v1370_v43 = vadd.f32 %v1329_v18, %v568_v14  ;;  %v1331_v44 = vadd.f32 %v1330_v38, %v1217_v20  ;;  %v1219_v49 = vpop.f32.mrf.mxu0  ;;  %v1416_v38 = vld [vmem:[#allocation3 + $0xa8] sm:$0xff] }
 0x187   : > { %v1332_v55 = vpop.f32.mrf.mxu1 }
 0x188   : > { %1402 = vst [vmem:[#allocation2 + $0xd0] sm:$0xff] %v1370_v43  ;;  %v1371_v56 = vadd.f32 %v1331_v44, %v569_v37  ;;  %v1333_v61 = vadd.f32 %v1332_v55, %v1219_v49  ;;  %v1223_v62 = vpop.f32.mrf.mxu0  ;;  %v1417_v55 = vld [vmem:[#allocation3 + $0xd0] sm:$0xff] }
 0x189   : > { %v1336_v4 = vpop.f32.mrf.mxu1 }
 0x18a   : > { %1403 = vst [vmem:[#allocation2 + $0x10] sm:$0xff] %v1371_v56  ;;  %v1372_v9 = vadd.f32 %v1333_v61, %v570_v50  ;;  %v1337_v10 = vadd.f32 %v1336_v4, %v1223_v62  ;;  %v1225_v15 = vpop.f32.mrf.mxu0  ;;  %v1418_v4 = vld [vmem:[#allocation3 + $0xb0] sm:$0xff] }
 0x18b   : > { %v1338_v21 = vpop.f32.mrf.mxu1 }
 0x18c   : > { %1404 = vst [vmem:[#allocation2 + $0x28] sm:$0xff] %v1372_v9  ;;  %v1373_v22 = vadd.f32 %v1337_v10, %v571_v3  ;;  %v1339_v23 = vadd.f32 %v1338_v21, %v1225_v15  ;;  %v1227_v24 = vpop.f32.mrf.mxu0  ;;  %v1419_v21 = vld [vmem:[#allocation3 + $0x38] sm:$0xff] }
 0x18d   : > { %v1340_v26 = vpop.f32.mrf.mxu1 }
 0x18e   : > { %1405 = vst [vmem:[#allocation2 + $0xa0] sm:$0xff] %v1373_v22  ;;  %v1374_v27 = vadd.f32 %v1339_v23, %v572_v16  ;;  %v1341_v28 = vadd.f32 %v1340_v26, %v1227_v24  ;;  %v1229_v29 = vpop.f32.mrf.mxu0  ;;  %v1420_v26 = vld [vmem:[#allocation3 + $0x40] sm:$0xff] }
 0x18f   : > { %v1342_v31 = vpop.f32.mrf.mxu1 }
 0x190   : > { %1406 = vst [vmem:[#allocation2 + $0xf8] sm:$0xff] %v1374_v27  ;;  %v1375_v32 = vadd.f32 %v1341_v28, %v573_v25  ;;  %v1343_v33 = vadd.f32 %v1342_v31, %v1229_v29  ;;  %v1859_v34 = vpop.f32.mrf.mxu0  ;;  %v1421_v31 = vld [vmem:[#allocation3 + $0xe0] sm:$0xff] }
 0x191   : > { %v1972_v36 = vpop.f32.mrf.mxu1 }
 0x192   : > { %1407 = vst [vmem:[#allocation2 + $0x20] sm:$0xff] %v1375_v32  ;;  %v1376_v39 = vadd.f32 %v1343_v33, %v574_v30  ;;  %v1973_v40 = vadd.f32 %v1972_v36, %v1859_v34  ;;  %v1861_v41 = vpop.f32.mrf.mxu0  ;;  %v1422_v36 = vld [vmem:[#allocation3 + $0x60] sm:$0xff] }
 0x193   : > { %v1974_v45 = vpop.f32.mrf.mxu1 }
 0x194   : > { %1408 = vst [vmem:[#allocation2 + $0x98] sm:$0xff] %v1376_v39  ;;  %v2051_v46 = vadd.f32 %v1973_v40, %v1409_v35  ;;  %v1975_v47 = vadd.f32 %v1974_v45, %v1861_v41  ;;  %v1863_v48 = vpop.f32.mrf.mxu0  ;;  %v1423_v45 = vld [vmem:[#allocation3 + $0x18] sm:$0xff] }
 0x195   : > { %v1976_v52 = vpop.f32.mrf.mxu1 }
 0x196   : > { %2083 = vst [vmem:[#allocation3 + $0x80] sm:$0xff] %v2051_v46  ;;  %v2052_v53 = vadd.f32 %v1975_v47, %v1410_v42  ;;  %v1977_v54 = vadd.f32 %v1976_v52, %v1863_v48  ;;  %v1865_v57 = vpop.f32.mrf.mxu0  ;;  %v1424_v52 = vld [vmem:[#allocation3 + $0x68] sm:$0xff] }
 0x197   : > { %v1978_v59 = vpop.f32.mrf.mxu1 }
 0x198   : > { %2084 = vst [vmem:[#allocation3 + $0xc8] sm:$0xff] %v2052_v53  ;;  %v2053_v60 = vadd.f32 %v1977_v54, %v1411_v51  ;;  %v1979_v63 = vadd.f32 %v1978_v59, %v1865_v57  ;;  %v1869_v0 = vpop.f32.mrf.mxu0  ;;  %v1425_v59 = vld [vmem:[#allocation3 + $0x10] sm:$0xff] }
 0x199   : > { %v1982_v2 = vpop.f32.mrf.mxu1 }
 0x19a   : > { %2085 = vst [vmem:[#allocation3 + $0xe8] sm:$0xff] %v2053_v60  ;;  %v2054_v5 = vadd.f32 %v1979_v63, %v1412_v58  ;;  %v1983_v6 = vadd.f32 %v1982_v2, %v1869_v0  ;;  %v1871_v7 = vpop.f32.mrf.mxu0  ;;  %v1426_v2 = vld [vmem:[#allocation3 + $0x70] sm:$0xff] }
 0x19b   : > { %v1984_v11 = vpop.f32.mrf.mxu1 }
 0x19c   : > { %2086 = vst [vmem:[#allocation3 + $0x78] sm:$0xff] %v2054_v5  ;;  %v2055_v12 = vadd.f32 %v1983_v6, %v1413_v1  ;;  %v1985_v13 = vadd.f32 %v1984_v11, %v1871_v7  ;;  %v1873_v14 = vpop.f32.mrf.mxu0  ;;  %v1427_v11 = vld [vmem:[#allocation3 + $0x50] sm:$0xff] }
 0x19d   : > { %v1986_v19 = vpop.f32.mrf.mxu1 }
 0x19e   : > { %2087 = vst [vmem:[#allocation3 + $0x8] sm:$0xff] %v2055_v12  ;;  %v2056_v18 = vadd.f32 %v1985_v13, %v1414_v8  ;;  %v1987_v20 = vadd.f32 %v1986_v19, %v1873_v14  ;;  %v1875_v37 = vpop.f32.mrf.mxu0  ;;  %v1428_v19 = vld [vmem:[#allocation3 + $0xa0] sm:$0xff] }
 0x19f   : > { %v1988_v43 = vpop.f32.mrf.mxu1 }
 0x1a0   : > { %2088 = vst [vmem:[#allocation3 + $0x90] sm:$0xff] %v2056_v18  ;;  %v2057_v44 = vadd.f32 %v1987_v20, %v1415_v17  ;;  %v1989_v49 = vadd.f32 %v1988_v43, %v1875_v37  ;;  %v1879_v50 = vpop.f32.mrf.mxu0  ;;  %v1429_v43 = vld [vmem:[#allocation3 + $0xd8] sm:$0xff] }
 0x1a1   : > { %v1992_v56 = vpop.f32.mrf.mxu1 }
 0x1a2   : > { %2089 = vst [vmem:[#allocation3 + $0x58] sm:$0xff] %v2057_v44  ;;  %v2058_v61 = vadd.f32 %v1989_v49, %v1416_v38  ;;  %v1993_v62 = vadd.f32 %v1992_v56, %v1879_v50  ;;  %v1881_v3 = vpop.f32.mrf.mxu0  ;;  %v1430_v56 = vld [vmem:[#allocation3 + $0x30] sm:$0xff] }
 0x1a3   : > { %v1994_v9 = vpop.f32.mrf.mxu1 }
 0x1a4   : > { %2090 = vst [vmem:[#allocation3 + $0xa8] sm:$0xff] %v2058_v61  ;;  %v2059_v10 = vadd.f32 %v1993_v62, %v1417_v55  ;;  %v1995_v15 = vadd.f32 %v1994_v9, %v1881_v3  ;;  %v1883_v16 = vpop.f32.mrf.mxu0  ;;  %v1431_v9 = vld [vmem:[#allocation3 + $0x20] sm:$0xff] }
 0x1a5   : > { %v1996_v22 = vpop.f32.mrf.mxu1 }
 0x1a6   : > { %2091 = vst [vmem:[#allocation3 + $0xd0] sm:$0xff] %v2059_v10  ;;  %v2060_v23 = vadd.f32 %v1995_v15, %v1418_v4  ;;  %v1997_v24 = vadd.f32 %v1996_v22, %v1883_v16  ;;  %v1885_v25 = vpop.f32.mrf.mxu0  ;;  %v1432_v22 = vld [vmem:[#allocation3 + $0xf0] sm:$0xff] }
 0x1a7   : > { %v1998_v27 = vpop.f32.mrf.mxu1 }
 0x1a8   : > { %2092 = vst [vmem:[#allocation3 + $0xb0] sm:$0xff] %v2060_v23  ;;  %v2061_v28 = vadd.f32 %v1997_v24, %v1419_v21  ;;  %v1999_v29 = vadd.f32 %v1998_v27, %v1885_v25  ;;  %v1889_v30 = vpop.f32.mrf.mxu0  ;;  %v1433_v27 = vld [vmem:[#allocation3 + $0x88] sm:$0xff] }
 0x1a9   : > { %v2002_v32 = vpop.f32.mrf.mxu1 }
 0x1aa   : > { %2093 = vst [vmem:[#allocation3 + $0x38] sm:$0xff] %v2061_v28  ;;  %v2062_v33 = vadd.f32 %v1999_v29, %v1420_v26  ;;  %v2003_v34 = vadd.f32 %v2002_v32, %v1889_v30  ;;  %v1891_v35 = vpop.f32.mrf.mxu0  ;;  %v1434_v32 = vld [vmem:[#allocation3 + $0x48] sm:$0xff] }
 0x1ab   : > { %v2004_v39 = vpop.f32.mrf.mxu1 }
 0x1ac   : > { %2094 = vst [vmem:[#allocation3 + $0x40] sm:$0xff] %v2062_v33  ;;  %v2063_v40 = vadd.f32 %v2003_v34, %v1421_v31  ;;  %v2005_v41 = vadd.f32 %v2004_v39, %v1891_v35  ;;  %v1893_v42 = vpop.f32.mrf.mxu0  ;;  %v1435_v39 = vld [vmem:[#allocation3 + $0xf8] sm:$0xff] }
 0x1ad   : > { %v2006_v46 = vpop.f32.mrf.mxu1 }
 0x1ae   : > { %2095 = vst [vmem:[#allocation3 + $0xe0] sm:$0xff] %v2063_v40  ;;  %v2064_v47 = vadd.f32 %v2005_v41, %v1422_v36  ;;  %v2007_v48 = vadd.f32 %v2006_v46, %v1893_v42  ;;  %v1895_v51 = vpop.f32.mrf.mxu0  ;;  %v1436_v46 = vld [vmem:[#allocation3 + $0xc0] sm:$0xff] }
 0x1af   : > { %v2008_v53 = vpop.f32.mrf.mxu1 }
 0x1b0   : > { %2096 = vst [vmem:[#allocation3 + $0x60] sm:$0xff] %v2064_v47  ;;  %v2065_v54 = vadd.f32 %v2007_v48, %v1423_v45  ;;  %v2009_v57 = vadd.f32 %v2008_v53, %v1895_v51  ;;  %v1899_v58 = vpop.f32.mrf.mxu0  ;;  %v1437_v53 = vld [vmem:[#allocation3 + $0xb8] sm:$0xff] }
 0x1b1   : > { %v2012_v60 = vpop.f32.mrf.mxu1 }
 0x1b2   : > { %2097 = vst [vmem:[#allocation3 + $0x18] sm:$0xff] %v2065_v54  ;;  %v2066_v63 = vadd.f32 %v2009_v57, %v1424_v52  ;;  %v2013_v0 = vadd.f32 %v2012_v60, %v1899_v58  ;;  %v1901_v1 = vpop.f32.mrf.mxu0  ;;  %v1438_v60 = vld [vmem:[#allocation3] sm:$0xff] }
 0x1b3   : > { %v2014_v5 = vpop.f32.mrf.mxu1 }
 0x1b4   : > { %2098 = vst [vmem:[#allocation3 + $0x68] sm:$0xff] %v2066_v63  ;;  %v2067_v6 = vadd.f32 %v2013_v0, %v1425_v59  ;;  %v2015_v7 = vadd.f32 %v2014_v5, %v1901_v1  ;;  %v1903_v8 = vpop.f32.mrf.mxu0  ;;  %v1439_v5 = vld [vmem:[#allocation3 + $0x28] sm:$0xff] }
 0x1b5   : > { %v2016_v12 = vpop.f32.mrf.mxu1 }
 0x1b6   : > { %2099 = vst [vmem:[#allocation3 + $0x10] sm:$0xff] %v2067_v6  ;;  %v2068_v13 = vadd.f32 %v2015_v7, %v1426_v2  ;;  %v2017_v14 = vadd.f32 %v2016_v12, %v1903_v8  ;;  %v1905_v17 = vpop.f32.mrf.mxu0  ;;  %v1440_v12 = vld [vmem:[#allocation3 + $0x98] sm:$0xff] }
 0x1b7   : > { %v2018_v18 = vpop.f32.mrf.mxu1 }
 0x1b8   : > { %2100 = vst [vmem:[#allocation3 + $0x70] sm:$0xff] %v2068_v13  ;;  %v2069_v20 = vadd.f32 %v2017_v14, %v1427_v11  ;;  %v2019_v37 = vadd.f32 %v2018_v18, %v1905_v17  ;;  %v1909_v38 = vpop.f32.mrf.mxu0 }
 0x1b9   : > { %v2022_v44 = vpop.f32.mrf.mxu1 }
 0x1ba   : > { %2101 = vst [vmem:[#allocation3 + $0x50] sm:$0xff] %v2069_v20  ;;  %v2070_v49 = vadd.f32 %v2019_v37, %v1428_v19  ;;  %v2023_v50 = vadd.f32 %v2022_v44, %v1909_v38  ;;  %v1911_v55 = vpop.f32.mrf.mxu0 }
 0x1bb   : > { %v2024_v61 = vpop.f32.mrf.mxu1 }
 0x1bc   : > { %2102 = vst [vmem:[#allocation3 + $0xa0] sm:$0xff] %v2070_v49  ;;  %v2071_v62 = vadd.f32 %v2023_v50, %v1429_v43  ;;  %v2025_v3 = vadd.f32 %v2024_v61, %v1911_v55  ;;  %v1913_v4 = vpop.f32.mrf.mxu0 }
 0x1bd   : > { %v2026_v10 = vpop.f32.mrf.mxu1 }
 0x1be   : > { %2103 = vst [vmem:[#allocation3 + $0xd8] sm:$0xff] %v2071_v62  ;;  %v2072_v15 = vadd.f32 %v2025_v3, %v1430_v56  ;;  %v2027_v16 = vadd.f32 %v2026_v10, %v1913_v4  ;;  %v1915_v21 = vpop.f32.mrf.mxu0 }
 0x1bf   : > { %v2028_v23 = vpop.f32.mrf.mxu1 }
 0x1c0   : > { %2104 = vst [vmem:[#allocation3 + $0x30] sm:$0xff] %v2072_v15  ;;  %v2073_v24 = vadd.f32 %v2027_v16, %v1431_v9  ;;  %v2029_v25 = vadd.f32 %v2028_v23, %v1915_v21  ;;  %v1919_v26 = vpop.f32.mrf.mxu0 }
 0x1c1   : > { %v2032_v28 = vpop.f32.mrf.mxu1 }
 0x1c2   : > { %2105 = vst [vmem:[#allocation3 + $0x20] sm:$0xff] %v2073_v24  ;;  %v2074_v29 = vadd.f32 %v2029_v25, %v1432_v22  ;;  %v2033_v30 = vadd.f32 %v2032_v28, %v1919_v26  ;;  %v1921_v31 = vpop.f32.mrf.mxu0 }
 0x1c3   : > { %v2034_v33 = vpop.f32.mrf.mxu1 }
 0x1c4   : > { %2106 = vst [vmem:[#allocation3 + $0xf0] sm:$0xff] %v2074_v29  ;;  %v2075_v34 = vadd.f32 %v2033_v30, %v1433_v27  ;;  %v2035_v35 = vadd.f32 %v2034_v33, %v1921_v31  ;;  %v1923_v36 = vpop.f32.mrf.mxu0 }
 0x1c5   : > { %v2036_v40 = vpop.f32.mrf.mxu1 }
 0x1c6   : > { %2107 = vst [vmem:[#allocation3 + $0x88] sm:$0xff] %v2075_v34  ;;  %v2076_v41 = vadd.f32 %v2035_v35, %v1434_v32  ;;  %v2037_v42 = vadd.f32 %v2036_v40, %v1923_v36  ;;  %v1925_v45 = vpop.f32.mrf.mxu0 }
 0x1c7   : > { %v2038_v47 = vpop.f32.mrf.mxu1 }
 0x1c8   : > { %2108 = vst [vmem:[#allocation3 + $0x48] sm:$0xff] %v2076_v41  ;;  %v2077_v48 = vadd.f32 %v2037_v42, %v1435_v39  ;;  %v2039_v51 = vadd.f32 %v2038_v47, %v1925_v45  ;;  %v1929_v52 = vpop.f32.mrf.mxu0 }
 0x1c9   : > { %v2042_v54 = vpop.f32.mrf.mxu1 }
 0x1ca   : > { %2109 = vst [vmem:[#allocation3 + $0xf8] sm:$0xff] %v2077_v48  ;;  %v2078_v57 = vadd.f32 %v2039_v51, %v1436_v46  ;;  %v2043_v58 = vadd.f32 %v2042_v54, %v1929_v52  ;;  %v1931_v59 = vpop.f32.mrf.mxu0 }
 0x1cb   : > { %v2044_v63 = vpop.f32.mrf.mxu1 }
 0x1cc   : > { %2110 = vst [vmem:[#allocation3 + $0xc0] sm:$0xff] %v2078_v57  ;;  %v2079_v0 = vadd.f32 %v2043_v58, %v1437_v53  ;;  %v2045_v1 = vadd.f32 %v2044_v63, %v1931_v59  ;;  %v1933_v2 = vpop.f32.mrf.mxu0 }
 0x1cd   : > { %v2046_v6 = vpop.f32.mrf.mxu1 }
 0x1ce   : > { %2111 = vst [vmem:[#allocation3 + $0xb8] sm:$0xff] %v2079_v0  ;;  %v2080_v7 = vadd.f32 %v2045_v1, %v1438_v60  ;;  %v2047_v8 = vadd.f32 %v2046_v6, %v1933_v2  ;;  %v1935_v11 = vpop.f32.mrf.mxu0 }
 0x1cf   : > { %v2048_v13 = vpop.f32.mrf.mxu1 }
 0x1d0   : > { %2112 = vst [vmem:[#allocation3] sm:$0xff] %v2080_v7  ;;  %v2081_v14 = vadd.f32 %v2047_v8, %v1439_v5  ;;  %v2049_v17 = vadd.f32 %v2048_v13, %v1935_v11  ;;  %2118 = sbr.rel (%p2925_p11) target bundleno = 556 (0x22c), region = 67 }
 0x1d2   : > { %2113 = vst [vmem:[#allocation3 + $0x28] sm:$0xff] %v2081_v14  ;;  %v2082_v19 = vadd.f32 %v2049_v17, %v1440_v12 }
 0x1d4   : > { %2114 = vst [vmem:[#allocation3 + $0x98] sm:$0xff] %v2082_v19 }
 0x1d5   : > { %v2151_v18 = vld [vmem:[#allocation3 + $0x80] sm:$0xff]  ;;  %v2152_v20 = vld [vmem:[#allocation3 + $0xc8] sm:$0xff]  ;;  %v2154_v44 = vld [vmem:[#allocation3 + $0x78] sm:$0xff] }
 0x1d6   : > { %v2926_v37 = vmul.f32 -1.442695, %v2151_v18  ;;  %v2927_v38 = vmul.f32 -1.442695, %v2152_v20  ;;  %v2153_v43 = vld [vmem:[#allocation3 + $0xe8] sm:$0xff]  ;;  %v2156_v56 = vld [vmem:[#allocation3 + $0x90] sm:$0xff] }
 0x1d7   : > { %v2928_v49 = vmul.f32 -1.442695, %v2153_v43  ;;  %v2929_v50 = vmul.f32 -1.442695, %v2154_v44  ;;  %v2155_v55 = vld [vmem:[#allocation3 + $0x8] sm:$0xff]  ;;  %v2157_v3 = vld [vmem:[#allocation3 + $0x58] sm:$0xff] }
 0x1d8   : > { %3278 = vpow2.f32 %v2926_v37  ;;  %v2930_v61 = vmul.f32 -1.442695, %v2155_v55  ;;  %v2931_v62 = vmul.f32 -1.442695, %v2156_v56  ;;  %v2158_v4 = vld [vmem:[#allocation3 + $0xa8] sm:$0xff]  ;;  %v2159_v15 = vld [vmem:[#allocation3 + $0xd0] sm:$0xff] }
 0x1d9   : > { %3280 = vpow2.f32 %v2927_v38  ;;  %v2932_v9 = vmul.f32 -1.442695, %v2157_v3  ;;  %v2933_v10 = vmul.f32 -1.442695, %v2158_v4  ;;  %v2160_v16 = vld [vmem:[#allocation3 + $0xb0] sm:$0xff]  ;;  %v2161_v23 = vld [vmem:[#allocation3 + $0x38] sm:$0xff] }
 0x1da   : > { %3282 = vpow2.f32 %v2928_v49  ;;  %v2934_v21 = vmul.f32 -1.442695, %v2159_v15  ;;  %v2935_v22 = vmul.f32 -1.442695, %v2160_v16  ;;  %v2162_v24 = vld [vmem:[#allocation3 + $0x40] sm:$0xff]  ;;  %v2165_v31 = vld [vmem:[#allocation3 + $0x18] sm:$0xff] }
 0x1db   : > { %3284 = vpow2.f32 %v2929_v50  ;;  %v2936_v25 = vmul.f32 -1.442695, %v2161_v23  ;;  %v2937_v26 = vmul.f32 -1.442695, %v2162_v24  ;;  %v2163_v27 = vld [vmem:[#allocation3 + $0xe0] sm:$0xff]  ;;  %v2166_v32 = vld [vmem:[#allocation3 + $0x68] sm:$0xff] }
 0x1dc   : > { %3286 = vpow2.f32 %v2930_v61  ;;  %v2164_v28 = vld [vmem:[#allocation3 + $0x60] sm:$0xff]  ;;  %v2938_v29 = vmul.f32 -1.442695, %v2163_v27  ;;  %v2940_v33 = vmul.f32 -1.442695, %v2165_v31  ;;  %v3945_v51 = vld [vmem:[%s4115_s3 + $0x8] sm:$0xff] }
 0x1dd   : > { %3288 = vpow2.f32 %v2931_v62  ;;  %v2939_v30 = vmul.f32 -1.442695, %v2164_v28  ;;  %v2941_v34 = vmul.f32 -1.442695, %v2166_v32  ;;  %v3940_v45 = vld [vmem:[%s4115_s3] sm:$0xff]  ;;  %v3950_v54 = vld [vmem:[%s4115_s3 + $0x10] sm:$0xff]  ;;  %v2425_v1 = vunpack.c.l.bf16 %v3945_v51 }
 0x1de   : > { %3290 = vpow2.f32 %v2932_v9  ;;  %v2423_v58 = vunpack.c.l.bf16 %v3940_v45  ;;  %v3956_v60 = vld [vmem:[%s4115_s3 + $0x18] sm:$0xff]  ;;  %v2424_v0 = vunpack.c.h.bf16 %v3940_v45  ;;  %v3963_v5 = vld [vmem:[%s4115_s3 + $0x20] sm:$0xff]  ;;  %v2426_v7 = vunpack.c.h.bf16 %v3945_v51  ;;  %v3970_v12 = vld [vmem:[%s4115_s3 + $0x28] sm:$0xff] }
 0x1df   : > { %3292 = vpow2.f32 %v2933_v10  ;;  %v2427_v8 = vunpack.c.l.bf16 %v3950_v54  ;;  %v2428_v14 = vunpack.c.h.bf16 %v3950_v54  ;;  %v2429_v17 = vunpack.c.l.bf16 %v3956_v60  ;;  %v3977_v18 = vld [vmem:[%s4115_s3 + $0x30] sm:$0xff]  ;;  %v3986_v61 = vld [vmem:[%s4115_s3 + $0x38] sm:$0xff]  ;;  %v2120_v28 = vld [vmem:[#allocation2] sm:$0xff] }
 0x1e0   : > { %3294 = vpow2.f32 %v2934_v21  ;;  %v2430_v37 = vunpack.c.h.bf16 %v3956_v60  ;;  %v2431_v43 = vunpack.c.l.bf16 %v3963_v5  ;;  %v2167_v44 = vld [vmem:[#allocation3 + $0x10] sm:$0xff]  ;;  %v2432_v50 = vunpack.c.h.bf16 %v3963_v5 }
 0x1e1   : > { %3296 = vpow2.f32 %v2935_v22  ;;  %v2433_v56 = vunpack.c.l.bf16 %v3970_v12  ;;  %v2168_v62 = vld [vmem:[#allocation3 + $0x70] sm:$0xff]  ;;  %v2434_v9 = vunpack.c.h.bf16 %v3970_v12  ;;  %v2435_v10 = vunpack.c.l.bf16 %v3977_v18 }
 0x1e2   : > { %3298 = vpow2.f32 %v2936_v25  ;;  %v2169_v15 = vld [vmem:[#allocation3 + $0x50] sm:$0xff]  ;;  %v2436_v23 = vunpack.c.h.bf16 %v3977_v18  ;;  %v2942_v24 = vmul.f32 -1.442695, %v2167_v44  ;;  %v2170_v25 = vld [vmem:[#allocation3 + $0xa0] sm:$0xff]  ;;  %v2943_v31 = vmul.f32 -1.442695, %v2168_v62 }
 0x1e3   : > { %3300 = vpow2.f32 %v2937_v26  ;;  %v2119_v21 = vld [vmem:[#allocation2 + $0xb0] sm:$0xff]  ;;  %v2171_v26 = vld [vmem:[#allocation3 + $0xd8] sm:$0xff] }
 0x1e4   : > { %3302 = vpow2.f32 %v2938_v29  ;;  %v2172_v32 = vld [vmem:[#allocation3 + $0x30] sm:$0xff] }
 0x1e5   : > { %v3279_v35 = vpop.eup %3278  ;;  %3304 = vpow2.f32 %v2939_v30  ;;  %v2437_v30 = vunpack.c.l.bf16 %v3986_v61 }
 0x1e6   : > { %v3281_v36 = vpop.eup %3280  ;;  %v2279_v39 = vadd.f32 1.0, %v3279_v35  ;;  %3306 = vpow2.f32 %v2940_v33  ;;  %v2173_v33 = vld [vmem:[#allocation3 + $0x20] sm:$0xff]  ;;  %v2121_v35 = vld [vmem:[#allocation2 + $0xd8] sm:$0xff] }
 0x1e7   : > { %v3283_v40 = vpop.eup %3282  ;;  %v2280_v41 = vadd.f32 1.0, %v3281_v36  ;;  %3308 = vpow2.f32 %v2941_v34 }
 0x1e8   : > { %v3285_v42 = vpop.eup %3284  ;;  %3310 = vrcp.f32 %v2279_v39  ;;  %v2281_v46 = vadd.f32 1.0, %v3283_v40  ;;  %v2438_v39 = vunpack.c.h.bf16 %v3986_v61  ;;  %v2944_v40 = vmul.f32 -1.442695, %v2169_v15 }
 0x1e9   : > { %v3287_v47 = vpop.eup %3286  ;;  %3312 = vrcp.f32 %v2280_v41  ;;  %v2282_v48 = vadd.f32 1.0, %v3285_v42  ;;  %v2174_v41 = vld [vmem:[#allocation3 + $0xf0] sm:$0xff]  ;;  %v2175_v42 = vld [vmem:[#allocation3 + $0x88] sm:$0xff] }
 0x1ea   : > { %v3289_v52 = vpop.eup %3288  ;;  %3314 = vrcp.f32 %v2281_v46  ;;  %v2283_v53 = vadd.f32 1.0, %v3287_v47  ;;  %v2950_v44 = vmul.f32 -1.442695, %v2175_v42 }
 0x1eb   : > { %v3291_v57 = vpop.eup %3290  ;;  %3316 = vrcp.f32 %v2282_v48  ;;  %v2284_v59 = vadd.f32 1.0, %v3289_v52  ;;  %v2945_v48 = vmul.f32 -1.442695, %v2170_v25  ;;  %v2946_v52 = vmul.f32 -1.442695, %v2171_v26  ;;  %v2125_v25 = vld [vmem:[#allocation2 + $0x30] sm:$0xff] }
 0x1ec   : > { %v3293_v63 = vpop.eup %3292  ;;  %3318 = vrcp.f32 %v2283_v53  ;;  %v2285_v2 = vadd.f32 1.0, %v3291_v57  ;;  %v2176_v53 = vld [vmem:[#allocation3 + $0x48] sm:$0xff] }
 0x1ed   : > { %v3295_v6 = vpop.eup %3294  ;;  %3320 = vrcp.f32 %v2284_v59  ;;  %v2286_v11 = vadd.f32 1.0, %v3293_v63  ;;  %v2122_v63 = vld [vmem:[#allocation2 + $0x18] sm:$0xff]  ;;  %v2951_v15 = vmul.f32 -1.442695, %v2176_v53  ;;  %v2181_v53 = vld [vmem:[#allocation3 + $0x28] sm:$0xff] }
 0x1ee   : > { %v3297_v13 = vpop.eup %3296  ;;  %3322 = vrcp.f32 %v2285_v2  ;;  %v2287_v19 = vadd.f32 1.0, %v3295_v6  ;;  %v2947_v2 = vmul.f32 -1.442695, %v2172_v32  ;;  %v2948_v6 = vmul.f32 -1.442695, %v2173_v33  ;;  %v2126_v33 = vld [vmem:[#allocation2 + $0x48] sm:$0xff] }
 0x1ef   : > { %v3299_v20 = vpop.eup %3298  ;;  %3324 = vrcp.f32 %v2286_v11  ;;  %v2288_v38 = vadd.f32 1.0, %v3297_v13  ;;  %v2177_v11 = vld [vmem:[#allocation3 + $0xf8] sm:$0xff] }
 0x1f0   : > { %v3301_v49 = vpop.eup %3300  ;;  %3326 = vrcp.f32 %v2287_v19  ;;  %v2289_v55 = vadd.f32 1.0, %v3299_v20  ;;  %v2123_v20 = vld [vmem:[#allocation2 + $0x50] sm:$0xff]  ;;  %v2952_v26 = vmul.f32 -1.442695, %v2177_v11 }
 0x1f1   : > { %v3303_v3 = vpop.eup %3302  ;;  %3328 = vrcp.f32 %v2288_v38  ;;  %v2290_v4 = vadd.f32 1.0, %v3301_v49  ;;  %v2949_v38 = vmul.f32 -1.442695, %v2174_v41  ;;  %v2178_v49 = vld [vmem:[#allocation3 + $0xc0] sm:$0xff] }
 0x1f2   : > { %v3305_v16 = vpop.eup %3304  ;;  %3330 = vrcp.f32 %v2289_v55  ;;  %v2291_v22 = vadd.f32 1.0, %v3303_v3 }
 0x1f3   : > { %v3307_v27 = vpop.eup %3306  ;;  %3332 = vrcp.f32 %v2290_v4  ;;  %v2292_v29 = vadd.f32 1.0, %v3305_v16  ;;  %v2124_v4 = vld [vmem:[#allocation2 + $0x68] sm:$0xff] }
 0x1f4   : > { %v3309_v34 = vpop.eup %3308  ;;  %3334 = vrcp.f32 %v2291_v22  ;;  %v2293_v36 = vadd.f32 1.0, %v3307_v27  ;;  %v2179_v27 = vld [vmem:[#allocation3 + $0xb8] sm:$0xff] }
 0x1f5   : > { %v3311_v46 = vpop.eup %3310  ;;  %3336 = vrcp.f32 %v2292_v29  ;;  %v2294_v47 = vadd.f32 1.0, %v3309_v34 }
 0x1f6   : > { %v3313_v57 = vpop.eup %3312  ;;  %v2375_v59 = vmul.f32 %v3311_v46, %v2119_v21  ;;  %3338 = vrcp.f32 %v2293_v36  ;;  %v2180_v36 = vld [vmem:[#allocation3] sm:$0xff]  ;;  %v2128_v46 = vld [vmem:[#allocation2 + $0x88] sm:$0xff] }
 0x1f7   : > { %v3315_v13 = vpop.eup %3314  ;;  %v2376_v19 = vmul.f32 %v3313_v57, %v2120_v28  ;;  %3340 = vrcp.f32 %v2294_v47 }
 0x1f8   : > { %v3317_v55 = vpop.eup %3316  ;;  %v2455_v62 = vadd.f32 %v2423_v58, %v2375_v59  ;;  %v2377_v3 = vmul.f32 %v3315_v13, %v2121_v35  ;;  %3342 = vpow2.f32 %v2942_v24  ;;  %v2953_v58 = vmul.f32 -1.442695, %v2178_v49 }
 0x1f9   : > { %v3319_v16 = vpop.eup %3318  ;;  %v2456_v21 = vadd.f32 %v2424_v0, %v2376_v19  ;;  %v2378_v22 = vmul.f32 %v3317_v55, %v2122_v63  ;;  %3344 = vpow2.f32 %v2943_v31  ;;  %v2127_v0 = vld [vmem:[#allocation2 + $0x80] sm:$0xff]  ;;  %v2955_v63 = vmul.f32 -1.442695, %v2180_v36  ;;  %v2182_v19 = vld [vmem:[#allocation3 + $0x98] sm:$0xff] }
 0x1fa   : > { %v3321_v28 = vpop.eup %3320  ;;  %v2457_v29 = vadd.f32 %v2425_v1, %v2377_v3  ;;  %v2379_v32 = vmul.f32 %v3319_v16, %v2123_v20  ;;  %3346 = vpow2.f32 %v2944_v40  ;;  %v2954_v1 = vmul.f32 -1.442695, %v2179_v27 }
 0x1fb   : > { %v3323_v34 = vpop.eup %3322  ;;  %v2981_v24 = vpack.c.bf16 %v2456_v21, %v2455_v62  ;;  %v2458_v35 = vadd.f32 %v2426_v7, %v2378_v22  ;;  %v2380_v45 = vmul.f32 %v3321_v28, %v2124_v4  ;;  %3348 = vpow2.f32 %v2945_v48  ;;  %v2129_v48 = vld [vmem:[#allocation2 + $0xe8] sm:$0xff]  ;;  %v2134_v21 = vld [vmem:[#allocation2 + $0x78] sm:$0xff] }
 0x1fc   : > { %v3325_v31 = vpop.eup %3324  ;;  %v2459_v41 = vadd.f32 %v2427_v8, %v2379_v32  ;;  %v2381_v42 = vmul.f32 %v3323_v34, %v2125_v25  ;;  %3350 = vpow2.f32 %v2946_v52  ;;  %v2130_v52 = vld [vmem:[#allocation2 + $0xb8] sm:$0xff]  ;;  %v2956_v55 = vmul.f32 -1.442695, %v2181_v53 }
 0x1fd   : > { %v3327_v47 = vpop.eup %3326  ;;  %2583 = vst [vmem:[%s4116_s4] sm:$0xff] %v2981_v24  ;;  %v2982_v40 = vpack.c.bf16 %v2458_v35, %v2457_v29  ;;  %v2460_v51 = vadd.f32 %v2428_v14, %v2380_v45  ;;  %v2382_v7 = vmul.f32 %v3325_v31, %v2126_v33  ;;  %3352 = vpow2.f32 %v2947_v2  ;;  %v2131_v2 = vld [vmem:[#allocation2 + $0x60] sm:$0xff] }
 0x1fe   : > { %v3329_v57 = vpop.eup %3328  ;;  %v2461_v8 = vadd.f32 %v2429_v17, %v2381_v42  ;;  %v2383_v59 = vmul.f32 %v3327_v47, %v2127_v0  ;;  %3354 = vpow2.f32 %v2948_v6  ;;  %v2132_v6 = vld [vmem:[#allocation2 + $0xf0] sm:$0xff] }
 0x1ff   : > { %v3331_v11 = vpop.eup %3330  ;;  %2584 = vst [vmem:[%s4116_s4 + $0x8] sm:$0xff] %v2982_v40  ;;  %v2983_v13 = vpack.c.bf16 %v2460_v51, %v2459_v41  ;;  %v2462_v54 = vadd.f32 %v2430_v37, %v2382_v7  ;;  %v2384_v14 = vmul.f32 %v3329_v57, %v2128_v46  ;;  %3356 = vpow2.f32 %v2949_v38  ;;  %v2133_v38 = vld [vmem:[#allocation2 + $0x8] sm:$0xff]  ;;  %v2415_v57 = vld [vmem:[%s4115_s3 + $0x40] sm:$0xff] }
 0x200   : > { %v3333_v20 = vpop.eup %3332  ;;  %v2463_v17 = vadd.f32 %v2431_v43, %v2383_v59  ;;  %v2385_v49 = vmul.f32 %v3331_v11, %v2129_v48  ;;  %3358 = vpow2.f32 %v2950_v44  ;;  %v2957_v44 = vmul.f32 -1.442695, %v2182_v19  ;;  %v2135_v11 = vld [vmem:[#allocation2 + $0x38] sm:$0xff] }
 0x201   : > { %v3335_v62 = vpop.eup %3334  ;;  %2585 = vst [vmem:[%s4116_s4 + $0x10] sm:$0xff] %v2983_v13  ;;  %v2984_v3 = vpack.c.bf16 %v2462_v54, %v2461_v8  ;;  %v2464_v60 = vadd.f32 %v2432_v50, %v2384_v14  ;;  %v2386_v37 = vmul.f32 %v3333_v20, %v2130_v52  ;;  %3360 = vpow2.f32 %v2951_v15  ;;  %v2416_v13 = vld [vmem:[%s4115_s3 + $0x48] sm:$0xff] }
 0x202   : > { %v3337_v4 = vpop.eup %3336  ;;  %v2465_v43 = vadd.f32 %v2433_v56, %v2385_v49  ;;  %v2387_v16 = vmul.f32 %v3335_v62, %v2131_v2  ;;  %3362 = vpow2.f32 %v2952_v26  ;;  %v2136_v2 = vld [vmem:[#allocation2 + $0x58] sm:$0xff]  ;;  %v2439_v19 = vunpack.c.l.bf16 %v2415_v57 }
 0x203   : > { %v3339_v22 = vpop.eup %3338  ;;  %2586 = vst [vmem:[%s4116_s4 + $0x18] sm:$0xff] %v2984_v3  ;;  %v2985_v25 = vpack.c.bf16 %v2464_v60, %v2463_v17  ;;  %v2466_v5 = vadd.f32 %v2434_v9, %v2386_v37  ;;  %v2388_v50 = vmul.f32 %v3337_v4, %v2132_v6  ;;  %3364 = vpow2.f32 %v2953_v58  ;;  %v2137_v6 = vld [vmem:[#allocation2 + $0x40] sm:$0xff]  ;;  %v2138_v37 = vld [vmem:[#allocation2 + $0xc8] sm:$0xff] }
 0x204   : > { %v3341_v15 = vpop.eup %3340  ;;  %v2467_v27 = vadd.f32 %v2435_v10, %v2387_v16  ;;  %v2389_v56 = vmul.f32 %v3339_v22, %v2133_v38  ;;  %3366 = vpow2.f32 %v2954_v1  ;;  %v2440_v49 = vunpack.c.h.bf16 %v2415_v57  ;;  %v2146_v57 = vld [vmem:[#allocation2 + $0x28] sm:$0xff] }
 0x205   : > { %v3343_v28 = vpop.eup %3342  ;;  %2587 = vst [vmem:[%s4116_s4 + $0x20] sm:$0xff] %v2985_v25  ;;  %v2986_v26 = vpack.c.bf16 %v2466_v5, %v2465_v43  ;;  %v2468_v29 = vadd.f32 %v2436_v23, %v2388_v50  ;;  %v2390_v32 = vmul.f32 %v3341_v15, %v2134_v21  ;;  %3368 = vpow2.f32 %v2955_v63  ;;  %v2139_v21 = vld [vmem:[#allocation2 + $0xe0] sm:$0xff]  ;;  %v2140_v50 = vld [vmem:[#allocation2 + $0x90] sm:$0xff] }
 0x206   : > { %v3345_v12 = vpop.eup %3344  ;;  %v2469_v9 = vadd.f32 %v2437_v30, %v2389_v56  ;;  %v2295_v33 = vadd.f32 1.0, %v3343_v28  ;;  %3370 = vpow2.f32 %v2956_v55  ;;  %v2417_v55 = vld [vmem:[%s4115_s3 + $0x50] sm:$0xff]  ;;  %v2441_v38 = vunpack.c.l.bf16 %v2416_v13 }
 0x207   : > { %v3347_v10 = vpop.eup %3346  ;;  %2588 = vst [vmem:[%s4116_s4 + $0x28] sm:$0xff] %v2986_v26  ;;  %v2987_v58 = vpack.c.bf16 %v2468_v29, %v2467_v27  ;;  %v2470_v34 = vadd.f32 %v2438_v39, %v2390_v32  ;;  %v2296_v24 = vadd.f32 1.0, %v3345_v12  ;;  %3372 = vpow2.f32 %v2957_v44  ;;  %v2418_v44 = vld [vmem:[%s4115_s3 + $0x58] sm:$0xff]  ;;  %v2141_v29 = vld [vmem:[#allocation2 + $0x70] sm:$0xff]  ;;  %v2419_v32 = vld [vmem:[%s4115_s3 + $0x60] sm:$0xff] }
 0x208   : > { %v3349_v18 = vpop.eup %3348  ;;  %3374 = vrcp.f32 %v2295_v33  ;;  %v2297_v23 = vadd.f32 1.0, %v3347_v10  ;;  %v2442_v16 = vunpack.c.h.bf16 %v2416_v13  ;;  %v2443_v15 = vunpack.c.l.bf16 %v2417_v55  ;;  %v2142_v10 = vld [vmem:[#allocation2 + $0xc0] sm:$0xff] }
 0x209   : > { %v3351_v35 = vpop.eup %3350  ;;  %2589 = vst [vmem:[%s4116_s4 + $0x30] sm:$0xff] %v2987_v58  ;;  %v2988_v30 = vpack.c.bf16 %v2470_v34, %v2469_v9  ;;  %3376 = vrcp.f32 %v2296_v24  ;;  %v2298_v45 = vadd.f32 1.0, %v3349_v18  ;;  %v2444_v26 = vunpack.c.h.bf16 %v2417_v55 }
 0x20a   : > { %v3353_v0 = vpop.eup %3352  ;;  %3378 = vrcp.f32 %v2297_v23  ;;  %v2299_v36 = vadd.f32 1.0, %v3351_v35  ;;  %v2445_v58 = vunpack.c.l.bf16 %v2418_v44  ;;  %v2446_v35 = vunpack.c.h.bf16 %v2418_v44 }
 0x20b   : > { %v3355_v31 = vpop.eup %3354  ;;  %2590 = vst [vmem:[%s4116_s4 + $0x38] sm:$0xff] %v2988_v30  ;;  %3380 = vrcp.f32 %v2298_v45  ;;  %v2300_v61 = vadd.f32 1.0, %v3353_v0  ;;  %v2143_v30 = vld [vmem:[#allocation2 + $0xa8] sm:$0xff] }
 0x20c   : > { %v3357_v39 = vpop.eup %3356  ;;  %3382 = vrcp.f32 %v2299_v36  ;;  %v2301_v41 = vadd.f32 1.0, %v3355_v31  ;;  %v2420_v45 = vld [vmem:[%s4115_s3 + $0x68] sm:$0xff] }
 0x20d   : > { %v3359_v42 = vpop.eup %3358  ;;  %3384 = vrcp.f32 %v2300_v61  ;;  %v2302_v46 = vadd.f32 1.0, %v3357_v39  ;;  %v2144_v61 = vld [vmem:[#allocation2 + $0xd0] sm:$0xff]  ;;  %v2447_v39 = vunpack.c.l.bf16 %v2419_v32  ;;  %v2450_v13 = vunpack.c.h.bf16 %v2420_v45 }
 0x20e   : > { %v3361_v1 = vpop.eup %3360  ;;  %3386 = vrcp.f32 %v2301_v41  ;;  %v2303_v47 = vadd.f32 1.0, %v3359_v42 }
 0x20f   : > { %v3363_v40 = vpop.eup %3362  ;;  %3388 = vrcp.f32 %v2302_v46  ;;  %v2304_v51 = vadd.f32 1.0, %v3361_v1 }
 0x210   : > { %v3365_v7 = vpop.eup %3364  ;;  %3390 = vrcp.f32 %v2303_v47  ;;  %v2305_v48 = vadd.f32 1.0, %v3363_v40  ;;  %v2448_v47 = vunpack.c.h.bf16 %v2419_v32  ;;  %v2145_v40 = vld [vmem:[#allocation2 + $0x10] sm:$0xff] }
 0x211   : > { %v3367_v53 = vpop.eup %3366  ;;  %3392 = vrcp.f32 %v2304_v51  ;;  %v2306_v8 = vadd.f32 1.0, %v3365_v7  ;;  %v2421_v51 = vld [vmem:[%s4115_s3 + $0x70] sm:$0xff] }
 0x212   : > { %v3369_v59 = vpop.eup %3368  ;;  %3394 = vrcp.f32 %v2305_v48  ;;  %v2307_v52 = vadd.f32 1.0, %v3367_v53 }
 0x213   : > { %v3371_v63 = vpop.eup %3370  ;;  %3396 = vrcp.f32 %v2306_v8  ;;  %v2308_v54 = vadd.f32 1.0, %v3369_v59  ;;  %v2449_v8 = vunpack.c.l.bf16 %v2420_v45 }
 0x214   : > { %v3373_v14 = vpop.eup %3372  ;;  %3398 = vrcp.f32 %v2307_v52  ;;  %v2309_v20 = vadd.f32 1.0, %v3371_v63 }
 0x215   : > { %v3375_v17 = vpop.eup %3374  ;;  %3400 = vrcp.f32 %v2308_v54  ;;  %v2310_v62 = vadd.f32 1.0, %v3373_v14  ;;  %v2147_v54 = vld [vmem:[#allocation2 + $0xa0] sm:$0xff]  ;;  %v2422_v14 = vld [vmem:[%s4115_s3 + $0x78] sm:$0xff] }
 0x216   : > { %v3377_v3 = vpop.eup %3376  ;;  %v2391_v60 = vmul.f32 %v3375_v17, %v2135_v11  ;;  %3402 = vrcp.f32 %v2309_v20  ;;  %v2148_v17 = vld [vmem:[#allocation2 + $0xf8] sm:$0xff] }
 0x217   : > { %v3379_v4 = vpop.eup %3378  ;;  %v2392_v43 = vmul.f32 %v3377_v3, %v2136_v2  ;;  %3404 = vrcp.f32 %v2310_v62 }
 0x218   : > { %v3381_v22 = vpop.eup %3380  ;;  %v2471_v25 = vadd.f32 %v2439_v19, %v2391_v60  ;;  %v2393_v5 = vmul.f32 %v3379_v4, %v2137_v6  ;;  %v2452_v60 = vunpack.c.h.bf16 %v2421_v51 }
 0x219   : > { %v3383_v27 = vpop.eup %3382  ;;  %v2472_v56 = vadd.f32 %v2440_v49, %v2392_v43  ;;  %v2394_v28 = vmul.f32 %v3381_v22, %v2138_v37  ;;  %v2451_v49 = vunpack.c.l.bf16 %v2421_v51  ;;  %v2149_v37 = vld [vmem:[#allocation2 + $0x20] sm:$0xff] }
 0x21a   : > { %v3385_v12 = vpop.eup %3384  ;;  %v2473_v9 = vadd.f32 %v2441_v38, %v2393_v5  ;;  %v2395_v33 = vmul.f32 %v3383_v27, %v2139_v21  ;;  %v2453_v21 = vunpack.c.l.bf16 %v2422_v14 }
 0x21b   : > { %v3387_v34 = vpop.eup %3386  ;;  %v2989_v24 = vpack.c.bf16 %v2472_v56, %v2471_v25  ;;  %v2474_v18 = vadd.f32 %v2442_v16, %v2394_v28  ;;  %v2396_v23 = vmul.f32 %v3385_v12, %v2140_v50  ;;  %v2150_v16 = vld [vmem:[#allocation2 + $0x98] sm:$0xff]  ;;  %v2454_v50 = vunpack.c.h.bf16 %v2422_v14 }
 0x21c   : > { %v3389_v0 = vpop.eup %3388  ;;  %v2475_v36 = vadd.f32 %v2443_v15, %v2395_v33  ;;  %v2397_v31 = vmul.f32 %v3387_v34, %v2141_v29 }
 0x21d   : > { %v3391_v41 = vpop.eup %3390  ;;  %2591 = vst [vmem:[%s4116_s4 + $0x40] sm:$0xff] %v2989_v24  ;;  %v2990_v42 = vpack.c.bf16 %v2474_v18, %v2473_v9  ;;  %v2476_v46 = vadd.f32 %v2444_v26, %v2396_v23  ;;  %v2398_v1 = vmul.f32 %v3389_v0, %v2142_v10 }
 0x21e   : > { %v3393_v7 = vpop.eup %3392  ;;  %v2477_v48 = vadd.f32 %v2445_v58, %v2397_v31  ;;  %v2399_v53 = vmul.f32 %v3391_v41, %v2143_v30 }
 0x21f   : > { %v3395_v59 = vpop.eup %3394  ;;  %2592 = vst [vmem:[%s4116_s4 + $0x48] sm:$0xff] %v2990_v42  ;;  %v2991_v52 = vpack.c.bf16 %v2476_v46, %v2475_v36  ;;  %v2478_v63 = vadd.f32 %v2446_v35, %v2398_v1  ;;  %v2400_v11 = vmul.f32 %v3393_v7, %v2144_v61 }
 0x220   : > { %v3397_v2 = vpop.eup %3396  ;;  %v2479_v19 = vadd.f32 %v2447_v39, %v2399_v53  ;;  %v2401_v20 = vmul.f32 %v3395_v59, %v2145_v40 }
 0x221   : > { %v3399_v6 = vpop.eup %3398  ;;  %2593 = vst [vmem:[%s4116_s4 + $0x50] sm:$0xff] %v2991_v52  ;;  %v2992_v55 = vpack.c.bf16 %v2478_v63, %v2477_v48  ;;  %v2480_v62 = vadd.f32 %v2448_v47, %v2400_v11  ;;  %v2402_v3 = vmul.f32 %v3397_v2, %v2146_v57 }
 0x222   : > { %v3401_v38 = vpop.eup %3400  ;;  %v2481_v4 = vadd.f32 %v2449_v8, %v2401_v20  ;;  %v2403_v43 = vmul.f32 %v3399_v6, %v2147_v54 }
 0x223   : > { %v3403_v44 = vpop.eup %3402  ;;  %2594 = vst [vmem:[%s4116_s4 + $0x58] sm:$0xff] %v2992_v55  ;;  %v2993_v22 = vpack.c.bf16 %v2480_v62, %v2479_v19  ;;  %v2482_v25 = vadd.f32 %v2450_v13, %v2402_v3  ;;  %v2404_v5 = vmul.f32 %v3401_v38, %v2148_v17 }
 0x224   : > { %v3405_v15 = vpop.eup %3404  ;;  %v2483_v27 = vadd.f32 %v2451_v49, %v2403_v43  ;;  %v2405_v56 = vmul.f32 %v3403_v44, %v2149_v37 }
 0x225   : > { %2595 = vst [vmem:[%s4116_s4 + $0x60] sm:$0xff] %v2993_v22  ;;  %v2994_v28 = vpack.c.bf16 %v2482_v25, %v2481_v4  ;;  %v2484_v26 = vadd.f32 %v2452_v60, %v2404_v5  ;;  %v2406_v29 = vmul.f32 %v3405_v15, %v2150_v16 }
 0x226   : > { %v2485_v32 = vadd.f32 %v2453_v21, %v2405_v56 }
 0x227   : > { %2596 = vst [vmem:[%s4116_s4 + $0x68] sm:$0xff] %v2994_v28  ;;  %v2995_v12 = vpack.c.bf16 %v2484_v26, %v2483_v27  ;;  %v2486_v9 = vadd.f32 %v2454_v50, %v2406_v29 }
 0x229   : > { %2597 = vst [vmem:[%s4116_s4 + $0x70] sm:$0xff] %v2995_v12  ;;  %v2996_v33 = vpack.c.bf16 %v2486_v9, %v2485_v32 }
 0x22b   : > { %2598 = vst [vmem:[%s4116_s4 + $0x78] sm:$0xff] %v2996_v33 }
 0x22c PF: > { %s14_s19 = sadd.s32 1, %s3444_s19   ;;  %s4117_s15 = smov %s3432_s16 }
 0x22d   : > { %p11_p12 = scmp.ge.s32.totalorder %s14_s19, 7   ;;  %s4118_s16 = smov %s3507_s23 }
 0x22e   : > { %s4119_s17 = smov %s3440_s18  ;;  %s4120_s18 = smov %s4122_s20 }
 0x22f   :  { %13 = sbr.rel (!%p11_p12) target bundleno = 3 (0x3), region = 111 }

// kernel: model_forward.55
= control target key start
LH: loop header
LB: loop body
LE: loop exit
PB: predicated region body
PF: predicated region fallthrough
CT: control target
= control target key end

     0   :  { %s390_s9 = smov 0   ;;  %s423_s0 = inlined_call_operand.vmem [shape: f32[32,8], index: 0, kind: input, shape index: {}]   ;;  %s424_s1 = inlined_call_operand.vmem [shape: bf16[64,8,5], index: 1, kind: input, shape index: {}]   ;;  %s425_s2 = inlined_call_operand.vmem [shape: bf16[64,32,5], index: 2, kind: output, shape index: {}]  }
   0x1 LB: > { %s321_s10 = sadd.s32 4294967295, %s373_s9   ;;  %p325_p0 = scmp.ge.s32.totalorder %s373_s9, 1  ;;  %s373_s9 = sphi %s390_s9, %s12_s9  }
   0x2   : > { %p111_p1 = scmp.lt.s32.totalorder %s373_s9, 65 }
   0x4   : > { %p112_p2 = pnand %p325_p0, %p111_p1 }
   0x5   : > { %p132_p3 = scmp.lt.s32.totalorder (!%p112_p2), %s321_s10, 63 }
   0x6   : > { %115 = sbr.rel (%p112_p2) target bundleno = 217 (0xd9), region = 28 }
   0xb   : > { %v141_v0 = vld [vmem:[%s423_s0] sm:$0xff]  ;;  %vm147_vm0 = vcmask 64512   ;;  %v143_v1 = vld [vmem:[%s423_s0 + $0x10] sm:$0xff]  ;;  %s427_s10 = smov (!%p132_p3, %s321_s10), 63  ;;  %v142_v4 = vld [vmem:[%s423_s0 + $0x8] sm:$0xff]  ;;  %vm261_vm1 = vcmask 35840  }
   0xc   : > { %351 = vmatprep.mubr.msk.f32.mxu0 %vm147_vm0, %v141_v0  ;;  %354 = vmatprep.mubr.msk.f32.mxu1 %vm147_vm0, %v143_v1  ;;  %s326_s15 = sshll.u32 %s427_s10, 2  ;;  %v144_v5 = vld [vmem:[%s423_s0 + $0x18] sm:$0xff]  ;;  %s339_s23 = sshll.u32 %s427_s10, 4 }
   0xd   : > { %s135_s18 = scalar_lea.vmem %s424_s1, %s326_s15  ;;  %s140_s26 = scalar_lea.vmem %s425_s2, %s339_s23 }
   0xe   : > { %v145_v2 = vld [vmem:[%s135_s18] sm:$0xf] }
   0xf   : > { %v146_v3 = vunpack.c.l.bf16 %v145_v2 }
  0x11   : > { %349 = vmatprep.subr.mxu0 %v146_v3  ;;  %357 = vmatprep.subr.mxu1 %v146_v3 }
  0x12   : > { %350 = vmatpush3.msra.mxu0 %v146_v3  ;;  %358 = vmatpush3.msra.mxu1 %v146_v3 }
  0x13   : > { %352 = vmatmul.mubr.msk.f32.vlgmr.msra.gmra.mxu0 %vm147_vm0, %v142_v4  ;;  %355 = vmatmul.mubr.msk.f32.vlgmr.msra.gmra.mxu1 %vm147_vm0, %v144_v5 }
  0xd3   : > { %v353_v6 = vpop.f32.mrf.mxu0  ;;  %v356_v7 = vpop.f32.mrf.mxu1 }
  0xd4   : > { %v341_v8 = vpack.c.bf16 %v353_v6, %v353_v6  ;;  %v343_v9 = vpack.c.bf16 %v356_v7, %v356_v7 }
  0xd5   : > { %v226_v10 = vpop.f32.mrf.mxu0  ;;  %v236_v11 = vpop.f32.mrf.mxu1 }
  0xd6   : > { %263 = vst.msk [vmem:[%s140_s26 + $0x4] sm:$0xf] %vm261_vm1, %v341_v8  ;;  %265 = vst.msk [vmem:[%s140_s26 + $0xc] sm:$0xf] %vm261_vm1, %v343_v9  ;;  %v340_v12 = vpack.c.bf16 %v226_v10, %v226_v10  ;;  %v342_v13 = vpack.c.bf16 %v236_v11, %v236_v11 }
  0xd8   : > { %262 = vst.msk [vmem:[%s140_s26] sm:$0xf] %vm261_vm1, %v340_v12  ;;  %264 = vst.msk [vmem:[%s140_s26 + $0x8] sm:$0xf] %vm261_vm1, %v342_v13 }
  0xd9 PF: > { %s12_s9 = sadd.s32 1, %s373_s9  }
  0xda   : > { %p9_p4 = scmp.ge.s32.totalorder %s12_s9, 66  }
  0xdc   :  { %11 = sbr.rel (!%p9_p4) target bundleno = 1 (0x1), region = 58 }

// kernel: model_forward.54
= control target key start
LH: loop header
LB: loop body
LE: loop exit
PB: predicated region body
PF: predicated region fallthrough
CT: control target
= control target key end

     0   :  { %s390_s9 = smov 0   ;;  %s423_s0 = inlined_call_operand.vmem [shape: f32[32,8], index: 0, kind: input, shape index: {}]   ;;  %s424_s1 = inlined_call_operand.vmem [shape: bf16[2,8,40], index: 1, kind: input, shape index: {}]   ;;  %s425_s2 = inlined_call_operand.vmem [shape: bf16[2,32,40], index: 2, kind: output, shape index: {}]  }
   0x1 LB: > { %s321_s10 = sadd.s32 4294967295, %s373_s9   ;;  %p325_p0 = scmp.ge.s32.totalorder %s373_s9, 1  ;;  %s373_s9 = sphi %s390_s9, %s12_s9  }
   0x2   : > { %p111_p1 = scmp.lt.s32.totalorder %s373_s9, 3 }
   0x4   : > { %p112_p2 = pnand %p325_p0, %p111_p1 }
   0x5   : > { %p132_p3 = scmp.lt.s32.totalorder (!%p112_p2), %s321_s10, 1 }
   0x6   : > { %115 = sbr.rel (%p112_p2) target bundleno = 217 (0xd9), region = 28 }
   0xb   : > { %v141_v0 = vld [vmem:[%s423_s0] sm:$0xff]  ;;  %vm147_vm0 = vcmask 64512   ;;  %v143_v1 = vld [vmem:[%s423_s0 + $0x10] sm:$0xff]  ;;  %s427_s10 = smov (!%p132_p3, %s321_s10), 1  ;;  %v142_v4 = vld [vmem:[%s423_s0 + $0x8] sm:$0xff]  ;;  %vm261_vm1 = vcmask 322560  }
   0xc   : > { %351 = vmatprep.mubr.msk.f32.mxu0 %vm147_vm0, %v141_v0  ;;  %354 = vmatprep.mubr.msk.f32.mxu1 %vm147_vm0, %v143_v1  ;;  %s326_s15 = sshll.u32 %s427_s10, 2  ;;  %v144_v5 = vld [vmem:[%s423_s0 + $0x18] sm:$0xff]  ;;  %s339_s23 = sshll.u32 %s427_s10, 4 }
   0xd   : > { %s135_s18 = scalar_lea.vmem %s424_s1, %s326_s15  ;;  %s140_s26 = scalar_lea.vmem %s425_s2, %s339_s23 }
   0xe   : > { %v145_v2 = vld [vmem:[%s135_s18] sm:$0xf] }
   0xf   : > { %v146_v3 = vunpack.c.l.bf16 %v145_v2 }
  0x11   : > { %349 = vmatprep.subr.mxu0 %v146_v3  ;;  %357 = vmatprep.subr.mxu1 %v146_v3 }
  0x12   : > { %350 = vmatpush3.msra.mxu0 %v146_v3  ;;  %358 = vmatpush3.msra.mxu1 %v146_v3 }
  0x13   : > { %352 = vmatmul.mubr.msk.f32.vlgmr.msra.gmra.mxu0 %vm147_vm0, %v142_v4  ;;  %355 = vmatmul.mubr.msk.f32.vlgmr.msra.gmra.mxu1 %vm147_vm0, %v144_v5 }
  0xd3   : > { %v353_v6 = vpop.f32.mrf.mxu0  ;;  %v356_v7 = vpop.f32.mrf.mxu1 }
  0xd4   : > { %v341_v8 = vpack.c.bf16 %v353_v6, %v353_v6  ;;  %v343_v9 = vpack.c.bf16 %v356_v7, %v356_v7 }
  0xd5   : > { %v226_v10 = vpop.f32.mrf.mxu0  ;;  %v236_v11 = vpop.f32.mrf.mxu1 }
  0xd6   : > { %263 = vst.msk [vmem:[%s140_s26 + $0x4] sm:$0xf] %vm261_vm1, %v341_v8  ;;  %265 = vst.msk [vmem:[%s140_s26 + $0xc] sm:$0xf] %vm261_vm1, %v343_v9  ;;  %v340_v12 = vpack.c.bf16 %v226_v10, %v226_v10  ;;  %v342_v13 = vpack.c.bf16 %v236_v11, %v236_v11 }
  0xd8   : > { %262 = vst.msk [vmem:[%s140_s26] sm:$0xf] %vm261_vm1, %v340_v12  ;;  %264 = vst.msk [vmem:[%s140_s26 + $0x8] sm:$0xf] %vm261_vm1, %v342_v13 }
  0xd9 PF: > { %s12_s9 = sadd.s32 1, %s373_s9  }
  0xda   : > { %p9_p4 = scmp.ge.s32.totalorder %s12_s9, 4  }
  0xdc   :  { %11 = sbr.rel (!%p9_p4) target bundleno = 1 (0x1), region = 58 }

</bundles_post_ra>
